<compile_context>
chip_gen: v7x
topology: tpu7x:2x2x1
jax: 0.10.0
libtpu: 0.0.40
codegen_flags: <defaults>
</compile_context>

<pallas_src>
import jax
import jax.numpy as jnp
from jax import lax
from jax.experimental import pallas as pl
from jax.experimental.pallas import tpu as pltpu

GROUPS = 32
EPS = 1e-6


# ---------------------------------------------------------------------------
# Fused kernel factory: ResBlock + scale/shift branches + SFT fuse, per sample.
# ---------------------------------------------------------------------------
def _make_fuseblock_kernel(H, W, Ci, Co, fuse_w):
    M = H * W

    def build_masks():
        """Validity masks (1, M) for the 8 shifted taps (center tap needs none)."""
        m = lax.broadcasted_iota(jnp.int32, (1, M), 1).astype(jnp.float32)
        row = jnp.floor(m * (1.0 / W))
        col = m - row * W
        masks = {}
        for dy in (-1, 0, 1):
            rok = (row >= 1.0) if dy < 0 else ((row <= float(H - 2)) if dy > 0 else None)
            for dx in (-1, 0, 1):
                if dy == 0 and dx == 0:
                    continue
                cok = (col >= 1.0) if dx < 0 else ((col <= float(W - 2)) if dx > 0 else None)
                if rok is None:
                    valid = cok
                elif cok is None:
                    valid = rok
                else:
                    valid = jnp.logical_and(rok, cok)
                masks[(dy, dx)] = valid
        return masks

    def conv3x3(x, w9_ref, bias, masks, acc0=None):
        """3x3 same-pad conv on (Cin, M) f32 via 9 lane-rolled taps, f32 accumulation.
        w9_ref: (9, Cout, Cin) bf16 Ref; bias: (Cout, 1) f32."""
        cout = w9_ref.shape[1]
        acc = jnp.zeros((cout, M), jnp.float32) if acc0 is None else acc0
        t = 0
        for dy in (-1, 0, 1):
            for dx in (-1, 0, 1):
                d = dy * W + dx
                if d == 0:
                    tap = x
                else:
                    # shifted[c, m] = x[c, m + d]; image-boundary wrap is masked off.
                    tap = pltpu.roll(x, (-d) % M, axis=1)
                    tap = jnp.where(masks[(dy, dx)], tap, 0.0)
                # TODO(synk): roll a pre-cast bf16 copy instead (halves roll traffic) once
                # packed-16-bit lane rotates are confirmed on the target toolchain.
                acc = acc + jnp.dot(w9_ref[t], tap.astype(jnp.bfloat16),
                                    preferred_element_type=jnp.float32)
                t += 1
        return acc + bias

    def gn_swish(x, p_ref, gamma, beta):
        """GroupNorm(32, eps, affine) + swish on (C, M); groups = contiguous channel blocks."""
        c = x.shape[0]
        inv_cnt = 1.0 / float(M * (c // GROUPS))
        P = p_ref[...]                                               # (C, C) bf16 0/1
        gsum = jnp.dot(P, x.astype(jnp.bfloat16),
                       preferred_element_type=jnp.float32)           # group sums, bcast per ch
        mean = jnp.sum(gsum, axis=1, keepdims=True) * inv_cnt        # (C, 1) f32
        xc = x - mean
        g2 = jnp.dot(P, (xc * xc).astype(jnp.bfloat16),
                     preferred_element_type=jnp.float32)
        var = jnp.sum(g2, axis=1, keepdims=True) * inv_cnt
        y = xc * lax.rsqrt(var + EPS)
        y = y * gamma + beta
        return y * jax.nn.sigmoid(y)                                  # swish

    def kernel(x_ref, dec_ref,
               p1_ref, g1_ref, b1_ref, w1_ref, c1b_ref,
               p2_ref, g2_ref, b2_ref, w2_ref, wsk_ref, c2b_ref,
               wss_ref, ssb_ref, wst_ref, stb_ref,
               o_ref):
        x = x_ref[0].astype(jnp.float32)          # (2Ci, M) = cat([enc, dec], channel)
        dec = dec_ref[0].astype(jnp.float32)      # (Ci,  M)
        masks = build_masks()

        # ---- encode_enc = ResBlock(2*in_ch -> out_ch) ----
        h = gn_swish(x, p1_ref, g1_ref[...], b1_ref[...])
        h = conv3x3(h, w1_ref, c1b_ref[...], masks)                   # (Co, M)
        h = gn_swish(h, p2_ref, g2_ref[...], b2_ref[...])
        # 1x1 skip conv folded in as conv2's initial accumulator (biases pre-summed).
        skip = jnp.dot(wsk_ref[...], x.astype(jnp.bfloat16),
                       preferred_element_type=jnp.float32)
        enc = conv3x3(h, w2_ref, c2b_ref[...], masks, acc0=skip)      # (Co, M)

        # ---- SFT head: scale0/shift0 merged along Cout; scale2/shift2 block-diagonal ----
        ss = conv3x3(enc, wss_ref, ssb_ref[...], masks)               # (2Co, M)
        ss = jnp.where(ss >= 0.0, ss, 0.2 * ss)                       # LeakyReLU(0.2)
        st = conv3x3(ss, wst_ref, stb_ref[...], masks)                # (2Co, M)
        s = st[:Co]                                                   # scale branch output
        t = st[Co:]                                                   # shift branch output

        # ---- SFT fuse: out = dec + w * (dec * scale + shift) ----
        out = dec + fuse_w * (dec * s + t)
        o_ref[0] = out.astype(o_ref.dtype)

    return kernel


# ---------------------------------------------------------------------------
# Wrapper: weight repacking (OIHW -> per-tap bf16) + single pallas_call.
# ---------------------------------------------------------------------------
def fuseblock_forward(p, encft, decft, w=1.0):
    """encft, decft: (N, in_ch, H, W) NCHW (as in the PyTorch module). Returns NCHW."""
    N, Ci, H, W = encft.shape
    Co = p["conv1_b"].shape[0]
    C2 = 2 * Ci
    M = H * W
    assert Ci == Co, "Fuseblock needs in_ch == out_ch (scale/shift convs read ResBlock output)"
    assert C2 % GROUPS == 0 and Co % GROUPS == 0, "GroupNorm(32) needs channels divisible by 32"

    x = jnp.concatenate([encft, decft], axis=1).reshape(N, C2, M)
    dec = decft.reshape(N, Ci, M)

    def taps(w_oihw):                      # (Cout, Cin, 3, 3) -> (9, Cout, Cin) bf16
        co, ci = w_oihw.shape[:2]
        return jnp.transpose(w_oihw, (2, 3, 0, 1)).reshape(9, co, ci).astype(jnp.bfloat16)

    def colv(b):                           # (C,) -> (C, 1) f32
        return b.reshape(-1, 1).astype(jnp.float32)

    def group_mat(c):                      # (C, C) 0/1 same-group indicator, bf16
        g = jnp.arange(c, dtype=jnp.int32) // (c // GROUPS)
        return (g[:, None] == g[None, :]).astype(jnp.bfloat16)

    # scale0/shift0 share their input -> exact merge along Cout.
    wss = jnp.concatenate([p["scale0_w"], p["shift0_w"]], axis=0)        # (2Co, Ci, 3, 3)
    bss = jnp.concatenate([p["scale0_b"], p["shift0_b"]], axis=0)
    # scale2/shift2 have independent inputs -> block-diagonal merge (zero blocks are cheap
    # MXU filler; halves the per-tap roll/mask passes and matmul count).
    z = jnp.zeros_like(p["scale2_w"])
    wst = jnp.concatenate([jnp.concatenate([p["scale2_w"], z], axis=1),
                           jnp.concatenate([z, p["shift2_w"]], axis=1)], axis=0)
    bst = jnp.concatenate([p["scale2_b"], p["shift2_b"]], axis=0)

    args = [
        x, dec,
        group_mat(C2), colv(p["norm1_g"]), colv(p["norm1_b"]),
        taps(p["conv1_w"]), colv(p["conv1_b"]),
        group_mat(Co), colv(p["norm2_g"]), colv(p["norm2_b"]),
        taps(p["conv2_w"]),
        p["conv_out_w"].reshape(Co, C2).astype(jnp.bfloat16),
        colv(p["conv2_b"] + p["conv_out_b"]),
        taps(wss), colv(bss),
        taps(wst), colv(bst),
    ]

    kernel = _make_fuseblock_kernel(H, W, Ci, Co, float(w))

    def const_spec(a):
        nd = a.ndim
        return pl.BlockSpec(a.shape, lambda n, _nd=nd: (0,) * _nd)

    in_specs = [pl.BlockSpec((1, C2, M), lambda n: (n, 0, 0)),
                pl.BlockSpec((1, Ci, M), lambda n: (n, 0, 0))]
    in_specs += [const_spec(a) for a in args[2:]]
    out_spec = pl.BlockSpec((1, Co, M), lambda n: (n, 0, 0))

    out = pl.pallas_call(
        kernel,
        out_shape=jax.ShapeDtypeStruct((N, Co, M), decft.dtype),
        grid=(N,),
        in_specs=in_specs,
        out_specs=out_spec,
        compiler_params=pltpu.CompilerParams(
            dimension_semantics=("parallel",),
            vmem_limit_bytes=32 * 1024 * 1024),
    )(*args)

    return out.reshape(N, Co, H, W)


# ---------------------------------------------------------------------------
# Pure-JAX f32 reference (NCHW / OIHW, HIGHEST precision) for the sanity check.
# ---------------------------------------------------------------------------
def _ref_conv(x, wt, b):
    k = wt.shape[-1]
    pad = [(1, 1), (1, 1)] if k == 3 else [(0, 0), (0, 0)]
    y = lax.conv_general_dilated(x, wt, (1, 1), pad,
                                 dimension_numbers=("NCHW", "OIHW", "NCHW"),
                                 precision=lax.Precision.HIGHEST)
    return y + b.reshape(1, -1, 1, 1)


def _ref_gn_swish(x, gamma, beta):
    N, C, H, W = x.shape
    xg = x.reshape(N, GROUPS, C // GROUPS, H, W)
    mean = jnp.mean(xg, axis=(2, 3, 4), keepdims=True)
    var = jnp.mean((xg - mean) ** 2, axis=(2, 3, 4), keepdims=True)
    y = ((xg - mean) * lax.rsqrt(var + EPS)).reshape(N, C, H, W)
    y = y * gamma.reshape(1, C, 1, 1) + beta.reshape(1, C, 1, 1)
    return y * jax.nn.sigmoid(y)


def fuseblock_reference(p, encft, decft, w=1.0):
    x = jnp.concatenate([encft, decft], axis=1)
    h = _ref_gn_swish(x, p["norm1_g"], p["norm1_b"])
    h = _ref_conv(h, p["conv1_w"], p["conv1_b"])
    h = _ref_gn_swish(h, p["norm2_g"], p["norm2_b"])
    h = _ref_conv(h, p["conv2_w"], p["conv2_b"])
    enc = h + _ref_conv(x, p["conv_out_w"], p["conv_out_b"])
    s = _ref_conv(enc, p["scale0_w"], p["scale0_b"])
    s = jnp.where(s >= 0, s, 0.2 * s)
    s = _ref_conv(s, p["scale2_w"], p["scale2_b"])
    t = _ref_conv(enc, p["shift0_w"], p["shift0_b"])
    t = jnp.where(t >= 0, t, 0.2 * t)
    t = _ref_conv(t, p["shift2_w"], p["shift2_b"])
    return decft + w * (decft * s + t)


def init_params(key, in_ch, out_ch):
    ks = iter(jax.random.split(key, 24))
    nrm = lambda shp, s=0.05: s * jax.random.normal(next(ks), shp, jnp.float32)
    c2 = 2 * in_ch
    return {
        "norm1_g": 1.0 + 0.1 * jax.random.normal(next(ks), (c2,), jnp.float32),
        "norm1_b": 0.1 * jax.random.normal(next(ks), (c2,), jnp.float32),
        "conv1_w": nrm((out_ch, c2, 3, 3)),
        "conv1_b": nrm((out_ch,)),
        "norm2_g": 1.0 + 0.1 * jax.random.normal(next(ks), (out_ch,), jnp.float32),
        "norm2_b": 0.1 * jax.random.normal(next(ks), (out_ch,), jnp.float32),
        "conv2_w": nrm((out_ch, out_ch, 3, 3)),
        "conv2_b": nrm((out_ch,)),
        "conv_out_w": nrm((out_ch, c2, 1, 1)),
        "conv_out_b": nrm((out_ch,)),
        "scale0_w": nrm((out_ch, in_ch, 3, 3)),
        "scale0_b": nrm((out_ch,)),
        "scale2_w": nrm((out_ch, out_ch, 3, 3)),
        "scale2_b": nrm((out_ch,)),
        "shift0_w": nrm((out_ch, in_ch, 3, 3)),
        "shift0_b": nrm((out_ch,)),
        "shift2_w": nrm((out_ch, out_ch, 3, 3)),
        "shift2_b": nrm((out_ch,)),
    }


if __name__ == "__main__":
    # Small but non-degenerate config: 64 channels / 32 groups = 2 channels per group,
    # H*W = 256 (lane-dense spatial axis), batch 2 (one grid step per TensorCore on v7x).
    # NOTE: perf conclusions need representative sizes (>= 64x64 feature maps); this run
    # is a correctness smoke test.
    N, IN_CH, OUT_CH, H, W = 2, 64, 64, 16, 16

    key = jax.random.PRNGKey(0)
    k_enc, k_dec, k_par = jax.random.split(key, 3)
    encft = jax.random.normal(k_enc, (N, IN_CH, H, W), jnp.float32)
    decft = jax.random.normal(k_dec, (N, IN_CH, H, W), jnp.float32)
    params = init_params(k_par, IN_CH, OUT_CH)

    fwd = jax.jit(lambda p, e, d: fuseblock_forward(p, e, d, w=1.0))
    out = jax.block_until_ready(fwd(params, encft, decft))
    assert out.shape == (N, OUT_CH, H, W)

    ref = fuseblock_reference(params, encft, decft, w=1.0)
    err = float(jnp.max(jnp.abs(out - ref)))
    scale = float(jnp.max(jnp.abs(ref)))
    # Kernel uses bf16 MXU operands vs an f32 (HIGHEST precision) reference -> ~1% relative.
    assert err <= 3e-2 * scale + 1e-2, f"mismatch vs reference: abs={err:.4g}, ref_max={scale:.4g}"
    print("KERNEL_OK")
</pallas_src>

<mosaic_0001>
module attributes {stable_mosaic.version = 11 : i64} {
  func.func @kernel(%arg0: i32, %arg1: memref<1x128x256xf32, #tpu.memory_space<vmem>>, %arg2: memref<1x64x256xf32, #tpu.memory_space<vmem>>, %arg3: memref<128x128xbf16, #tpu.memory_space<vmem>>, %arg4: memref<128x1xf32, #tpu.memory_space<vmem>>, %arg5: memref<128x1xf32, #tpu.memory_space<vmem>>, %arg6: memref<9x64x128xbf16, #tpu.memory_space<vmem>>, %arg7: memref<64x1xf32, #tpu.memory_space<vmem>>, %arg8: memref<64x64xbf16, #tpu.memory_space<vmem>>, %arg9: memref<64x1xf32, #tpu.memory_space<vmem>>, %arg10: memref<64x1xf32, #tpu.memory_space<vmem>>, %arg11: memref<9x64x64xbf16, #tpu.memory_space<vmem>>, %arg12: memref<64x128xbf16, #tpu.memory_space<vmem>>, %arg13: memref<64x1xf32, #tpu.memory_space<vmem>>, %arg14: memref<9x128x64xbf16, #tpu.memory_space<vmem>>, %arg15: memref<128x1xf32, #tpu.memory_space<vmem>>, %arg16: memref<9x128x128xbf16, #tpu.memory_space<vmem>>, %arg17: memref<128x1xf32, #tpu.memory_space<vmem>>, %arg18: memref<1x64x256xf32, #tpu.memory_space<vmem>>) attributes {dimension_semantics = [#tpu.dimension_semantics<parallel>], iteration_bounds = array<i64: 2>, scalar_prefetch = 0 : i64, scratch_operands = 0 : i64, tpu.core_type = #tpu.core_type<tc>, window_params = [{transform_indices = @transform_0, window_bounds = array<i64: 1, 128, 256>}, {transform_indices = @transform_1, window_bounds = array<i64: 1, 64, 256>}, {pipeline_mode = #tpu.pipeline_mode<synchronous>, transform_indices = @transform_2, window_bounds = array<i64: 128, 128>}, {pipeline_mode = #tpu.pipeline_mode<synchronous>, transform_indices = @transform_3, window_bounds = array<i64: 128, 1>}, {pipeline_mode = #tpu.pipeline_mode<synchronous>, transform_indices = @transform_4, window_bounds = array<i64: 128, 1>}, {pipeline_mode = #tpu.pipeline_mode<synchronous>, transform_indices = @transform_5, window_bounds = array<i64: 9, 64, 128>}, {pipeline_mode = #tpu.pipeline_mode<synchronous>, transform_indices = @transform_6, window_bounds = array<i64: 64, 1>}, {pipeline_mode = #tpu.pipeline_mode<synchronous>, transform_indices = @transform_7, window_bounds = array<i64: 64, 64>}, {pipeline_mode = #tpu.pipeline_mode<synchronous>, transform_indices = @transform_8, window_bounds = array<i64: 64, 1>}, {pipeline_mode = #tpu.pipeline_mode<synchronous>, transform_indices = @transform_9, window_bounds = array<i64: 64, 1>}, {pipeline_mode = #tpu.pipeline_mode<synchronous>, transform_indices = @transform_10, window_bounds = array<i64: 9, 64, 64>}, {pipeline_mode = #tpu.pipeline_mode<synchronous>, transform_indices = @transform_11, window_bounds = array<i64: 64, 128>}, {pipeline_mode = #tpu.pipeline_mode<synchronous>, transform_indices = @transform_12, window_bounds = array<i64: 64, 1>}, {pipeline_mode = #tpu.pipeline_mode<synchronous>, transform_indices = @transform_13, window_bounds = array<i64: 9, 128, 64>}, {pipeline_mode = #tpu.pipeline_mode<synchronous>, transform_indices = @transform_14, window_bounds = array<i64: 128, 1>}, {pipeline_mode = #tpu.pipeline_mode<synchronous>, transform_indices = @transform_15, window_bounds = array<i64: 9, 128, 128>}, {pipeline_mode = #tpu.pipeline_mode<synchronous>, transform_indices = @transform_16, window_bounds = array<i64: 128, 1>}, {transform_indices = @transform_17, window_bounds = array<i64: 1, 64, 256>}]} {
    %c0 = arith.constant 0 : index
    %c0_0 = arith.constant 0 : index
    %c0_1 = arith.constant 0 : index
    %0 = vector.load %arg1[%c0, %c0_0, %c0_1] : memref<1x128x256xf32, #tpu.memory_space<vmem>>, vector<1x128x256xf32>
    %1 = vector.shape_cast %0 : vector<1x128x256xf32> to vector<128x256xf32>
    %c0_2 = arith.constant 0 : index
    %c0_3 = arith.constant 0 : index
    %c0_4 = arith.constant 0 : index
    %2 = vector.load %arg2[%c0_2, %c0_3, %c0_4] : memref<1x64x256xf32, #tpu.memory_space<vmem>>, vector<1x64x256xf32>
    %3 = vector.shape_cast %2 : vector<1x64x256xf32> to vector<64x256xf32>
    %4 = tpu.iota {dimensions = array<i32: 1>} : vector<1x256xi32>
    %5 = arith.sitofp %4 : vector<1x256xi32> to vector<1x256xf32>
    %cst = arith.constant 6.250000e-02 : f32
    %6 = vector.broadcast %cst : f32 to vector<1x256xf32>
    %7 = arith.mulf %5, %6 : vector<1x256xf32>
    %8 = math.floor %7 : vector<1x256xf32>
    %cst_5 = arith.constant 1.600000e+01 : f32
    %9 = vector.broadcast %cst_5 : f32 to vector<1x256xf32>
    %10 = arith.mulf %8, %9 : vector<1x256xf32>
    %11 = arith.subf %5, %10 : vector<1x256xf32>
    %cst_6 = arith.constant 1.000000e+00 : f32
    %12 = vector.broadcast %cst_6 : f32 to vector<1x256xf32>
    %13 = arith.cmpf oge, %8, %12 : vector<1x256xf32>
    %cst_7 = arith.constant 1.000000e+00 : f32
    %14 = vector.broadcast %cst_7 : f32 to vector<1x256xf32>
    %15 = arith.cmpf oge, %11, %14 : vector<1x256xf32>
    %16 = arith.andi %13, %15 : vector<1x256xi1>
    %cst_8 = arith.constant 1.400000e+01 : f32
    %17 = vector.broadcast %cst_8 : f32 to vector<1x256xf32>
    %18 = arith.cmpf ole, %11, %17 : vector<1x256xf32>
    %19 = arith.andi %13, %18 : vector<1x256xi1>
    %cst_9 = arith.constant 1.000000e+00 : f32
    %20 = vector.broadcast %cst_9 : f32 to vector<1x256xf32>
    %21 = arith.cmpf oge, %11, %20 : vector<1x256xf32>
    %cst_10 = arith.constant 1.400000e+01 : f32
    %22 = vector.broadcast %cst_10 : f32 to vector<1x256xf32>
    %23 = arith.cmpf ole, %11, %22 : vector<1x256xf32>
    %cst_11 = arith.constant 1.400000e+01 : f32
    %24 = vector.broadcast %cst_11 : f32 to vector<1x256xf32>
    %25 = arith.cmpf ole, %8, %24 : vector<1x256xf32>
    %cst_12 = arith.constant 1.000000e+00 : f32
    %26 = vector.broadcast %cst_12 : f32 to vector<1x256xf32>
    %27 = arith.cmpf oge, %11, %26 : vector<1x256xf32>
    %28 = arith.andi %25, %27 : vector<1x256xi1>
    %cst_13 = arith.constant 1.400000e+01 : f32
    %29 = vector.broadcast %cst_13 : f32 to vector<1x256xf32>
    %30 = arith.cmpf ole, %11, %29 : vector<1x256xf32>
    %31 = arith.andi %25, %30 : vector<1x256xi1>
    %c0_14 = arith.constant 0 : index
    %c0_15 = arith.constant 0 : index
    %32 = vector.load %arg4[%c0_14, %c0_15] : memref<128x1xf32, #tpu.memory_space<vmem>>, vector<128x1xf32>
    %c0_16 = arith.constant 0 : index
    %c0_17 = arith.constant 0 : index
    %33 = vector.load %arg5[%c0_16, %c0_17] : memref<128x1xf32, #tpu.memory_space<vmem>>, vector<128x1xf32>
    %c0_18 = arith.constant 0 : index
    %c0_19 = arith.constant 0 : index
    %34 = vector.load %arg3[%c0_18, %c0_19] : memref<128x128xbf16, #tpu.memory_space<vmem>>, vector<128x128xbf16>
    %35 = arith.truncf %1 : vector<128x256xf32> to vector<128x256xbf16>
    %cst_20 = arith.constant dense<0.000000e+00> : vector<128x256xf32>
    %36 = tpu.matmul %34, %35, %cst_20 {dimension_numbers = #tpu.dot_dimension_numbers<[1], [0], [0], [1], [0, 0, 1, 1], [], []>} : vector<128x128xbf16>, vector<128x256xbf16>, vector<128x256xf32> -> vector<128x256xf32>
    %cst_21 = arith.constant dense<0.000000e+00> : vector<128xf32>
    %37 = vector.multi_reduction <add>, %36, %cst_21 [1] : vector<128x256xf32> to vector<128xf32>
    %38 = vector.shape_cast %37 : vector<128xf32> to vector<128x1xf32>
    %cst_22 = arith.constant 9.765625E-4 : f32
    %39 = vector.broadcast %cst_22 : f32 to vector<128x1xf32>
    %40 = arith.mulf %38, %39 : vector<128x1xf32>
    %41 = vector.broadcast %40 : vector<128x1xf32> to vector<128x256xf32>
    %42 = arith.subf %1, %41 : vector<128x256xf32>
    %43 = arith.mulf %42, %42 : vector<128x256xf32>
    %44 = arith.truncf %43 : vector<128x256xf32> to vector<128x256xbf16>
    %cst_23 = arith.constant dense<0.000000e+00> : vector<128x256xf32>
    %45 = tpu.matmul %34, %44, %cst_23 {dimension_numbers = #tpu.dot_dimension_numbers<[1], [0], [0], [1], [0, 0, 1, 1], [], []>} : vector<128x128xbf16>, vector<128x256xbf16>, vector<128x256xf32> -> vector<128x256xf32>
    %cst_24 = arith.constant dense<0.000000e+00> : vector<128xf32>
    %46 = vector.multi_reduction <add>, %45, %cst_24 [1] : vector<128x256xf32> to vector<128xf32>
    %47 = vector.shape_cast %46 : vector<128xf32> to vector<128x1xf32>
    %cst_25 = arith.constant 9.765625E-4 : f32
    %48 = vector.broadcast %cst_25 : f32 to vector<128x1xf32>
    %49 = arith.mulf %47, %48 : vector<128x1xf32>
    %cst_26 = arith.constant 9.99999997E-7 : f32
    %50 = vector.broadcast %cst_26 : f32 to vector<128x1xf32>
    %51 = arith.addf %49, %50 : vector<128x1xf32>
    %52 = math.rsqrt %51 : vector<128x1xf32>
    %53 = vector.broadcast %52 : vector<128x1xf32> to vector<128x256xf32>
    %54 = arith.mulf %42, %53 : vector<128x256xf32>
    %55 = vector.broadcast %32 : vector<128x1xf32> to vector<128x256xf32>
    %56 = arith.mulf %54, %55 : vector<128x256xf32>
    %57 = vector.broadcast %33 : vector<128x1xf32> to vector<128x256xf32>
    %58 = arith.addf %56, %57 : vector<128x256xf32>
    %59 = arith.negf %58 : vector<128x256xf32>
    %60 = math.exp %59 : vector<128x256xf32>
    %cst_27 = arith.constant 1.000000e+00 : f32
    %61 = vector.broadcast %cst_27 : f32 to vector<128x256xf32>
    %62 = arith.addf %61, %60 : vector<128x256xf32>
    %63 = arith.divf %61, %62 : vector<128x256xf32>
    %64 = arith.mulf %58, %63 : vector<128x256xf32>
    %c0_28 = arith.constant 0 : index
    %c0_29 = arith.constant 0 : index
    %65 = vector.load %arg7[%c0_28, %c0_29] : memref<64x1xf32, #tpu.memory_space<vmem>>, vector<64x1xf32>
    %cst_30 = arith.constant 0.000000e+00 : f32
    %66 = vector.broadcast %cst_30 : f32 to vector<64x256xf32>
    %c17_i32 = arith.constant 17 : i32
    %67 = tpu.dynamic_rotate %64 by %c17_i32 dim 1 : vector<128x256xf32>, i32 -> vector<128x256xf32>
    %cst_31 = arith.constant 0.000000e+00 : f32
    %68 = vector.shape_cast %16 : vector<1x256xi1> to vector<1x256xi1>
    %69 = vector.broadcast %68 : vector<1x256xi1> to vector<128x256xi1>
    %70 = vector.broadcast %cst_31 : f32 to vector<128x256xf32>
    %71 = arith.select %69, %67, %70 : vector<128x256xi1>, vector<128x256xf32>
    %c0_32 = arith.constant 0 : index
    %c0_33 = arith.constant 0 : index
    %c0_34 = arith.constant 0 : index
    %72 = vector.load %arg6[%c0_32, %c0_33, %c0_34] : memref<9x64x128xbf16, #tpu.memory_space<vmem>>, vector<1x64x128xbf16>
    %73 = vector.shape_cast %72 : vector<1x64x128xbf16> to vector<64x128xbf16>
    %74 = arith.truncf %71 : vector<128x256xf32> to vector<128x256xbf16>
    %cst_35 = arith.constant dense<0.000000e+00> : vector<64x256xf32>
    %75 = tpu.matmul %73, %74, %cst_35 {dimension_numbers = #tpu.dot_dimension_numbers<[1], [0], [0], [1], [0, 0, 1, 1], [], []>} : vector<64x128xbf16>, vector<128x256xbf16>, vector<64x256xf32> -> vector<64x256xf32>
    %76 = arith.addf %66, %75 : vector<64x256xf32>
    %c16_i32 = arith.constant 16 : i32
    %77 = tpu.dynamic_rotate %64 by %c16_i32 dim 1 : vector<128x256xf32>, i32 -> vector<128x256xf32>
    %cst_36 = arith.constant 0.000000e+00 : f32
    %78 = vector.shape_cast %13 : vector<1x256xi1> to vector<1x256xi1>
    %79 = vector.broadcast %78 : vector<1x256xi1> to vector<128x256xi1>
    %80 = vector.broadcast %cst_36 : f32 to vector<128x256xf32>
    %81 = arith.select %79, %77, %80 : vector<128x256xi1>, vector<128x256xf32>
    %c1 = arith.constant 1 : index
    %c0_37 = arith.constant 0 : index
    %c0_38 = arith.constant 0 : index
    %82 = vector.load %arg6[%c1, %c0_37, %c0_38] : memref<9x64x128xbf16, #tpu.memory_space<vmem>>, vector<1x64x128xbf16>
    %83 = vector.shape_cast %82 : vector<1x64x128xbf16> to vector<64x128xbf16>
    %84 = arith.truncf %81 : vector<128x256xf32> to vector<128x256xbf16>
    %cst_39 = arith.constant dense<0.000000e+00> : vector<64x256xf32>
    %85 = tpu.matmul %83, %84, %cst_39 {dimension_numbers = #tpu.dot_dimension_numbers<[1], [0], [0], [1], [0, 0, 1, 1], [], []>} : vector<64x128xbf16>, vector<128x256xbf16>, vector<64x256xf32> -> vector<64x256xf32>
    %86 = arith.addf %76, %85 : vector<64x256xf32>
    %c15_i32 = arith.constant 15 : i32
    %87 = tpu.dynamic_rotate %64 by %c15_i32 dim 1 : vector<128x256xf32>, i32 -> vector<128x256xf32>
    %cst_40 = arith.constant 0.000000e+00 : f32
    %88 = vector.shape_cast %19 : vector<1x256xi1> to vector<1x256xi1>
    %89 = vector.broadcast %88 : vector<1x256xi1> to vector<128x256xi1>
    %90 = vector.broadcast %cst_40 : f32 to vector<128x256xf32>
    %91 = arith.select %89, %87, %90 : vector<128x256xi1>, vector<128x256xf32>
    %c2 = arith.constant 2 : index
    %c0_41 = arith.constant 0 : index
    %c0_42 = arith.constant 0 : index
    %92 = vector.load %arg6[%c2, %c0_41, %c0_42] : memref<9x64x128xbf16, #tpu.memory_space<vmem>>, vector<1x64x128xbf16>
    %93 = vector.shape_cast %92 : vector<1x64x128xbf16> to vector<64x128xbf16>
    %94 = arith.truncf %91 : vector<128x256xf32> to vector<128x256xbf16>
    %cst_43 = arith.constant dense<0.000000e+00> : vector<64x256xf32>
    %95 = tpu.matmul %93, %94, %cst_43 {dimension_numbers = #tpu.dot_dimension_numbers<[1], [0], [0], [1], [0, 0, 1, 1], [], []>} : vector<64x128xbf16>, vector<128x256xbf16>, vector<64x256xf32> -> vector<64x256xf32>
    %96 = arith.addf %86, %95 : vector<64x256xf32>
    %c1_i32 = arith.constant 1 : i32
    %97 = tpu.dynamic_rotate %64 by %c1_i32 dim 1 : vector<128x256xf32>, i32 -> vector<128x256xf32>
    %cst_44 = arith.constant 0.000000e+00 : f32
    %98 = vector.shape_cast %21 : vector<1x256xi1> to vector<1x256xi1>
    %99 = vector.broadcast %98 : vector<1x256xi1> to vector<128x256xi1>
    %100 = vector.broadcast %cst_44 : f32 to vector<128x256xf32>
    %101 = arith.select %99, %97, %100 : vector<128x256xi1>, vector<128x256xf32>
    %c3 = arith.constant 3 : index
    %c0_45 = arith.constant 0 : index
    %c0_46 = arith.constant 0 : index
    %102 = vector.load %arg6[%c3, %c0_45, %c0_46] : memref<9x64x128xbf16, #tpu.memory_space<vmem>>, vector<1x64x128xbf16>
    %103 = vector.shape_cast %102 : vector<1x64x128xbf16> to vector<64x128xbf16>
    %104 = arith.truncf %101 : vector<128x256xf32> to vector<128x256xbf16>
    %cst_47 = arith.constant dense<0.000000e+00> : vector<64x256xf32>
    %105 = tpu.matmul %103, %104, %cst_47 {dimension_numbers = #tpu.dot_dimension_numbers<[1], [0], [0], [1], [0, 0, 1, 1], [], []>} : vector<64x128xbf16>, vector<128x256xbf16>, vector<64x256xf32> -> vector<64x256xf32>
    %106 = arith.addf %96, %105 : vector<64x256xf32>
    %c4 = arith.constant 4 : index
    %c0_48 = arith.constant 0 : index
    %c0_49 = arith.constant 0 : index
    %107 = vector.load %arg6[%c4, %c0_48, %c0_49] : memref<9x64x128xbf16, #tpu.memory_space<vmem>>, vector<1x64x128xbf16>
    %108 = vector.shape_cast %107 : vector<1x64x128xbf16> to vector<64x128xbf16>
    %109 = arith.truncf %64 : vector<128x256xf32> to vector<128x256xbf16>
    %cst_50 = arith.constant dense<0.000000e+00> : vector<64x256xf32>
    %110 = tpu.matmul %108, %109, %cst_50 {dimension_numbers = #tpu.dot_dimension_numbers<[1], [0], [0], [1], [0, 0, 1, 1], [], []>} : vector<64x128xbf16>, vector<128x256xbf16>, vector<64x256xf32> -> vector<64x256xf32>
    %111 = arith.addf %106, %110 : vector<64x256xf32>
    %c255_i32 = arith.constant 255 : i32
    %112 = tpu.dynamic_rotate %64 by %c255_i32 dim 1 : vector<128x256xf32>, i32 -> vector<128x256xf32>
    %cst_51 = arith.constant 0.000000e+00 : f32
    %113 = vector.shape_cast %23 : vector<1x256xi1> to vector<1x256xi1>
    %114 = vector.broadcast %113 : vector<1x256xi1> to vector<128x256xi1>
    %115 = vector.broadcast %cst_51 : f32 to vector<128x256xf32>
    %116 = arith.select %114, %112, %115 : vector<128x256xi1>, vector<128x256xf32>
    %c5 = arith.constant 5 : index
    %c0_52 = arith.constant 0 : index
    %c0_53 = arith.constant 0 : index
    %117 = vector.load %arg6[%c5, %c0_52, %c0_53] : memref<9x64x128xbf16, #tpu.memory_space<vmem>>, vector<1x64x128xbf16>
    %118 = vector.shape_cast %117 : vector<1x64x128xbf16> to vector<64x128xbf16>
    %119 = arith.truncf %116 : vector<128x256xf32> to vector<128x256xbf16>
    %cst_54 = arith.constant dense<0.000000e+00> : vector<64x256xf32>
    %120 = tpu.matmul %118, %119, %cst_54 {dimension_numbers = #tpu.dot_dimension_numbers<[1], [0], [0], [1], [0, 0, 1, 1], [], []>} : vector<64x128xbf16>, vector<128x256xbf16>, vector<64x256xf32> -> vector<64x256xf32>
    %121 = arith.addf %111, %120 : vector<64x256xf32>
    %c241_i32 = arith.constant 241 : i32
    %122 = tpu.dynamic_rotate %64 by %c241_i32 dim 1 : vector<128x256xf32>, i32 -> vector<128x256xf32>
    %cst_55 = arith.constant 0.000000e+00 : f32
    %123 = vector.shape_cast %28 : vector<1x256xi1> to vector<1x256xi1>
    %124 = vector.broadcast %123 : vector<1x256xi1> to vector<128x256xi1>
    %125 = vector.broadcast %cst_55 : f32 to vector<128x256xf32>
    %126 = arith.select %124, %122, %125 : vector<128x256xi1>, vector<128x256xf32>
    %c6 = arith.constant 6 : index
    %c0_56 = arith.constant 0 : index
    %c0_57 = arith.constant 0 : index
    %127 = vector.load %arg6[%c6, %c0_56, %c0_57] : memref<9x64x128xbf16, #tpu.memory_space<vmem>>, vector<1x64x128xbf16>
    %128 = vector.shape_cast %127 : vector<1x64x128xbf16> to vector<64x128xbf16>
    %129 = arith.truncf %126 : vector<128x256xf32> to vector<128x256xbf16>
    %cst_58 = arith.constant dense<0.000000e+00> : vector<64x256xf32>
    %130 = tpu.matmul %128, %129, %cst_58 {dimension_numbers = #tpu.dot_dimension_numbers<[1], [0], [0], [1], [0, 0, 1, 1], [], []>} : vector<64x128xbf16>, vector<128x256xbf16>, vector<64x256xf32> -> vector<64x256xf32>
    %131 = arith.addf %121, %130 : vector<64x256xf32>
    %c240_i32 = arith.constant 240 : i32
    %132 = tpu.dynamic_rotate %64 by %c240_i32 dim 1 : vector<128x256xf32>, i32 -> vector<128x256xf32>
    %cst_59 = arith.constant 0.000000e+00 : f32
    %133 = vector.shape_cast %25 : vector<1x256xi1> to vector<1x256xi1>
    %134 = vector.broadcast %133 : vector<1x256xi1> to vector<128x256xi1>
    %135 = vector.broadcast %cst_59 : f32 to vector<128x256xf32>
    %136 = arith.select %134, %132, %135 : vector<128x256xi1>, vector<128x256xf32>
    %c7 = arith.constant 7 : index
    %c0_60 = arith.constant 0 : index
    %c0_61 = arith.constant 0 : index
    %137 = vector.load %arg6[%c7, %c0_60, %c0_61] : memref<9x64x128xbf16, #tpu.memory_space<vmem>>, vector<1x64x128xbf16>
    %138 = vector.shape_cast %137 : vector<1x64x128xbf16> to vector<64x128xbf16>
    %139 = arith.truncf %136 : vector<128x256xf32> to vector<128x256xbf16>
    %cst_62 = arith.constant dense<0.000000e+00> : vector<64x256xf32>
    %140 = tpu.matmul %138, %139, %cst_62 {dimension_numbers = #tpu.dot_dimension_numbers<[1], [0], [0], [1], [0, 0, 1, 1], [], []>} : vector<64x128xbf16>, vector<128x256xbf16>, vector<64x256xf32> -> vector<64x256xf32>
    %141 = arith.addf %131, %140 : vector<64x256xf32>
    %c239_i32 = arith.constant 239 : i32
    %142 = tpu.dynamic_rotate %64 by %c239_i32 dim 1 : vector<128x256xf32>, i32 -> vector<128x256xf32>
    %cst_63 = arith.constant 0.000000e+00 : f32
    %143 = vector.shape_cast %31 : vector<1x256xi1> to vector<1x256xi1>
    %144 = vector.broadcast %143 : vector<1x256xi1> to vector<128x256xi1>
    %145 = vector.broadcast %cst_63 : f32 to vector<128x256xf32>
    %146 = arith.select %144, %142, %145 : vector<128x256xi1>, vector<128x256xf32>
    %c8 = arith.constant 8 : index
    %c0_64 = arith.constant 0 : index
    %c0_65 = arith.constant 0 : index
    %147 = vector.load %arg6[%c8, %c0_64, %c0_65] : memref<9x64x128xbf16, #tpu.memory_space<vmem>>, vector<1x64x128xbf16>
    %148 = vector.shape_cast %147 : vector<1x64x128xbf16> to vector<64x128xbf16>
    %149 = arith.truncf %146 : vector<128x256xf32> to vector<128x256xbf16>
    %cst_66 = arith.constant dense<0.000000e+00> : vector<64x256xf32>
    %150 = tpu.matmul %148, %149, %cst_66 {dimension_numbers = #tpu.dot_dimension_numbers<[1], [0], [0], [1], [0, 0, 1, 1], [], []>} : vector<64x128xbf16>, vector<128x256xbf16>, vector<64x256xf32> -> vector<64x256xf32>
    %151 = arith.addf %141, %150 : vector<64x256xf32>
    %152 = vector.broadcast %65 : vector<64x1xf32> to vector<64x256xf32>
    %153 = arith.addf %151, %152 : vector<64x256xf32>
    %c0_67 = arith.constant 0 : index
    %c0_68 = arith.constant 0 : index
    %154 = vector.load %arg9[%c0_67, %c0_68] : memref<64x1xf32, #tpu.memory_space<vmem>>, vector<64x1xf32>
    %c0_69 = arith.constant 0 : index
    %c0_70 = arith.constant 0 : index
    %155 = vector.load %arg10[%c0_69, %c0_70] : memref<64x1xf32, #tpu.memory_space<vmem>>, vector<64x1xf32>
    %c0_71 = arith.constant 0 : index
    %c0_72 = arith.constant 0 : index
    %156 = vector.load %arg8[%c0_71, %c0_72] : memref<64x64xbf16, #tpu.memory_space<vmem>>, vector<64x64xbf16>
    %157 = arith.truncf %153 : vector<64x256xf32> to vector<64x256xbf16>
    %cst_73 = arith.constant dense<0.000000e+00> : vector<64x256xf32>
    %158 = tpu.matmul %156, %157, %cst_73 {dimension_numbers = #tpu.dot_dimension_numbers<[1], [0], [0], [1], [0, 0, 1, 1], [], []>} : vector<64x64xbf16>, vector<64x256xbf16>, vector<64x256xf32> -> vector<64x256xf32>
    %cst_74 = arith.constant dense<0.000000e+00> : vector<64xf32>
    %159 = vector.multi_reduction <add>, %158, %cst_74 [1] : vector<64x256xf32> to vector<64xf32>
    %160 = vector.shape_cast %159 : vector<64xf32> to vector<64x1xf32>
    %cst_75 = arith.constant 0.001953125 : f32
    %161 = vector.broadcast %cst_75 : f32 to vector<64x1xf32>
    %162 = arith.mulf %160, %161 : vector<64x1xf32>
    %163 = vector.broadcast %162 : vector<64x1xf32> to vector<64x256xf32>
    %164 = arith.subf %153, %163 : vector<64x256xf32>
    %165 = arith.mulf %164, %164 : vector<64x256xf32>
    %166 = arith.truncf %165 : vector<64x256xf32> to vector<64x256xbf16>
    %cst_76 = arith.constant dense<0.000000e+00> : vector<64x256xf32>
    %167 = tpu.matmul %156, %166, %cst_76 {dimension_numbers = #tpu.dot_dimension_numbers<[1], [0], [0], [1], [0, 0, 1, 1], [], []>} : vector<64x64xbf16>, vector<64x256xbf16>, vector<64x256xf32> -> vector<64x256xf32>
    %cst_77 = arith.constant dense<0.000000e+00> : vector<64xf32>
    %168 = vector.multi_reduction <add>, %167, %cst_77 [1] : vector<64x256xf32> to vector<64xf32>
    %169 = vector.shape_cast %168 : vector<64xf32> to vector<64x1xf32>
    %cst_78 = arith.constant 0.001953125 : f32
    %170 = vector.broadcast %cst_78 : f32 to vector<64x1xf32>
    %171 = arith.mulf %169, %170 : vector<64x1xf32>
    %cst_79 = arith.constant 9.99999997E-7 : f32
    %172 = vector.broadcast %cst_79 : f32 to vector<64x1xf32>
    %173 = arith.addf %171, %172 : vector<64x1xf32>
    %174 = math.rsqrt %173 : vector<64x1xf32>
    %175 = vector.broadcast %174 : vector<64x1xf32> to vector<64x256xf32>
    %176 = arith.mulf %164, %175 : vector<64x256xf32>
    %177 = vector.broadcast %154 : vector<64x1xf32> to vector<64x256xf32>
    %178 = arith.mulf %176, %177 : vector<64x256xf32>
    %179 = vector.broadcast %155 : vector<64x1xf32> to vector<64x256xf32>
    %180 = arith.addf %178, %179 : vector<64x256xf32>
    %181 = arith.negf %180 : vector<64x256xf32>
    %182 = math.exp %181 : vector<64x256xf32>
    %cst_80 = arith.constant 1.000000e+00 : f32
    %183 = vector.broadcast %cst_80 : f32 to vector<64x256xf32>
    %184 = arith.addf %183, %182 : vector<64x256xf32>
    %185 = arith.divf %183, %184 : vector<64x256xf32>
    %186 = arith.mulf %180, %185 : vector<64x256xf32>
    %c0_81 = arith.constant 0 : index
    %c0_82 = arith.constant 0 : index
    %187 = vector.load %arg12[%c0_81, %c0_82] : memref<64x128xbf16, #tpu.memory_space<vmem>>, vector<64x128xbf16>
    %188 = arith.truncf %1 : vector<128x256xf32> to vector<128x256xbf16>
    %cst_83 = arith.constant dense<0.000000e+00> : vector<64x256xf32>
    %189 = tpu.matmul %187, %188, %cst_83 {dimension_numbers = #tpu.dot_dimension_numbers<[1], [0], [0], [1], [0, 0, 1, 1], [], []>} : vector<64x128xbf16>, vector<128x256xbf16>, vector<64x256xf32> -> vector<64x256xf32>
    %c0_84 = arith.constant 0 : index
    %c0_85 = arith.constant 0 : index
    %190 = vector.load %arg13[%c0_84, %c0_85] : memref<64x1xf32, #tpu.memory_space<vmem>>, vector<64x1xf32>
    %c17_i32_86 = arith.constant 17 : i32
    %191 = tpu.dynamic_rotate %186 by %c17_i32_86 dim 1 : vector<64x256xf32>, i32 -> vector<64x256xf32>
    %cst_87 = arith.constant 0.000000e+00 : f32
    %192 = vector.shape_cast %16 : vector<1x256xi1> to vector<1x256xi1>
    %193 = vector.broadcast %192 : vector<1x256xi1> to vector<64x256xi1>
    %194 = vector.broadcast %cst_87 : f32 to vector<64x256xf32>
    %195 = arith.select %193, %191, %194 : vector<64x256xi1>, vector<64x256xf32>
    %c0_88 = arith.constant 0 : index
    %c0_89 = arith.constant 0 : index
    %c0_90 = arith.constant 0 : index
    %196 = vector.load %arg11[%c0_88, %c0_89, %c0_90] : memref<9x64x64xbf16, #tpu.memory_space<vmem>>, vector<1x64x64xbf16>
    %197 = vector.shape_cast %196 : vector<1x64x64xbf16> to vector<64x64xbf16>
    %198 = arith.truncf %195 : vector<64x256xf32> to vector<64x256xbf16>
    %cst_91 = arith.constant dense<0.000000e+00> : vector<64x256xf32>
    %199 = tpu.matmul %197, %198, %cst_91 {dimension_numbers = #tpu.dot_dimension_numbers<[1], [0], [0], [1], [0, 0, 1, 1], [], []>} : vector<64x64xbf16>, vector<64x256xbf16>, vector<64x256xf32> -> vector<64x256xf32>
    %200 = arith.addf %189, %199 : vector<64x256xf32>
    %c16_i32_92 = arith.constant 16 : i32
    %201 = tpu.dynamic_rotate %186 by %c16_i32_92 dim 1 : vector<64x256xf32>, i32 -> vector<64x256xf32>
    %cst_93 = arith.constant 0.000000e+00 : f32
    %202 = vector.shape_cast %13 : vector<1x256xi1> to vector<1x256xi1>
    %203 = vector.broadcast %202 : vector<1x256xi1> to vector<64x256xi1>
    %204 = vector.broadcast %cst_93 : f32 to vector<64x256xf32>
    %205 = arith.select %203, %201, %204 : vector<64x256xi1>, vector<64x256xf32>
    %c1_94 = arith.constant 1 : index
    %c0_95 = arith.constant 0 : index
    %c0_96 = arith.constant 0 : index
    %206 = vector.load %arg11[%c1_94, %c0_95, %c0_96] : memref<9x64x64xbf16, #tpu.memory_space<vmem>>, vector<1x64x64xbf16>
    %207 = vector.shape_cast %206 : vector<1x64x64xbf16> to vector<64x64xbf16>
    %208 = arith.truncf %205 : vector<64x256xf32> to vector<64x256xbf16>
    %cst_97 = arith.constant dense<0.000000e+00> : vector<64x256xf32>
    %209 = tpu.matmul %207, %208, %cst_97 {dimension_numbers = #tpu.dot_dimension_numbers<[1], [0], [0], [1], [0, 0, 1, 1], [], []>} : vector<64x64xbf16>, vector<64x256xbf16>, vector<64x256xf32> -> vector<64x256xf32>
    %210 = arith.addf %200, %209 : vector<64x256xf32>
    %c15_i32_98 = arith.constant 15 : i32
    %211 = tpu.dynamic_rotate %186 by %c15_i32_98 dim 1 : vector<64x256xf32>, i32 -> vector<64x256xf32>
    %cst_99 = arith.constant 0.000000e+00 : f32
    %212 = vector.shape_cast %19 : vector<1x256xi1> to vector<1x256xi1>
    %213 = vector.broadcast %212 : vector<1x256xi1> to vector<64x256xi1>
    %214 = vector.broadcast %cst_99 : f32 to vector<64x256xf32>
    %215 = arith.select %213, %211, %214 : vector<64x256xi1>, vector<64x256xf32>
    %c2_100 = arith.constant 2 : index
    %c0_101 = arith.constant 0 : index
    %c0_102 = arith.constant 0 : index
    %216 = vector.load %arg11[%c2_100, %c0_101, %c0_102] : memref<9x64x64xbf16, #tpu.memory_space<vmem>>, vector<1x64x64xbf16>
    %217 = vector.shape_cast %216 : vector<1x64x64xbf16> to vector<64x64xbf16>
    %218 = arith.truncf %215 : vector<64x256xf32> to vector<64x256xbf16>
    %cst_103 = arith.constant dense<0.000000e+00> : vector<64x256xf32>
    %219 = tpu.matmul %217, %218, %cst_103 {dimension_numbers = #tpu.dot_dimension_numbers<[1], [0], [0], [1], [0, 0, 1, 1], [], []>} : vector<64x64xbf16>, vector<64x256xbf16>, vector<64x256xf32> -> vector<64x256xf32>
    %220 = arith.addf %210, %219 : vector<64x256xf32>
    %c1_i32_104 = arith.constant 1 : i32
    %221 = tpu.dynamic_rotate %186 by %c1_i32_104 dim 1 : vector<64x256xf32>, i32 -> vector<64x256xf32>
    %cst_105 = arith.constant 0.000000e+00 : f32
    %222 = vector.shape_cast %21 : vector<1x256xi1> to vector<1x256xi1>
    %223 = vector.broadcast %222 : vector<1x256xi1> to vector<64x256xi1>
    %224 = vector.broadcast %cst_105 : f32 to vector<64x256xf32>
    %225 = arith.select %223, %221, %224 : vector<64x256xi1>, vector<64x256xf32>
    %c3_106 = arith.constant 3 : index
    %c0_107 = arith.constant 0 : index
    %c0_108 = arith.constant 0 : index
    %226 = vector.load %arg11[%c3_106, %c0_107, %c0_108] : memref<9x64x64xbf16, #tpu.memory_space<vmem>>, vector<1x64x64xbf16>
    %227 = vector.shape_cast %226 : vector<1x64x64xbf16> to vector<64x64xbf16>
    %228 = arith.truncf %225 : vector<64x256xf32> to vector<64x256xbf16>
    %cst_109 = arith.constant dense<0.000000e+00> : vector<64x256xf32>
    %229 = tpu.matmul %227, %228, %cst_109 {dimension_numbers = #tpu.dot_dimension_numbers<[1], [0], [0], [1], [0, 0, 1, 1], [], []>} : vector<64x64xbf16>, vector<64x256xbf16>, vector<64x256xf32> -> vector<64x256xf32>
    %230 = arith.addf %220, %229 : vector<64x256xf32>
    %c4_110 = arith.constant 4 : index
    %c0_111 = arith.constant 0 : index
    %c0_112 = arith.constant 0 : index
    %231 = vector.load %arg11[%c4_110, %c0_111, %c0_112] : memref<9x64x64xbf16, #tpu.memory_space<vmem>>, vector<1x64x64xbf16>
    %232 = vector.shape_cast %231 : vector<1x64x64xbf16> to vector<64x64xbf16>
    %233 = arith.truncf %186 : vector<64x256xf32> to vector<64x256xbf16>
    %cst_113 = arith.constant dense<0.000000e+00> : vector<64x256xf32>
    %234 = tpu.matmul %232, %233, %cst_113 {dimension_numbers = #tpu.dot_dimension_numbers<[1], [0], [0], [1], [0, 0, 1, 1], [], []>} : vector<64x64xbf16>, vector<64x256xbf16>, vector<64x256xf32> -> vector<64x256xf32>
    %235 = arith.addf %230, %234 : vector<64x256xf32>
    %c255_i32_114 = arith.constant 255 : i32
    %236 = tpu.dynamic_rotate %186 by %c255_i32_114 dim 1 : vector<64x256xf32>, i32 -> vector<64x256xf32>
    %cst_115 = arith.constant 0.000000e+00 : f32
    %237 = vector.shape_cast %23 : vector<1x256xi1> to vector<1x256xi1>
    %238 = vector.broadcast %237 : vector<1x256xi1> to vector<64x256xi1>
    %239 = vector.broadcast %cst_115 : f32 to vector<64x256xf32>
    %240 = arith.select %238, %236, %239 : vector<64x256xi1>, vector<64x256xf32>
    %c5_116 = arith.constant 5 : index
    %c0_117 = arith.constant 0 : index
    %c0_118 = arith.constant 0 : index
    %241 = vector.load %arg11[%c5_116, %c0_117, %c0_118] : memref<9x64x64xbf16, #tpu.memory_space<vmem>>, vector<1x64x64xbf16>
    %242 = vector.shape_cast %241 : vector<1x64x64xbf16> to vector<64x64xbf16>
    %243 = arith.truncf %240 : vector<64x256xf32> to vector<64x256xbf16>
    %cst_119 = arith.constant dense<0.000000e+00> : vector<64x256xf32>
    %244 = tpu.matmul %242, %243, %cst_119 {dimension_numbers = #tpu.dot_dimension_numbers<[1], [0], [0], [1], [0, 0, 1, 1], [], []>} : vector<64x64xbf16>, vector<64x256xbf16>, vector<64x256xf32> -> vector<64x256xf32>
    %245 = arith.addf %235, %244 : vector<64x256xf32>
    %c241_i32_120 = arith.constant 241 : i32
    %246 = tpu.dynamic_rotate %186 by %c241_i32_120 dim 1 : vector<64x256xf32>, i32 -> vector<64x256xf32>
    %cst_121 = arith.constant 0.000000e+00 : f32
    %247 = vector.shape_cast %28 : vector<1x256xi1> to vector<1x256xi1>
    %248 = vector.broadcast %247 : vector<1x256xi1> to vector<64x256xi1>
    %249 = vector.broadcast %cst_121 : f32 to vector<64x256xf32>
    %250 = arith.select %248, %246, %249 : vector<64x256xi1>, vector<64x256xf32>
    %c6_122 = arith.constant 6 : index
    %c0_123 = arith.constant 0 : index
    %c0_124 = arith.constant 0 : index
    %251 = vector.load %arg11[%c6_122, %c0_123, %c0_124] : memref<9x64x64xbf16, #tpu.memory_space<vmem>>, vector<1x64x64xbf16>
    %252 = vector.shape_cast %251 : vector<1x64x64xbf16> to vector<64x64xbf16>
    %253 = arith.truncf %250 : vector<64x256xf32> to vector<64x256xbf16>
    %cst_125 = arith.constant dense<0.000000e+00> : vector<64x256xf32>
    %254 = tpu.matmul %252, %253, %cst_125 {dimension_numbers = #tpu.dot_dimension_numbers<[1], [0], [0], [1], [0, 0, 1, 1], [], []>} : vector<64x64xbf16>, vector<64x256xbf16>, vector<64x256xf32> -> vector<64x256xf32>
    %255 = arith.addf %245, %254 : vector<64x256xf32>
    %c240_i32_126 = arith.constant 240 : i32
    %256 = tpu.dynamic_rotate %186 by %c240_i32_126 dim 1 : vector<64x256xf32>, i32 -> vector<64x256xf32>
    %cst_127 = arith.constant 0.000000e+00 : f32
    %257 = vector.shape_cast %25 : vector<1x256xi1> to vector<1x256xi1>
    %258 = vector.broadcast %257 : vector<1x256xi1> to vector<64x256xi1>
    %259 = vector.broadcast %cst_127 : f32 to vector<64x256xf32>
    %260 = arith.select %258, %256, %259 : vector<64x256xi1>, vector<64x256xf32>
    %c7_128 = arith.constant 7 : index
    %c0_129 = arith.constant 0 : index
    %c0_130 = arith.constant 0 : index
    %261 = vector.load %arg11[%c7_128, %c0_129, %c0_130] : memref<9x64x64xbf16, #tpu.memory_space<vmem>>, vector<1x64x64xbf16>
    %262 = vector.shape_cast %261 : vector<1x64x64xbf16> to vector<64x64xbf16>
    %263 = arith.truncf %260 : vector<64x256xf32> to vector<64x256xbf16>
    %cst_131 = arith.constant dense<0.000000e+00> : vector<64x256xf32>
    %264 = tpu.matmul %262, %263, %cst_131 {dimension_numbers = #tpu.dot_dimension_numbers<[1], [0], [0], [1], [0, 0, 1, 1], [], []>} : vector<64x64xbf16>, vector<64x256xbf16>, vector<64x256xf32> -> vector<64x256xf32>
    %265 = arith.addf %255, %264 : vector<64x256xf32>
    %c239_i32_132 = arith.constant 239 : i32
    %266 = tpu.dynamic_rotate %186 by %c239_i32_132 dim 1 : vector<64x256xf32>, i32 -> vector<64x256xf32>
    %cst_133 = arith.constant 0.000000e+00 : f32
    %267 = vector.shape_cast %31 : vector<1x256xi1> to vector<1x256xi1>
    %268 = vector.broadcast %267 : vector<1x256xi1> to vector<64x256xi1>
    %269 = vector.broadcast %cst_133 : f32 to vector<64x256xf32>
    %270 = arith.select %268, %266, %269 : vector<64x256xi1>, vector<64x256xf32>
    %c8_134 = arith.constant 8 : index
    %c0_135 = arith.constant 0 : index
    %c0_136 = arith.constant 0 : index
    %271 = vector.load %arg11[%c8_134, %c0_135, %c0_136] : memref<9x64x64xbf16, #tpu.memory_space<vmem>>, vector<1x64x64xbf16>
    %272 = vector.shape_cast %271 : vector<1x64x64xbf16> to vector<64x64xbf16>
    %273 = arith.truncf %270 : vector<64x256xf32> to vector<64x256xbf16>
    %cst_137 = arith.constant dense<0.000000e+00> : vector<64x256xf32>
    %274 = tpu.matmul %272, %273, %cst_137 {dimension_numbers = #tpu.dot_dimension_numbers<[1], [0], [0], [1], [0, 0, 1, 1], [], []>} : vector<64x64xbf16>, vector<64x256xbf16>, vector<64x256xf32> -> vector<64x256xf32>
    %275 = arith.addf %265, %274 : vector<64x256xf32>
    %276 = vector.broadcast %190 : vector<64x1xf32> to vector<64x256xf32>
    %277 = arith.addf %275, %276 : vector<64x256xf32>
    %c0_138 = arith.constant 0 : index
    %c0_139 = arith.constant 0 : index
    %278 = vector.load %arg15[%c0_138, %c0_139] : memref<128x1xf32, #tpu.memory_space<vmem>>, vector<128x1xf32>
    %cst_140 = arith.constant 0.000000e+00 : f32
    %279 = vector.broadcast %cst_140 : f32 to vector<128x256xf32>
    %c17_i32_141 = arith.constant 17 : i32
    %280 = tpu.dynamic_rotate %277 by %c17_i32_141 dim 1 : vector<64x256xf32>, i32 -> vector<64x256xf32>
    %cst_142 = arith.constant 0.000000e+00 : f32
    %281 = vector.shape_cast %16 : vector<1x256xi1> to vector<1x256xi1>
    %282 = vector.broadcast %281 : vector<1x256xi1> to vector<64x256xi1>
    %283 = vector.broadcast %cst_142 : f32 to vector<64x256xf32>
    %284 = arith.select %282, %280, %283 : vector<64x256xi1>, vector<64x256xf32>
    %c0_143 = arith.constant 0 : index
    %c0_144 = arith.constant 0 : index
    %c0_145 = arith.constant 0 : index
    %285 = vector.load %arg14[%c0_143, %c0_144, %c0_145] : memref<9x128x64xbf16, #tpu.memory_space<vmem>>, vector<1x128x64xbf16>
    %286 = vector.shape_cast %285 : vector<1x128x64xbf16> to vector<128x64xbf16>
    %287 = arith.truncf %284 : vector<64x256xf32> to vector<64x256xbf16>
    %cst_146 = arith.constant dense<0.000000e+00> : vector<128x256xf32>
    %288 = tpu.matmul %286, %287, %cst_146 {dimension_numbers = #tpu.dot_dimension_numbers<[1], [0], [0], [1], [0, 0, 1, 1], [], []>} : vector<128x64xbf16>, vector<64x256xbf16>, vector<128x256xf32> -> vector<128x256xf32>
    %289 = arith.addf %279, %288 : vector<128x256xf32>
    %c16_i32_147 = arith.constant 16 : i32
    %290 = tpu.dynamic_rotate %277 by %c16_i32_147 dim 1 : vector<64x256xf32>, i32 -> vector<64x256xf32>
    %cst_148 = arith.constant 0.000000e+00 : f32
    %291 = vector.shape_cast %13 : vector<1x256xi1> to vector<1x256xi1>
    %292 = vector.broadcast %291 : vector<1x256xi1> to vector<64x256xi1>
    %293 = vector.broadcast %cst_148 : f32 to vector<64x256xf32>
    %294 = arith.select %292, %290, %293 : vector<64x256xi1>, vector<64x256xf32>
    %c1_149 = arith.constant 1 : index
    %c0_150 = arith.constant 0 : index
    %c0_151 = arith.constant 0 : index
    %295 = vector.load %arg14[%c1_149, %c0_150, %c0_151] : memref<9x128x64xbf16, #tpu.memory_space<vmem>>, vector<1x128x64xbf16>
    %296 = vector.shape_cast %295 : vector<1x128x64xbf16> to vector<128x64xbf16>
    %297 = arith.truncf %294 : vector<64x256xf32> to vector<64x256xbf16>
    %cst_152 = arith.constant dense<0.000000e+00> : vector<128x256xf32>
    %298 = tpu.matmul %296, %297, %cst_152 {dimension_numbers = #tpu.dot_dimension_numbers<[1], [0], [0], [1], [0, 0, 1, 1], [], []>} : vector<128x64xbf16>, vector<64x256xbf16>, vector<128x256xf32> -> vector<128x256xf32>
    %299 = arith.addf %289, %298 : vector<128x256xf32>
    %c15_i32_153 = arith.constant 15 : i32
    %300 = tpu.dynamic_rotate %277 by %c15_i32_153 dim 1 : vector<64x256xf32>, i32 -> vector<64x256xf32>
    %cst_154 = arith.constant 0.000000e+00 : f32
    %301 = vector.shape_cast %19 : vector<1x256xi1> to vector<1x256xi1>
    %302 = vector.broadcast %301 : vector<1x256xi1> to vector<64x256xi1>
    %303 = vector.broadcast %cst_154 : f32 to vector<64x256xf32>
    %304 = arith.select %302, %300, %303 : vector<64x256xi1>, vector<64x256xf32>
    %c2_155 = arith.constant 2 : index
    %c0_156 = arith.constant 0 : index
    %c0_157 = arith.constant 0 : index
    %305 = vector.load %arg14[%c2_155, %c0_156, %c0_157] : memref<9x128x64xbf16, #tpu.memory_space<vmem>>, vector<1x128x64xbf16>
    %306 = vector.shape_cast %305 : vector<1x128x64xbf16> to vector<128x64xbf16>
    %307 = arith.truncf %304 : vector<64x256xf32> to vector<64x256xbf16>
    %cst_158 = arith.constant dense<0.000000e+00> : vector<128x256xf32>
    %308 = tpu.matmul %306, %307, %cst_158 {dimension_numbers = #tpu.dot_dimension_numbers<[1], [0], [0], [1], [0, 0, 1, 1], [], []>} : vector<128x64xbf16>, vector<64x256xbf16>, vector<128x256xf32> -> vector<128x256xf32>
    %309 = arith.addf %299, %308 : vector<128x256xf32>
    %c1_i32_159 = arith.constant 1 : i32
    %310 = tpu.dynamic_rotate %277 by %c1_i32_159 dim 1 : vector<64x256xf32>, i32 -> vector<64x256xf32>
    %cst_160 = arith.constant 0.000000e+00 : f32
    %311 = vector.shape_cast %21 : vector<1x256xi1> to vector<1x256xi1>
    %312 = vector.broadcast %311 : vector<1x256xi1> to vector<64x256xi1>
    %313 = vector.broadcast %cst_160 : f32 to vector<64x256xf32>
    %314 = arith.select %312, %310, %313 : vector<64x256xi1>, vector<64x256xf32>
    %c3_161 = arith.constant 3 : index
    %c0_162 = arith.constant 0 : index
    %c0_163 = arith.constant 0 : index
    %315 = vector.load %arg14[%c3_161, %c0_162, %c0_163] : memref<9x128x64xbf16, #tpu.memory_space<vmem>>, vector<1x128x64xbf16>
    %316 = vector.shape_cast %315 : vector<1x128x64xbf16> to vector<128x64xbf16>
    %317 = arith.truncf %314 : vector<64x256xf32> to vector<64x256xbf16>
    %cst_164 = arith.constant dense<0.000000e+00> : vector<128x256xf32>
    %318 = tpu.matmul %316, %317, %cst_164 {dimension_numbers = #tpu.dot_dimension_numbers<[1], [0], [0], [1], [0, 0, 1, 1], [], []>} : vector<128x64xbf16>, vector<64x256xbf16>, vector<128x256xf32> -> vector<128x256xf32>
    %319 = arith.addf %309, %318 : vector<128x256xf32>
    %c4_165 = arith.constant 4 : index
    %c0_166 = arith.constant 0 : index
    %c0_167 = arith.constant 0 : index
    %320 = vector.load %arg14[%c4_165, %c0_166, %c0_167] : memref<9x128x64xbf16, #tpu.memory_space<vmem>>, vector<1x128x64xbf16>
    %321 = vector.shape_cast %320 : vector<1x128x64xbf16> to vector<128x64xbf16>
    %322 = arith.truncf %277 : vector<64x256xf32> to vector<64x256xbf16>
    %cst_168 = arith.constant dense<0.000000e+00> : vector<128x256xf32>
    %323 = tpu.matmul %321, %322, %cst_168 {dimension_numbers = #tpu.dot_dimension_numbers<[1], [0], [0], [1], [0, 0, 1, 1], [], []>} : vector<128x64xbf16>, vector<64x256xbf16>, vector<128x256xf32> -> vector<128x256xf32>
    %324 = arith.addf %319, %323 : vector<128x256xf32>
    %c255_i32_169 = arith.constant 255 : i32
    %325 = tpu.dynamic_rotate %277 by %c255_i32_169 dim 1 : vector<64x256xf32>, i32 -> vector<64x256xf32>
    %cst_170 = arith.constant 0.000000e+00 : f32
    %326 = vector.shape_cast %23 : vector<1x256xi1> to vector<1x256xi1>
    %327 = vector.broadcast %326 : vector<1x256xi1> to vector<64x256xi1>
    %328 = vector.broadcast %cst_170 : f32 to vector<64x256xf32>
    %329 = arith.select %327, %325, %328 : vector<64x256xi1>, vector<64x256xf32>
    %c5_171 = arith.constant 5 : index
    %c0_172 = arith.constant 0 : index
    %c0_173 = arith.constant 0 : index
    %330 = vector.load %arg14[%c5_171, %c0_172, %c0_173] : memref<9x128x64xbf16, #tpu.memory_space<vmem>>, vector<1x128x64xbf16>
    %331 = vector.shape_cast %330 : vector<1x128x64xbf16> to vector<128x64xbf16>
    %332 = arith.truncf %329 : vector<64x256xf32> to vector<64x256xbf16>
    %cst_174 = arith.constant dense<0.000000e+00> : vector<128x256xf32>
    %333 = tpu.matmul %331, %332, %cst_174 {dimension_numbers = #tpu.dot_dimension_numbers<[1], [0], [0], [1], [0, 0, 1, 1], [], []>} : vector<128x64xbf16>, vector<64x256xbf16>, vector<128x256xf32> -> vector<128x256xf32>
    %334 = arith.addf %324, %333 : vector<128x256xf32>
    %c241_i32_175 = arith.constant 241 : i32
    %335 = tpu.dynamic_rotate %277 by %c241_i32_175 dim 1 : vector<64x256xf32>, i32 -> vector<64x256xf32>
    %cst_176 = arith.constant 0.000000e+00 : f32
    %336 = vector.shape_cast %28 : vector<1x256xi1> to vector<1x256xi1>
    %337 = vector.broadcast %336 : vector<1x256xi1> to vector<64x256xi1>
    %338 = vector.broadcast %cst_176 : f32 to vector<64x256xf32>
    %339 = arith.select %337, %335, %338 : vector<64x256xi1>, vector<64x256xf32>
    %c6_177 = arith.constant 6 : index
    %c0_178 = arith.constant 0 : index
    %c0_179 = arith.constant 0 : index
    %340 = vector.load %arg14[%c6_177, %c0_178, %c0_179] : memref<9x128x64xbf16, #tpu.memory_space<vmem>>, vector<1x128x64xbf16>
    %341 = vector.shape_cast %340 : vector<1x128x64xbf16> to vector<128x64xbf16>
    %342 = arith.truncf %339 : vector<64x256xf32> to vector<64x256xbf16>
    %cst_180 = arith.constant dense<0.000000e+00> : vector<128x256xf32>
    %343 = tpu.matmul %341, %342, %cst_180 {dimension_numbers = #tpu.dot_dimension_numbers<[1], [0], [0], [1], [0, 0, 1, 1], [], []>} : vector<128x64xbf16>, vector<64x256xbf16>, vector<128x256xf32> -> vector<128x256xf32>
    %344 = arith.addf %334, %343 : vector<128x256xf32>
    %c240_i32_181 = arith.constant 240 : i32
    %345 = tpu.dynamic_rotate %277 by %c240_i32_181 dim 1 : vector<64x256xf32>, i32 -> vector<64x256xf32>
    %cst_182 = arith.constant 0.000000e+00 : f32
    %346 = vector.shape_cast %25 : vector<1x256xi1> to vector<1x256xi1>
    %347 = vector.broadcast %346 : vector<1x256xi1> to vector<64x256xi1>
    %348 = vector.broadcast %cst_182 : f32 to vector<64x256xf32>
    %349 = arith.select %347, %345, %348 : vector<64x256xi1>, vector<64x256xf32>
    %c7_183 = arith.constant 7 : index
    %c0_184 = arith.constant 0 : index
    %c0_185 = arith.constant 0 : index
    %350 = vector.load %arg14[%c7_183, %c0_184, %c0_185] : memref<9x128x64xbf16, #tpu.memory_space<vmem>>, vector<1x128x64xbf16>
    %351 = vector.shape_cast %350 : vector<1x128x64xbf16> to vector<128x64xbf16>
    %352 = arith.truncf %349 : vector<64x256xf32> to vector<64x256xbf16>
    %cst_186 = arith.constant dense<0.000000e+00> : vector<128x256xf32>
    %353 = tpu.matmul %351, %352, %cst_186 {dimension_numbers = #tpu.dot_dimension_numbers<[1], [0], [0], [1], [0, 0, 1, 1], [], []>} : vector<128x64xbf16>, vector<64x256xbf16>, vector<128x256xf32> -> vector<128x256xf32>
    %354 = arith.addf %344, %353 : vector<128x256xf32>
    %c239_i32_187 = arith.constant 239 : i32
    %355 = tpu.dynamic_rotate %277 by %c239_i32_187 dim 1 : vector<64x256xf32>, i32 -> vector<64x256xf32>
    %cst_188 = arith.constant 0.000000e+00 : f32
    %356 = vector.shape_cast %31 : vector<1x256xi1> to vector<1x256xi1>
    %357 = vector.broadcast %356 : vector<1x256xi1> to vector<64x256xi1>
    %358 = vector.broadcast %cst_188 : f32 to vector<64x256xf32>
    %359 = arith.select %357, %355, %358 : vector<64x256xi1>, vector<64x256xf32>
    %c8_189 = arith.constant 8 : index
    %c0_190 = arith.constant 0 : index
    %c0_191 = arith.constant 0 : index
    %360 = vector.load %arg14[%c8_189, %c0_190, %c0_191] : memref<9x128x64xbf16, #tpu.memory_space<vmem>>, vector<1x128x64xbf16>
    %361 = vector.shape_cast %360 : vector<1x128x64xbf16> to vector<128x64xbf16>
    %362 = arith.truncf %359 : vector<64x256xf32> to vector<64x256xbf16>
    %cst_192 = arith.constant dense<0.000000e+00> : vector<128x256xf32>
    %363 = tpu.matmul %361, %362, %cst_192 {dimension_numbers = #tpu.dot_dimension_numbers<[1], [0], [0], [1], [0, 0, 1, 1], [], []>} : vector<128x64xbf16>, vector<64x256xbf16>, vector<128x256xf32> -> vector<128x256xf32>
    %364 = arith.addf %354, %363 : vector<128x256xf32>
    %365 = vector.broadcast %278 : vector<128x1xf32> to vector<128x256xf32>
    %366 = arith.addf %364, %365 : vector<128x256xf32>
    %cst_193 = arith.constant 0.000000e+00 : f32
    %367 = vector.broadcast %cst_193 : f32 to vector<128x256xf32>
    %368 = arith.cmpf oge, %366, %367 : vector<128x256xf32>
    %cst_194 = arith.constant 2.000000e-01 : f32
    %369 = vector.broadcast %cst_194 : f32 to vector<128x256xf32>
    %370 = arith.mulf %369, %366 : vector<128x256xf32>
    %371 = arith.select %368, %366, %370 : vector<128x256xi1>, vector<128x256xf32>
    %c0_195 = arith.constant 0 : index
    %c0_196 = arith.constant 0 : index
    %372 = vector.load %arg17[%c0_195, %c0_196] : memref<128x1xf32, #tpu.memory_space<vmem>>, vector<128x1xf32>
    %cst_197 = arith.constant 0.000000e+00 : f32
    %373 = vector.broadcast %cst_197 : f32 to vector<128x256xf32>
    %c17_i32_198 = arith.constant 17 : i32
    %374 = tpu.dynamic_rotate %371 by %c17_i32_198 dim 1 : vector<128x256xf32>, i32 -> vector<128x256xf32>
    %cst_199 = arith.constant 0.000000e+00 : f32
    %375 = vector.shape_cast %16 : vector<1x256xi1> to vector<1x256xi1>
    %376 = vector.broadcast %375 : vector<1x256xi1> to vector<128x256xi1>
    %377 = vector.broadcast %cst_199 : f32 to vector<128x256xf32>
    %378 = arith.select %376, %374, %377 : vector<128x256xi1>, vector<128x256xf32>
    %c0_200 = arith.constant 0 : index
    %c0_201 = arith.constant 0 : index
    %c0_202 = arith.constant 0 : index
    %379 = vector.load %arg16[%c0_200, %c0_201, %c0_202] : memref<9x128x128xbf16, #tpu.memory_space<vmem>>, vector<1x128x128xbf16>
    %380 = vector.shape_cast %379 : vector<1x128x128xbf16> to vector<128x128xbf16>
    %381 = arith.truncf %378 : vector<128x256xf32> to vector<128x256xbf16>
    %cst_203 = arith.constant dense<0.000000e+00> : vector<128x256xf32>
    %382 = tpu.matmul %380, %381, %cst_203 {dimension_numbers = #tpu.dot_dimension_numbers<[1], [0], [0], [1], [0, 0, 1, 1], [], []>} : vector<128x128xbf16>, vector<128x256xbf16>, vector<128x256xf32> -> vector<128x256xf32>
    %383 = arith.addf %373, %382 : vector<128x256xf32>
    %c16_i32_204 = arith.constant 16 : i32
    %384 = tpu.dynamic_rotate %371 by %c16_i32_204 dim 1 : vector<128x256xf32>, i32 -> vector<128x256xf32>
    %cst_205 = arith.constant 0.000000e+00 : f32
    %385 = vector.shape_cast %13 : vector<1x256xi1> to vector<1x256xi1>
    %386 = vector.broadcast %385 : vector<1x256xi1> to vector<128x256xi1>
    %387 = vector.broadcast %cst_205 : f32 to vector<128x256xf32>
    %388 = arith.select %386, %384, %387 : vector<128x256xi1>, vector<128x256xf32>
    %c1_206 = arith.constant 1 : index
    %c0_207 = arith.constant 0 : index
    %c0_208 = arith.constant 0 : index
    %389 = vector.load %arg16[%c1_206, %c0_207, %c0_208] : memref<9x128x128xbf16, #tpu.memory_space<vmem>>, vector<1x128x128xbf16>
    %390 = vector.shape_cast %389 : vector<1x128x128xbf16> to vector<128x128xbf16>
    %391 = arith.truncf %388 : vector<128x256xf32> to vector<128x256xbf16>
    %cst_209 = arith.constant dense<0.000000e+00> : vector<128x256xf32>
    %392 = tpu.matmul %390, %391, %cst_209 {dimension_numbers = #tpu.dot_dimension_numbers<[1], [0], [0], [1], [0, 0, 1, 1], [], []>} : vector<128x128xbf16>, vector<128x256xbf16>, vector<128x256xf32> -> vector<128x256xf32>
    %393 = arith.addf %383, %392 : vector<128x256xf32>
    %c15_i32_210 = arith.constant 15 : i32
    %394 = tpu.dynamic_rotate %371 by %c15_i32_210 dim 1 : vector<128x256xf32>, i32 -> vector<128x256xf32>
    %cst_211 = arith.constant 0.000000e+00 : f32
    %395 = vector.shape_cast %19 : vector<1x256xi1> to vector<1x256xi1>
    %396 = vector.broadcast %395 : vector<1x256xi1> to vector<128x256xi1>
    %397 = vector.broadcast %cst_211 : f32 to vector<128x256xf32>
    %398 = arith.select %396, %394, %397 : vector<128x256xi1>, vector<128x256xf32>
    %c2_212 = arith.constant 2 : index
    %c0_213 = arith.constant 0 : index
    %c0_214 = arith.constant 0 : index
    %399 = vector.load %arg16[%c2_212, %c0_213, %c0_214] : memref<9x128x128xbf16, #tpu.memory_space<vmem>>, vector<1x128x128xbf16>
    %400 = vector.shape_cast %399 : vector<1x128x128xbf16> to vector<128x128xbf16>
    %401 = arith.truncf %398 : vector<128x256xf32> to vector<128x256xbf16>
    %cst_215 = arith.constant dense<0.000000e+00> : vector<128x256xf32>
    %402 = tpu.matmul %400, %401, %cst_215 {dimension_numbers = #tpu.dot_dimension_numbers<[1], [0], [0], [1], [0, 0, 1, 1], [], []>} : vector<128x128xbf16>, vector<128x256xbf16>, vector<128x256xf32> -> vector<128x256xf32>
    %403 = arith.addf %393, %402 : vector<128x256xf32>
    %c1_i32_216 = arith.constant 1 : i32
    %404 = tpu.dynamic_rotate %371 by %c1_i32_216 dim 1 : vector<128x256xf32>, i32 -> vector<128x256xf32>
    %cst_217 = arith.constant 0.000000e+00 : f32
    %405 = vector.shape_cast %21 : vector<1x256xi1> to vector<1x256xi1>
    %406 = vector.broadcast %405 : vector<1x256xi1> to vector<128x256xi1>
    %407 = vector.broadcast %cst_217 : f32 to vector<128x256xf32>
    %408 = arith.select %406, %404, %407 : vector<128x256xi1>, vector<128x256xf32>
    %c3_218 = arith.constant 3 : index
    %c0_219 = arith.constant 0 : index
    %c0_220 = arith.constant 0 : index
    %409 = vector.load %arg16[%c3_218, %c0_219, %c0_220] : memref<9x128x128xbf16, #tpu.memory_space<vmem>>, vector<1x128x128xbf16>
    %410 = vector.shape_cast %409 : vector<1x128x128xbf16> to vector<128x128xbf16>
    %411 = arith.truncf %408 : vector<128x256xf32> to vector<128x256xbf16>
    %cst_221 = arith.constant dense<0.000000e+00> : vector<128x256xf32>
    %412 = tpu.matmul %410, %411, %cst_221 {dimension_numbers = #tpu.dot_dimension_numbers<[1], [0], [0], [1], [0, 0, 1, 1], [], []>} : vector<128x128xbf16>, vector<128x256xbf16>, vector<128x256xf32> -> vector<128x256xf32>
    %413 = arith.addf %403, %412 : vector<128x256xf32>
    %c4_222 = arith.constant 4 : index
    %c0_223 = arith.constant 0 : index
    %c0_224 = arith.constant 0 : index
    %414 = vector.load %arg16[%c4_222, %c0_223, %c0_224] : memref<9x128x128xbf16, #tpu.memory_space<vmem>>, vector<1x128x128xbf16>
    %415 = vector.shape_cast %414 : vector<1x128x128xbf16> to vector<128x128xbf16>
    %416 = arith.truncf %371 : vector<128x256xf32> to vector<128x256xbf16>
    %cst_225 = arith.constant dense<0.000000e+00> : vector<128x256xf32>
    %417 = tpu.matmul %415, %416, %cst_225 {dimension_numbers = #tpu.dot_dimension_numbers<[1], [0], [0], [1], [0, 0, 1, 1], [], []>} : vector<128x128xbf16>, vector<128x256xbf16>, vector<128x256xf32> -> vector<128x256xf32>
    %418 = arith.addf %413, %417 : vector<128x256xf32>
    %c255_i32_226 = arith.constant 255 : i32
    %419 = tpu.dynamic_rotate %371 by %c255_i32_226 dim 1 : vector<128x256xf32>, i32 -> vector<128x256xf32>
    %cst_227 = arith.constant 0.000000e+00 : f32
    %420 = vector.shape_cast %23 : vector<1x256xi1> to vector<1x256xi1>
    %421 = vector.broadcast %420 : vector<1x256xi1> to vector<128x256xi1>
    %422 = vector.broadcast %cst_227 : f32 to vector<128x256xf32>
    %423 = arith.select %421, %419, %422 : vector<128x256xi1>, vector<128x256xf32>
    %c5_228 = arith.constant 5 : index
    %c0_229 = arith.constant 0 : index
    %c0_230 = arith.constant 0 : index
    %424 = vector.load %arg16[%c5_228, %c0_229, %c0_230] : memref<9x128x128xbf16, #tpu.memory_space<vmem>>, vector<1x128x128xbf16>
    %425 = vector.shape_cast %424 : vector<1x128x128xbf16> to vector<128x128xbf16>
    %426 = arith.truncf %423 : vector<128x256xf32> to vector<128x256xbf16>
    %cst_231 = arith.constant dense<0.000000e+00> : vector<128x256xf32>
    %427 = tpu.matmul %425, %426, %cst_231 {dimension_numbers = #tpu.dot_dimension_numbers<[1], [0], [0], [1], [0, 0, 1, 1], [], []>} : vector<128x128xbf16>, vector<128x256xbf16>, vector<128x256xf32> -> vector<128x256xf32>
    %428 = arith.addf %418, %427 : vector<128x256xf32>
    %c241_i32_232 = arith.constant 241 : i32
    %429 = tpu.dynamic_rotate %371 by %c241_i32_232 dim 1 : vector<128x256xf32>, i32 -> vector<128x256xf32>
    %cst_233 = arith.constant 0.000000e+00 : f32
    %430 = vector.shape_cast %28 : vector<1x256xi1> to vector<1x256xi1>
    %431 = vector.broadcast %430 : vector<1x256xi1> to vector<128x256xi1>
    %432 = vector.broadcast %cst_233 : f32 to vector<128x256xf32>
    %433 = arith.select %431, %429, %432 : vector<128x256xi1>, vector<128x256xf32>
    %c6_234 = arith.constant 6 : index
    %c0_235 = arith.constant 0 : index
    %c0_236 = arith.constant 0 : index
    %434 = vector.load %arg16[%c6_234, %c0_235, %c0_236] : memref<9x128x128xbf16, #tpu.memory_space<vmem>>, vector<1x128x128xbf16>
    %435 = vector.shape_cast %434 : vector<1x128x128xbf16> to vector<128x128xbf16>
    %436 = arith.truncf %433 : vector<128x256xf32> to vector<128x256xbf16>
    %cst_237 = arith.constant dense<0.000000e+00> : vector<128x256xf32>
    %437 = tpu.matmul %435, %436, %cst_237 {dimension_numbers = #tpu.dot_dimension_numbers<[1], [0], [0], [1], [0, 0, 1, 1], [], []>} : vector<128x128xbf16>, vector<128x256xbf16>, vector<128x256xf32> -> vector<128x256xf32>
    %438 = arith.addf %428, %437 : vector<128x256xf32>
    %c240_i32_238 = arith.constant 240 : i32
    %439 = tpu.dynamic_rotate %371 by %c240_i32_238 dim 1 : vector<128x256xf32>, i32 -> vector<128x256xf32>
    %cst_239 = arith.constant 0.000000e+00 : f32
    %440 = vector.shape_cast %25 : vector<1x256xi1> to vector<1x256xi1>
    %441 = vector.broadcast %440 : vector<1x256xi1> to vector<128x256xi1>
    %442 = vector.broadcast %cst_239 : f32 to vector<128x256xf32>
    %443 = arith.select %441, %439, %442 : vector<128x256xi1>, vector<128x256xf32>
    %c7_240 = arith.constant 7 : index
    %c0_241 = arith.constant 0 : index
    %c0_242 = arith.constant 0 : index
    %444 = vector.load %arg16[%c7_240, %c0_241, %c0_242] : memref<9x128x128xbf16, #tpu.memory_space<vmem>>, vector<1x128x128xbf16>
    %445 = vector.shape_cast %444 : vector<1x128x128xbf16> to vector<128x128xbf16>
    %446 = arith.truncf %443 : vector<128x256xf32> to vector<128x256xbf16>
    %cst_243 = arith.constant dense<0.000000e+00> : vector<128x256xf32>
    %447 = tpu.matmul %445, %446, %cst_243 {dimension_numbers = #tpu.dot_dimension_numbers<[1], [0], [0], [1], [0, 0, 1, 1], [], []>} : vector<128x128xbf16>, vector<128x256xbf16>, vector<128x256xf32> -> vector<128x256xf32>
    %448 = arith.addf %438, %447 : vector<128x256xf32>
    %c239_i32_244 = arith.constant 239 : i32
    %449 = tpu.dynamic_rotate %371 by %c239_i32_244 dim 1 : vector<128x256xf32>, i32 -> vector<128x256xf32>
    %cst_245 = arith.constant 0.000000e+00 : f32
    %450 = vector.shape_cast %31 : vector<1x256xi1> to vector<1x256xi1>
    %451 = vector.broadcast %450 : vector<1x256xi1> to vector<128x256xi1>
    %452 = vector.broadcast %cst_245 : f32 to vector<128x256xf32>
    %453 = arith.select %451, %449, %452 : vector<128x256xi1>, vector<128x256xf32>
    %c8_246 = arith.constant 8 : index
    %c0_247 = arith.constant 0 : index
    %c0_248 = arith.constant 0 : index
    %454 = vector.load %arg16[%c8_246, %c0_247, %c0_248] : memref<9x128x128xbf16, #tpu.memory_space<vmem>>, vector<1x128x128xbf16>
    %455 = vector.shape_cast %454 : vector<1x128x128xbf16> to vector<128x128xbf16>
    %456 = arith.truncf %453 : vector<128x256xf32> to vector<128x256xbf16>
    %cst_249 = arith.constant dense<0.000000e+00> : vector<128x256xf32>
    %457 = tpu.matmul %455, %456, %cst_249 {dimension_numbers = #tpu.dot_dimension_numbers<[1], [0], [0], [1], [0, 0, 1, 1], [], []>} : vector<128x128xbf16>, vector<128x256xbf16>, vector<128x256xf32> -> vector<128x256xf32>
    %458 = arith.addf %448, %457 : vector<128x256xf32>
    %459 = vector.broadcast %372 : vector<128x1xf32> to vector<128x256xf32>
    %460 = arith.addf %458, %459 : vector<128x256xf32>
    %461 = vector.extract_strided_slice %460 {offsets = [0, 0], sizes = [64, 256], strides = [1, 1]} : vector<128x256xf32> to vector<64x256xf32>
    %462 = vector.extract_strided_slice %460 {offsets = [64, 0], sizes = [64, 256], strides = [1, 1]} : vector<128x256xf32> to vector<64x256xf32>
    %463 = arith.mulf %3, %461 : vector<64x256xf32>
    %464 = arith.addf %463, %462 : vector<64x256xf32>
    %cst_250 = arith.constant 1.000000e+00 : f32
    %465 = vector.broadcast %cst_250 : f32 to vector<64x256xf32>
    %466 = arith.mulf %465, %464 : vector<64x256xf32>
    %467 = arith.addf %3, %466 : vector<64x256xf32>
    %c0_251 = arith.constant 0 : index
    %c0_252 = arith.constant 0 : index
    %c0_253 = arith.constant 0 : index
    %468 = vector.load %arg18[%c0_251, %c0_252, %c0_253] : memref<1x64x256xf32, #tpu.memory_space<vmem>>, vector<1x64x256xf32>
    %469 = vector.shape_cast %468 : vector<1x64x256xf32> to vector<64x256xf32>
    %470 = vector.shape_cast %467 : vector<64x256xf32> to vector<1x64x256xf32>
    tpu.vector_store %arg18[%c0_251, %c0_252, %c0_253], %470 {strides = array<i32>} : memref<1x64x256xf32, #tpu.memory_space<vmem>>, vector<1x64x256xf32>,
    return
  }
  func.func @transform_0(%arg0: i32) -> (i32, i32, i32) {
    %c0_i32 = arith.constant 0 : i32
    %c0_i32_0 = arith.constant 0 : i32
    %c0_i32_1 = arith.constant 0 : i32
    return %arg0, %c0_i32, %c0_i32_0 : i32, i32, i32
  }
  func.func @transform_1(%arg0: i32) -> (i32, i32, i32) {
    %c0_i32 = arith.constant 0 : i32
    %c0_i32_0 = arith.constant 0 : i32
    %c0_i32_1 = arith.constant 0 : i32
    return %arg0, %c0_i32, %c0_i32_0 : i32, i32, i32
  }
  func.func @transform_2(%arg0: i32) -> (i32, i32) {
    %c0_i32 = arith.constant 0 : i32
    %c0_i32_0 = arith.constant 0 : i32
    %c0_i32_1 = arith.constant 0 : i32
    return %c0_i32, %c0_i32_0 : i32, i32
  }
  func.func @transform_3(%arg0: i32) -> (i32, i32) {
    %c0_i32 = arith.constant 0 : i32
    %c0_i32_0 = arith.constant 0 : i32
    %c0_i32_1 = arith.constant 0 : i32
    return %c0_i32, %c0_i32_0 : i32, i32
  }
  func.func @transform_4(%arg0: i32) -> (i32, i32) {
    %c0_i32 = arith.constant 0 : i32
    %c0_i32_0 = arith.constant 0 : i32
    %c0_i32_1 = arith.constant 0 : i32
    return %c0_i32, %c0_i32_0 : i32, i32
  }
  func.func @transform_5(%arg0: i32) -> (i32, i32, i32) {
    %c0_i32 = arith.constant 0 : i32
    %c0_i32_0 = arith.constant 0 : i32
    %c0_i32_1 = arith.constant 0 : i32
    %c0_i32_2 = arith.constant 0 : i32
    return %c0_i32, %c0_i32_0, %c0_i32_1 : i32, i32, i32
  }
  func.func @transform_6(%arg0: i32) -> (i32, i32) {
    %c0_i32 = arith.constant 0 : i32
    %c0_i32_0 = arith.constant 0 : i32
    %c0_i32_1 = arith.constant 0 : i32
    return %c0_i32, %c0_i32_0 : i32, i32
  }
  func.func @transform_7(%arg0: i32) -> (i32, i32) {
    %c0_i32 = arith.constant 0 : i32
    %c0_i32_0 = arith.constant 0 : i32
    %c0_i32_1 = arith.constant 0 : i32
    return %c0_i32, %c0_i32_0 : i32, i32
  }
  func.func @transform_8(%arg0: i32) -> (i32, i32) {
    %c0_i32 = arith.constant 0 : i32
    %c0_i32_0 = arith.constant 0 : i32
    %c0_i32_1 = arith.constant 0 : i32
    return %c0_i32, %c0_i32_0 : i32, i32
  }
  func.func @transform_9(%arg0: i32) -> (i32, i32) {
    %c0_i32 = arith.constant 0 : i32
    %c0_i32_0 = arith.constant 0 : i32
    %c0_i32_1 = arith.constant 0 : i32
    return %c0_i32, %c0_i32_0 : i32, i32
  }
  func.func @transform_10(%arg0: i32) -> (i32, i32, i32) {
    %c0_i32 = arith.constant 0 : i32
    %c0_i32_0 = arith.constant 0 : i32
    %c0_i32_1 = arith.constant 0 : i32
    %c0_i32_2 = arith.constant 0 : i32
    return %c0_i32, %c0_i32_0, %c0_i32_1 : i32, i32, i32
  }
  func.func @transform_11(%arg0: i32) -> (i32, i32) {
    %c0_i32 = arith.constant 0 : i32
    %c0_i32_0 = arith.constant 0 : i32
    %c0_i32_1 = arith.constant 0 : i32
    return %c0_i32, %c0_i32_0 : i32, i32
  }
  func.func @transform_12(%arg0: i32) -> (i32, i32) {
    %c0_i32 = arith.constant 0 : i32
    %c0_i32_0 = arith.constant 0 : i32
    %c0_i32_1 = arith.constant 0 : i32
    return %c0_i32, %c0_i32_0 : i32, i32
  }
  func.func @transform_13(%arg0: i32) -> (i32, i32, i32) {
    %c0_i32 = arith.constant 0 : i32
    %c0_i32_0 = arith.constant 0 : i32
    %c0_i32_1 = arith.constant 0 : i32
    %c0_i32_2 = arith.constant 0 : i32
    return %c0_i32, %c0_i32_0, %c0_i32_1 : i32, i32, i32
  }
  func.func @transform_14(%arg0: i32) -> (i32, i32) {
    %c0_i32 = arith.constant 0 : i32
    %c0_i32_0 = arith.constant 0 : i32
    %c0_i32_1 = arith.constant 0 : i32
    return %c0_i32, %c0_i32_0 : i32, i32
  }
  func.func @transform_15(%arg0: i32) -> (i32, i32, i32) {
    %c0_i32 = arith.constant 0 : i32
    %c0_i32_0 = arith.constant 0 : i32
    %c0_i32_1 = arith.constant 0 : i32
    %c0_i32_2 = arith.constant 0 : i32
    return %c0_i32, %c0_i32_0, %c0_i32_1 : i32, i32, i32
  }
  func.func @transform_16(%arg0: i32) -> (i32, i32) {
    %c0_i32 = arith.constant 0 : i32
    %c0_i32_0 = arith.constant 0 : i32
    %c0_i32_1 = arith.constant 0 : i32
    return %c0_i32, %c0_i32_0 : i32, i32
  }
  func.func @transform_17(%arg0: i32) -> (i32, i32, i32) {
    %c0_i32 = arith.constant 0 : i32
    %c0_i32_0 = arith.constant 0 : i32
    %c0_i32_1 = arith.constant 0 : i32
    return %arg0, %c0_i32, %c0_i32_0 : i32, i32, i32
  }
}

</mosaic_0001>

<bundles_post_ra>
// kernel: _lambda_.1
= control target key start
LH: loop header
LB: loop body
LE: loop exit
PB: predicated region body
PF: predicated region fallthrough
CT: control target
= control target key end

     0   :  { %s17853_s24 = smov 0   ;;  %s24298_s0 = inlined_call_operand.vmem [shape: f32[2,128,256], index: 0, kind: input, shape index: {}]   ;;  %s24299_s1 = inlined_call_operand.vmem [shape: f32[2,64,256], index: 1, kind: input, shape index: {}]   ;;  %s24300_s2 = inlined_call_operand.vmem [shape: bf16[128,128], index: 2, kind: input, shape index: {}]   ;;  %s24301_s3 = inlined_call_operand.vmem [shape: f32[128,1], index: 3, kind: input, shape index: {}]   ;;  %s24302_s4 = inlined_call_operand.vmem [shape: f32[128,1], index: 4, kind: input, shape index: {}]   ;;  %s24303_s5 = inlined_call_operand.vmem [shape: bf16[9,64,128], index: 5, kind: input, shape index: {}]   ;;  %s24304_s6 = inlined_call_operand.vmem [shape: f32[64,1], index: 6, kind: input, shape index: {}]   ;;  %s24305_s7 = inlined_call_operand.vmem [shape: bf16[64,64], index: 7, kind: input, shape index: {}]   ;;  %s24306_s8 = inlined_call_operand.vmem [shape: f32[64,1], index: 8, kind: input, shape index: {}]   ;;  %s24307_s9 = inlined_call_operand.vmem [shape: f32[64,1], index: 9, kind: input, shape index: {}]   ;;  %s24308_s10 = inlined_call_operand.vmem [shape: bf16[9,64,64], index: 10, kind: input, shape index: {}]   ;;  %s24309_s11 = inlined_call_operand.vmem [shape: bf16[64,128], index: 11, kind: input, shape index: {}]   ;;  %s24310_s12 = inlined_call_operand.vmem [shape: f32[64,1], index: 12, kind: input, shape index: {}]   ;;  %s24311_s13 = inlined_call_operand.vmem [shape: bf16[9,128,64], index: 13, kind: input, shape index: {}]   ;;  %s24312_s14 = inlined_call_operand.vmem [shape: f32[128,1], index: 14, kind: input, shape index: {}]   ;;  %s24313_s15 = inlined_call_operand.vmem [shape: bf16[9,128,128], index: 15, kind: input, shape index: {}]   ;;  %s24314_s16 = inlined_call_operand.vmem [shape: f32[128,1], index: 16, kind: input, shape index: {}]   ;;  %s24315_s17 = inlined_call_operand.vmem [shape: f32[2,64,256], index: 17, kind: output, shape index: {}]  }
   0x1   :  { %24465 = sst [smem:[#allocation35_spill]] %s24298_s0 }
   0x2   :  { %24466 = sst [smem:[#allocation36_spill]] %s24299_s1 }
   0x3 LB: > { %s12548_s25 = sadd.s32 4294967295, %s17752_s24   ;;  %p12552_p0 = scmp.ge.s32.totalorder %s17752_s24, 1  ;;  %s17752_s24 = sphi %s17853_s24, %s27_s24  }
   0x4   : > { %p497_p1 = scmp.lt.s32.totalorder %s17752_s24, 3 }
   0x6   : > { %p498_p2 = pnand %p12552_p0, %p497_p1 }
   0x8   : > { %501 = sbr.rel (%p498_p2) target bundleno = 4906 (0x132a), region = 88 }
   0xf   : > { %p554_p3 = scmp.lt.s32.totalorder %s12548_s25, 1  ;;  %v24317_v0 = vmov 0   ;;  %s24467_s29 = sld [smem:[#allocation35_spill]]  ;;  %v17235_v49 = vld [vmem:[%s24300_s2] sm:$0xff]   ;;  %v17236_v50 = vld [vmem:[%s24300_s2 + $0x8] sm:$0xff]   ;;  %v17237_v51 = vld [vmem:[%s24300_s2 + $0x10] sm:$0xff]  }
  0x10   : > { %791 = vmatprep.mubr.bf16.mxu0 %v24317_v0  ;;  %1108 = vmatprep.mubr.bf16.mxu1 %v24317_v0  ;;  %v17238_v52 = vld [vmem:[%s24300_s2 + $0x18] sm:$0xff]   ;;  %v17239_v53 = vld [vmem:[%s24300_s2 + $0x20] sm:$0xff]   ;;  %v17240_v54 = vld [vmem:[%s24300_s2 + $0x28] sm:$0xff]   ;;  %s24406_s27 = smov 17   ;;  %s24404_s28 = smov 15  }
  0x11   : > { %s25313_s25 = smov (!%p554_p3, %s12548_s25), 1  ;;  %15314 = vset.pattern.permute.xlu1 %v24317_v0  ;;  %15313 = vset.pattern.permute.xlu0 %v24317_v0  ;;  %v17241_v55 = vld [vmem:[%s24300_s2 + $0x30] sm:$0xff]   ;;  %v17984_v56 = vld [vmem:[%s24300_s2 + $0x38] sm:$0xff]   ;;  %s24400_s30 = smov 127  }
  0x12   : > { %s14493_s26 = sshll.u32 %s25313_s25, 8  ;;  %s24398_s20 = smov 113  }
  0x13   : > { %s24372_s22 = smov 112   ;;  %s24638_s1 = smov 1  }
  0x14   : > { %s24639_s21 = smov 127   ;;  %s24641_s23 = smov 112  }
  0x15   : > { %s17871_s0 = scalar_lea.vmem %s24467_s29, %s14493_s26  ;;  %s24420_s26 = smov 16  }
  0x16   : > { %v571_v1 = vld [vmem:[%s17871_s0 + $0x8] sm:$0xff]  ;;  %v573_v2 = vld [vmem:[%s17871_s0 + $0x18] sm:$0xff]  ;;  %v570_v3 = vld [vmem:[%s17871_s0] sm:$0xff]  ;;  %s24402_s29 = smov 1  }
  0x17   : > { %v17876_v4 = vpack.c.bf16 %v573_v2, %v571_v1  ;;  %v572_v5 = vld [vmem:[%s17871_s0 + $0x10] sm:$0xff]  ;;  %v575_v6 = vld [vmem:[%s17871_s0 + $0x28] sm:$0xff]  ;;  %v577_v7 = vld [vmem:[%s17871_s0 + $0x38] sm:$0xff] }
  0x18   : > { %v17881_v8 = vpack.c.bf16 %v572_v5, %v570_v3  ;;  %v17883_v9 = vpack.c.bf16 %v577_v7, %v575_v6  ;;  %v574_v10 = vld [vmem:[%s17871_s0 + $0x20] sm:$0xff]  ;;  %v576_v11 = vld [vmem:[%s17871_s0 + $0x30] sm:$0xff]  ;;  %v579_v12 = vld [vmem:[%s17871_s0 + $0x48] sm:$0xff] }
  0x19   : > { %24468 = vst [vmem:[#allocation2_spill] sm:$0xff] %v17876_v4  ;;  %759 = vmatprep.subr.bf16.mxu0 %v17876_v4  ;;  %v581_v13 = vld [vmem:[%s17871_s0 + $0x58] sm:$0xff]  ;;  %v17891_v14 = vpack.c.bf16 %v576_v11, %v574_v10  ;;  %v578_v16 = vld [vmem:[%s17871_s0 + $0x40] sm:$0xff]  ;;  %v580_v17 = vld [vmem:[%s17871_s0 + $0x50] sm:$0xff] }
  0x1a   : > { %24469 = vst [vmem:[#allocation3_spill] sm:$0xff] %v17881_v8  ;;  %24470 = vst [vmem:[#allocation4_spill] sm:$0xff] %v17883_v9  ;;  %760 = vmatpush1.bf16.msra.mxu0 %v17881_v8  ;;  %v17894_v15 = vpack.c.bf16 %v581_v13, %v579_v12  ;;  %v583_v18 = vld [vmem:[%s17871_s0 + $0x68] sm:$0xff]  ;;  %v585_v19 = vld [vmem:[%s17871_s0 + $0x78] sm:$0xff]  ;;  %v17901_v20 = vpack.c.bf16 %v580_v17, %v578_v16 }
  0x1b   : > { %24471 = vst [vmem:[#allocation5_spill] sm:$0xff] %v17891_v14  ;;  %761 = vmatprep.subr.bf16.mxu0 %v17883_v9  ;;  %v17904_v21 = vpack.c.bf16 %v585_v19, %v583_v18  ;;  %v582_v22 = vld [vmem:[%s17871_s0 + $0x60] sm:$0xff]  ;;  %v584_v23 = vld [vmem:[%s17871_s0 + $0x70] sm:$0xff]  ;;  %v587_v24 = vld [vmem:[%s17871_s0 + $0x88] sm:$0xff] }
  0x1c   : > { %24472 = vst [vmem:[#allocation6_spill] sm:$0xff] %v17894_v15  ;;  %24473 = vst [vmem:[#allocation7_spill] sm:$0xff] %v17901_v20  ;;  %v589_v25 = vld [vmem:[%s17871_s0 + $0x98] sm:$0xff]  ;;  %v586_v26 = vld [vmem:[%s17871_s0 + $0x80] sm:$0xff]  ;;  %v17913_v28 = vpack.c.bf16 %v584_v23, %v582_v22 }
  0x1d   : > { %24474 = vst [vmem:[#allocation8_spill] sm:$0xff] %v17904_v21  ;;  %v588_v27 = vld [vmem:[%s17871_s0 + $0x90] sm:$0xff]  ;;  %v591_v29 = vld [vmem:[%s17871_s0 + $0xa8] sm:$0xff]  ;;  %v593_v30 = vld [vmem:[%s17871_s0 + $0xb8] sm:$0xff]  ;;  %v17918_v31 = vpack.c.bf16 %v589_v25, %v587_v24 }
  0x1e   : > { %762 = vmatpush1.bf16.msra.mxu0 %v17891_v14  ;;  %24475 = vst [vmem:[#allocation9_spill] sm:$0xff] %v17913_v28  ;;  %v590_v32 = vld [vmem:[%s17871_s0 + $0xa0] sm:$0xff]  ;;  %v592_v33 = vld [vmem:[%s17871_s0 + $0xb0] sm:$0xff]  ;;  %v17923_v34 = vpack.c.bf16 %v588_v27, %v586_v26  ;;  %v595_v35 = vld [vmem:[%s17871_s0 + $0xc8] sm:$0xff]  ;;  %v17928_v37 = vpack.c.bf16 %v593_v30, %v591_v29 }
  0x1f   : > { %763 = vmatprep.subr.bf16.mxu0 %v17894_v15  ;;  %24476 = vst [vmem:[#allocation10_spill] sm:$0xff] %v17918_v31  ;;  %v597_v36 = vld [vmem:[%s17871_s0 + $0xd8] sm:$0xff]  ;;  %v594_v38 = vld [vmem:[%s17871_s0 + $0xc0] sm:$0xff]  ;;  %v596_v39 = vld [vmem:[%s17871_s0 + $0xd0] sm:$0xff]  ;;  %v17933_v40 = vpack.c.bf16 %v592_v33, %v590_v32 }
  0x20   : > { %24477 = vst [vmem:[#allocation11_spill] sm:$0xff] %v17923_v34  ;;  %24478 = vst [vmem:[#allocation12_spill] sm:$0xff] %v17928_v37  ;;  %v599_v41 = vld [vmem:[%s17871_s0 + $0xe8] sm:$0xff]  ;;  %v601_v42 = vld [vmem:[%s17871_s0 + $0xf8] sm:$0xff]  ;;  %v17938_v43 = vpack.c.bf16 %v597_v36, %v595_v35  ;;  %v17943_v46 = vpack.c.bf16 %v596_v39, %v594_v38 }
  0x21   : > { %24479 = vst [vmem:[#allocation13_spill] sm:$0xff] %v17933_v40  ;;  %v598_v44 = vld [vmem:[%s17871_s0 + $0xe0] sm:$0xff]  ;;  %v600_v45 = vld [vmem:[%s17871_s0 + $0xf0] sm:$0xff]  ;;  %v17946_v47 = vpack.c.bf16 %v601_v42, %v599_v41 }
  0x22   : > { %764 = vmatpush1.bf16.msra.mxu0 %v17901_v20  ;;  %24480 = vst [vmem:[#allocation14_spill] sm:$0xff] %v17938_v43  ;;  %24481 = vst [vmem:[#allocation15_spill] sm:$0xff] %v17943_v46  ;;  %v17949_v48 = vpack.c.bf16 %v600_v45, %v598_v44 }
  0x23   : > { %765 = vmatprep.subr.bf16.mxu0 %v17904_v21  ;;  %24482 = vst [vmem:[#allocation16_spill] sm:$0xff] %v17946_v47 }
  0x24   : > { %24483 = vst [vmem:[#allocation17_spill] sm:$0xff] %v17949_v48 }
  0x26   : > { %766 = vmatpush1.bf16.msra.mxu0 %v17913_v28 }
  0x27   : > { %767 = vmatprep.subr.bf16.mxu0 %v17918_v31 }
  0x2a   : > { %768 = vmatpush1.bf16.msra.mxu0 %v17923_v34 }
  0x2b   : > { %769 = vmatprep.subr.bf16.mxu0 %v17928_v37 }
  0x2e   : > { %770 = vmatpush1.bf16.msra.mxu0 %v17933_v40 }
  0x2f   : > { %771 = vmatprep.subr.bf16.mxu0 %v17938_v43 }
  0x32   : > { %772 = vmatpush1.bf16.msra.mxu0 %v17943_v46 }
  0x33   : > { %773 = vmatprep.subr.bf16.mxu0 %v17946_v47 }
  0x36   : > { %774 = vmatpush1.bf16.msra.mxu0 %v17949_v48 }
  0x39   : > { %792 = vmatmul.mubr.bf16.vlgmr.msra.gmra.mrb[0].mxu0 %v17235_v49 }
  0x3a   : > { %801 = vmatprep.mubr.bf16.mxu0 %v24317_v0 }
  0x41   : > { %802 = vmatmul.mubr.bf16.gmra.mrb[4].mxu0 %v17236_v50 }
  0x42   : > { %811 = vmatprep.mubr.bf16.mxu0 %v24317_v0 }
  0x49   : > { %812 = vmatmul.mubr.bf16.gmra.mrb[8].mxu0 %v17237_v51 }
  0x4a   : > { %821 = vmatprep.mubr.bf16.mxu0 %v24317_v0 }
  0x51   : > { %822 = vmatmul.mubr.bf16.gmra.mrb[12].mxu0 %v17238_v52 }
  0x52   : > { %831 = vmatprep.mubr.bf16.mxu0 %v24317_v0 }
  0x59   : > { %832 = vmatmul.mubr.bf16.gmra.mrb[16].mxu0 %v17239_v53 }
  0x5a   : > { %841 = vmatprep.mubr.bf16.mxu0 %v24317_v0 }
  0x61   : > { %842 = vmatmul.mubr.bf16.gmra.mrb[20].mxu0 %v17240_v54 }
  0x62   : > { %851 = vmatprep.mubr.bf16.mxu0 %v24317_v0 }
  0x69   : > { %852 = vmatmul.mubr.bf16.gmra.mrb[24].mxu0 %v17241_v55 }
  0x6a   : > { %861 = vmatprep.mubr.bf16.mxu0 %v24317_v0 }
  0x71   : > { %862 = vmatmul.mubr.bf16.gmra.mrb[28].mxu0 %v17984_v56 }
  0x72   : > { %1048 = vmatprep.mubr.bf16.mxu0 %v24317_v0 }
 0x10c   : > { %v793_v57 = vpop.f32.mrb[0].mxu0 }
 0x10d   : > { %v795_v58 = vpop.f32.mrb[1].mxu0 }
 0x10e   : > { %v797_v59 = vpop.f32.mrb[2].mxu0  ;;  %v872_v60 = vadd.f32 %v795_v58, %v793_v57 }
 0x10f   : > { %v799_v61 = vpop.f32.mrb[3].mxu0 }
 0x110   : > { %v875_v62 = vadd.f32 %v799_v61, %v797_v59  ;;  %873 = vadd.xlane.f32.xlu0 %v872_v60  ;;  %v648_v59 = vld [vmem:[%s24301_s3 + $0x8] sm:$0xff]  ;;  %v663_v60 = vld [vmem:[%s24302_s4] sm:$0xff] }
 0x111   : > { %v647_v61 = vld [vmem:[%s24301_s3] sm:$0xff] }
 0x114   : > { %876 = vadd.xlane.f32.xlu0 %v875_v62  ;;  %v803_v63 = vpop.f32.mrb[4].mxu0  ;;  %v664_v62 = vld [vmem:[%s24302_s4 + $0x8] sm:$0xff] }
 0x115   : > { %v805_v1 = vpop.f32.mrb[5].mxu0 }
 0x116   : > { %v807_v2 = vpop.f32.mrb[6].mxu0  ;;  %v878_v3 = vadd.f32 %v805_v1, %v803_v63  ;;  %v650_v63 = vld [vmem:[%s24301_s3 + $0x18] sm:$0xff]  ;;  %v649_v1 = vld [vmem:[%s24301_s3 + $0x10] sm:$0xff] }
 0x117   : > { %v809_v5 = vpop.f32.mrb[7].mxu0 }
 0x118   : > { %v881_v6 = vadd.f32 %v809_v5, %v807_v2  ;;  %879 = vadd.xlane.f32.xlu1 %v878_v3  ;;  %v668_v2 = vld [vmem:[%s24302_s4 + $0x28] sm:$0xff]  ;;  %v665_v3 = vld [vmem:[%s24302_s4 + $0x10] sm:$0xff]  ;;  %v654_v5 = vld [vmem:[%s24301_s3 + $0x38] sm:$0xff] }
 0x11c   : > { %882 = vadd.xlane.f32.xlu1 %v881_v6  ;;  %v813_v7 = vpop.f32.mrb[8].mxu0 }
 0x11d   : > { %v815_v10 = vpop.f32.mrb[9].mxu0 }
 0x11e   : > { %v884_v11 = vadd.f32 %v815_v10, %v813_v7  ;;  %v817_v12 = vpop.f32.mrb[10].mxu0  ;;  %v666_v10 = vld [vmem:[%s24302_s4 + $0x18] sm:$0xff] }
 0x11f   : > { %v819_v13 = vpop.f32.mrb[11].mxu0 }
 0x120   : > { %v887_v16 = vadd.f32 %v819_v13, %v817_v12  ;;  %885 = vadd.xlane.f32.xlu0 %v884_v11  ;;  %v670_v11 = vld [vmem:[%s24302_s4 + $0x38] sm:$0xff]  ;;  %v17707_v12 = vld [vmem:[%s17871_s0] sm:$0xff] }
 0x122   : > { %888 = vadd.xlane.f32.xlu1 %v887_v16 }
 0x124   : > { %v823_v17 = vpop.f32.mrb[12].mxu0 }
 0x125   : > { %v825_v18 = vpop.f32.mrb[13].mxu0 }
 0x126   : > { %v890_v19 = vadd.f32 %v825_v18, %v823_v17  ;;  %v827_v22 = vpop.f32.mrb[14].mxu0  ;;  %v17708_v17 = vld [vmem:[%s17871_s0 + $0x8] sm:$0xff] }
 0x127   : > { %v829_v23 = vpop.f32.mrb[15].mxu0 }
 0x128   : > { %v893_v24 = vadd.f32 %v829_v23, %v827_v22  ;;  %891 = vadd.xlane.f32.xlu0 %v890_v19  ;;  %v651_v22 = vld [vmem:[%s24301_s3 + $0x20] sm:$0xff]  ;;  %v656_v23 = vld [vmem:[%s24301_s3 + $0x48] sm:$0xff] }
 0x12a   : > { %894 = vadd.xlane.f32.xlu1 %v893_v24  ;;  %v17709_v24 = vld [vmem:[%s17871_s0 + $0x10] sm:$0xff] }
 0x12c   : > { %v833_v25 = vpop.f32.mrb[16].mxu0 }
 0x12d   : > { %v835_v26 = vpop.f32.mrb[17].mxu0 }
 0x12e   : > { %v896_v27 = vadd.f32 %v835_v26, %v833_v25  ;;  %v837_v29 = vpop.f32.mrb[18].mxu0  ;;  %v17710_v26 = vld [vmem:[%s17871_s0 + $0x18] sm:$0xff] }
 0x12f   : > { %v839_v30 = vpop.f32.mrb[19].mxu0 }
 0x130   : > { %v899_v32 = vadd.f32 %v839_v30, %v837_v29  ;;  %897 = vadd.xlane.f32.xlu0 %v896_v27 }
 0x132   : > { %900 = vadd.xlane.f32.xlu1 %v899_v32 }
 0x134   : > { %v843_v33 = vpop.f32.mrb[20].mxu0 }
 0x135   : > { %v845_v35 = vpop.f32.mrb[21].mxu0 }
 0x136   : > { %v902_v36 = vadd.f32 %v845_v35, %v843_v33  ;;  %v847_v38 = vpop.f32.mrb[22].mxu0 }
 0x137   : > { %v849_v39 = vpop.f32.mrb[23].mxu0 }
 0x138   : > { %v905_v41 = vadd.f32 %v849_v39, %v847_v38  ;;  %903 = vadd.xlane.f32.xlu0 %v902_v36  ;;  %v652_v38 = vld [vmem:[%s24301_s3 + $0x28] sm:$0xff] }
 0x13a   : > { %906 = vadd.xlane.f32.xlu1 %v905_v41 }
 0x13c   : > { %v853_v42 = vpop.f32.mrb[24].mxu0 }
 0x13d   : > { %v855_v44 = vpop.f32.mrb[25].mxu0 }
 0x13e   : > { %v908_v45 = vadd.f32 %v855_v44, %v853_v42  ;;  %v857_v49 = vpop.f32.mrb[26].mxu0  ;;  %v672_v44 = vld [vmem:[%s24302_s4 + $0x48] sm:$0xff] }
 0x13f   : > { %v859_v50 = vpop.f32.mrb[27].mxu0 }
 0x140   : > { %v911_v51 = vadd.f32 %v859_v50, %v857_v49  ;;  %909 = vadd.xlane.f32.xlu0 %v908_v45  ;;  %v17711_v45 = vld [vmem:[%s17871_s0 + $0x28] sm:$0xff] }
 0x142   : > { %912 = vadd.xlane.f32.xlu1 %v911_v51  ;;  %v667_v51 = vld [vmem:[%s24302_s4 + $0x20] sm:$0xff] }
 0x144   : > { %v863_v52 = vpop.f32.mrb[28].mxu0 }
 0x145   : > { %v865_v53 = vpop.f32.mrb[29].mxu0 }
 0x146   : > { %v914_v54 = vadd.f32 %v865_v53, %v863_v52  ;;  %v867_v55 = vpop.f32.mrb[30].mxu0  ;;  %v17712_v52 = vld [vmem:[%s17871_s0 + $0x20] sm:$0xff] }
 0x147   : > { %v869_v57 = vpop.f32.mrb[31].mxu0 }
 0x148   : > { %v917_v58 = vadd.f32 %v869_v57, %v867_v55  ;;  %915 = vadd.xlane.f32.xlu0 %v914_v54  ;;  %v17713_v54 = vld [vmem:[%s17871_s0 + $0x30] sm:$0xff]  ;;  %v17714_v57 = vld [vmem:[%s17871_s0 + $0x38] sm:$0xff] }
 0x14a   : > { %918 = vadd.xlane.f32.xlu1 %v917_v58 }
 0x15b   : > { %1264 = vperm.xlu1 %15314, %v648_v59  }
 0x15e   : > { %1259 = vperm.xlu0 %15313, %v647_v61  }
 0x15f   : > { %1371 = vperm.xlu1 %15314, %v663_v60   ;;  %v658_v60 = vld [vmem:[%s24301_s3 + $0x58] sm:$0xff] }
 0x162   : > { %1274 = vperm.xlu0 %15313, %v650_v63  }
 0x163   : > { %1376 = vperm.xlu1 %15314, %v664_v62  }
 0x166   : > { %1396 = vperm.xlu0 %15313, %v668_v2   ;;  %v653_v2 = vld [vmem:[%s24301_s3 + $0x30] sm:$0xff] }
 0x167   : > { %1269 = vperm.xlu1 %15314, %v649_v1  }
 0x16a   : > { %1294 = vperm.xlu0 %15313, %v654_v5  }
 0x16b   : > { %1381 = vperm.xlu1 %15314, %v665_v3  }
 0x16e   : > { %1406 = vperm.xlu0 %15313, %v670_v11  }
 0x16f   : > { %1386 = vperm.xlu1 %15314, %v666_v10   ;;  %v17716_v10 = vld [vmem:[%s17871_s0 + $0x48] sm:$0xff] }
 0x172   : > { %1304 = vperm.xlu0 %15313, %v656_v23  }
 0x173   : > { %1279 = vperm.xlu1 %15314, %v651_v22   ;;  %v17717_v22 = vld [vmem:[%s17871_s0 + $0x50] sm:$0xff] }
 0x176   : > { %1416 = vperm.xlu0 %15313, %v672_v44   ;;  %v655_v44 = vld [vmem:[%s24301_s3 + $0x40] sm:$0xff] }
 0x177   : > { %1284 = vperm.xlu1 %15314, %v652_v38  }
 0x17a   : > { %1314 = vperm.xlu0 %15313, %v658_v60  }
 0x17b   : > { %1391 = vperm.xlu1 %15314, %v667_v51   ;;  %v17720_v51 = vld [vmem:[%s17871_s0 + $0x68] sm:$0xff] }
 0x17f   : > { %1289 = vperm.xlu1 %15314, %v653_v2  }
 0x19d   : > { %v874_v6 = vpop.xlane.xlu0 %873 }
 0x19e   : > { %v920_v7 = vmul.f32 0.0009765625, %v874_v6  ;;  %v17715_v6 = vld [vmem:[%s17871_s0 + $0x40] sm:$0xff] }
 0x1a0   : > { %v18022_v13 = vsub.f32 %v17707_v12, %v920_v7  ;;  %v18025_v18 = vsub.f32 %v17708_v17, %v920_v7 }
 0x1a1   : > { %v877_v16 = vpop.xlane.xlu0 %876 }
 0x1a2   : > { %v921_v19 = vmul.f32 0.0009765625, %v877_v16  ;;  %v968_v29 = vmul.f32 %v18022_v13, %v18022_v13  ;;  %v969_v32 = vmul.f32 %v18025_v18, %v18025_v18 }
 0x1a4   : > { %v18034_v25 = vsub.f32 %v17709_v24, %v921_v19  ;;  %v18037_v27 = vsub.f32 %v17710_v26, %v921_v19  ;;  %v674_v19 = vld [vmem:[%s24302_s4 + $0x58] sm:$0xff] }
 0x1a5   : > { %v880_v30 = vpop.xlane.xlu1 %879  ;;  %v17718_v24 = vld [vmem:[%s17871_s0 + $0x58] sm:$0xff]  ;;  %1426 = vperm.xlu0 %15313, %v674_v19  }
 0x1a6   : > { %v970_v33 = vmul.f32 %v18034_v25, %v18034_v25  ;;  %v971_v35 = vmul.f32 %v18037_v27, %v18037_v27  ;;  %v922_v36 = vmul.f32 0.0009765625, %v880_v30 }
 0x1a8   : > { %v1001_v39 = vpack.c.bf16 %v971_v35, %v969_v32  ;;  %v1000_v41 = vpack.c.bf16 %v970_v33, %v968_v29  ;;  %v18054_v49 = vsub.f32 %v17711_v45, %v922_v36  ;;  %v18060_v53 = vsub.f32 %v17712_v52, %v922_v36  ;;  %v669_v29 = vld [vmem:[%s24302_s4 + $0x30] sm:$0xff]  ;;  %v17719_v45 = vld [vmem:[%s17871_s0 + $0x60] sm:$0xff] }
 0x1a9   : > { %v883_v42 = vpop.xlane.xlu1 %882  ;;  %1401 = vperm.xlu1 %15314, %v669_v29  }
 0x1aa   : > { %v923_v50 = vmul.f32 0.0009765625, %v883_v42  ;;  %1016 = vmatprep.subr.bf16.mxu0 %v1001_v39  ;;  %14496 = vmatprep.subr.bf16.mxu1 %v1001_v39  ;;  %v973_v61 = vmul.f32 %v18054_v49, %v18054_v49  ;;  %v972_v3 = vmul.f32 %v18060_v53, %v18060_v53 }
 0x1ab   : > { %1017 = vmatpush1.bf16.msra.mxu0 %v1000_v41  ;;  %14504 = vmatpush1.bf16.msra.mxu1 %v1000_v41 }
 0x1ac   : > { %v18063_v55 = vsub.f32 %v17713_v54, %v923_v50  ;;  %v18066_v58 = vsub.f32 %v17714_v57, %v923_v50  ;;  %v660_v57 = vld [vmem:[%s24301_s3 + $0x68] sm:$0xff] }
 0x1ad   : > { %v886_v59 = vpop.xlane.xlu0 %885  ;;  %1299 = vperm.xlu1 %15314, %v655_v44   ;;  %1324 = vperm.xlu0 %15313, %v660_v57  }
 0x1ae   : > { %v974_v62 = vmul.f32 %v18063_v55, %v18063_v55  ;;  %v975_v63 = vmul.f32 %v18066_v58, %v18066_v58  ;;  %v924_v1 = vmul.f32 0.0009765625, %v886_v59  ;;  %v17721_v59 = vld [vmem:[%s17871_s0 + $0x70] sm:$0xff] }
 0x1af   : > { %v889_v5 = vpop.xlane.xlu1 %888 }
 0x1b0   : > { %v18083_v7 = vsub.f32 %v17715_v6, %v924_v1  ;;  %v18086_v11 = vsub.f32 %v17716_v10, %v924_v1  ;;  %v925_v12 = vmul.f32 0.0009765625, %v889_v5  ;;  %v1003_v16 = vpack.c.bf16 %v975_v63, %v973_v61  ;;  %v17722_v61 = vld [vmem:[%s17871_s0 + $0x78] sm:$0xff]  ;;  %v671_v63 = vld [vmem:[%s24302_s4 + $0x40] sm:$0xff]  ;;  %v676_v6 = vld [vmem:[%s24302_s4 + $0x68] sm:$0xff] }
 0x1b1   : > { %v1002_v17 = vpack.c.bf16 %v974_v62, %v972_v3  ;;  %1411 = vperm.xlu1 %15314, %v671_v63   ;;  %1436 = vperm.xlu0 %15313, %v676_v6  }
 0x1b2   : > { %v18092_v23 = vsub.f32 %v17717_v22, %v925_v12  ;;  %v18095_v26 = vsub.f32 %v17718_v24, %v925_v12  ;;  %1018 = vmatprep.subr.bf16.mxu0 %v1003_v16  ;;  %v976_v30 = vmul.f32 %v18083_v7, %v18083_v7  ;;  %14497 = vmatprep.subr.bf16.mxu1 %v1003_v16  ;;  %v657_v22 = vld [vmem:[%s24301_s3 + $0x50] sm:$0xff]  ;;  %v17723_v24 = vld [vmem:[%s17871_s0 + $0x80] sm:$0xff] }
 0x1b3   : > { %1019 = vmatpush1.bf16.msra.mxu0 %v1002_v17  ;;  %v977_v32 = vmul.f32 %v18086_v11, %v18086_v11  ;;  %14505 = vmatpush1.bf16.msra.mxu1 %v1002_v17 }
 0x1b4   : > { %v978_v33 = vmul.f32 %v18092_v23, %v18092_v23  ;;  %v979_v35 = vmul.f32 %v18095_v26, %v18095_v26 }
 0x1b5   : > { %v892_v36 = vpop.xlane.xlu0 %891  ;;  %1309 = vperm.xlu1 %15314, %v657_v22   ;;  %v675_v22 = vld [vmem:[%s24302_s4 + $0x60] sm:$0xff] }
 0x1b6   : > { %v926_v38 = vmul.f32 0.0009765625, %v892_v36  ;;  %v1005_v39 = vpack.c.bf16 %v979_v35, %v977_v32  ;;  %v1004_v41 = vpack.c.bf16 %v978_v33, %v976_v30  ;;  %v17724_v30 = vld [vmem:[%s17871_s0 + $0x88] sm:$0xff]  ;;  %v17725_v35 = vld [vmem:[%s17871_s0 + $0x90] sm:$0xff] }
 0x1b7   : > { %v895_v42 = vpop.xlane.xlu1 %894 }
 0x1b8   : > { %v18112_v50 = vsub.f32 %v17719_v45, %v926_v38  ;;  %v18115_v52 = vsub.f32 %v17720_v51, %v926_v38  ;;  %v927_v54 = vmul.f32 0.0009765625, %v895_v42  ;;  %1020 = vmatprep.subr.bf16.mxu0 %v1005_v39  ;;  %14498 = vmatprep.subr.bf16.mxu1 %v1005_v39  ;;  %v17726_v38 = vld [vmem:[%s17871_s0 + $0x98] sm:$0xff] }
 0x1b9   : > { %1021 = vmatpush1.bf16.msra.mxu0 %v1004_v41  ;;  %14506 = vmatpush1.bf16.msra.mxu1 %v1004_v41  ;;  %v673_v41 = vld [vmem:[%s24302_s4 + $0x50] sm:$0xff] }
 0x1ba   : > { %v18121_v60 = vsub.f32 %v17721_v59, %v927_v54  ;;  %v18124_v62 = vsub.f32 %v17722_v61, %v927_v54  ;;  %v980_v1 = vmul.f32 %v18112_v50, %v18112_v50  ;;  %v981_v2 = vmul.f32 %v18115_v52, %v18115_v52  ;;  %1421 = vperm.xlu1 %15314, %v673_v41  }
 0x1bc   : > { %v982_v3 = vmul.f32 %v18121_v60, %v18121_v60  ;;  %v983_v5 = vmul.f32 %v18124_v62, %v18124_v62 }
 0x1bd   : > { %v898_v10 = vpop.xlane.xlu0 %897 }
 0x1be   : > { %v928_v12 = vmul.f32 0.0009765625, %v898_v10  ;;  %v1007_v16 = vpack.c.bf16 %v983_v5, %v981_v2  ;;  %v1006_v17 = vpack.c.bf16 %v982_v3, %v980_v1  ;;  %v659_v1 = vld [vmem:[%s24301_s3 + $0x60] sm:$0xff]  ;;  %v17728_v5 = vld [vmem:[%s17871_s0 + $0xa8] sm:$0xff] }
 0x1bf   : > { %v901_v19 = vpop.xlane.xlu1 %900  ;;  %v17727_v2 = vld [vmem:[%s17871_s0 + $0xa0] sm:$0xff]  ;;  %1319 = vperm.xlu1 %15314, %v659_v1   ;;  %v17733_v1 = vld [vmem:[%s17871_s0 + $0xd0] sm:$0xff] }
 0x1c0   : > { %v18144_v29 = vsub.f32 %v17723_v24, %v928_v12  ;;  %v18147_v32 = vsub.f32 %v17724_v30, %v928_v12  ;;  %v929_v33 = vmul.f32 0.0009765625, %v901_v19  ;;  %1022 = vmatprep.subr.bf16.mxu0 %v1007_v16  ;;  %14499 = vmatprep.subr.bf16.mxu1 %v1007_v16  ;;  %v17729_v12 = vld [vmem:[%s17871_s0 + $0xb0] sm:$0xff] }
 0x1c1   : > { %1023 = vmatpush1.bf16.msra.mxu0 %v1006_v17  ;;  %14507 = vmatpush1.bf16.msra.mxu1 %v1006_v17  ;;  %v17730_v17 = vld [vmem:[%s17871_s0 + $0xb8] sm:$0xff] }
 0x1c2   : > { %24484 = vst [vmem:[#allocation18_spill] sm:$0xff] %v18144_v29  ;;  %24485 = vst [vmem:[#allocation19_spill] sm:$0xff] %v18147_v32  ;;  %v18150_v36 = vsub.f32 %v17725_v35, %v929_v33  ;;  %v18153_v39 = vsub.f32 %v17726_v38, %v929_v33  ;;  %v984_v42 = vmul.f32 %v18144_v29, %v18144_v29 }
 0x1c3   : > { %v985_v44 = vmul.f32 %v18147_v32, %v18147_v32  ;;  %1431 = vperm.xlu1 %15314, %v675_v22  }
 0x1c4   : > { %24486 = vst [vmem:[#allocation20_spill] sm:$0xff] %v18150_v36  ;;  %24487 = vst [vmem:[#allocation21_spill] sm:$0xff] %v18153_v39  ;;  %v986_v45 = vmul.f32 %v18150_v36, %v18150_v36  ;;  %v987_v51 = vmul.f32 %v18153_v39, %v18153_v39 }
 0x1c5   : > { %v904_v54 = vpop.xlane.xlu0 %903 }
 0x1c6   : > { %v930_v57 = vmul.f32 0.0009765625, %v904_v54  ;;  %v1009_v59 = vpack.c.bf16 %v987_v51, %v985_v44  ;;  %v1008_v61 = vpack.c.bf16 %v986_v45, %v984_v42  ;;  %v661_v51 = vld [vmem:[%s24301_s3 + $0x70] sm:$0xff]  ;;  %v17731_v54 = vld [vmem:[%s17871_s0 + $0xc0] sm:$0xff] }
 0x1c7   : > { %v907_v63 = vpop.xlane.xlu1 %906  ;;  %1329 = vperm.xlu1 %15314, %v661_v51  }
 0x1c8   : > { %v18170_v3 = vsub.f32 %v17727_v2, %v930_v57  ;;  %v18173_v6 = vsub.f32 %v17728_v5, %v930_v57  ;;  %v931_v10 = vmul.f32 0.0009765625, %v907_v63  ;;  %1024 = vmatprep.subr.bf16.mxu0 %v1009_v59  ;;  %14500 = vmatprep.subr.bf16.mxu1 %v1009_v59  ;;  %v17732_v59 = vld [vmem:[%s17871_s0 + $0xc8] sm:$0xff]  ;;  %v17734_v5 = vld [vmem:[%s17871_s0 + $0xd8] sm:$0xff] }
 0x1c9   : > { %1025 = vmatpush1.bf16.msra.mxu0 %v1008_v61  ;;  %14508 = vmatpush1.bf16.msra.mxu1 %v1008_v61 }
 0x1ca   : > { %24488 = vst [vmem:[#allocation22_spill] sm:$0xff] %v18170_v3  ;;  %24489 = vst [vmem:[#allocation23_spill] sm:$0xff] %v18173_v6  ;;  %v18176_v16 = vsub.f32 %v17729_v12, %v931_v10  ;;  %v18179_v19 = vsub.f32 %v17730_v17, %v931_v10  ;;  %v988_v24 = vmul.f32 %v18170_v3, %v18170_v3 }
 0x1cb   : > { %v989_v30 = vmul.f32 %v18173_v6, %v18173_v6 }
 0x1cc   : > { %24490 = vst [vmem:[#allocation24_spill] sm:$0xff] %v18176_v16  ;;  %24491 = vst [vmem:[#allocation25_spill] sm:$0xff] %v18179_v19  ;;  %v990_v33 = vmul.f32 %v18176_v16, %v18176_v16  ;;  %v991_v35 = vmul.f32 %v18179_v19, %v18179_v19 }
 0x1cd   : > { %v910_v38 = vpop.xlane.xlu0 %909 }
 0x1ce   : > { %v932_v41 = vmul.f32 0.0009765625, %v910_v38  ;;  %v1011_v42 = vpack.c.bf16 %v991_v35, %v989_v30  ;;  %v1010_v44 = vpack.c.bf16 %v990_v33, %v988_v24 }
 0x1cf   : > { %v913_v45 = vpop.xlane.xlu1 %912 }
 0x1d0   : > { %v18196_v57 = vsub.f32 %v17731_v54, %v932_v41  ;;  %v18199_v61 = vsub.f32 %v17732_v59, %v932_v41  ;;  %v933_v63 = vmul.f32 0.0009765625, %v913_v45  ;;  %1026 = vmatprep.subr.bf16.mxu0 %v1011_v42  ;;  %14501 = vmatprep.subr.bf16.mxu1 %v1011_v42  ;;  %v17735_v42 = vld [vmem:[%s17871_s0 + $0xe0] sm:$0xff]  ;;  %v17736_v45 = vld [vmem:[%s17871_s0 + $0xe8] sm:$0xff]  ;;  %v17737_v59 = vld [vmem:[%s17871_s0 + $0xf0] sm:$0xff] }
 0x1d1   : > { %1027 = vmatpush1.bf16.msra.mxu0 %v1010_v44  ;;  %14509 = vmatpush1.bf16.msra.mxu1 %v1010_v44 }
 0x1d2   : > { %v18202_v2 = vsub.f32 %v17733_v1, %v933_v63  ;;  %v18205_v10 = vsub.f32 %v17734_v5, %v933_v63  ;;  %v992_v12 = vmul.f32 %v18196_v57, %v18196_v57  ;;  %v993_v17 = vmul.f32 %v18199_v61, %v18199_v61  ;;  %v17738_v1 = vld [vmem:[%s17871_s0 + $0xf8] sm:$0xff]  ;;  %s24396_s0 = smov 111  }
 0x1d4   : > { %v994_v22 = vmul.f32 %v18202_v2, %v18202_v2  ;;  %v995_v24 = vmul.f32 %v18205_v10, %v18205_v10 }
 0x1d5   : > { %v916_v30 = vpop.xlane.xlu0 %915 }
 0x1d6   : > { %v934_v33 = vmul.f32 0.0009765625, %v916_v30  ;;  %v1013_v35 = vpack.c.bf16 %v995_v24, %v993_v17  ;;  %v1012_v38 = vpack.c.bf16 %v994_v22, %v992_v12 }
 0x1d7   : > { %v919_v41 = vpop.xlane.xlu1 %918 }
 0x1d8   : > { %v18216_v44 = vsub.f32 %v17735_v42, %v934_v33  ;;  %v18219_v51 = vsub.f32 %v17736_v45, %v934_v33  ;;  %v935_v54 = vmul.f32 0.0009765625, %v919_v41  ;;  %1028 = vmatprep.subr.bf16.mxu0 %v1013_v35  ;;  %14502 = vmatprep.subr.bf16.mxu1 %v1013_v35  ;;  %v17739_v35 = vld [vmem:[%s24300_s2] sm:$0xff]   ;;  %v17741_v41 = vld [vmem:[%s24300_s2 + $0x8] sm:$0xff]   ;;  %v17742_v42 = vld [vmem:[%s24300_s2 + $0x10] sm:$0xff]  }
 0x1d9   : > { %1029 = vmatpush1.bf16.msra.mxu0 %v1012_v38  ;;  %14510 = vmatpush1.bf16.msra.mxu1 %v1012_v38  ;;  %v17740_v38 = vld [vmem:[%s24300_s2 + $0x30] sm:$0xff]   ;;  %v17743_v45 = vld [vmem:[%s24300_s2 + $0x18] sm:$0xff]  }
 0x1da   : > { %v18222_v63 = vsub.f32 %v17737_v59, %v935_v54  ;;  %v18225_v5 = vsub.f32 %v17738_v1, %v935_v54  ;;  %v996_v12 = vmul.f32 %v18216_v44, %v18216_v44  ;;  %v997_v17 = vmul.f32 %v18219_v51, %v18219_v51  ;;  %v17745_v54 = vld [vmem:[%s24300_s2 + $0x28] sm:$0xff]  }
 0x1dc   : > { %v998_v22 = vmul.f32 %v18222_v63, %v18222_v63  ;;  %v999_v24 = vmul.f32 %v18225_v5, %v18225_v5 }
 0x1de   : > { %v1015_v30 = vpack.c.bf16 %v999_v24, %v997_v17  ;;  %v1014_v33 = vpack.c.bf16 %v998_v22, %v996_v12 }
 0x1e0   : > { %1030 = vmatprep.subr.bf16.mxu0 %v1015_v30  ;;  %14503 = vmatprep.subr.bf16.mxu1 %v1015_v30 }
 0x1e1   : > { %1031 = vmatpush1.bf16.msra.mxu0 %v1014_v33  ;;  %14511 = vmatpush1.bf16.msra.mxu1 %v1014_v33 }
 0x1e4   : > { %1049 = vmatmul.mubr.bf16.vlgmr.msra.gmra.mrb[32].mxu0 %v17739_v35  ;;  %1109 = vmatmul.mubr.bf16.vlgmr.msra.gmra.mrb[0].mxu1 %v17740_v38 }
 0x1e5   : > { %1058 = vmatprep.mubr.bf16.mxu0 %v24317_v0  ;;  %1118 = vmatprep.mubr.bf16.mxu1 %v24317_v0 }
 0x1ec   : > { %1059 = vmatmul.mubr.bf16.gmra.mrb[36].mxu0 %v17741_v41  ;;  %1119 = vmatmul.mubr.bf16.gmra.mrb[4].mxu1 %v17984_v56  ;;  %v17744_v56 = vld [vmem:[%s24300_s2 + $0x20] sm:$0xff]  }
 0x1ed   : > { %1068 = vmatprep.mubr.bf16.mxu0 %v24317_v0  ;;  %4139 = vmatprep.mubr.bf16.mxu1 %v24317_v0 }
 0x1f4   : > { %1069 = vmatmul.mubr.bf16.gmra.mrb[40].mxu0 %v17742_v42 }
 0x1f5   : > { %1078 = vmatprep.mubr.bf16.mxu0 %v24317_v0 }
 0x1fc   : > { %1079 = vmatmul.mubr.bf16.gmra.mrb[44].mxu0 %v17743_v45 }
 0x1fd   : > { %1088 = vmatprep.mubr.bf16.mxu0 %v24317_v0 }
 0x204   : > { %1089 = vmatmul.mubr.bf16.gmra.mrb[48].mxu0 %v17744_v56 }
 0x205   : > { %1098 = vmatprep.mubr.bf16.mxu0 %v24317_v0 }
 0x20c   : > { %1099 = vmatmul.mubr.bf16.gmra.mrb[52].mxu0 %v17745_v54 }
 0x20d   : > { %2084 = vmatprep.mubr.bf16.mxu0 %v24317_v0 }
 0x2b7   : > { %v1050_v59 = vpop.f32.mrb[32].mxu0  ;;  %v1110_v1 = vpop.f32.mrb[0].mxu1 }
 0x2b8   : > { %v1052_v12 = vpop.f32.mrb[33].mxu0  ;;  %v1112_v17 = vpop.f32.mrb[1].mxu1 }
 0x2b9   : > { %v1129_v22 = vadd.f32 %v1052_v12, %v1050_v59  ;;  %v1054_v24 = vpop.f32.mrb[34].mxu0  ;;  %v1165_v30 = vadd.f32 %v1112_v17, %v1110_v1  ;;  %v1114_v33 = vpop.f32.mrb[2].mxu1 }
 0x2ba   : > { %v1056_v35 = vpop.f32.mrb[35].mxu0  ;;  %v1116_v38 = vpop.f32.mrb[3].mxu1 }
 0x2bb   : > { %v1132_v41 = vadd.f32 %v1056_v35, %v1054_v24  ;;  %1130 = vadd.xlane.f32.xlu0 %v1129_v22  ;;  %v1168_v42 = vadd.f32 %v1116_v38, %v1114_v33 }
 0x2bd   : > { %1133 = vadd.xlane.f32.xlu1 %v1132_v41 }
 0x2bf   : > { %1166 = vadd.xlane.f32.xlu0 %v1165_v30  ;;  %v1060_v45 = vpop.f32.mrb[36].mxu0  ;;  %v1120_v56 = vpop.f32.mrb[4].mxu1 }
 0x2c0   : > { %v1062_v54 = vpop.f32.mrb[37].mxu0  ;;  %v1122_v48 = vpop.f32.mrb[5].mxu1 }
 0x2c1   : > { %v1135_v0 = vadd.f32 %v1062_v54, %v1060_v45  ;;  %1169 = vadd.xlane.f32.xlu1 %v1168_v42  ;;  %v1064_v47 = vpop.f32.mrb[38].mxu0  ;;  %v1171_v46 = vadd.f32 %v1122_v48, %v1120_v56  ;;  %v1124_v43 = vpop.f32.mrb[6].mxu1 }
 0x2c2   : > { %v1066_v59 = vpop.f32.mrb[39].mxu0  ;;  %v1126_v12 = vpop.f32.mrb[7].mxu1 }
 0x2c3   : > { %v1138_v1 = vadd.f32 %v1066_v59, %v1064_v47  ;;  %1136 = vadd.xlane.f32.xlu0 %v1135_v0  ;;  %v1174_v17 = vadd.f32 %v1126_v12, %v1124_v43 }
 0x2c5   : > { %1172 = vadd.xlane.f32.xlu1 %v1171_v46 }
 0x2c7   : > { %1175 = vadd.xlane.f32.xlu0 %v1174_v17  ;;  %v1070_v22 = vpop.f32.mrb[40].mxu0  ;;  %v18265_v17 = vpop.permute.xlu1 %1264 }
 0x2c8   : > { %v1072_v24 = vpop.f32.mrb[41].mxu0 }
 0x2c9   : > { %v1141_v33 = vadd.f32 %v1072_v24, %v1070_v22  ;;  %1139 = vadd.xlane.f32.xlu1 %v1138_v1  ;;  %v1074_v30 = vpop.f32.mrb[42].mxu0 }
 0x2ca   : > { %v1076_v35 = vpop.f32.mrb[43].mxu0 }
 0x2cb   : > { %v1144_v38 = vadd.f32 %v1076_v35, %v1074_v30  ;;  %1142 = vadd.xlane.f32.xlu0 %v1141_v33 }
 0x2cd   : > { %1145 = vadd.xlane.f32.xlu1 %v1144_v38  ;;  %v18267_v38 = vpop.permute.xlu1 %1371 }
 0x2cf   : > { %v1080_v41 = vpop.f32.mrb[44].mxu0 }
 0x2d0   : > { %v1082_v42 = vpop.f32.mrb[45].mxu0 }
 0x2d1   : > { %v1147_v48 = vadd.f32 %v1082_v42, %v1080_v41  ;;  %v1084_v45 = vpop.f32.mrb[46].mxu0  ;;  %v18269_v41 = vpop.permute.xlu1 %1376 }
 0x2d2   : > { %v1086_v56 = vpop.f32.mrb[47].mxu0 }
 0x2d3   : > { %v1150_v54 = vadd.f32 %v1086_v56, %v1084_v45  ;;  %1148 = vadd.xlane.f32.xlu0 %v1147_v48  ;;  %v677_v48 = vld [vmem:[%s24302_s4 + $0x70] sm:$0xff]  ;;  %v662_v45 = vld [vmem:[%s24301_s3 + $0x78] sm:$0xff] }
 0x2d5   : > { %1151 = vadd.xlane.f32.xlu1 %v1150_v54  ;;  %v18271_v42 = vpop.permute.xlu1 %1269  ;;  %v678_v54 = vld [vmem:[%s24302_s4 + $0x78] sm:$0xff] }
 0x2d7   : > { %v1090_v0 = vpop.f32.mrb[48].mxu0 }
 0x2d8   : > { %v1092_v43 = vpop.f32.mrb[49].mxu0 }
 0x2d9   : > { %v1153_v46 = vadd.f32 %v1092_v43, %v1090_v0  ;;  %v1094_v47 = vpop.f32.mrb[50].mxu0  ;;  %v18279_v56 = vpop.permute.xlu1 %1381 }
 0x2da   : > { %v1096_v59 = vpop.f32.mrb[51].mxu0 }
 0x2db   : > { %v1156_v12 = vadd.f32 %v1096_v59, %v1094_v47  ;;  %1154 = vadd.xlane.f32.xlu0 %v1153_v46  ;;  %v1260_v46 = vpop.permute.xlu0 %1259 }
 0x2dd   : > { %1157 = vadd.xlane.f32.xlu1 %v1156_v12  ;;  %v18284_v0 = vpop.permute.xlu1 %1386 }
 0x2df   : > { %v1100_v1 = vpop.f32.mrb[52].mxu0  ;;  %v18290_v59 = vpop.permute.xlu0 %1274 }
 0x2e0   : > { %v1102_v22 = vpop.f32.mrb[53].mxu0 }
 0x2e1   : > { %v1159_v24 = vadd.f32 %v1102_v22, %v1100_v1  ;;  %v1104_v33 = vpop.f32.mrb[54].mxu0  ;;  %v18286_v43 = vpop.permute.xlu1 %1279 }
 0x2e2   : > { %v1106_v30 = vpop.f32.mrb[55].mxu0 }
 0x2e3   : > { %v1162_v35 = vadd.f32 %v1106_v30, %v1104_v33  ;;  %1160 = vadd.xlane.f32.xlu0 %v1159_v24  ;;  %v18294_v1 = vpop.permute.xlu0 %1396 }
 0x2e5   : > { %1163 = vadd.xlane.f32.xlu1 %v1162_v35  ;;  %v18288_v47 = vpop.permute.xlu1 %1284 }
 0x2e7   : > { %v18298_v24 = vpop.permute.xlu0 %1294 }
 0x2e9   : > { %v18292_v12 = vpop.permute.xlu1 %1391 }
 0x2eb   : > { %v18302_v30 = vpop.permute.xlu0 %1406 }
 0x2ed   : > { %v18296_v22 = vpop.permute.xlu1 %1289 }
 0x2f1   : > { %v18300_v33 = vpop.permute.xlu1 %1401 }
 0x2f5   : > { %v18304_v35 = vpop.permute.xlu1 %1299 }
 0x2f6   : > { %1441 = vperm.xlu1 %15314, %v677_v48   ;;  %24492 = vst [vmem:[#allocation26_spill] sm:$0xff] %v18304_v35  ;;  %v18306_v48 = vpop.permute.xlu0 %1304 }
 0x2f7   : > { %24493 = vst [vmem:[#allocation27_spill] sm:$0xff] %v18306_v48 }
 0x2f9   : > { %1334 = vperm.xlu0 %15313, %v662_v45   ;;  %v18308_v45 = vpop.permute.xlu1 %1411 }
 0x2fa   : > { %24494 = vst [vmem:[#allocation28_spill] sm:$0xff] %v18308_v45 }
 0x2fd   : > { %1446 = vperm.xlu0 %15313, %v678_v54   ;;  %v18310_v54 = vpop.permute.xlu0 %1416  ;;  %v18312_v40 = vpop.permute.xlu1 %1309 }
 0x2fe   : > { %24495 = vst [vmem:[#allocation29_spill] sm:$0xff] %v18310_v54  ;;  %24496 = vst [vmem:[#allocation30_spill] sm:$0xff] %v18312_v40 }
 0x301   : > { %v18314_v37 = vpop.permute.xlu0 %1314  ;;  %v18316_v34 = vpop.permute.xlu1 %1421 }
 0x302   : > { %24497 = vst [vmem:[#allocation31_spill] sm:$0xff] %v18314_v37  ;;  %24498 = vst [vmem:[#allocation32_spill] sm:$0xff] %v18316_v34 }
 0x305   : > { %v18318_v31 = vpop.permute.xlu0 %1426  ;;  %v18320_v28 = vpop.permute.xlu1 %1319 }
 0x306   : > { %24499 = vst [vmem:[#allocation33_spill] sm:$0xff] %v18318_v31 }
 0x309   : > { %v18322_v21 = vpop.permute.xlu0 %1324  ;;  %v18324_v20 = vpop.permute.xlu1 %1431 }
 0x30d   : > { %v18326_v15 = vpop.permute.xlu0 %1436  ;;  %v18328_v14 = vpop.permute.xlu1 %1329 }
 0x348   : > { %v1131_v9 = vpop.xlane.xlu0 %1130 }
 0x349   : > { %v1177_v8 = vmul.f32 0.0009765625, %v1131_v9 }
 0x34a   : > { %v1134_v4 = vpop.xlane.xlu1 %1133 }
 0x34b   : > { %v1193_v19 = vadd.f32 1e-06, %v1177_v8  ;;  %v1178_v16 = vmul.f32 0.0009765625, %v1134_v4 }
 0x34c   : > { %v1167_v37 = vpop.xlane.xlu0 %1166 }
 0x34d   : > { %17467 = vrsqrt.f32 %v1193_v19  ;;  %v1194_v34 = vadd.f32 1e-06, %v1178_v16  ;;  %v1189_v54 = vmul.f32 0.0009765625, %v1167_v37 }
 0x34e   : > { %v1170_v31 = vpop.xlane.xlu1 %1169 }
 0x34f   : > { %17469 = vrsqrt.f32 %v1194_v34  ;;  %v1205_v40 = vadd.f32 1e-06, %v1189_v54  ;;  %v1190_v48 = vmul.f32 0.0009765625, %v1170_v31 }
 0x350   : > { %v1137_v6 = vpop.xlane.xlu0 %1136 }
 0x351   : > { %17471 = vrsqrt.f32 %v1205_v40  ;;  %v1206_v3 = vadd.f32 1e-06, %v1190_v48  ;;  %v1179_v39 = vmul.f32 0.0009765625, %v1137_v6 }
 0x352   : > { %v1173_v36 = vpop.xlane.xlu1 %1172 }
 0x353   : > { %17473 = vrsqrt.f32 %v1206_v3  ;;  %v1195_v45 = vadd.f32 1e-06, %v1179_v39 }
 0x354   : > { %v1176_v35 = vpop.xlane.xlu0 %1175 }
 0x355   : > { %17475 = vrsqrt.f32 %v1195_v45  ;;  %v1191_v45 = vmul.f32 0.0009765625, %v1173_v36 }
 0x356   : > { %v1140_v9 = vpop.xlane.xlu1 %1139 }
 0x357   : > { %v17468_v8 = vpop.eup %17467  ;;  %v1180_v4 = vmul.f32 0.0009765625, %v1140_v9 }
 0x358   : > { %v1225_v19 = vmul.f32 %v17468_v8, %v18022_v13  ;;  %v1226_v37 = vmul.f32 %v17468_v8, %v18025_v18  ;;  %v1143_v16 = vpop.xlane.xlu0 %1142 }
 0x359   : > { %v17470_v34 = vpop.eup %17469  ;;  %v1196_v54 = vadd.f32 1e-06, %v1180_v4  ;;  %v1181_v31 = vmul.f32 0.0009765625, %v1143_v16 }
 0x35a   : > { %v1337_v32 = vmul.f32 %v1260_v46, %v1225_v19  ;;  %v1338_v40 = vmul.f32 %v1260_v46, %v1226_v37  ;;  %v1227_v6 = vmul.f32 %v17470_v34, %v18034_v25  ;;  %v1228_v3 = vmul.f32 %v17470_v34, %v18037_v27  ;;  %v1146_v39 = vpop.xlane.xlu1 %1145 }
 0x35b   : > { %v17472_v48 = vpop.eup %17471  ;;  %17477 = vrsqrt.f32 %v1196_v54  ;;  %v1197_v29 = vadd.f32 1e-06, %v1181_v31  ;;  %v1182_v9 = vmul.f32 0.0009765625, %v1146_v39  ;;  %v1192_v19 = vmul.f32 0.0009765625, %v1176_v35 }
 0x35c   : > { %v18335_v13 = vadd.f32 %v18267_v38, %v1337_v32  ;;  %v18338_v18 = vadd.f32 %v18267_v38, %v1338_v40  ;;  %v1339_v8 = vmul.f32 %v18265_v17, %v1227_v6  ;;  %v1340_v46 = vmul.f32 %v18265_v17, %v1228_v3 }
 0x35d   : > { %v17474_v4 = vpop.eup %17473  ;;  %v1249_v25 = vmul.f32 %v17472_v48, %v18196_v57  ;;  %v1250_v27 = vmul.f32 %v17472_v48, %v18199_v61  ;;  %17479 = vrsqrt.f32 %v1197_v29  ;;  %v1198_v61 = vadd.f32 1e-06, %v1182_v9 }
 0x35e   : > { %v12567_v36 = vmul.f32 -1.442695, %v18335_v13  ;;  %v12568_v37 = vmul.f32 -1.442695, %v18338_v18  ;;  %v18347_v32 = vadd.f32 %v18269_v41, %v1339_v8  ;;  %v18350_v38 = vadd.f32 %v18269_v41, %v1340_v46 }
 0x35f   : > { %v17476_v16 = vpop.eup %17475  ;;  %v1361_v17 = vmul.f32 %v18320_v28, %v1249_v25  ;;  %v1251_v34 = vmul.f32 %v17474_v4, %v18202_v2  ;;  %v1252_v57 = vmul.f32 %v17474_v4, %v18205_v10  ;;  %v1207_v31 = vadd.f32 1e-06, %v1191_v45 }
 0x360   : > { %17481 = vpow2.f32 %v12567_v36  ;;  %v12569_v29 = vmul.f32 -1.442695, %v18347_v32  ;;  %v12570_v35 = vmul.f32 -1.442695, %v18350_v38  ;;  %v1229_v54 = vmul.f32 %v17476_v16, %v18060_v53  ;;  %v1149_v2 = vpop.xlane.xlu0 %1148 }
 0x361   : > { %17483 = vpow2.f32 %v12568_v37  ;;  %v1362_v41 = vmul.f32 %v18320_v28, %v1250_v27  ;;  %v1230_v40 = vmul.f32 %v17476_v16, %v18054_v49  ;;  %v18362_v10 = vadd.f32 %v18324_v20, %v1361_v17 }
 0x362   : > { %17485 = vpow2.f32 %v12569_v29  ;;  %v1341_v6 = vmul.f32 %v18271_v42, %v1229_v54  ;;  %v1152_v3 = vpop.xlane.xlu1 %1151  ;;  %v1363_v39 = vmul.f32 %v18322_v21, %v1251_v34  ;;  %v1208_v48 = vadd.f32 1e-06, %v1192_v19 }
 0x363   : > { %17487 = vpow2.f32 %v12570_v35  ;;  %v1364_v53 = vmul.f32 %v18322_v21, %v1252_v57  ;;  %v1342_v45 = vmul.f32 %v18271_v42, %v1230_v40  ;;  %v1183_v49 = vmul.f32 0.0009765625, %v1149_v2 }
 0x364   : > { %v18368_v9 = vadd.f32 %v18279_v56, %v1341_v6  ;;  %17489 = vrsqrt.f32 %v1198_v61  ;;  %v1184_v8 = vmul.f32 0.0009765625, %v1152_v3  ;;  %v18371_v46 = vadd.f32 %v18324_v20, %v1362_v41 }
 0x365   : > { %v17478_v28 = vpop.eup %17477  ;;  %v18374_v4 = vadd.f32 %v18279_v56, %v1342_v45  ;;  %17491 = vrsqrt.f32 %v1207_v31  ;;  %v18378_v21 = vadd.f32 %v18326_v15, %v1363_v39  ;;  %v1199_v19 = vadd.f32 1e-06, %v1183_v49 }
 0x366   : > { %v12571_v25 = vmul.f32 -1.442695, %v18368_v9  ;;  %17493 = vrsqrt.f32 %v1208_v48  ;;  %v1231_v42 = vmul.f32 %v17478_v28, %v18063_v55  ;;  %v12591_v36 = vmul.f32 -1.442695, %v18362_v10 }
 0x367   : > { %v17480_v27 = vpop.eup %17479  ;;  %v18383_v37 = vadd.f32 %v18326_v15, %v1364_v53  ;;  %v12572_v20 = vmul.f32 -1.442695, %v18374_v4  ;;  %v1232_v56 = vmul.f32 %v17478_v28, %v18066_v58  ;;  %v1200_v34 = vadd.f32 1e-06, %v1184_v8 }
 0x368   : > { %17495 = vpow2.f32 %v12571_v25  ;;  %v1343_v16 = vmul.f32 %v18290_v59, %v1231_v42  ;;  %v1233_v17 = vmul.f32 %v17480_v27, %v18083_v7  ;;  %v12592_v61 = vmul.f32 -1.442695, %v18371_v46  ;;  %v1155_v25 = vpop.xlane.xlu0 %1154 }
 0x369   : > { %17497 = vpow2.f32 %v12572_v20  ;;  %v1234_v55 = vmul.f32 %v17480_v27, %v18086_v11  ;;  %v12593_v15 = vmul.f32 -1.442695, %v18378_v21  ;;  %v12594_v54 = vmul.f32 -1.442695, %v18383_v37 }
 0x36a   : > { %v17482_v57 = vpop.eup %17481  ;;  %v18393_v35 = vadd.f32 %v18284_v0, %v1343_v16  ;;  %17499 = vrsqrt.f32 %v1199_v19  ;;  %v1344_v31 = vmul.f32 %v18290_v59, %v1232_v56  ;;  %v1345_v40 = vmul.f32 %v18286_v43, %v1233_v17 }
 0x36b   : > { %v17484_v29 = vpop.eup %17483  ;;  %17501 = vrsqrt.f32 %v1200_v34  ;;  %v1346_v2 = vmul.f32 %v18286_v43, %v1234_v55  ;;  %v1577_v59 = vadd.f32 1.0, %v17482_v57  ;;  %v1185_v16 = vmul.f32 0.0009765625, %v1155_v25  ;;  %v1158_v55 = vpop.xlane.xlu1 %1157 }
 0x36c   : > { %v17486_v58 = vpop.eup %17485  ;;  %17503 = vpow2.f32 %v12591_v36  ;;  %v12573_v41 = vmul.f32 -1.442695, %v18393_v35  ;;  %v1578_v45 = vadd.f32 1.0, %v17484_v29  ;;  %v18405_v28 = vadd.f32 %v18284_v0, %v1344_v31 }
 0x36d   : > { %v17488_v7 = vpop.eup %17487  ;;  %v1579_v6 = vadd.f32 1.0, %v17486_v58  ;;  %17505 = vpow2.f32 %v12592_v61  ;;  %v18410_v8 = vadd.f32 %v18292_v12, %v1345_v40 }
 0x36e   : > { %v17490_v11 = vpop.eup %17489  ;;  %v1580_v3 = vadd.f32 1.0, %v17488_v7  ;;  %17507 = vpow2.f32 %v12593_v15  ;;  %v12574_v36 = vmul.f32 -1.442695, %v18405_v28 }
 0x36f   : > { %v1235_v39 = vmul.f32 %v17490_v11, %v18092_v23  ;;  %v1236_v48 = vmul.f32 %v17490_v11, %v18095_v26  ;;  %v18402_v53 = vpop.eup %17491  ;;  %17509 = vpow2.f32 %v12594_v54  ;;  %v18415_v26 = vadd.f32 %v18292_v12, %v1346_v2 }
 0x370   : > { %v18407_v49 = vpop.eup %17493  ;;  %17511 = vpow2.f32 %v12573_v41  ;;  %v12575_v12 = vmul.f32 -1.442695, %v18410_v8 }
 0x371   : > { %v1347_v43 = vmul.f32 %v18288_v47, %v1235_v39  ;;  %v1348_v23 = vmul.f32 %v18288_v47, %v1236_v48  ;;  %17513 = vrcp.f32 %v1579_v6  ;;  %v12576_v34 = vmul.f32 -1.442695, %v18415_v26 }
 0x372   : > { %v17496_v27 = vpop.eup %17495  ;;  %17515 = vrcp.f32 %v1580_v3  ;;  %v1186_v3 = vmul.f32 0.0009765625, %v1158_v55 }
 0x373   : > { %v18418_v0 = vadd.f32 %v18294_v1, %v1347_v43  ;;  %v17498_v42 = vpop.eup %17497  ;;  %17517 = vrcp.f32 %v1577_v59  ;;  %v1581_v19 = vadd.f32 1.0, %v17496_v27  ;;  %v18422_v20 = vadd.f32 %v18294_v1, %v1348_v23 }
 0x374   : > { %v17500_v56 = vpop.eup %17499  ;;  %17519 = vrcp.f32 %v1578_v45  ;;  %v1582_v47 = vadd.f32 1.0, %v17498_v42  ;;  %v1253_v42 = vmul.f32 %v18402_v53, %v18216_v44 }
 0x375   : > { %v17502_v17 = vpop.eup %17501  ;;  %17521 = vrcp.f32 %v1581_v19  ;;  %v1237_v57 = vmul.f32 %v17500_v56, %v18112_v50  ;;  %v1238_v61 = vmul.f32 %v17500_v56, %v18115_v52  ;;  %v12577_v1 = vmul.f32 -1.442695, %v18418_v0  ;;  %v1161_v52 = vpop.xlane.xlu0 %1160 }
 0x376   : > { %v18428_v29 = vpop.eup %17503  ;;  %17523 = vrcp.f32 %v1582_v47  ;;  %v1239_v15 = vmul.f32 %v17502_v17, %v18121_v60  ;;  %v1240_v58 = vmul.f32 %v17502_v17, %v18124_v62  ;;  %v12578_v31 = vmul.f32 -1.442695, %v18422_v20 }
 0x377   : > { %v18433_v54 = vpop.eup %17505  ;;  %17525 = vpow2.f32 %v12574_v36  ;;  %v1349_v7 = vmul.f32 %v18296_v22, %v1237_v57  ;;  %v1350_v50 = vmul.f32 %v18296_v22, %v1238_v61  ;;  %v1201_v60 = vadd.f32 1e-06, %v1185_v16  ;;  %v1164_v22 = vpop.xlane.xlu1 %1163 }
 0x378   : > { %v18438_v41 = vpop.eup %17507  ;;  %17527 = vpow2.f32 %v12575_v12  ;;  %v1351_v40 = vmul.f32 %v18298_v24, %v1239_v15  ;;  %v1352_v11 = vmul.f32 %v18298_v24, %v1240_v58  ;;  %v1187_v24 = vmul.f32 0.0009765625, %v1161_v52 }
 0x379   : > { %v18442_v6 = vpop.eup %17509  ;;  %17529 = vpow2.f32 %v12576_v34  ;;  %v18445_v62 = vadd.f32 %v18300_v33, %v1349_v7  ;;  %v18448_v2 = vadd.f32 %v18300_v33, %v1350_v50  ;;  %v1254_v19 = vmul.f32 %v18402_v53, %v18219_v51  ;;  %v1335_v61 = vpop.permute.xlu0 %1334 }
 0x37a   : > { %v17512_v39 = vpop.eup %17511  ;;  %17531 = vpow2.f32 %v12577_v1  ;;  %v18451_v48 = vadd.f32 %v18302_v30, %v1351_v40  ;;  %v18454_v59 = vadd.f32 %v18302_v30, %v1352_v11  ;;  %v1202_v47 = vadd.f32 1e-06, %v1186_v3 }
 0x37b   : > { %v17514_v45 = vpop.eup %17513  ;;  %v1583_v43 = vadd.f32 1.0, %v17512_v39  ;;  %17533 = vpow2.f32 %v12578_v31  ;;  %v12579_v23 = vmul.f32 -1.442695, %v18445_v62  ;;  %v12580_v25 = vmul.f32 -1.442695, %v18448_v2  ;;  %v1442_v57 = vpop.permute.xlu1 %1441 }
 0x37c   : > { %v17516_v33 = vpop.eup %17515  ;;  %v12581_v27 = vmul.f32 -1.442695, %v18451_v48  ;;  %17535 = vrsqrt.f32 %v1201_v60  ;;  %v12582_v36 = vmul.f32 -1.442695, %v18454_v59  ;;  %v1203_v12 = vadd.f32 1e-06, %v1187_v24 }
 0x37d   : > { %v17518_v30 = vpop.eup %17517  ;;  %17537 = vrcp.f32 %v1583_v43  ;;  %v18465_v17 = vmul.f32 %v17514_v45, %v18347_v32  ;;  %v18468_v34 = vmul.f32 %v17516_v33, %v18350_v38  ;;  %v1188_v44 = vmul.f32 0.0009765625, %v1164_v22  ;;  %v1447_v24 = vpop.permute.xlu0 %1446 }
 0x37e   : > { %v17520_v56 = vpop.eup %17519  ;;  %17539 = vpow2.f32 %v12579_v23  ;;  %v18473_v53 = vmul.f32 %v17518_v30, %v18335_v13  ;;  %v1365_v55 = vmul.f32 %v18328_v14, %v1253_v42  ;;  %v1366_v1 = vmul.f32 %v18328_v14, %v1254_v19 }
 0x37f   : > { %v17522_v16 = vpop.eup %17521  ;;  %17541 = vpow2.f32 %v12580_v25  ;;  %v18478_v32 = vmul.f32 %v17520_v56, %v18338_v18  ;;  %v1255_v38 = vmul.f32 %v18407_v49, %v18222_v63  ;;  %v1256_v58 = vmul.f32 %v18407_v49, %v18225_v5  ;;  %v24500_v25 = vld [vmem:[#allocation18_spill] sm:$0xff] }
 0x380   : > { %v18470_v51 = vpop.eup %17523  ;;  %17543 = vpow2.f32 %v12581_v27  ;;  %v18484_v13 = vadd.f32 %v1442_v57, %v1365_v55  ;;  %v18486_v50 = vadd.f32 %v1442_v57, %v1366_v1  ;;  %v18494_v63 = vpack.i.bf16 %v18465_v17, %v18473_v53  ;;  %v24501_v27 = vld [vmem:[#allocation19_spill] sm:$0xff] }
 0x381   : > { %v17526_v15 = vpop.eup %17525  ;;  %17545 = vpow2.f32 %v12582_v36  ;;  %v18490_v18 = vpack.i.bf16 %v18468_v34, %v18478_v32  ;;  %v18497_v5 = vmul.f32 %v17522_v16, %v18368_v9  ;;  %v1204_v11 = vadd.f32 1e-06, %v1188_v44  ;;  %v24502_v16 = vld [vmem:[#allocation26_spill] sm:$0xff] }
 0x382   : > { %v17528_v31 = vpop.eup %17527  ;;  %v1584_v7 = vadd.f32 1.0, %v17526_v15  ;;  %17547 = vrsqrt.f32 %v1202_v47  ;;  %v1367_v22 = vmul.f32 %v1335_v61, %v1255_v38  ;;  %v1368_v39 = vmul.f32 %v1335_v61, %v1256_v58  ;;  %15316 = vrot.lane.b32.xlu1 %v18494_v63, %s24420_s26  ;;  %v24503_v58 = vld [vmem:[#allocation28_spill] sm:$0xff] }
 0x383   : > { %v17530_v52 = vpop.eup %17529  ;;  %v1585_v14 = vadd.f32 1.0, %v17528_v31  ;;  %17549 = vrsqrt.f32 %v1203_v12  ;;  %15321 = vrot.lane.b32.xlu0 %v18490_v18, %s24420_s26  ;;  %v12595_v43 = vmul.f32 -1.442695, %v18484_v13  ;;  %v12596_v19 = vmul.f32 -1.442695, %v18486_v50 }
 0x384   : > { %v17532_v40 = vpop.eup %17531  ;;  %17551 = vrcp.f32 %v1584_v7  ;;  %v1586_v49 = vadd.f32 1.0, %v17530_v52  ;;  %v18510_v56 = vadd.f32 %v1447_v24, %v1367_v22  ;;  %v18514_v1 = vadd.f32 %v1447_v24, %v1368_v39  ;;  %v24505_v24 = vld [vmem:[#allocation21_spill] sm:$0xff] }
 0x385   : > { %v17534_v60 = vpop.eup %17533  ;;  %17553 = vrcp.f32 %v1585_v14  ;;  %v1587_v3 = vadd.f32 1.0, %v17532_v40 }
 0x386   : > { %v17536_v45 = vpop.eup %17535  ;;  %17555 = vrcp.f32 %v1586_v49  ;;  %v1588_v9 = vadd.f32 1.0, %v17534_v60  ;;  %v12597_v40 = vmul.f32 -1.442695, %v18510_v56 }
 0x387   : > { %v17538_v23 = vpop.eup %17537  ;;  %17557 = vrcp.f32 %v1587_v3  ;;  %v1241_v33 = vmul.f32 %v17536_v45, %v24500_v25  ;;  %v1242_v42 = vmul.f32 %v17536_v45, %v24501_v27  ;;  %v24504_v3 = vld [vmem:[#allocation20_spill] sm:$0xff]  ;;  %v18537_v27 = vmul.f32 %v18470_v51, %v18374_v4  ;;  %v24510_v4 = vld [vmem:[#allocation29_spill] sm:$0xff] }
 0x388   : > { %v17540_v30 = vpop.eup %17539  ;;  %v18508_v36 = vmul.f32 %v17538_v23, %v18393_v35  ;;  %17559 = vrcp.f32 %v1588_v9  ;;  %v24506_v9 = vld [vmem:[#allocation22_spill] sm:$0xff]  ;;  %v24507_v23 = vld [vmem:[#allocation23_spill] sm:$0xff] }
 0x389   : > { %v17542_v47 = vpop.eup %17541  ;;  %v1589_v12 = vadd.f32 1.0, %v17540_v30  ;;  %v1353_v44 = vmul.f32 %v24502_v16, %v1241_v33  ;;  %v1354_v57 = vmul.f32 %v24502_v16, %v1242_v42  ;;  %17561 = vrsqrt.f32 %v1204_v11  ;;  %v24508_v42 = vld [vmem:[#allocation27_spill] sm:$0xff] }
 0x38a   : > { %v17544_v61 = vpop.eup %17543  ;;  %v1590_v55 = vadd.f32 1.0, %v17542_v47  ;;  %17563 = vpow2.f32 %v12595_v43  ;;  %v18518_v15 = vpack.i.bf16 %v18508_v36, %v18497_v5  ;;  %v12598_v47 = vmul.f32 -1.442695, %v18514_v1 }
 0x38b   : > { %v17546_v35 = vpop.eup %17545  ;;  %17565 = vrcp.f32 %v1589_v12  ;;  %v1591_v38 = vadd.f32 1.0, %v17544_v61  ;;  %v18521_v31 = vadd.f32 %v24503_v58, %v1353_v44  ;;  %v18524_v7 = vadd.f32 %v24503_v58, %v1354_v57  ;;  %v24509_v57 = vld [vmem:[#allocation30_spill] sm:$0xff] }
 0x38c   : > { %v17548_v52 = vpop.eup %17547  ;;  %17567 = vrcp.f32 %v1590_v55  ;;  %v1592_v14 = vadd.f32 1.0, %v17546_v35  ;;  %15326 = vrot.lane.b32.xlu1 %v18518_v15, %s24420_s26 }
 0x38d   : > { %v17550_v49 = vpop.eup %17549  ;;  %17569 = vrcp.f32 %v1591_v38  ;;  %v12583_v11 = vmul.f32 -1.442695, %v18521_v31  ;;  %v12584_v60 = vmul.f32 -1.442695, %v18524_v7  ;;  %v1243_v22 = vmul.f32 %v17548_v52, %v24504_v3 }
 0x38e   : > { %v17552_v39 = vpop.eup %17551  ;;  %17571 = vrcp.f32 %v1592_v14  ;;  %v1244_v45 = vmul.f32 %v17548_v52, %v24505_v24  ;;  %v1245_v43 = vmul.f32 %v17550_v49, %v24506_v9  ;;  %v1246_v25 = vmul.f32 %v17550_v49, %v24507_v23  ;;  %v24511_v14 = vld [vmem:[#allocation32_spill] sm:$0xff] }
 0x38f   : > { %v17554_v33 = vpop.eup %17553  ;;  %17573 = vpow2.f32 %v12583_v11  ;;  %v1355_v30 = vmul.f32 %v24508_v42, %v1243_v22  ;;  %v18542_v16 = vmul.f32 %v17552_v39, %v18405_v28  ;;  %v24512_v39 = vld [vmem:[#allocation24_spill] sm:$0xff] }
 0x390   : > { %v17556_v12 = vpop.eup %17555  ;;  %17575 = vpow2.f32 %v12584_v60  ;;  %v1356_v44 = vmul.f32 %v24508_v42, %v1244_v45  ;;  %v1357_v61 = vmul.f32 %v24509_v57, %v1245_v43  ;;  %v18547_v35 = vmul.f32 %v17554_v33, %v18410_v8  ;;  %v24513_v45 = vld [vmem:[#allocation25_spill] sm:$0xff]  ;;  %v24514_v33 = vld [vmem:[#allocation31_spill] sm:$0xff] }
 0x391   : > { %v17558_v55 = vpop.eup %17557  ;;  %v18550_v51 = vadd.f32 %v24510_v4, %v1355_v30  ;;  %v1358_v38 = vmul.f32 %v24509_v57, %v1246_v25  ;;  %17577 = vpow2.f32 %v12596_v19  ;;  %v18574_v43 = vmul.f32 %v17556_v12, %v18415_v26 }
 0x392   : > { %v17560_v58 = vpop.eup %17559  ;;  %v18554_v52 = vmul.f32 %v17558_v55, %v18418_v0  ;;  %v18557_v28 = vadd.f32 %v24510_v4, %v1356_v44  ;;  %v18560_v49 = vadd.f32 %v24511_v14, %v1357_v61  ;;  %17579 = vpow2.f32 %v12597_v40  ;;  %v24515_v4 = vld [vmem:[#allocation33_spill] sm:$0xff] }
 0x393   : > { %v17562_v11 = vpop.eup %17561  ;;  %v18563_v8 = vmul.f32 %v17560_v58, %v18422_v20  ;;  %v12585_v60 = vmul.f32 -1.442695, %v18550_v51  ;;  %v18567_v3 = vadd.f32 %v24511_v14, %v1358_v38  ;;  %17581 = vpow2.f32 %v12598_v47 }
 0x394   : > { %v17564_v19 = vpop.eup %17563  ;;  %v12586_v0 = vmul.f32 -1.442695, %v18557_v28  ;;  %v12587_v22 = vmul.f32 -1.442695, %v18560_v49  ;;  %v1247_v24 = vmul.f32 %v17562_v11, %v24512_v39  ;;  %v1248_v9 = vmul.f32 %v17562_v11, %v24513_v45 }
 0x395   : > { %v17566_v40 = vpop.eup %17565  ;;  %17583 = vpow2.f32 %v12585_v60  ;;  %v12588_v20 = vmul.f32 -1.442695, %v18567_v3  ;;  %v18579_v23 = vpack.i.bf16 %v18542_v16, %v18537_v27  ;;  %v1605_v44 = vadd.f32 1.0, %v17564_v19 }
 0x396   : > { %v17568_v25 = vpop.eup %17567  ;;  %17585 = vpow2.f32 %v12586_v0  ;;  %v1359_v42 = vmul.f32 %v24514_v33, %v1247_v24  ;;  %v1360_v30 = vmul.f32 %v24514_v33, %v1248_v9  ;;  %v18587_v26 = vpack.i.bf16 %v18563_v8, %v18574_v43 }
 0x397   : > { %v17570_v47 = vpop.eup %17569  ;;  %17587 = vpow2.f32 %v12587_v22  ;;  %15331 = vrot.lane.b32.xlu0 %v18579_v23, %s24420_s26  ;;  %v18591_v12 = vpack.i.bf16 %v18554_v52, %v18547_v35  ;;  %v18594_v61 = vmul.f32 %v17566_v40, %v18445_v62  ;;  %v18606_v11 = vmul.f32 %v17568_v25, %v18448_v2 }
 0x398   : > { %v17572_v57 = vpop.eup %17571  ;;  %v18597_v55 = vmul.f32 %v17570_v47, %v18451_v48  ;;  %v18600_v38 = vadd.f32 %v24515_v4, %v1359_v42  ;;  %v18603_v58 = vadd.f32 %v24515_v4, %v1360_v30  ;;  %17589 = vpow2.f32 %v12588_v20 }
 0x399   : > { %v17574_v14 = vpop.eup %17573  ;;  %v18609_v60 = vmul.f32 %v17572_v57, %v18454_v59  ;;  %15336 = vrot.lane.b32.xlu1 %v18591_v12, %s24420_s26  ;;  %17591 = vrcp.f32 %v1605_v44  ;;  %v1602_v33 = vadd.f32 1.0, %v18433_v54  ;;  %v1604_v47 = vadd.f32 1.0, %v18442_v6 }
 0x39a   : > { %v17576_v62 = vpop.eup %17575  ;;  %v1593_v48 = vadd.f32 1.0, %v17574_v14  ;;  %v12589_v19 = vmul.f32 -1.442695, %v18600_v38  ;;  %v18616_v0 = vpack.i.bf16 %v18597_v55, %v18594_v61  ;;  %v12590_v2 = vmul.f32 -1.442695, %v18603_v58 }
 0x39b   : > { %v17578_v22 = vpop.eup %17577  ;;  %v1594_v39 = vadd.f32 1.0, %v17576_v62  ;;  %15341 = vrot.lane.b32.xlu0 %v18587_v26, %s24420_s26  ;;  %v18623_v59 = vpack.i.bf16 %v18609_v60, %v18606_v11  ;;  %v1601_v62 = vadd.f32 1.0, %v18428_v29 }
 0x39c   : > { %v17580_v24 = vpop.eup %17579  ;;  %17593 = vrcp.f32 %v1593_v48  ;;  %v1606_v45 = vadd.f32 1.0, %v17578_v22 }
 0x39d   : > { %v17582_v9 = vpop.eup %17581  ;;  %17595 = vrcp.f32 %v1594_v39  ;;  %v1607_v40 = vadd.f32 1.0, %v17580_v24  ;;  %15346 = vrot.lane.b32.xlu1 %v18616_v0, %s24420_s26 }
 0x39e   : > { %17597 = vpow2.f32 %v12589_v19  ;;  %v1608_v57 = vadd.f32 1.0, %v17582_v9  ;;  %v1603_v19 = vadd.f32 1.0, %v18438_v41 }
 0x39f   : > { %v17584_v20 = vpop.eup %17583  ;;  %17599 = vpow2.f32 %v12590_v2  ;;  %15351 = vrot.lane.b32.xlu0 %v18623_v59, %s24420_s26 }
 0x3a0   : > { %v17586_v25 = vpop.eup %17585  ;;  %v1595_v42 = vadd.f32 1.0, %v17584_v20  ;;  %17601 = vrcp.f32 %v1606_v45 }
 0x3a1   : > { %v17588_v30 = vpop.eup %17587  ;;  %v1596_v44 = vadd.f32 1.0, %v17586_v25  ;;  %17603 = vrcp.f32 %v1607_v40 }
 0x3a2   : > { %17605 = vrcp.f32 %v1595_v42  ;;  %v17590_v4 = vpop.eup %17589  ;;  %v1597_v14 = vadd.f32 1.0, %v17588_v30 }
 0x3a3   : > { %17607 = vrcp.f32 %v1596_v44  ;;  %v17592_v48 = vpop.eup %17591  ;;  %v1598_v22 = vadd.f32 1.0, %v17590_v4 }
 0x3a4   : > { %17609 = vrcp.f32 %v1602_v33  ;;  %v18634_v29 = vmul.f32 %v17592_v48, %v18484_v13 }
 0x3a5   : > { %17611 = vrcp.f32 %v1604_v47 }
 0x3a6   : > { %v17594_v54 = vpop.eup %17593  ;;  %17613 = vrcp.f32 %v1608_v57  ;;  %24516 = vst [vmem:[#allocation18_spill] sm:$0xff] %v18634_v29 }
 0x3a7   : > { %v17596_v39 = vpop.eup %17595  ;;  %17615 = vrcp.f32 %v1597_v14  ;;  %v18640_v33 = vmul.f32 %v17594_v54, %v18521_v31 }
 0x3a8   : > { %v17598_v6 = vpop.eup %17597  ;;  %17617 = vrcp.f32 %v1601_v62  ;;  %v18646_v47 = vmul.f32 %v17596_v39, %v18524_v7 }
 0x3a9   : > { %v17600_v2 = vpop.eup %17599  ;;  %17619 = vrcp.f32 %v1603_v19  ;;  %v1599_v24 = vadd.f32 1.0, %v17598_v6 }
 0x3aa   : > { %v17602_v45 = vpop.eup %17601  ;;  %17621 = vrcp.f32 %v1598_v22  ;;  %v1600_v9 = vadd.f32 1.0, %v17600_v2 }
 0x3ab   : > { %v17604_v40 = vpop.eup %17603  ;;  %17623 = vrcp.f32 %v1599_v24 }
 0x3ac   : > { %v17606_v41 = vpop.eup %17605  ;;  %17625 = vrcp.f32 %v1600_v9  ;;  %v18637_v20 = vmul.f32 %v17604_v40, %v18510_v56 }
 0x3ad   : > { %v17608_v25 = vpop.eup %17607  ;;  %v18643_v42 = vmul.f32 %v17606_v41, %v18550_v51  ;;  %v18660_v51 = vmul.f32 %v17602_v45, %v18486_v50 }
 0x3ae   : > { %24517 = vst [vmem:[#allocation19_spill] sm:$0xff] %v18637_v20  ;;  %v17610_v30 = vpop.eup %17609  ;;  %v18649_v44 = vmul.f32 %v17608_v25, %v18557_v28  ;;  %v18653_v13 = vpack.i.bf16 %v18637_v20, %v18634_v29 }
 0x3af   : > { %v17612_v56 = vpop.eup %17611  ;;  %v18657_v57 = vpack.i.bf16 %v18643_v42, %v18640_v33  ;;  %24518 = vst [vmem:[#allocation26_spill] sm:$0xff] %v18660_v51  ;;  %v18674_v48 = vmul.f32 %v17610_v30, %v18371_v46 }
 0x3b0   : > { %v17614_v31 = vpop.eup %17613  ;;  %v18664_v7 = vpack.i.bf16 %v18649_v44, %v18646_v47  ;;  %v18677_v50 = vmul.f32 %v17612_v56, %v18383_v37 }
 0x3b1   : > { %v17616_v4 = vpop.eup %17615  ;;  %v18667_v28 = vmul.f32 %v17614_v31, %v18514_v1  ;;  %15356 = vrot.lane.b32.xlu1 %v18657_v57, %s24420_s26  ;;  %24520 = vst [vmem:[#allocation20_spill] sm:$0xff] %v18674_v48 }
 0x3b2   : > { %v17618_v14 = vpop.eup %17617  ;;  %15361 = vrot.lane.b32.xlu0 %v18664_v7, %s24420_s26  ;;  %24521 = vst [vmem:[#allocation21_spill] sm:$0xff] %v18677_v50  ;;  %v18684_v54 = vmul.f32 %v17616_v4, %v18560_v49 }
 0x3b3   : > { %24519 = vst [vmem:[#allocation28_spill] sm:$0xff] %v18667_v28  ;;  %v17620_v62 = vpop.eup %17619  ;;  %v18681_v19 = vpack.i.bf16 %v18667_v28, %v18660_v51  ;;  %v18699_v24 = vmul.f32 %v17618_v14, %v18362_v10 }
 0x3b4   : > { %v17622_v1 = vpop.eup %17621  ;;  %24522 = vst [vmem:[#allocation22_spill] sm:$0xff] %v18684_v54  ;;  %v18690_v2 = vmul.f32 %v17620_v62, %v18378_v21  ;;  %v18711_v21 = vpack.i.bf16 %v18677_v50, %v18674_v48 }
 0x3b5   : > { %v17624_v22 = vpop.eup %17623  ;;  %v18693_v46 = vmul.f32 %v17622_v1, %v18567_v3  ;;  %24525 = vst [vmem:[#allocation30_spill] sm:$0xff] %v18699_v24  ;;  %v618_v1 = vlaneseq }
 0x3b6   : > { %v17626_v39 = vpop.eup %17625  ;;  %v18687_v6 = vmul.f32 %v17624_v22, %v18600_v38  ;;  %24524 = vst [vmem:[#allocation27_spill] sm:$0xff] %v18690_v2  ;;  %v18719_v10 = vpack.i.bf16 %v18690_v2, %v18699_v24 }
 0x3b7   : > { %v18696_v37 = vmul.f32 %v17626_v39, %v18603_v58  ;;  %v18787_v22 = vand.u32 127, %v618_v1 }
 0x3b8   : > { %24523 = vst [vmem:[#allocation23_spill] sm:$0xff] %v18687_v6  ;;  %v18703_v49 = vpack.i.bf16 %v18687_v6, %v18684_v54 }
 0x3b9   : > { %v18707_v38 = vpack.i.bf16 %v18696_v37, %v18693_v46  ;;  %v18794_v39 = vadd.s32 128, %v18787_v22  ;;  %v24350_v1 = vcvt.s32.f32 %v18787_v22  ;;  %vm24376_vm0 = vcmp.lt.s32.totalorder %v18787_v22, 16 }
 0x3ba   : > { %15366 = vrot.lane.b32.xlu1 %v18703_v49, %s24420_s26  ;;  %vm24377_vm5 = vcmp.lt.s32.totalorder %v18787_v22, 17  ;;  %vm24375_vm13 = vcmp.lt.s32.totalorder %v18787_v22, 15 }
 0x3bb   : > { %15376 = vrot.lane.b32.xlu0 %v18707_v38, %s24420_s26  ;;  %v24351_v62 = vcvt.s32.f32 %v18794_v39  ;;  %v623_v4 = vmul.f32 0.0625, %v24350_v1 }
 0x3bd   : > { %v624_v14 = vmul.f32 0.0625, %v24351_v62  ;;  %v18816_v56 = vfloor.f32 %v623_v4 }
 0x3be   : > { %15371 = vrot.lane.b32.xlu1 %v18719_v10, %s24420_s26 }
 0x3bf   : > { %15381 = vrot.lane.b32.xlu0 %v18711_v21, %s24420_s26  ;;  %v18814_v31 = vfloor.f32 %v624_v14  ;;  %vm631_vm2 = vcmp.ge.f32.partialorder %v18816_v56, 1.0 }
 0x3c0   : > { %vm18847_vm4 = vmpackc.low %vm631_vm2, %vm631_vm2 }
 0x3c1   : > { %vm632_vm1 = vcmp.ge.f32.partialorder %v18814_v31, 1.0 }
 0x3c2   : > { %15386 = vrot.lane.b32.xlu1 %v18653_v13, %s24420_s26  ;;  %vm18838_vm3 = vmpackc.low %vm632_vm1, %vm632_vm1 }
 0x3c3   : > { %15391 = vrot.lane.b32.xlu0 %v18681_v19, %s24420_s26 }
 0x3c6   : > { %15396 = vrot.lane.b32.xlu1 %v18494_v63, %s24406_s27 }
 0x3c7   : > { %15401 = vrot.lane.b32.xlu0 %v18490_v18, %s24406_s27 }
 0x3ca   : > { %15406 = vrot.lane.b32.xlu1 %v18518_v15, %s24406_s27 }
 0x3cb   : > { %15411 = vrot.lane.b32.xlu0 %v18579_v23, %s24406_s27 }
 0x3ce   : > { %15416 = vrot.lane.b32.xlu1 %v18591_v12, %s24406_s27 }
 0x3cf   : > { %15421 = vrot.lane.b32.xlu0 %v18587_v26, %s24406_s27 }
 0x3d2   : > { %15426 = vrot.lane.b32.xlu1 %v18616_v0, %s24406_s27 }
 0x3d3   : > { %15431 = vrot.lane.b32.xlu0 %v18623_v59, %s24406_s27 }
 0x3d6   : > { %15436 = vrot.lane.b32.xlu1 %v18657_v57, %s24406_s27 }
 0x3d7   : > { %15441 = vrot.lane.b32.xlu0 %v18664_v7, %s24406_s27 }
 0x3da   : > { %15446 = vrot.lane.b32.xlu1 %v18703_v49, %s24406_s27 }
 0x3db   : > { %15456 = vrot.lane.b32.xlu0 %v18707_v38, %s24406_s27 }
 0x3de   : > { %15451 = vrot.lane.b32.xlu1 %v18719_v10, %s24406_s27 }
 0x3df   : > { %15461 = vrot.lane.b32.xlu0 %v18711_v21, %s24406_s27 }
 0x3e2   : > { %15466 = vrot.lane.b32.xlu1 %v18653_v13, %s24406_s27 }
 0x3e3   : > { %15471 = vrot.lane.b32.xlu0 %v18681_v19, %s24406_s27 }
 0x3e6   : > { %15476 = vrot.lane.b32.xlu1 %v18494_v63, %s24404_s28 }
 0x3e7   : > { %15481 = vrot.lane.b32.xlu0 %v18490_v18, %s24404_s28 }
 0x3ea   : > { %15486 = vrot.lane.b32.xlu1 %v18518_v15, %s24404_s28 }
 0x3eb   : > { %15491 = vrot.lane.b32.xlu0 %v18579_v23, %s24404_s28 }
 0x3ee   : > { %15496 = vrot.lane.b32.xlu1 %v18591_v12, %s24404_s28 }
 0x3ef   : > { %15501 = vrot.lane.b32.xlu0 %v18587_v26, %s24404_s28 }
 0x3f2   : > { %15506 = vrot.lane.b32.xlu1 %v18616_v0, %s24404_s28 }
 0x3f3   : > { %15511 = vrot.lane.b32.xlu0 %v18623_v59, %s24404_s28 }
 0x3f4   : > { %v15317_v25 = vpop.permute.xlu1 %15316 }
 0x3f5   : > { %v15322_v30 = vpop.permute.xlu0 %15321  ;;  %v15319_v14 = vunpack.i.h.bf16 %v15317_v25  ;;  %v15318_v9 = vunpack.i.l.bf16 %v15317_v25  ;;  %v24526_v25 = vmov 0 }
 0x3f6   : > { %15516 = vrot.lane.b32.xlu1 %v18657_v57, %s24404_s28  ;;  %v15324_v41 = vunpack.i.h.bf16 %v15322_v30  ;;  %v15323_v40 = vunpack.i.l.bf16 %v15322_v30  ;;  %v24527_v25 = vsel %vm18838_vm3, 4294967295, %v24526_v25 }
 0x3f7   : > { %15521 = vrot.lane.b32.xlu0 %v18664_v7, %s24404_s28  ;;  %24528 = vst [vmem:[#allocation29_spill] sm:$0xff] %v24527_v25 }
 0x3f8   : > { %v1936_v4 = vsel %vm24376_vm0, %v15319_v14, %v15324_v41  ;;  %v1952_v45 = vsel %vm24376_vm0, %v15324_v41, %v15319_v14  ;;  %v1935_v58 = vsel %vm24376_vm0, %v15318_v9, %v15323_v40  ;;  %v1951_v3 = vsel %vm24376_vm0, %v15323_v40, %v15318_v9 }
 0x3f9   : > { %v12615_v30 = vpack.c.bf16 %v1952_v45, %v1951_v3  ;;  %v12612_v1 = vpack.c.bf16 %v1936_v4, %v1935_v58  ;;  %v24529_v41 = vmov 0 }
 0x3fa   : > { %15526 = vrot.lane.b32.xlu1 %v18703_v49, %s24404_s28  ;;  %v24530_v41 = vsel %vm18847_vm4, 4294967295, %v24529_v41 }
 0x3fb   : > { %15536 = vrot.lane.b32.xlu0 %v18707_v38, %s24404_s28  ;;  %24531 = vst [vmem:[#allocation32_spill] sm:$0xff] %v24530_v41  ;;  %12613 = vmatprep.subr.msk.bf16.mxu0 %vm18838_vm3, %v12612_v1  ;;  %v24541_v41 = vmov 0  }
 0x3fc   : > { %12616 = vmatpush1.bf16.msk.msra.mxu0 %vm18847_vm4, %v12615_v30 }
 0x3fe   : > { %15531 = vrot.lane.b32.xlu1 %v18719_v10, %s24404_s28  ;;  %v15327_v3 = vpop.permute.xlu1 %15326 }
 0x3ff   : > { %15541 = vrot.lane.b32.xlu0 %v18711_v21, %s24404_s28  ;;  %v15329_v58 = vunpack.i.h.bf16 %v15327_v3  ;;  %v15328_v45 = vunpack.i.l.bf16 %v15327_v3 }
 0x402   : > { %15546 = vrot.lane.b32.xlu1 %v18653_v13, %s24404_s28 }
 0x403   : > { %15551 = vrot.lane.b32.xlu0 %v18681_v19, %s24404_s28 }
 0x406   : > { %15556 = vrot.lane.b32.xlu1 %v18494_v63, %s24402_s29 }
 0x407   : > { %15561 = vrot.lane.b32.xlu0 %v18490_v18, %s24402_s29 }
 0x409   : > { %v15332_v9 = vpop.permute.xlu0 %15331 }
 0x40a   : > { %15566 = vrot.lane.b32.xlu1 %v18518_v15, %s24402_s29  ;;  %v15334_v40 = vunpack.i.h.bf16 %v15332_v9  ;;  %v15333_v1 = vunpack.i.l.bf16 %v15332_v9 }
 0x40b   : > { %15571 = vrot.lane.b32.xlu0 %v18579_v23, %s24402_s29  ;;  %v15337_v14 = vpop.permute.xlu1 %15336 }
 0x40c   : > { %v1938_v4 = vsel %vm24376_vm0, %v15329_v58, %v15334_v40  ;;  %v1954_v30 = vsel %vm24376_vm0, %v15334_v40, %v15329_v58  ;;  %v1937_v62 = vsel %vm24376_vm0, %v15328_v45, %v15333_v1  ;;  %v1953_v3 = vsel %vm24376_vm0, %v15333_v1, %v15328_v45 }
 0x40d   : > { %v12621_v29 = vpack.c.bf16 %v1954_v30, %v1953_v3  ;;  %v15342_v20 = vpop.permute.xlu0 %15341  ;;  %v15339_v51 = vunpack.i.h.bf16 %v15337_v14  ;;  %v15338_v9 = vunpack.i.l.bf16 %v15337_v14  ;;  %v12618_v28 = vpack.c.bf16 %v1938_v4, %v1937_v62 }
 0x40e   : > { %15576 = vrot.lane.b32.xlu1 %v18591_v12, %s24402_s29  ;;  %v15344_v2 = vunpack.i.h.bf16 %v15342_v20  ;;  %v15343_v24 = vunpack.i.l.bf16 %v15342_v20 }
 0x40f   : > { %15581 = vrot.lane.b32.xlu0 %v18587_v26, %s24402_s29  ;;  %12619 = vmatprep.subr.msk.bf16.mxu0 %vm18838_vm3, %v12618_v28  ;;  %v15347_v58 = vpop.permute.xlu1 %15346 }
 0x410   : > { %v1940_v45 = vsel %vm24376_vm0, %v15339_v51, %v15344_v2  ;;  %v1956_v40 = vsel %vm24376_vm0, %v15344_v2, %v15339_v51  ;;  %v1939_v62 = vsel %vm24376_vm0, %v15338_v9, %v15343_v24  ;;  %v1955_v1 = vsel %vm24376_vm0, %v15343_v24, %v15338_v9  ;;  %12622 = vmatpush1.bf16.msk.msra.mxu0 %vm18847_vm4, %v12621_v29 }
 0x411   : > { %v12627_v20 = vpack.c.bf16 %v1956_v40, %v1955_v1  ;;  %v12624_v14 = vpack.c.bf16 %v1940_v45, %v1939_v62  ;;  %v15352_v4 = vpop.permute.xlu0 %15351  ;;  %v15349_v28 = vunpack.i.h.bf16 %v15347_v58  ;;  %v15348_v30 = vunpack.i.l.bf16 %v15347_v58 }
 0x412   : > { %15586 = vrot.lane.b32.xlu1 %v18616_v0, %s24402_s29  ;;  %v15354_v3 = vunpack.i.h.bf16 %v15352_v4  ;;  %v15353_v54 = vunpack.i.l.bf16 %v15352_v4 }
 0x413   : > { %15591 = vrot.lane.b32.xlu0 %v18623_v59, %s24402_s29  ;;  %12625 = vmatprep.subr.msk.bf16.mxu0 %vm18838_vm3, %v12624_v14 }
 0x414   : > { %12628 = vmatpush1.bf16.msk.msra.mxu0 %vm18847_vm4, %v12627_v20  ;;  %v1942_v29 = vsel %vm24376_vm0, %v15349_v28, %v15354_v3  ;;  %v1958_v51 = vsel %vm24376_vm0, %v15354_v3, %v15349_v28  ;;  %v1941_v2 = vsel %vm24376_vm0, %v15348_v30, %v15353_v54  ;;  %v1957_v24 = vsel %vm24376_vm0, %v15353_v54, %v15348_v30 }
 0x415   : > { %v12633_v9 = vpack.c.bf16 %v1958_v51, %v1957_v24  ;;  %v12630_v58 = vpack.c.bf16 %v1942_v29, %v1941_v2 }
 0x416   : > { %15596 = vrot.lane.b32.xlu1 %v18657_v57, %s24402_s29 }
 0x417   : > { %15601 = vrot.lane.b32.xlu0 %v18664_v7, %s24402_s29  ;;  %12631 = vmatprep.subr.msk.bf16.mxu0 %vm18838_vm3, %v12630_v58 }
 0x418   : > { %12634 = vmatpush1.bf16.msk.msra.mxu0 %vm18847_vm4, %v12633_v9 }
 0x41a   : > { %15606 = vrot.lane.b32.xlu1 %v18703_v49, %s24402_s29 }
 0x41b   : > { %15616 = vrot.lane.b32.xlu0 %v18707_v38, %s24402_s29 }
 0x41e   : > { %15611 = vrot.lane.b32.xlu1 %v18719_v10, %s24402_s29 }
 0x41f   : > { %15621 = vrot.lane.b32.xlu0 %v18711_v21, %s24402_s29 }
 0x422   : > { %15626 = vrot.lane.b32.xlu1 %v18653_v13, %s24402_s29 }
 0x423   : > { %15631 = vrot.lane.b32.xlu0 %v18681_v19, %s24402_s29  ;;  %v15357_v54 = vpop.permute.xlu1 %15356 }
 0x424   : > { %v15362_v45 = vpop.permute.xlu0 %15361  ;;  %v15359_v40 = vunpack.i.h.bf16 %v15357_v54  ;;  %v15358_v62 = vunpack.i.l.bf16 %v15357_v54 }
 0x425   : > { %v15364_v1 = vunpack.i.h.bf16 %v15362_v45  ;;  %v15363_v20 = vunpack.i.l.bf16 %v15362_v45  ;;  %v628_v45 = vmul.f32 16.0, %v18814_v31 }
 0x426   : > { %15636 = vrot.lane.b32.xlu1 %v18494_v63, %s24400_s30 }
 0x427   : > { %v1944_v14 = vsel %vm24376_vm0, %v15359_v40, %v15364_v1  ;;  %v1960_v4 = vsel %vm24376_vm0, %v15364_v1, %v15359_v40  ;;  %v1943_v28 = vsel %vm24376_vm0, %v15358_v62, %v15363_v20  ;;  %v1959_v30 = vsel %vm24376_vm0, %v15363_v20, %v15358_v62  ;;  %15641 = vrot.lane.b32.xlu0 %v18490_v18, %s24400_s30 }
 0x428   : > { %v12639_v3 = vpack.c.bf16 %v1960_v4, %v1959_v30  ;;  %v12636_v29 = vpack.c.bf16 %v1944_v14, %v1943_v28  ;;  %v627_v40 = vmul.f32 16.0, %v18816_v56 }
 0x42a   : > { %15646 = vrot.lane.b32.xlu1 %v18518_v15, %s24400_s30  ;;  %12637 = vmatprep.subr.msk.bf16.mxu0 %vm18838_vm3, %v12636_v29 }
 0x42b   : > { %15651 = vrot.lane.b32.xlu0 %v18579_v23, %s24400_s30  ;;  %12640 = vmatpush1.bf16.msk.msra.mxu0 %vm18847_vm4, %v12639_v3 }
 0x42c   : > { %v15367_v51 = vpop.permute.xlu1 %15366 }
 0x42d   : > { %v15377_v2 = vpop.permute.xlu0 %15376  ;;  %v15369_v24 = vunpack.i.h.bf16 %v15367_v51  ;;  %v15368_v9 = vunpack.i.l.bf16 %v15367_v51 }
 0x42e   : > { %v15379_v58 = vunpack.i.h.bf16 %v15377_v2  ;;  %v15378_v54 = vunpack.i.l.bf16 %v15377_v2  ;;  %15656 = vrot.lane.b32.xlu1 %v18591_v12, %s24400_s30 }
 0x42f   : > { %15661 = vrot.lane.b32.xlu0 %v18587_v26, %s24400_s30 }
 0x430   : > { %v1946_v62 = vsel %vm24376_vm0, %v15369_v24, %v15379_v58  ;;  %v1962_v1 = vsel %vm24376_vm0, %v15379_v58, %v15369_v24  ;;  %v1945_v20 = vsel %vm24376_vm0, %v15368_v9, %v15378_v54  ;;  %v1961_v14 = vsel %vm24376_vm0, %v15378_v54, %v15368_v9  ;;  %v15372_v4 = vpop.permute.xlu1 %15371 }
 0x431   : > { %v12645_v28 = vpack.c.bf16 %v1962_v1, %v1961_v14  ;;  %v15382_v30 = vpop.permute.xlu0 %15381  ;;  %v15374_v3 = vunpack.i.h.bf16 %v15372_v4  ;;  %v15373_v29 = vunpack.i.l.bf16 %v15372_v4  ;;  %v12642_v51 = vpack.c.bf16 %v1946_v62, %v1945_v20 }
 0x432   : > { %v15384_v2 = vunpack.i.h.bf16 %v15382_v30  ;;  %v15383_v6 = vunpack.i.l.bf16 %v15382_v30  ;;  %15666 = vrot.lane.b32.xlu1 %v18616_v0, %s24400_s30  ;;  %v24532_v24 = vcvt.s32.f32 %v18794_v39  ;;  %v24533_v58 = vcvt.s32.f32 %v18787_v22 }
 0x433   : > { %15671 = vrot.lane.b32.xlu0 %v18623_v59, %s24400_s30  ;;  %12643 = vmatprep.subr.msk.bf16.mxu0 %vm18838_vm3, %v12642_v51 }
 0x434   : > { %v18973_v9 = vsub.f32 %v24532_v24, %v628_v45  ;;  %v18977_v54 = vsub.f32 %v24533_v58, %v627_v40  ;;  %v1948_v62 = vsel %vm24376_vm0, %v15374_v3, %v15384_v2  ;;  %v1964_v1 = vsel %vm24376_vm0, %v15384_v2, %v15374_v3  ;;  %12646 = vmatpush1.bf16.msk.msra.mxu0 %vm18847_vm4, %v12645_v28  ;;  %v15387_v39 = vpop.permute.xlu1 %15386 }
 0x435   : > { %v1947_v20 = vsel %vm24376_vm0, %v15373_v29, %v15383_v6  ;;  %v1963_v14 = vsel %vm24376_vm0, %v15383_v6, %v15373_v29  ;;  %v15392_v4 = vpop.permute.xlu0 %15391  ;;  %v15389_v40 = vunpack.i.h.bf16 %v15387_v39  ;;  %v15388_v30 = vunpack.i.l.bf16 %v15387_v39 }
 0x436   : > { %v12651_v45 = vpack.c.bf16 %v1964_v1, %v1963_v14  ;;  %v12648_v51 = vpack.c.bf16 %v1948_v62, %v1947_v20  ;;  %v15394_v24 = vunpack.i.h.bf16 %v15392_v4  ;;  %v15393_v58 = vunpack.i.l.bf16 %v15392_v4  ;;  %15676 = vrot.lane.b32.xlu1 %v18657_v57, %s24400_s30 }
 0x437   : > { %15681 = vrot.lane.b32.xlu0 %v18664_v7, %s24400_s30  ;;  %vm634_vm6 = vcmp.ge.f32.partialorder %v18973_v9, 1.0  ;;  %vm24380_vm7 = vcmp.ge.f32.partialorder %v18977_v54, 1.0  ;;  %vm24379_vm12 = vcmp.le.f32.partialorder %v18973_v9, 14.0  ;;  %vm24378_vm14 = vcmp.le.f32.partialorder %v18977_v54, 14.0 }
 0x438   : > { %12649 = vmatprep.subr.msk.bf16.mxu0 %vm18838_vm3, %v12648_v51  ;;  %v1950_v6 = vsel %vm24376_vm0, %v15389_v40, %v15394_v24  ;;  %v1966_v28 = vsel %vm24376_vm0, %v15394_v24, %v15389_v40  ;;  %v1949_v3 = vsel %vm24376_vm0, %v15388_v30, %v15393_v58  ;;  %v1965_v29 = vsel %vm24376_vm0, %v15393_v58, %v15388_v30  ;;  %v15397_v2 = vpop.permute.xlu1 %15396  ;;  %vm636_vm8 = vmand %vm632_vm1, %vm634_vm6 }
 0x439   : > { %12652 = vmatpush1.bf16.msk.msra.mxu0 %vm18847_vm4, %v12651_v45  ;;  %v12657_v62 = vpack.c.bf16 %v1966_v28, %v1965_v29  ;;  %v15402_v1 = vpop.permute.xlu0 %15401  ;;  %v15399_v20 = vunpack.i.h.bf16 %v15397_v2  ;;  %v15398_v14 = vunpack.i.l.bf16 %v15397_v2  ;;  %v12654_v39 = vpack.c.bf16 %v1950_v6, %v1949_v3  ;;  %v17243_v45 = vld [vmem:[%s24303_s5 + $0x20] sm:$0xff]   ;;  %vm19025_vm9 = vmand %vm631_vm2, %vm24380_vm7 }
 0x43a   : > { %v15404_v4 = vunpack.i.h.bf16 %v15402_v1  ;;  %v15403_v51 = vunpack.i.l.bf16 %v15402_v1  ;;  %15686 = vrot.lane.b32.xlu1 %v18703_v49, %s24400_s30  ;;  %vm19039_vm10 = vmpackc.low %vm636_vm8, %vm636_vm8 }
 0x43b   : > { %15696 = vrot.lane.b32.xlu0 %v18707_v38, %s24400_s30  ;;  %12655 = vmatprep.subr.msk.bf16.mxu0 %vm18838_vm3, %v12654_v39  ;;  %vm19048_vm11 = vmpackc.low %vm19025_vm9, %vm19025_vm9  ;;  %vm24374_vm9 = vcmp.lt.s32.totalorder %v18787_v22, 1 }
 0x43c   : > { %v1779_v30 = vsel %vm24377_vm5, %v15399_v20, %v15404_v4  ;;  %v1795_v24 = vsel %vm24377_vm5, %v15404_v4, %v15399_v20  ;;  %v1778_v58 = vsel %vm24377_vm5, %v15398_v14, %v15403_v51  ;;  %v1794_v6 = vsel %vm24377_vm5, %v15403_v51, %v15398_v14  ;;  %v15407_v28 = vpop.permute.xlu1 %15406  ;;  %vm640_vm15 = vmand %vm632_vm1, %vm24379_vm12 }
 0x43d   : > { %12658 = vmatpush1.bf16.msk.msra.mxu0 %vm18847_vm4, %v12657_v62  ;;  %v12667_v3 = vpack.c.bf16 %v1795_v24, %v1794_v6  ;;  %v15412_v29 = vpop.permute.xlu0 %15411  ;;  %v15409_v2 = vunpack.i.h.bf16 %v15407_v28  ;;  %v15408_v1 = vunpack.i.l.bf16 %v15407_v28  ;;  %v12664_v25 = vpack.c.bf16 %v1779_v30, %v1778_v58  ;;  %vm19192_vm8 = vmand %vm631_vm2, %vm24378_vm14 }
 0x43e   : > { %v15414_v20 = vunpack.i.h.bf16 %v15412_v29  ;;  %v15413_v4 = vunpack.i.l.bf16 %v15412_v29  ;;  %15691 = vrot.lane.b32.xlu1 %v18719_v10, %s24400_s30  ;;  %v24538_v62 = vmov 0  ;;  %vm19207_vm1 = vmpackc.low %vm640_vm15, %vm640_vm15 }
 0x43f   : > { %v24539_v62 = vsel %vm19048_vm11, 4294967295, %v24538_v62  ;;  %15701 = vrot.lane.b32.xlu0 %v18711_v21, %s24400_s30  ;;  %12665 = vmatprep.subr.msk.bf16.mxu0 %vm19039_vm10, %v12664_v25  ;;  %v17244_v25 = vld [vmem:[%s24303_s5 + $0x28] sm:$0xff]   ;;  %vm19218_vm2 = vmpackc.low %vm19192_vm8, %vm19192_vm8 }
 0x440   : > { %24540 = vst [vmem:[#allocation24_spill] sm:$0xff] %v24539_v62  ;;  %2085 = vmatmul.mubr.bf16.vlgmr.msra.gmra.mrb[56].mxu0 %v17243_v45  ;;  %v1781_v14 = vsel %vm24377_vm5, %v15409_v2, %v15414_v20  ;;  %v1797_v51 = vsel %vm24377_vm5, %v15414_v20, %v15409_v2  ;;  %v1780_v30 = vsel %vm24377_vm5, %v15408_v1, %v15413_v4  ;;  %v15417_v24 = vpop.permute.xlu1 %15416  ;;  %vm19366_vm15 = vmpackc.low %vm634_vm6, %vm634_vm6 }
 0x441   : > { %v1796_v40 = vsel %vm24377_vm5, %v15413_v4, %v15408_v1  ;;  %12668 = vmatpush1.bf16.msk.msra.mxu0 %vm19048_vm11, %v12667_v3  ;;  %v15422_v45 = vpop.permute.xlu0 %15421  ;;  %v15419_v6 = vunpack.i.h.bf16 %v15417_v24  ;;  %v15418_v28 = vunpack.i.l.bf16 %v15417_v24  ;;  %v12670_v29 = vpack.c.bf16 %v1781_v14, %v1780_v30  ;;  %2094 = vmatprep.mubr.bf16.mxu0 %v24541_v41  ;;  %vm19377_vm8 = vmpackc.low %vm24380_vm7, %vm24380_vm7 }
 0x442   : > { %v12673_v58 = vpack.c.bf16 %v1797_v51, %v1796_v40  ;;  %v15424_v2 = vunpack.i.h.bf16 %v15422_v45  ;;  %v15423_v20 = vunpack.i.l.bf16 %v15422_v45  ;;  %15706 = vrot.lane.b32.xlu1 %v18653_v13, %s24400_s30  ;;  %vm19685_vm0 = vmpackc.low %vm24378_vm14, %vm24378_vm14  ;;  %vm24383_vm14 = vcmp.lt.s32.totalorder %v18787_v22, 113 }
 0x443   : > { %15711 = vrot.lane.b32.xlu0 %v18681_v19, %s24400_s30  ;;  %12671 = vmatprep.subr.msk.bf16.mxu0 %vm19039_vm10, %v12670_v29  ;;  %vm24384_vm7 = vcmp.le.f32.partialorder %v18816_v56, 14.0 }
 0x444   : > { %v1783_v3 = vsel %vm24377_vm5, %v15419_v6, %v15424_v2  ;;  %v1799_v1 = vsel %vm24377_vm5, %v15424_v2, %v15419_v6  ;;  %v1782_v4 = vsel %vm24377_vm5, %v15418_v28, %v15423_v20  ;;  %v1798_v14 = vsel %vm24377_vm5, %v15423_v20, %v15418_v28  ;;  %v15427_v51 = vpop.permute.xlu1 %15426 }
 0x445   : > { %v12679_v30 = vpack.c.bf16 %v1799_v1, %v1798_v14  ;;  %12674 = vmatpush1.bf16.msk.msra.mxu0 %vm19048_vm11, %v12673_v58  ;;  %v15432_v40 = vpop.permute.xlu0 %15431  ;;  %v15429_v24 = vunpack.i.h.bf16 %v15427_v51  ;;  %v15428_v45 = vunpack.i.l.bf16 %v15427_v51  ;;  %v12676_v29 = vpack.c.bf16 %v1783_v3, %v1782_v4 }
 0x446   : > { %v15434_v50 = vunpack.i.h.bf16 %v15432_v40  ;;  %v15433_v48 = vunpack.i.l.bf16 %v15432_v40  ;;  %15716 = vrot.lane.b32.xlu1 %v18494_v63, %s24398_s20 }
 0x447   : > { %15721 = vrot.lane.b32.xlu0 %v18490_v18, %s24398_s20  ;;  %12677 = vmatprep.subr.msk.bf16.mxu0 %vm19039_vm10, %v12676_v29 }
 0x448   : > { %2095 = vmatmul.mubr.bf16.gmra.mrb[60].mxu0 %v17244_v25  ;;  %v1785_v6 = vsel %vm24377_vm5, %v15429_v24, %v15434_v50  ;;  %v1801_v58 = vsel %vm24377_vm5, %v15434_v50, %v15429_v24  ;;  %v1784_v28 = vsel %vm24377_vm5, %v15428_v45, %v15433_v48  ;;  %v1800_v2 = vsel %vm24377_vm5, %v15433_v48, %v15428_v45  ;;  %v15437_v20 = vpop.permute.xlu1 %15436  ;;  %v17245_v48 = vld [vmem:[%s24303_s5 + $0x30] sm:$0xff]  }
 0x449   : > { %v12685_v3 = vpack.c.bf16 %v1801_v58, %v1800_v2  ;;  %12680 = vmatpush1.bf16.msk.msra.mxu0 %vm19048_vm11, %v12679_v30  ;;  %v15442_v25 = vpop.permute.xlu0 %15441  ;;  %v15439_v1 = vunpack.i.h.bf16 %v15437_v20  ;;  %v15438_v4 = vunpack.i.l.bf16 %v15437_v20  ;;  %v12682_v14 = vpack.c.bf16 %v1785_v6, %v1784_v28  ;;  %2104 = vmatprep.mubr.bf16.mxu0 %v24541_v41 }
 0x44a   : > { %v15444_v50 = vunpack.i.h.bf16 %v15442_v25  ;;  %v15443_v51 = vunpack.i.l.bf16 %v15442_v25  ;;  %15726 = vrot.lane.b32.xlu1 %v18518_v15, %s24398_s20 }
 0x44b   : > { %15731 = vrot.lane.b32.xlu0 %v18579_v23, %s24398_s20  ;;  %12683 = vmatprep.subr.msk.bf16.mxu0 %vm19039_vm10, %v12682_v14 }
 0x44c   : > { %v1787_v30 = vsel %vm24377_vm5, %v15439_v1, %v15444_v50  ;;  %v1803_v40 = vsel %vm24377_vm5, %v15444_v50, %v15439_v1  ;;  %v1786_v24 = vsel %vm24377_vm5, %v15438_v4, %v15443_v51  ;;  %v1802_v45 = vsel %vm24377_vm5, %v15443_v51, %v15438_v4  ;;  %v15447_v29 = vpop.permute.xlu1 %15446 }
 0x44d   : > { %v12691_v6 = vpack.c.bf16 %v1803_v40, %v1802_v45  ;;  %12686 = vmatpush1.bf16.msk.msra.mxu0 %vm19048_vm11, %v12685_v3  ;;  %v15457_v58 = vpop.permute.xlu0 %15456  ;;  %v15449_v28 = vunpack.i.h.bf16 %v15447_v29  ;;  %v15448_v2 = vunpack.i.l.bf16 %v15447_v29  ;;  %v12688_v20 = vpack.c.bf16 %v1787_v30, %v1786_v24 }
 0x44e   : > { %v15459_v25 = vunpack.i.h.bf16 %v15457_v58  ;;  %v15458_v14 = vunpack.i.l.bf16 %v15457_v58  ;;  %15736 = vrot.lane.b32.xlu1 %v18591_v12, %s24398_s20 }
 0x44f   : > { %15741 = vrot.lane.b32.xlu0 %v18587_v26, %s24398_s20  ;;  %12689 = vmatprep.subr.msk.bf16.mxu0 %vm19039_vm10, %v12688_v20 }
 0x450   : > { %2105 = vmatmul.mubr.bf16.gmra.mrb[64].mxu0 %v17245_v48  ;;  %v1789_v1 = vsel %vm24377_vm5, %v15449_v28, %v15459_v25  ;;  %v1805_v4 = vsel %vm24377_vm5, %v15459_v25, %v15449_v28  ;;  %v1788_v3 = vsel %vm24377_vm5, %v15448_v2, %v15458_v14  ;;  %v1804_v50 = vsel %vm24377_vm5, %v15458_v14, %v15448_v2  ;;  %v15452_v51 = vpop.permute.xlu1 %15451 }
 0x451   : > { %v12697_v30 = vpack.c.bf16 %v1805_v4, %v1804_v50  ;;  %12692 = vmatpush1.bf16.msk.msra.mxu0 %vm19048_vm11, %v12691_v6  ;;  %v15462_v48 = vpop.permute.xlu0 %15461  ;;  %v15454_v40 = vunpack.i.h.bf16 %v15452_v51  ;;  %v15453_v24 = vunpack.i.l.bf16 %v15452_v51  ;;  %v12694_v45 = vpack.c.bf16 %v1789_v1, %v1788_v3  ;;  %2114 = vmatprep.mubr.bf16.mxu0 %v24541_v41  ;;  %v17246_v6 = vld [vmem:[%s24303_s5 + $0x38] sm:$0xff]  }
 0x452   : > { %v15464_v29 = vunpack.i.h.bf16 %v15462_v48  ;;  %v15463_v58 = vunpack.i.l.bf16 %v15462_v48  ;;  %15746 = vrot.lane.b32.xlu1 %v18616_v0, %s24398_s20 }
 0x453   : > { %15751 = vrot.lane.b32.xlu0 %v18623_v59, %s24398_s20  ;;  %12695 = vmatprep.subr.msk.bf16.mxu0 %vm19039_vm10, %v12694_v45 }
 0x454   : > { %v1791_v28 = vsel %vm24377_vm5, %v15454_v40, %v15464_v29  ;;  %v1807_v2 = vsel %vm24377_vm5, %v15464_v29, %v15454_v40  ;;  %v1790_v20 = vsel %vm24377_vm5, %v15453_v24, %v15463_v58  ;;  %v1806_v25 = vsel %vm24377_vm5, %v15463_v58, %v15453_v24  ;;  %v15467_v14 = vpop.permute.xlu1 %15466 }
 0x455   : > { %v12703_v1 = vpack.c.bf16 %v1807_v2, %v1806_v25  ;;  %12698 = vmatpush1.bf16.msk.msra.mxu0 %vm19048_vm11, %v12697_v30  ;;  %v15472_v4 = vpop.permute.xlu0 %15471  ;;  %v15469_v3 = vunpack.i.h.bf16 %v15467_v14  ;;  %v15468_v50 = vunpack.i.l.bf16 %v15467_v14  ;;  %v12700_v51 = vpack.c.bf16 %v1791_v28, %v1790_v20 }
 0x456   : > { %v15474_v48 = vunpack.i.h.bf16 %v15472_v4  ;;  %v15473_v45 = vunpack.i.l.bf16 %v15472_v4  ;;  %15756 = vrot.lane.b32.xlu1 %v18657_v57, %s24398_s20 }
 0x457   : > { %15761 = vrot.lane.b32.xlu0 %v18664_v7, %s24398_s20  ;;  %12701 = vmatprep.subr.msk.bf16.mxu0 %vm19039_vm10, %v12700_v51 }
 0x458   : > { %2115 = vmatmul.mubr.bf16.gmra.mrb[68].mxu0 %v17246_v6  ;;  %v1793_v30 = vsel %vm24377_vm5, %v15469_v3, %v15474_v48  ;;  %v1809_v40 = vsel %vm24377_vm5, %v15474_v48, %v15469_v3  ;;  %v1792_v24 = vsel %vm24377_vm5, %v15468_v50, %v15473_v45  ;;  %v1808_v29 = vsel %vm24377_vm5, %v15473_v45, %v15468_v50  ;;  %v15477_v58 = vpop.permute.xlu1 %15476 }
 0x459   : > { %v12709_v28 = vpack.c.bf16 %v1809_v40, %v1808_v29  ;;  %12704 = vmatpush1.bf16.msk.msra.mxu0 %vm19048_vm11, %v12703_v1  ;;  %v15482_v6 = vpop.permute.xlu0 %15481  ;;  %v15479_v2 = vunpack.i.h.bf16 %v15477_v58  ;;  %v15478_v20 = vunpack.i.l.bf16 %v15477_v58  ;;  %v12706_v25 = vpack.c.bf16 %v1793_v30, %v1792_v24  ;;  %2181 = vmatprep.mubr.bf16.mxu0 %v24541_v41  ;;  %v17247_v30 = vld [vmem:[%s24303_s5] sm:$0xff]  }
 0x45a   : > { %v15484_v14 = vunpack.i.h.bf16 %v15482_v6  ;;  %v15483_v4 = vunpack.i.l.bf16 %v15482_v6  ;;  %15766 = vrot.lane.b32.xlu1 %v18703_v49, %s24398_s20  ;;  %v24544_v40 = vmov 0  ;;  %vm24382_vm5 = vcmp.le.f32.partialorder %v18814_v31, 14.0 }
 0x45b   : > { %15776 = vrot.lane.b32.xlu0 %v18707_v38, %s24398_s20  ;;  %12707 = vmatprep.subr.msk.bf16.mxu0 %vm19039_vm10, %v12706_v25  ;;  %v24545_v40 = vsel %vm19207_vm1, 4294967295, %v24544_v40 }
 0x45c   : > { %v2288_v3 = vsel %vm24375_vm13, %v15479_v2, %v15484_v14  ;;  %v2304_v50 = vsel %vm24375_vm13, %v15484_v14, %v15479_v2  ;;  %v2287_v51 = vsel %vm24375_vm13, %v15478_v20, %v15483_v4  ;;  %v2303_v48 = vsel %vm24375_vm13, %v15483_v4, %v15478_v20  ;;  %v15487_v45 = vpop.permute.xlu1 %15486  ;;  %24546 = vst [vmem:[#allocation25_spill] sm:$0xff] %v24545_v40 }
 0x45d   : > { %v12727_v24 = vpack.c.bf16 %v2304_v50, %v2303_v48  ;;  %12710 = vmatpush1.bf16.msk.msra.mxu0 %vm19048_vm11, %v12709_v28  ;;  %v15492_v29 = vpop.permute.xlu0 %15491  ;;  %v15489_v58 = vunpack.i.h.bf16 %v15487_v45  ;;  %v15488_v6 = vunpack.i.l.bf16 %v15487_v45  ;;  %v12724_v2 = vpack.c.bf16 %v2288_v3, %v2287_v51 }
 0x45e   : > { %v15494_v25 = vunpack.i.h.bf16 %v15492_v29  ;;  %v15493_v14 = vunpack.i.l.bf16 %v15492_v29  ;;  %15771 = vrot.lane.b32.xlu1 %v18719_v10, %s24398_s20  ;;  %v24547_v20 = vmov 0 }
 0x45f   : > { %v24548_v20 = vsel %vm19218_vm2, 4294967295, %v24547_v20  ;;  %15781 = vrot.lane.b32.xlu0 %v18711_v21, %s24398_s20  ;;  %12725 = vmatprep.subr.msk.bf16.mxu0 %vm19207_vm1, %v12724_v2 }
 0x460   : > { %24549 = vst [vmem:[#allocation31_spill] sm:$0xff] %v24548_v20  ;;  %v2290_v28 = vsel %vm24375_vm13, %v15489_v58, %v15494_v25  ;;  %v2306_v4 = vsel %vm24375_vm13, %v15494_v25, %v15489_v58  ;;  %v2289_v1 = vsel %vm24375_vm13, %v15488_v6, %v15493_v14  ;;  %v2305_v3 = vsel %vm24375_vm13, %v15493_v14, %v15488_v6  ;;  %v15497_v50 = vpop.permute.xlu1 %15496 }
 0x461   : > { %2182 = vmatmul.mubr.bf16.vlgmr.msra.gmra.mrb[56].mxu0 %v17247_v30  ;;  %v12733_v51 = vpack.c.bf16 %v2306_v4, %v2305_v3  ;;  %v15502_v48 = vpop.permute.xlu0 %15501  ;;  %v15499_v45 = vunpack.i.h.bf16 %v15497_v50  ;;  %v15498_v29 = vunpack.i.l.bf16 %v15497_v50  ;;  %v12730_v2 = vpack.c.bf16 %v2290_v28, %v2289_v1  ;;  %v17248_v28 = vld [vmem:[%s24303_s5 + $0x8] sm:$0xff]  }
 0x462   : > { %12728 = vmatpush1.bf16.msk.msra.mxu0 %vm19218_vm2, %v12727_v24  ;;  %2191 = vmatprep.mubr.bf16.mxu0 %v24541_v41  ;;  %v15504_v62 = vunpack.i.h.bf16 %v15502_v48  ;;  %v15503_v58 = vunpack.i.l.bf16 %v15502_v48 }
 0x463   : > { %15786 = vrot.lane.b32.xlu1 %v18653_v13, %s24398_s20  ;;  %15791 = vrot.lane.b32.xlu0 %v18681_v19, %s24398_s20  ;;  %s24647_s20 = smov 111   ;;  %v25083_v39 = vld [vmem:[#allocation25_spill] sm:$0xff] }
 0x464   : > { %12731 = vmatprep.subr.msk.bf16.mxu0 %vm19207_vm1, %v12730_v2  ;;  %v2292_v30 = vsel %vm24375_vm13, %v15499_v45, %v15504_v62  ;;  %v2308_v24 = vsel %vm24375_vm13, %v15504_v62, %v15499_v45  ;;  %v2291_v6 = vsel %vm24375_vm13, %v15498_v29, %v15503_v58  ;;  %v2307_v25 = vsel %vm24375_vm13, %v15503_v58, %v15498_v29  ;;  %v15507_v14 = vpop.permute.xlu1 %15506 }
 0x465   : > { %v12739_v4 = vpack.c.bf16 %v2308_v24, %v2307_v25  ;;  %v15512_v1 = vpop.permute.xlu0 %15511  ;;  %v15509_v3 = vunpack.i.h.bf16 %v15507_v14  ;;  %v15508_v50 = vunpack.i.l.bf16 %v15507_v14  ;;  %v12736_v48 = vpack.c.bf16 %v2292_v30, %v2291_v6 }
 0x466   : > { %12734 = vmatpush1.bf16.msk.msra.mxu0 %vm19218_vm2, %v12733_v51  ;;  %v15514_v62 = vunpack.i.h.bf16 %v15512_v1  ;;  %v15513_v45 = vunpack.i.l.bf16 %v15512_v1 }
 0x467   : > { %15796 = vrot.lane.b32.xlu1 %v18494_v63, %s24372_s22  ;;  %15801 = vrot.lane.b32.xlu0 %v18490_v18, %s24372_s22 }
 0x468   : > { %12737 = vmatprep.subr.msk.bf16.mxu0 %vm19207_vm1, %v12736_v48  ;;  %v2294_v29 = vsel %vm24375_vm13, %v15509_v3, %v15514_v62  ;;  %v2310_v51 = vsel %vm24375_vm13, %v15514_v62, %v15509_v3  ;;  %v2293_v2 = vsel %vm24375_vm13, %v15508_v50, %v15513_v45  ;;  %v2309_v58 = vsel %vm24375_vm13, %v15513_v45, %v15508_v50  ;;  %v15517_v30 = vpop.permute.xlu1 %15516 }
 0x469   : > { %2192 = vmatmul.mubr.bf16.gmra.mrb[60].mxu0 %v17248_v28  ;;  %v12745_v24 = vpack.c.bf16 %v2310_v51, %v2309_v58  ;;  %v15522_v6 = vpop.permute.xlu0 %15521  ;;  %v15519_v25 = vunpack.i.h.bf16 %v15517_v30  ;;  %v15518_v14 = vunpack.i.l.bf16 %v15517_v30  ;;  %v12742_v1 = vpack.c.bf16 %v2294_v29, %v2293_v2  ;;  %v17249_v29 = vld [vmem:[%s24303_s5 + $0x10] sm:$0xff]  }
 0x46a   : > { %12740 = vmatpush1.bf16.msk.msra.mxu0 %vm19218_vm2, %v12739_v4  ;;  %2201 = vmatprep.mubr.bf16.mxu0 %v24541_v41  ;;  %v15524_v48 = vunpack.i.h.bf16 %v15522_v6  ;;  %v15523_v3 = vunpack.i.l.bf16 %v15522_v6 }
 0x46b   : > { %15806 = vrot.lane.b32.xlu1 %v18518_v15, %s24372_s22  ;;  %15811 = vrot.lane.b32.xlu0 %v18579_v23, %s24372_s22 }
 0x46c   : > { %12743 = vmatprep.subr.msk.bf16.mxu0 %vm19207_vm1, %v12742_v1  ;;  %v2296_v28 = vsel %vm24375_vm13, %v15519_v25, %v15524_v48  ;;  %v2312_v4 = vsel %vm24375_vm13, %v15524_v48, %v15519_v25  ;;  %v2295_v50 = vsel %vm24375_vm13, %v15518_v14, %v15523_v3  ;;  %v2311_v62 = vsel %vm24375_vm13, %v15523_v3, %v15518_v14  ;;  %v15527_v45 = vpop.permute.xlu1 %15526 }
 0x46d   : > { %v12751_v51 = vpack.c.bf16 %v2312_v4, %v2311_v62  ;;  %v15537_v2 = vpop.permute.xlu0 %15536  ;;  %v15529_v58 = vunpack.i.h.bf16 %v15527_v45  ;;  %v15528_v30 = vunpack.i.l.bf16 %v15527_v45  ;;  %v12748_v6 = vpack.c.bf16 %v2296_v28, %v2295_v50 }
 0x46e   : > { %12746 = vmatpush1.bf16.msk.msra.mxu0 %vm19218_vm2, %v12745_v24  ;;  %v15539_v25 = vunpack.i.h.bf16 %v15537_v2  ;;  %v15538_v1 = vunpack.i.l.bf16 %v15537_v2 }
 0x46f   : > { %15816 = vrot.lane.b32.xlu1 %v18591_v12, %s24372_s22  ;;  %15821 = vrot.lane.b32.xlu0 %v18587_v26, %s24372_s22 }
 0x470   : > { %12749 = vmatprep.subr.msk.bf16.mxu0 %vm19207_vm1, %v12748_v6  ;;  %v2298_v14 = vsel %vm24375_vm13, %v15529_v58, %v15539_v25  ;;  %v2314_v24 = vsel %vm24375_vm13, %v15539_v25, %v15529_v58  ;;  %v2297_v48 = vsel %vm24375_vm13, %v15528_v30, %v15538_v1  ;;  %v2313_v3 = vsel %vm24375_vm13, %v15538_v1, %v15528_v30  ;;  %v15532_v28 = vpop.permute.xlu1 %15531 }
 0x471   : > { %2202 = vmatmul.mubr.bf16.gmra.mrb[64].mxu0 %v17249_v29  ;;  %v12757_v4 = vpack.c.bf16 %v2314_v24, %v2313_v3  ;;  %v15542_v50 = vpop.permute.xlu0 %15541  ;;  %v15534_v62 = vunpack.i.h.bf16 %v15532_v28  ;;  %v15533_v45 = vunpack.i.l.bf16 %v15532_v28  ;;  %v12754_v2 = vpack.c.bf16 %v2298_v14, %v2297_v48  ;;  %v17250_v14 = vld [vmem:[%s24303_s5 + $0x18] sm:$0xff]  }
 0x472   : > { %12752 = vmatpush1.bf16.msk.msra.mxu0 %vm19218_vm2, %v12751_v51  ;;  %2211 = vmatprep.mubr.bf16.mxu0 %v24541_v41  ;;  %v15544_v6 = vunpack.i.h.bf16 %v15542_v50  ;;  %v15543_v58 = vunpack.i.l.bf16 %v15542_v50 }
 0x473   : > { %15826 = vrot.lane.b32.xlu1 %v18616_v0, %s24372_s22  ;;  %15831 = vrot.lane.b32.xlu0 %v18623_v59, %s24372_s22 }
 0x474   : > { %12755 = vmatprep.subr.msk.bf16.mxu0 %vm19207_vm1, %v12754_v2  ;;  %v2300_v29 = vsel %vm24375_vm13, %v15534_v62, %v15544_v6  ;;  %v2316_v51 = vsel %vm24375_vm13, %v15544_v6, %v15534_v62  ;;  %v2299_v30 = vsel %vm24375_vm13, %v15533_v45, %v15543_v58  ;;  %v2315_v25 = vsel %vm24375_vm13, %v15543_v58, %v15533_v45  ;;  %v15547_v1 = vpop.permute.xlu1 %15546 }
 0x475   : > { %v12763_v24 = vpack.c.bf16 %v2316_v51, %v2315_v25  ;;  %v15552_v48 = vpop.permute.xlu0 %15551  ;;  %v15549_v3 = vunpack.i.h.bf16 %v15547_v1  ;;  %v15548_v28 = vunpack.i.l.bf16 %v15547_v1  ;;  %v12760_v50 = vpack.c.bf16 %v2300_v29, %v2299_v30 }
 0x476   : > { %12758 = vmatpush1.bf16.msk.msra.mxu0 %vm19218_vm2, %v12757_v4  ;;  %v15554_v62 = vunpack.i.h.bf16 %v15552_v48  ;;  %v15553_v2 = vunpack.i.l.bf16 %v15552_v48 }
 0x477   : > { %15836 = vrot.lane.b32.xlu1 %v18657_v57, %s24372_s22  ;;  %15841 = vrot.lane.b32.xlu0 %v18664_v7, %s24372_s22 }
 0x478   : > { %12761 = vmatprep.subr.msk.bf16.mxu0 %vm19207_vm1, %v12760_v50  ;;  %v2302_v4 = vsel %vm24375_vm13, %v15549_v3, %v15554_v62  ;;  %v2318_v45 = vsel %vm24375_vm13, %v15554_v62, %v15549_v3  ;;  %v2301_v6 = vsel %vm24375_vm13, %v15548_v28, %v15553_v2  ;;  %v2317_v58 = vsel %vm24375_vm13, %v15553_v2, %v15548_v28  ;;  %v15557_v29 = vpop.permute.xlu1 %15556  ;;  %vm19658_vm13 = vmpackc.low %vm24379_vm12, %vm24379_vm12 }
 0x479   : > { %2212 = vmatmul.mubr.bf16.gmra.mrb[68].mxu0 %v17250_v14  ;;  %v12769_v51 = vpack.c.bf16 %v2318_v45, %v2317_v58  ;;  %v15562_v30 = vpop.permute.xlu0 %15561  ;;  %v15559_v25 = vunpack.i.h.bf16 %v15557_v29  ;;  %v15558_v1 = vunpack.i.l.bf16 %v15557_v29  ;;  %v12766_v48 = vpack.c.bf16 %v2302_v4, %v2301_v6  ;;  %v17251_v4 = vld [vmem:[%s24303_s5 + $0x40] sm:$0xff]   ;;  %vm19829_vm12 = vmand %vm24382_vm5, %vm634_vm6 }
 0x47a   : > { %12764 = vmatpush1.bf16.msk.msra.mxu0 %vm19218_vm2, %v12763_v24  ;;  %2436 = vmatprep.mubr.bf16.mxu0 %v24541_v41  ;;  %v15564_v50 = vunpack.i.h.bf16 %v15562_v30  ;;  %v15563_v3 = vunpack.i.l.bf16 %v15562_v30  ;;  %v24550_v45 = vmov 0  ;;  %vm19856_vm6 = vmpackc.low %vm19829_vm12, %vm19829_vm12 }
 0x47b   : > { %15846 = vrot.lane.b32.xlu1 %v18703_v49, %s24372_s22  ;;  %15856 = vrot.lane.b32.xlu0 %v18707_v38, %s24372_s22  ;;  %v24551_v45 = vsel %vm19366_vm15, 4294967295, %v24550_v45 }
 0x47c   : > { %12767 = vmatprep.subr.msk.bf16.mxu0 %vm19207_vm1, %v12766_v48  ;;  %v2559_v14 = vsel %vm24374_vm9, %v15559_v25, %v15564_v50  ;;  %v2575_v24 = vsel %vm24374_vm9, %v15564_v50, %v15559_v25  ;;  %v2558_v28 = vsel %vm24374_vm9, %v15558_v1, %v15563_v3  ;;  %v2574_v62 = vsel %vm24374_vm9, %v15563_v3, %v15558_v1  ;;  %v15567_v2 = vpop.permute.xlu1 %15566 }
 0x47d   : > { %24552 = vst [vmem:[#allocation33_spill] sm:$0xff] %v24551_v45  ;;  %v12787_v6 = vpack.c.bf16 %v2575_v24, %v2574_v62  ;;  %v15572_v58 = vpop.permute.xlu0 %15571  ;;  %v15569_v29 = vunpack.i.h.bf16 %v15567_v2  ;;  %v15568_v30 = vunpack.i.l.bf16 %v15567_v2  ;;  %v12784_v25 = vpack.c.bf16 %v2559_v14, %v2558_v28 }
 0x47e   : > { %12770 = vmatpush1.bf16.msk.msra.mxu0 %vm19218_vm2, %v12769_v51  ;;  %v15574_v1 = vunpack.i.h.bf16 %v15572_v58  ;;  %v15573_v48 = vunpack.i.l.bf16 %v15572_v58  ;;  %v24553_v50 = vmov 0 }
 0x47f   : > { %15851 = vrot.lane.b32.xlu1 %v18719_v10, %s24372_s22  ;;  %v24554_v50 = vsel %vm19377_vm8, 4294967295, %v24553_v50  ;;  %15861 = vrot.lane.b32.xlu0 %v18711_v21, %s24372_s22 }
 0x480   : > { %24555 = vst [vmem:[#allocation34_spill] sm:$0xff] %v24554_v50  ;;  %12785 = vmatprep.subr.msk.bf16.mxu0 %vm19366_vm15, %v12784_v25  ;;  %v2561_v51 = vsel %vm24374_vm9, %v15569_v29, %v15574_v1  ;;  %v2577_v3 = vsel %vm24374_vm9, %v15574_v1, %v15569_v29  ;;  %v2560_v14 = vsel %vm24374_vm9, %v15568_v30, %v15573_v48  ;;  %v15577_v28 = vpop.permute.xlu1 %15576 }
 0x481   : > { %v2576_v24 = vsel %vm24374_vm9, %v15573_v48, %v15568_v30  ;;  %2437 = vmatmul.mubr.bf16.vlgmr.msra.gmra.mrb[56].mxu0 %v17251_v4  ;;  %v15582_v2 = vpop.permute.xlu0 %15581  ;;  %v15579_v58 = vunpack.i.h.bf16 %v15577_v28  ;;  %v15578_v25 = vunpack.i.l.bf16 %v15577_v28  ;;  %v12790_v20 = vpack.c.bf16 %v2561_v51, %v2560_v14  ;;  %v17252_v51 = vld [vmem:[%s24303_s5 + $0x48] sm:$0xff]  }
 0x482   : > { %v12793_v62 = vpack.c.bf16 %v2577_v3, %v2576_v24  ;;  %12788 = vmatpush1.bf16.msk.msra.mxu0 %vm19377_vm8, %v12787_v6  ;;  %2446 = vmatprep.mubr.bf16.mxu0 %v24541_v41  ;;  %v15584_v40 = vunpack.i.h.bf16 %v15582_v2  ;;  %v15583_v29 = vunpack.i.l.bf16 %v15582_v2 }
 0x483   : > { %15866 = vrot.lane.b32.xlu1 %v18653_v13, %s24372_s22  ;;  %15871 = vrot.lane.b32.xlu0 %v18681_v19, %s24372_s22  ;;  %s24640_s22 = smov 113  }
 0x484   : > { %12791 = vmatprep.subr.msk.bf16.mxu0 %vm19366_vm15, %v12790_v20  ;;  %v2563_v4 = vsel %vm24374_vm9, %v15579_v58, %v15584_v40  ;;  %v2579_v6 = vsel %vm24374_vm9, %v15584_v40, %v15579_v58  ;;  %v2562_v30 = vsel %vm24374_vm9, %v15578_v25, %v15583_v29  ;;  %v2578_v1 = vsel %vm24374_vm9, %v15583_v29, %v15578_v25  ;;  %v15587_v48 = vpop.permute.xlu1 %15586 }
 0x485   : > { %v12799_v3 = vpack.c.bf16 %v2579_v6, %v2578_v1  ;;  %v15592_v20 = vpop.permute.xlu0 %15591  ;;  %v15589_v14 = vunpack.i.h.bf16 %v15587_v48  ;;  %v15588_v24 = vunpack.i.l.bf16 %v15587_v48  ;;  %v12796_v28 = vpack.c.bf16 %v2563_v4, %v2562_v30 }
 0x486   : > { %12794 = vmatpush1.bf16.msk.msra.mxu0 %vm19377_vm8, %v12793_v62  ;;  %v15594_v40 = vunpack.i.h.bf16 %v15592_v20  ;;  %v15593_v2 = vunpack.i.l.bf16 %v15592_v20 }
 0x487   : > { %15876 = vrot.lane.b32.xlu1 %v18494_v63, %s24396_s0  ;;  %15881 = vrot.lane.b32.xlu0 %v18490_v18, %s24396_s0 }
 0x488   : > { %12797 = vmatprep.subr.msk.bf16.mxu0 %vm19366_vm15, %v12796_v28  ;;  %v2565_v58 = vsel %vm24374_vm9, %v15589_v14, %v15594_v40  ;;  %v2581_v62 = vsel %vm24374_vm9, %v15594_v40, %v15589_v14  ;;  %v2564_v25 = vsel %vm24374_vm9, %v15588_v24, %v15593_v2  ;;  %v2580_v29 = vsel %vm24374_vm9, %v15593_v2, %v15588_v24  ;;  %v15597_v63 = vpop.permute.xlu1 %15596 }
 0x489   : > { %2447 = vmatmul.mubr.bf16.gmra.mrb[60].mxu0 %v17252_v51  ;;  %v12805_v4 = vpack.c.bf16 %v2581_v62, %v2580_v29  ;;  %v15602_v18 = vpop.permute.xlu0 %15601  ;;  %v15599_v6 = vunpack.i.h.bf16 %v15597_v63  ;;  %v15598_v30 = vunpack.i.l.bf16 %v15597_v63  ;;  %v12802_v1 = vpack.c.bf16 %v2565_v58, %v2564_v25 }
 0x48a   : > { %12800 = vmatpush1.bf16.msk.msra.mxu0 %vm19377_vm8, %v12799_v3  ;;  %2456 = vmatprep.mubr.bf16.mxu0 %v24541_v41  ;;  %v15604_v48 = vunpack.i.h.bf16 %v15602_v18  ;;  %v15603_v20 = vunpack.i.l.bf16 %v15602_v18 }
 0x48b   : > { %15886 = vrot.lane.b32.xlu1 %v18518_v15, %s24396_s0  ;;  %15891 = vrot.lane.b32.xlu0 %v18579_v23, %s24396_s0  ;;  %v17253_v15 = vld [vmem:[%s24303_s5 + $0x50] sm:$0xff]  }
 0x48c   : > { %12803 = vmatprep.subr.msk.bf16.mxu0 %vm19366_vm15, %v12802_v1  ;;  %v2567_v51 = vsel %vm24374_vm9, %v15599_v6, %v15604_v48  ;;  %v2583_v3 = vsel %vm24374_vm9, %v15604_v48, %v15599_v6  ;;  %v2566_v14 = vsel %vm24374_vm9, %v15598_v30, %v15603_v20  ;;  %v2582_v24 = vsel %vm24374_vm9, %v15603_v20, %v15598_v30  ;;  %v15607_v28 = vpop.permute.xlu1 %15606 }
 0x48d   : > { %v12811_v23 = vpack.c.bf16 %v2583_v3, %v2582_v24  ;;  %v15617_v40 = vpop.permute.xlu0 %15616  ;;  %v15609_v2 = vunpack.i.h.bf16 %v15607_v28  ;;  %v15608_v58 = vunpack.i.l.bf16 %v15607_v28  ;;  %v12808_v62 = vpack.c.bf16 %v2567_v51, %v2566_v14 }
 0x48e   : > { %12806 = vmatpush1.bf16.msk.msra.mxu0 %vm19377_vm8, %v12805_v4  ;;  %v15619_v25 = vunpack.i.h.bf16 %v15617_v40  ;;  %v15618_v29 = vunpack.i.l.bf16 %v15617_v40 }
 0x48f   : > { %15896 = vrot.lane.b32.xlu1 %v18591_v12, %s24396_s0  ;;  %15901 = vrot.lane.b32.xlu0 %v18587_v26, %s24396_s0 }
 0x490   : > { %12809 = vmatprep.subr.msk.bf16.mxu0 %vm19366_vm15, %v12808_v62  ;;  %v2569_v63 = vsel %vm24374_vm9, %v15609_v2, %v15619_v25  ;;  %v2585_v4 = vsel %vm24374_vm9, %v15619_v25, %v15609_v2  ;;  %v2568_v18 = vsel %vm24374_vm9, %v15608_v58, %v15618_v29  ;;  %v2584_v6 = vsel %vm24374_vm9, %v15618_v29, %v15608_v58  ;;  %v15612_v12 = vpop.permute.xlu1 %15611 }
 0x491   : > { %2457 = vmatmul.mubr.bf16.gmra.mrb[64].mxu0 %v17253_v15  ;;  %v12817_v30 = vpack.c.bf16 %v2585_v4, %v2584_v6  ;;  %v15622_v26 = vpop.permute.xlu0 %15621  ;;  %v15614_v1 = vunpack.i.h.bf16 %v15612_v12  ;;  %v15613_v48 = vunpack.i.l.bf16 %v15612_v12  ;;  %v12814_v20 = vpack.c.bf16 %v2569_v63, %v2568_v18 }
 0x492   : > { %12812 = vmatpush1.bf16.msk.msra.mxu0 %vm19377_vm8, %v12811_v23  ;;  %2466 = vmatprep.mubr.bf16.mxu0 %v24541_v41  ;;  %v15624_v51 = vunpack.i.h.bf16 %v15622_v26  ;;  %v15623_v3 = vunpack.i.l.bf16 %v15622_v26 }
 0x493   : > { %15906 = vrot.lane.b32.xlu1 %v18616_v0, %s24396_s0  ;;  %15911 = vrot.lane.b32.xlu0 %v18623_v59, %s24396_s0  ;;  %v17254_v0 = vld [vmem:[%s24303_s5 + $0x58] sm:$0xff]  }
 0x494   : > { %12815 = vmatprep.subr.msk.bf16.mxu0 %vm19366_vm15, %v12814_v20  ;;  %v2571_v14 = vsel %vm24374_vm9, %v15614_v1, %v15624_v51  ;;  %v2587_v24 = vsel %vm24374_vm9, %v15624_v51, %v15614_v1  ;;  %v2570_v28 = vsel %vm24374_vm9, %v15613_v48, %v15623_v3  ;;  %v2586_v15 = vsel %vm24374_vm9, %v15623_v3, %v15613_v48  ;;  %v15627_v23 = vpop.permute.xlu1 %15626  ;;  %v17255_v1 = vld [vmem:[%s24303_s5 + $0x60] sm:$0xff]  }
 0x495   : > { %v12823_v59 = vpack.c.bf16 %v2587_v24, %v2586_v15  ;;  %v15632_v40 = vpop.permute.xlu0 %15631  ;;  %v15629_v2 = vunpack.i.h.bf16 %v15627_v23  ;;  %v15628_v58 = vunpack.i.l.bf16 %v15627_v23  ;;  %v12820_v62 = vpack.c.bf16 %v2571_v14, %v2570_v28  ;;  %v1711_v28 = vld [vmem:[%s24304_s6 + $0x30] sm:$0xff] }
 0x496   : > { %12818 = vmatpush1.bf16.msk.msra.mxu0 %vm19377_vm8, %v12817_v30  ;;  %v15634_v25 = vunpack.i.h.bf16 %v15632_v40  ;;  %v15633_v29 = vunpack.i.l.bf16 %v15632_v40  ;;  %v24563_v24 = vpack.c.bf16 %v18649_v44, %v18646_v47  ;;  %v24565_v47 = vpack.c.bf16 %v18696_v37, %v18693_v46  ;;  %v24566_v44 = vld [vmem:[#allocation20_spill] sm:$0xff]  ;;  %v17258_v46 = vld [vmem:[%s24303_s5 + $0x78] sm:$0xff]   ;;  %v24568_v37 = vld [vmem:[#allocation23_spill] sm:$0xff] }
 0x497   : > { %15916 = vrot.lane.b32.xlu1 %v18657_v57, %s24396_s0  ;;  %15921 = vrot.lane.b32.xlu0 %v18664_v7, %s24396_s0 }
 0x498   : > { %12821 = vmatprep.subr.msk.bf16.mxu0 %vm19366_vm15, %v12820_v62  ;;  %v2573_v63 = vsel %vm24374_vm9, %v15629_v2, %v15634_v25  ;;  %v2589_v4 = vsel %vm24374_vm9, %v15634_v25, %v15629_v2  ;;  %v2572_v18 = vsel %vm24374_vm9, %v15628_v58, %v15633_v29  ;;  %v2588_v6 = vsel %vm24374_vm9, %v15633_v29, %v15628_v58  ;;  %v19501_v57 = vpop.permute.xlu1 %15636  ;;  %v24569_v62 = vld [vmem:[#allocation22_spill] sm:$0xff] }
 0x499   : > { %2467 = vmatmul.mubr.bf16.gmra.mrb[68].mxu0 %v17254_v0  ;;  %v12829_v12 = vpack.c.bf16 %v2589_v4, %v2588_v6  ;;  %v19505_v7 = vpop.permute.xlu0 %15641  ;;  %v12826_v30 = vpack.c.bf16 %v2573_v63, %v2572_v18  ;;  %v24567_v0 = vld [vmem:[#allocation21_spill] sm:$0xff]  ;;  %vm24381_vm9 = vcmp.lt.s32.totalorder %v18787_v22, 127  ;;  %v24570_v25 = vpack.c.bf16 %v24568_v37, %v24569_v62  ;;  %v24571_v63 = vld [vmem:[#allocation30_spill] sm:$0xff]  ;;  %v24572_v4 = vld [vmem:[#allocation27_spill] sm:$0xff] }
 0x49a   : > { %12824 = vmatpush1.bf16.msk.msra.mxu0 %vm19377_vm8, %v12823_v59  ;;  %2707 = vmatprep.mubr.bf16.mxu0 %v24541_v41  ;;  %v2786_v59 = vpack.c.bf16 %v24567_v0, %v24566_v44  ;;  %v15644_v40 = vunpack.i.h.bf16 %v19505_v7  ;;  %v15643_v2 = vunpack.i.l.bf16 %v19505_v7  ;;  %v2785_v18 = vpack.c.bf16 %v24572_v4, %v24571_v63 }
 0x49b   : > { %15926 = vrot.lane.b32.xlu1 %v18703_v49, %s24396_s0  ;;  %15936 = vrot.lane.b32.xlu0 %v18707_v38, %s24396_s0  ;;  %v24556_v49 = vpack.c.bf16 %v18468_v34, %v18478_v32  ;;  %v2773_v38 = vpack.c.bf16 %v18465_v17, %v18473_v53  ;;  %v24557_v34 = vpack.c.bf16 %v18542_v16, %v18537_v27  ;;  %v1705_v17 = vld [vmem:[%s24304_s6] sm:$0xff]  ;;  %v1706_v32 = vld [vmem:[%s24304_s6 + $0x8] sm:$0xff] }
 0x49c   : > { %12827 = vmatprep.subr.msk.bf16.mxu0 %vm19366_vm15, %v12826_v30  ;;  %v19514_v26 = vpop.permute.xlu1 %15646  ;;  %v17256_v27 = vld [vmem:[%s24303_s5 + $0x68] sm:$0xff]   ;;  %v24558_v16 = vpack.c.bf16 %v18508_v36, %v18497_v5  ;;  %v1708_v5 = vld [vmem:[%s24304_s6 + $0x18] sm:$0xff]  ;;  %v24560_v36 = vpack.c.bf16 %v18554_v52, %v18547_v35  ;;  %v17257_v52 = vld [vmem:[%s24303_s5 + $0x70] sm:$0xff]  }
 0x49d   : > { %v19521_v48 = vpop.permute.xlu0 %15651  ;;  %v1710_v35 = vld [vmem:[%s24304_s6 + $0x28] sm:$0xff] }
 0x49e   : > { %12830 = vmatpush1.bf16.msk.msra.mxu0 %vm19377_vm8, %v12829_v12  ;;  %v15654_v7 = vunpack.i.h.bf16 %v19521_v48  ;;  %v15653_v30 = vunpack.i.l.bf16 %v19521_v48 }
 0x49f   : > { %2813 = vmatprep.subr.bf16.mxu0 %v24556_v49  ;;  %15931 = vrot.lane.b32.xlu1 %v18719_v10, %s24396_s0  ;;  %v15648_v49 = vunpack.i.l.bf16 %v19514_v26 }
 0x4a0   : > { %15941 = vrot.lane.b32.xlu0 %v18711_v21, %s24396_s0  ;;  %v19532_v20 = vpop.permute.xlu1 %15656  ;;  %v1707_v21 = vld [vmem:[%s24304_s6 + $0x10] sm:$0xff] }
 0x4a1   : > { %2708 = vmatmul.mubr.bf16.vlgmr.msra.gmra.mrb[56].mxu0 %v17255_v1  ;;  %v19534_v51 = vpop.permute.xlu0 %15661  ;;  %v15649_v1 = vunpack.i.h.bf16 %v19514_v26  ;;  %v24576_v26 = vmov 0 }
 0x4a2   : > { %2814 = vmatpush1.bf16.msra.mxu0 %v2773_v38  ;;  %2717 = vmatprep.mubr.bf16.mxu0 %v24541_v41  ;;  %v24577_v26 = vsel %vm19658_vm13, 4294967295, %v24576_v26 }
 0x4a3   : > { %2815 = vmatprep.subr.bf16.mxu0 %v24557_v34  ;;  %15946 = vrot.lane.b32.xlu1 %v18653_v13, %s24396_s0  ;;  %v24573_v34 = vld [vmem:[#allocation28_spill] sm:$0xff]  ;;  %24578 = vst [vmem:[#allocation20_spill] sm:$0xff] %v24577_v26 }
 0x4a4   : > { %15951 = vrot.lane.b32.xlu0 %v18681_v19, %s24396_s0  ;;  %v19547_v53 = vpop.permute.xlu1 %15666  ;;  %v24559_v19 = vpack.c.bf16 %v18563_v8, %v18574_v43  ;;  %v24561_v8 = vpack.c.bf16 %v18609_v60, %v18606_v11  ;;  %v1709_v43 = vld [vmem:[%s24304_s6 + $0x20] sm:$0xff]  ;;  %v24562_v11 = vpack.c.bf16 %v18597_v55, %v18594_v61  ;;  %v1712_v61 = vld [vmem:[%s24304_s6 + $0x38] sm:$0xff]  ;;  %v24564_v55 = vpack.c.bf16 %v18643_v42, %v18640_v33  ;;  %s24813_s0 = smov 17  }
 0x4a5   : > { %v19558_v13 = vpop.permute.xlu0 %15671  ;;  %v15639_v33 = vunpack.i.h.bf16 %v19501_v57  ;;  %v15638_v42 = vunpack.i.l.bf16 %v19501_v57 }
 0x4a6   : > { %2816 = vmatpush1.bf16.msra.mxu0 %v24558_v16 }
 0x4a7   : > { %2817 = vmatprep.subr.bf16.mxu0 %v24559_v19  ;;  %3988 = vperm.xlu1 %15314, %v1705_v17   ;;  %v2984_v6 = vsel %vm24381_vm9, %v15644_v40, %v15639_v33  ;;  %v2983_v57 = vsel %vm24381_vm9, %v15643_v2, %v15638_v42  ;;  %v24574_v17 = vld [vmem:[#allocation26_spill] sm:$0xff]  ;;  %v2967_v16 = vsel %vm24381_vm9, %v15638_v42, %v15643_v2  ;;  %v15664_v19 = vunpack.i.h.bf16 %v19534_v51 }
 0x4a8   : > { %3993 = vperm.xlu0 %15313, %v1706_v32   ;;  %v19566_v10 = vpop.permute.xlu1 %15676  ;;  %v24575_v32 = vpack.c.bf16 %v24573_v34, %v24574_v17  ;;  %v12856_v48 = vpack.c.bf16 %v2984_v6, %v2983_v57  ;;  %v15674_v2 = vunpack.i.h.bf16 %v19558_v13  ;;  %v15669_v42 = vunpack.i.h.bf16 %v19547_v53 }
 0x4a9   : > { %2718 = vmatmul.mubr.bf16.gmra.mrb[60].mxu0 %v17256_v27  ;;  %v19574_v3 = vpop.permute.xlu0 %15681  ;;  %v2968_v27 = vsel %vm24381_vm9, %v15639_v33, %v15644_v40  ;;  %v15673_v33 = vunpack.i.l.bf16 %v19558_v13  ;;  %v15678_v6 = vunpack.i.l.bf16 %v19566_v10 }
 0x4aa   : > { %2818 = vmatpush1.bf16.msra.mxu0 %v24560_v36  ;;  %2727 = vmatprep.mubr.bf16.mxu0 %v24541_v41  ;;  %v15658_v36 = vunpack.i.l.bf16 %v19532_v20  ;;  %v15683_v4 = vunpack.i.l.bf16 %v19574_v3 }
 0x4ab   : > { %2819 = vmatprep.subr.bf16.mxu0 %v24561_v8  ;;  %3998 = vperm.xlu1 %15314, %v1707_v21   ;;  %v15663_v21 = vunpack.i.l.bf16 %v19534_v51 }
 0x4ac   : > { %4003 = vperm.xlu0 %15313, %v1708_v5   ;;  %v19583_v14 = vpop.permute.xlu1 %15686  ;;  %v15659_v5 = vunpack.i.h.bf16 %v19532_v20  ;;  %v24582_v20 = vmov 0 }
 0x4ad   : > { %v19594_v60 = vpop.permute.xlu0 %15696  ;;  %v24583_v20 = vsel %vm19685_vm0, 4294967295, %v24582_v20  ;;  %v2987_v0 = vsel %vm24381_vm9, %v15663_v21, %v15658_v36  ;;  %v2971_v13 = vsel %vm24381_vm9, %v15658_v36, %v15663_v21  ;;  %v15689_v21 = vunpack.i.h.bf16 %v19583_v14 }
 0x4ae   : > { %2820 = vmatpush1.bf16.msra.mxu0 %v24562_v11  ;;  %v24579_v11 = vld [vmem:[#allocation19_spill] sm:$0xff]  ;;  %24584 = vst [vmem:[#allocation21_spill] sm:$0xff] %v24583_v20  ;;  %v2988_v44 = vsel %vm24381_vm9, %v15664_v19, %v15659_v5 }
 0x4af   : > { %2821 = vmatprep.subr.bf16.mxu0 %v24563_v24  ;;  %4008 = vperm.xlu1 %15314, %v1709_v43   ;;  %v17259_v43 = vld [vmem:[%s24303_s5 + $0x80] sm:$0xff]   ;;  %v12868_v63 = vpack.c.bf16 %v2988_v44, %v2987_v0 }
 0x4b0   : > { %4013 = vperm.xlu0 %15313, %v1710_v35   ;;  %v19602_v15 = vpop.permute.xlu1 %15691  ;;  %v2986_v35 = vsel %vm24381_vm9, %v15654_v7, %v15649_v1  ;;  %v24580_v24 = vld [vmem:[#allocation18_spill] sm:$0xff] }
 0x4b1   : > { %2728 = vmatmul.mubr.bf16.gmra.mrb[64].mxu0 %v17257_v52  ;;  %v19610_v23 = vpop.permute.xlu0 %15701  ;;  %v2985_v52 = vsel %vm24381_vm9, %v15653_v30, %v15648_v49 }
 0x4b2   : > { %2822 = vmatpush1.bf16.msra.mxu0 %v24564_v55  ;;  %2737 = vmatprep.mubr.bf16.mxu0 %v24541_v41  ;;  %v2970_v55 = vsel %vm24381_vm9, %v15649_v1, %v15654_v7  ;;  %v12862_v40 = vpack.c.bf16 %v2986_v35, %v2985_v52  ;;  %v17260_v7 = vld [vmem:[%s24303_s5 + $0x88] sm:$0xff]  }
 0x4b3   : > { %2823 = vmatprep.subr.bf16.mxu0 %v24565_v47  ;;  %4018 = vperm.xlu1 %15314, %v1711_v28   ;;  %v24581_v28 = vpack.c.bf16 %v24579_v11, %v24580_v24  ;;  %v2969_v47 = vsel %vm24381_vm9, %v15648_v49, %v15653_v30  ;;  %v2990_v30 = vsel %vm24381_vm9, %v15674_v2, %v15669_v42  ;;  %v15703_v11 = vunpack.i.l.bf16 %v19610_v23 }
 0x4b4   : > { %4023 = vperm.xlu0 %15313, %v1712_v61   ;;  %v19622_v58 = vpop.permute.xlu1 %15706  ;;  %v12859_v61 = vpack.c.bf16 %v2968_v27, %v2967_v16  ;;  %v12865_v62 = vpack.c.bf16 %v2970_v55, %v2969_v47  ;;  %v2974_v49 = vsel %vm24381_vm9, %v15669_v42, %v15674_v2  ;;  %v15694_v24 = vunpack.i.h.bf16 %v19602_v15  ;;  %v17261_v55 = vld [vmem:[%s24303_s5 + $0x90] sm:$0xff]  }
 0x4b5   : > { %v19631_v29 = vpop.permute.xlu0 %15711 }
 0x4b6   : > { %2824 = vmatpush1.bf16.msra.mxu0 %v24570_v25  ;;  %v2972_v25 = vsel %vm24381_vm9, %v15659_v5, %v15664_v19  ;;  %v15698_v19 = vunpack.i.l.bf16 %v19594_v60  ;;  %v15688_v5 = vunpack.i.l.bf16 %v19583_v14  ;;  %v15704_v14 = vunpack.i.h.bf16 %v19610_v23 }
 0x4b7   : > { %2825 = vmatprep.subr.bf16.mxu0 %v2786_v59 }
 0x4b8   : > { %v19639_v12 = vpop.permute.xlu1 %15716  ;;  %v2993_v44 = vsel %vm24381_vm9, %v15698_v19, %v15688_v5  ;;  %v2996_v2 = vsel %vm24381_vm9, %v15704_v14, %v15694_v24 }
 0x4b9   : > { %2738 = vmatmul.mubr.bf16.gmra.mrb[68].mxu0 %v17258_v46  ;;  %v19645_v38 = vpop.permute.xlu0 %15721  ;;  %v15668_v46 = vunpack.i.l.bf16 %v19547_v53  ;;  %v15684_v53 = vunpack.i.h.bf16 %v19574_v3 }
 0x4ba   : > { %2826 = vmatpush1.bf16.msra.mxu0 %v2785_v18  ;;  %2845 = vmatprep.mubr.bf16.mxu0 %v24541_v41  ;;  %v15679_v18 = vunpack.i.h.bf16 %v19566_v10  ;;  %v12871_v10 = vpack.c.bf16 %v2972_v25, %v2971_v13  ;;  %v15713_v25 = vunpack.i.l.bf16 %v19631_v29  ;;  %v15709_v13 = vunpack.i.h.bf16 %v19622_v58 }
 0x4bb   : > { %2827 = vmatprep.subr.bf16.mxu0 %v24575_v32  ;;  %v2989_v1 = vsel %vm24381_vm9, %v15673_v33, %v15668_v46  ;;  %v2973_v34 = vsel %vm24381_vm9, %v15668_v46, %v15673_v33  ;;  %v2991_v32 = vsel %vm24381_vm9, %v15683_v4, %v15678_v6 }
 0x4bc   : > { %v19666_v8 = vpop.permute.xlu1 %15726  ;;  %v2992_v17 = vsel %vm24381_vm9, %v15684_v53, %v15679_v18  ;;  %v12874_v16 = vpack.c.bf16 %v2990_v30, %v2989_v1  ;;  %v2976_v35 = vsel %vm24381_vm9, %v15679_v18, %v15684_v53  ;;  %v15719_v30 = vunpack.i.h.bf16 %v19639_v12 }
 0x4bd   : > { %v19678_v51 = vpop.permute.xlu0 %15731  ;;  %v12880_v52 = vpack.c.bf16 %v2992_v17, %v2991_v32  ;;  %v15718_v1 = vunpack.i.l.bf16 %v19639_v12 }
 0x4be   : > { %2828 = vmatpush1.bf16.msra.mxu0 %v24581_v28  ;;  %v15693_v28 = vunpack.i.l.bf16 %v19602_v15 }
 0x4bf   : > { %12857 = vmatprep.subr.msk.bf16.mxu0 %vm19658_vm13, %v12856_v48  ;;  %v15699_v48 = vunpack.i.h.bf16 %v19594_v60  ;;  %v2975_v60 = vsel %vm24381_vm9, %v15678_v6, %v15683_v4  ;;  %v15724_v6 = vunpack.i.h.bf16 %v19645_v38 }
 0x4c0   : > { %v19697_v59 = vpop.permute.xlu1 %15736  ;;  %v12883_v15 = vpack.c.bf16 %v2976_v35, %v2975_v60  ;;  %v2995_v33 = vsel %vm24381_vm9, %v15703_v11, %v15693_v28  ;;  %v2979_v18 = vsel %vm24381_vm9, %v15693_v28, %v15703_v11  ;;  %v15734_v35 = vunpack.i.h.bf16 %v19678_v51 }
 0x4c1   : > { %2846 = vmatmul.mubr.bf16.vlgmr.msra.gmra.mrb[56].mxu0 %v17259_v43  ;;  %v19705_v37 = vpop.permute.xlu0 %15741  ;;  %v12877_v43 = vpack.c.bf16 %v2974_v49, %v2973_v34  ;;  %v2994_v47 = vsel %vm24381_vm9, %v15699_v48, %v15689_v21  ;;  %v2978_v0 = vsel %vm24381_vm9, %v15689_v21, %v15699_v48  ;;  %v17262_v49 = vld [vmem:[%s24303_s5 + $0x98] sm:$0xff]   ;;  %v15733_v60 = vunpack.i.l.bf16 %v19678_v51 }
 0x4c2   : > { %12860 = vmatpush1.bf16.msk.msra.mxu0 %vm19685_vm0, %v12859_v61  ;;  %2855 = vmatprep.mubr.bf16.mxu0 %v24541_v41  ;;  %v12886_v46 = vpack.c.bf16 %v2994_v47, %v2993_v44  ;;  %v15744_v47 = vunpack.i.h.bf16 %v19705_v37  ;;  %v15743_v44 = vunpack.i.l.bf16 %v19705_v37 }
 0x4c3   : > { %12863 = vmatprep.subr.msk.bf16.mxu0 %vm19658_vm13, %v12862_v40  ;;  %v2977_v40 = vsel %vm24381_vm9, %v15688_v5, %v15698_v19  ;;  %v3255_v19 = vsel %vm24383_vm14, %v15724_v6, %v15719_v30 }
 0x4c4   : > { %v19718_v57 = vpop.permute.xlu1 %15746  ;;  %v12889_v4 = vpack.c.bf16 %v2978_v0, %v2977_v40  ;;  %v15738_v0 = vunpack.i.l.bf16 %v19697_v59 }
 0x4c5   : > { %v19729_v3 = vpop.permute.xlu0 %15751 }
 0x4c6   : > { %12866 = vmatpush1.bf16.msk.msra.mxu0 %vm19685_vm0, %v12865_v62  ;;  %v15714_v62 = vunpack.i.h.bf16 %v19631_v29  ;;  %v2980_v29 = vsel %vm24381_vm9, %v15694_v24, %v15704_v14  ;;  %v15728_v14 = vunpack.i.l.bf16 %v19666_v8  ;;  %v24587_v24 = vmov 0 }
 0x4c7   : > { %12869 = vmatprep.subr.msk.bf16.mxu0 %vm19658_vm13, %v12868_v63  ;;  %v15708_v63 = vunpack.i.l.bf16 %v19622_v58  ;;  %v12892_v58 = vpack.c.bf16 %v2996_v2, %v2995_v33  ;;  %v12895_v12 = vpack.c.bf16 %v2980_v29, %v2979_v18  ;;  %v24588_v24 = vsel %vm19856_vm6, 4294967295, %v24587_v24  ;;  %v17263_v2 = vld [vmem:[%s24303_s5 + $0xa0] sm:$0xff]  }
 0x4c8   : > { %v19741_v27 = vpop.permute.xlu1 %15756  ;;  %v2998_v34 = vsel %vm24381_vm9, %v15714_v62, %v15709_v13  ;;  %v2982_v32 = vsel %vm24381_vm9, %v15709_v13, %v15714_v62  ;;  %24589 = vst [vmem:[#allocation23_spill] sm:$0xff] %v24588_v24  ;;  %v3240_v13 = vsel %vm24383_vm14, %v15728_v14, %v15733_v60 }
 0x4c9   : > { %2856 = vmatmul.mubr.bf16.gmra.mrb[60].mxu0 %v17260_v7  ;;  %v19749_v36 = vpop.permute.xlu0 %15761  ;;  %v15723_v7 = vunpack.i.l.bf16 %v19645_v38  ;;  %v2997_v17 = vsel %vm24381_vm9, %v15713_v25, %v15708_v63  ;;  %v2981_v48 = vsel %vm24381_vm9, %v15708_v63, %v15713_v25  ;;  %vm24590_vm9 = vcmp.ge.f32.partialorder %v18977_v54, 1.0 }
 0x4ca   : > { %12872 = vmatpush1.bf16.msk.msra.mxu0 %vm19685_vm0, %v12871_v10  ;;  %2865 = vmatprep.mubr.bf16.mxu0 %v24541_v41  ;;  %v12901_v51 = vpack.c.bf16 %v2982_v32, %v2981_v48  ;;  %vm643_vm5 = vmand %vm24384_vm7, %vm24590_vm9  ;;  %v15759_v32 = vunpack.i.h.bf16 %v19741_v27  ;;  %v17264_v48 = vld [vmem:[%s24303_s5 + $0xa8] sm:$0xff]   ;;  %vm24594_vm9 = vcmp.le.f32.partialorder %v18814_v31, 14.0 }
 0x4cb   : > { %12875 = vmatprep.subr.msk.bf16.mxu0 %vm19658_vm13, %v12874_v16  ;;  %v3254_v21 = vsel %vm24383_vm14, %v15723_v7, %v15718_v1  ;;  %v3238_v28 = vsel %vm24383_vm14, %v15718_v1, %v15723_v7  ;;  %vm19887_vm12 = vmpackc.low %vm643_vm5, %vm643_vm5  ;;  %v15749_v7 = vunpack.i.h.bf16 %v19718_v57  ;;  %v15758_v16 = vunpack.i.l.bf16 %v19741_v27 }
 0x4cc   : > { %v19762_v61 = vpop.permute.xlu1 %15766  ;;  %vm24393_vm5 = vcmp.lt.s32.totalorder %v18787_v22, 112 }
 0x4cd   : > { %v19773_v23 = vpop.permute.xlu0 %15776 }
 0x4ce   : > { %12878 = vmatpush1.bf16.msk.msra.mxu0 %vm19685_vm0, %v12877_v43  ;;  %v12898_v43 = vpack.c.bf16 %v2998_v34, %v2997_v17 }
 0x4cf   : > { %12881 = vmatprep.subr.msk.bf16.mxu0 %vm19658_vm13, %v12880_v52  ;;  %v15729_v52 = vunpack.i.h.bf16 %v19666_v8  ;;  %v3239_v8 = vsel %vm24383_vm14, %v15719_v30, %v15724_v6  ;;  %v15753_v6 = vunpack.i.l.bf16 %v19729_v3  ;;  %v15748_v30 = vunpack.i.l.bf16 %v19718_v57 }
 0x4d0   : > { %v19785_v42 = vpop.permute.xlu1 %15771  ;;  %v12919_v62 = vpack.c.bf16 %v3239_v8, %v3238_v28  ;;  %v15764_v57 = vunpack.i.h.bf16 %v19749_v36  ;;  %v15779_v8 = vunpack.i.h.bf16 %v19773_v23  ;;  %v15778_v28 = vunpack.i.l.bf16 %v19773_v23 }
 0x4d1   : > { %2866 = vmatmul.mubr.bf16.gmra.mrb[64].mxu0 %v17261_v55  ;;  %v19793_v53 = vpop.permute.xlu0 %15781  ;;  %v12916_v55 = vpack.c.bf16 %v3255_v19, %v3254_v21  ;;  %v3257_v33 = vsel %vm24383_vm14, %v15734_v35, %v15729_v52  ;;  %v3241_v25 = vsel %vm24383_vm14, %v15729_v52, %v15734_v35  ;;  %v3260_v21 = vsel %vm24383_vm14, %v15753_v6, %v15748_v30 }
 0x4d2   : > { %12884 = vmatpush1.bf16.msk.msra.mxu0 %vm19685_vm0, %v12883_v15  ;;  %2875 = vmatprep.mubr.bf16.mxu0 %v24541_v41  ;;  %v15739_v15 = vunpack.i.h.bf16 %v19697_v59  ;;  %v24591_v59 = vmov 0  ;;  %v3263_v52 = vsel %vm24383_vm14, %v15764_v57, %v15759_v32 }
 0x4d3   : > { %12887 = vmatprep.subr.msk.bf16.mxu0 %vm19658_vm13, %v12886_v46  ;;  %v3256_v46 = vsel %vm24383_vm14, %v15733_v60, %v15728_v14  ;;  %v24592_v59 = vsel %vm19887_vm12, 4294967295, %v24591_v59  ;;  %v3244_v60 = vsel %vm24383_vm14, %v15748_v30, %v15753_v6 }
 0x4d4   : > { %24593 = vst [vmem:[#allocation22_spill] sm:$0xff] %v24592_v59  ;;  %v3259_v63 = vsel %vm24383_vm14, %v15744_v47, %v15739_v15  ;;  %v12922_v18 = vpack.c.bf16 %v3257_v33, %v3256_v46  ;;  %v3243_v34 = vsel %vm24383_vm14, %v15739_v15, %v15744_v47  ;;  %v15768_v47 = vunpack.i.l.bf16 %v19762_v61 }
 0x4d5   : > { %v19807_v10 = vpop.permute.xlu1 %15786  ;;  %v19819_v38 = vpop.permute.xlu0 %15791  ;;  %v3247_v15 = vsel %vm24383_vm14, %v15759_v32, %v15764_v57  ;;  %v15774_v33 = vunpack.i.h.bf16 %v19785_v42  ;;  %v15773_v46 = vunpack.i.l.bf16 %v19785_v42 }
 0x4d6   : > { %12890 = vmatpush1.bf16.msk.msra.mxu0 %vm19685_vm0, %v12889_v4  ;;  %v3258_v4 = vsel %vm24383_vm14, %v15743_v44, %v15738_v0  ;;  %v15794_v30 = vunpack.i.h.bf16 %v19819_v38 }
 0x4d7   : > { %12893 = vmatprep.subr.msk.bf16.mxu0 %vm19658_vm13, %v12892_v58  ;;  %v15754_v58 = vunpack.i.h.bf16 %v19729_v3  ;;  %v3242_v3 = vsel %vm24383_vm14, %v15738_v0, %v15743_v44  ;;  %v12928_v17 = vpack.c.bf16 %v3259_v63, %v3258_v4  ;;  %v3264_v4 = vsel %vm24383_vm14, %v15778_v28, %v15768_v47 }
 0x4d8   : > { %v12931_v27 = vpack.c.bf16 %v3243_v34, %v3242_v3  ;;  %v15789_v34 = vunpack.i.h.bf16 %v19807_v10  ;;  %v15788_v3 = vunpack.i.l.bf16 %v19807_v10 }
 0x4d9   : > { %2876 = vmatmul.mubr.bf16.gmra.mrb[68].mxu0 %v17262_v49  ;;  %v19840_v5 = vpop.permute.xlu1 %15796  ;;  %v19848_v11 = vpop.permute.xlu0 %15801  ;;  %v12925_v49 = vpack.c.bf16 %v3241_v25, %v3240_v13  ;;  %v3261_v19 = vsel %vm24383_vm14, %v15754_v58, %v15749_v7  ;;  %v3245_v35 = vsel %vm24383_vm14, %v15749_v7, %v15754_v58  ;;  %v17265_v13 = vld [vmem:[%s24303_s5 + $0xb0] sm:$0xff]  }
 0x4da   : > { %12896 = vmatpush1.bf16.msk.msra.mxu0 %vm19685_vm0, %v12895_v12  ;;  %3116 = vmatprep.mubr.bf16.mxu0 %v24541_v41  ;;  %v15763_v12 = vunpack.i.l.bf16 %v19749_v36  ;;  %v12937_v44 = vpack.c.bf16 %v3245_v35, %v3244_v60  ;;  %v3269_v35 = vsel %vm24383_vm14, %v15794_v30, %v15789_v34 }
 0x4db   : > { %12899 = vmatprep.subr.msk.bf16.mxu0 %vm19658_vm13, %v12898_v43 }
 0x4dc   : > { %v3262_v14 = vsel %vm24383_vm14, %v15763_v12, %v15758_v16  ;;  %v3246_v0 = vsel %vm24383_vm14, %v15758_v16, %v15763_v12  ;;  %v15804_v16 = vunpack.i.h.bf16 %v19848_v11 }
 0x4dd   : > { %v19872_v40 = vpop.permute.xlu1 %15806  ;;  %v19883_v37 = vpop.permute.xlu0 %15811  ;;  %v12940_v23 = vpack.c.bf16 %v3263_v52, %v3262_v14  ;;  %v12943_v42 = vpack.c.bf16 %v3247_v15, %v3246_v0 }
 0x4de   : > { %12902 = vmatpush1.bf16.msk.msra.mxu0 %vm19685_vm0, %v12901_v51  ;;  %v12934_v51 = vpack.c.bf16 %v3261_v19, %v3260_v21  ;;  %v15799_v19 = vunpack.i.h.bf16 %v19840_v5  ;;  %v15798_v21 = vunpack.i.l.bf16 %v19840_v5  ;;  %v3253_v5 = vsel %vm24383_vm14, %v15789_v34, %v15794_v30 }
 0x4df   : > { %12917 = vmatprep.subr.msk.bf16.mxu0 %vm19856_vm6, %v12916_v55  ;;  %v15769_v55 = vunpack.i.h.bf16 %v19762_v61  ;;  %v15783_v61 = vunpack.i.l.bf16 %v19793_v53  ;;  %v15809_v15 = vunpack.i.h.bf16 %v19872_v40  ;;  %v15808_v0 = vunpack.i.l.bf16 %v19872_v40 }
 0x4e0   : > { %v3526_v14 = vsel %vm24393_vm5, %v15804_v16, %v15799_v19  ;;  %v24595_v40 = vmov 0  ;;  %vm24603_vm0 = vcmp.lt.s32.totalorder %v18787_v22, 111 }
 0x4e1   : > { %3117 = vmatmul.mubr.bf16.vlgmr.msra.gmra.mrb[56].mxu0 %v17263_v2  ;;  %v19899_v29 = vpop.permute.xlu1 %15816  ;;  %v19907_v1 = vpop.permute.xlu0 %15821  ;;  %v15784_v2 = vunpack.i.h.bf16 %v19793_v53  ;;  %v3265_v63 = vsel %vm24383_vm14, %v15779_v8, %v15769_v55  ;;  %v3249_v53 = vsel %vm24383_vm14, %v15769_v55, %v15779_v8  ;;  %v3266_v6 = vsel %vm24383_vm14, %v15783_v61, %v15773_v46  ;;  %vm24604_vm13 = vmmov %vm24603_vm0 }
 0x4e2   : > { %12920 = vmatpush1.bf16.msk.msra.mxu0 %vm19887_vm12, %v12919_v62  ;;  %3126 = vmatprep.mubr.bf16.mxu0 %v24541_v41  ;;  %v12946_v7 = vpack.c.bf16 %v3265_v63, %v3264_v4  ;;  %v3250_v32 = vsel %vm24383_vm14, %v15773_v46, %v15783_v61  ;;  %v15823_v46 = vunpack.i.l.bf16 %v19907_v1  ;;  %v15818_v63 = vunpack.i.l.bf16 %v19899_v29  ;;  %v17267_v4 = vld [vmem:[%s24303_s5 + $0xc0] sm:$0xff]  }
 0x4e3   : > { %12923 = vmatprep.subr.msk.bf16.mxu0 %vm19856_vm6, %v12922_v18  ;;  %v3248_v18 = vsel %vm24383_vm14, %v15768_v47, %v15778_v28  ;;  %v3267_v58 = vsel %vm24383_vm14, %v15784_v2, %v15774_v33  ;;  %v15814_v47 = vunpack.i.h.bf16 %v19883_v37 }
 0x4e4   : > { %v12949_v12 = vpack.c.bf16 %v3249_v53, %v3248_v18  ;;  %v12952_v10 = vpack.c.bf16 %v3267_v58, %v3266_v6 }
 0x4e5   : > { %v19929_v43 = vpop.permute.xlu0 %15831  ;;  %v19931_v36 = vpop.permute.xlu1 %15826  ;;  %v3512_v6 = vsel %vm24393_vm5, %v15809_v15, %v15814_v47 }
 0x4e6   : > { %12926 = vmatpush1.bf16.msk.msra.mxu0 %vm19887_vm12, %v12925_v49  ;;  %v15793_v49 = vunpack.i.l.bf16 %v19819_v38  ;;  %v3251_v38 = vsel %vm24383_vm14, %v15774_v33, %v15784_v2  ;;  %v3510_v2 = vsel %vm24393_vm5, %v15799_v19, %v15804_v16  ;;  %v15824_v33 = vunpack.i.h.bf16 %v19907_v1 }
 0x4e7   : > { %12929 = vmatprep.subr.msk.bf16.mxu0 %vm19856_vm6, %v12928_v17 }
 0x4e8   : > { %v3268_v60 = vsel %vm24383_vm14, %v15793_v49, %v15788_v3  ;;  %v3252_v52 = vsel %vm24383_vm14, %v15788_v3, %v15793_v49  ;;  %vm20044_vm14 = vmpackc.low %vm24594_vm9, %vm24594_vm9  ;;  %v3529_v49 = vsel %vm24393_vm5, %v15823_v46, %v15818_v63  ;;  %v15834_v3 = vunpack.i.h.bf16 %v19929_v43 }
 0x4e9   : > { %3127 = vmatmul.mubr.bf16.gmra.mrb[60].mxu0 %v17264_v48  ;;  %v19960_v62 = vpop.permute.xlu0 %15841  ;;  %v19962_v25 = vpop.permute.xlu1 %15836  ;;  %v15803_v48 = vunpack.i.l.bf16 %v19848_v11  ;;  %v12955_v11 = vpack.c.bf16 %v3251_v38, %v3250_v32  ;;  %v12958_v55 = vpack.c.bf16 %v3269_v35, %v3268_v60  ;;  %v24596_v40 = vsel %vm20044_vm14, 4294967295, %v24595_v40  ;;  %vm20070_vm9 = vmpackc.low %vm24384_vm7, %vm24384_vm7 }
 0x4ea   : > { %12932 = vmatpush1.bf16.msk.msra.mxu0 %vm19887_vm12, %v12931_v27  ;;  %3136 = vmatprep.mubr.bf16.mxu0 %v24541_v41  ;;  %v17266_v27 = vld [vmem:[%s24303_s5 + $0xb8] sm:$0xff]   ;;  %24597 = vst [vmem:[#allocation30_spill] sm:$0xff] %v24596_v40  ;;  %v15829_v38 = vunpack.i.h.bf16 %v19931_v36  ;;  %v15828_v32 = vunpack.i.l.bf16 %v19931_v36  ;;  %v15844_v19 = vunpack.i.h.bf16 %v19960_v62  ;;  %v15843_v36 = vunpack.i.l.bf16 %v19960_v62 }
 0x4eb   : > { %12935 = vmatprep.subr.msk.bf16.mxu0 %vm19856_vm6, %v12934_v51  ;;  %v3525_v51 = vsel %vm24393_vm5, %v15803_v48, %v15798_v21  ;;  %v3509_v61 = vsel %vm24393_vm5, %v15798_v21, %v15803_v48  ;;  %v3513_v48 = vsel %vm24393_vm5, %v15818_v63, %v15823_v46  ;;  %v15839_v21 = vunpack.i.h.bf16 %v19962_v25 }
 0x4ec   : > { %v12979_v58 = vpack.c.bf16 %v3510_v2, %v3509_v61  ;;  %vm24601_vm7 = vcmp.le.f32.partialorder %v18973_v9, 14.0 }
 0x4ed   : > { %v19990_v17 = vpop.permute.xlu0 %15856  ;;  %v19992_v57 = vpop.permute.xlu1 %15846 }
 0x4ee   : > { %12938 = vmatpush1.bf16.msk.msra.mxu0 %vm19887_vm12, %v12937_v44  ;;  %v15813_v44 = vunpack.i.l.bf16 %v19883_v37  ;;  %v12976_v37 = vpack.c.bf16 %v3526_v14, %v3525_v51  ;;  %v3534_v51 = vsel %vm24393_vm5, %v15844_v19, %v15839_v21 }
 0x4ef   : > { %12941 = vmatprep.subr.msk.bf16.mxu0 %vm19856_vm6, %v12940_v23  ;;  %v12961_v23 = vpack.c.bf16 %v3253_v5, %v3252_v52  ;;  %v3532_v5 = vsel %vm24393_vm5, %v15834_v3, %v15829_v38 }
 0x4f0   : > { %v3527_v53 = vsel %vm24393_vm5, %v15813_v44, %v15808_v0 }
 0x4f1   : > { %3137 = vmatmul.mubr.bf16.gmra.mrb[64].mxu0 %v17265_v13  ;;  %v20024_v8 = vpop.permute.xlu0 %15861  ;;  %v20026_v28 = vpop.permute.xlu1 %15851  ;;  %v15819_v13 = vunpack.i.h.bf16 %v19899_v29  ;;  %v24598_v29 = vmov 0 }
 0x4f2   : > { %12944 = vmatpush1.bf16.msk.msra.mxu0 %vm19887_vm12, %v12943_v42  ;;  %3146 = vmatprep.mubr.bf16.mxu0 %v24541_v41  ;;  %v3528_v42 = vsel %vm24393_vm5, %v15814_v47, %v15809_v15  ;;  %v24599_v29 = vsel %vm20070_vm9, 4294967295, %v24598_v29  ;;  %v15858_v15 = vunpack.i.l.bf16 %v19990_v17  ;;  %v15864_v46 = vunpack.i.h.bf16 %v20024_v8 }
 0x4f3   : > { %12947 = vmatprep.subr.msk.bf16.mxu0 %vm19856_vm6, %v12946_v7  ;;  %24600 = vst [vmem:[#allocation27_spill] sm:$0xff] %v24599_v29  ;;  %v3511_v7 = vsel %vm24393_vm5, %v15808_v0, %v15813_v44  ;;  %v3530_v30 = vsel %vm24393_vm5, %v15824_v33, %v15819_v13  ;;  %v12982_v34 = vpack.c.bf16 %v3528_v42, %v3527_v53  ;;  %v15859_v44 = vunpack.i.h.bf16 %v19990_v17  ;;  %v17269_v42 = vld [vmem:[%s24303_s5 + $0xd0] sm:$0xff]  }
 0x4f4   : > { %v3514_v16 = vsel %vm24393_vm5, %v15819_v13, %v15824_v33  ;;  %v15849_v0 = vunpack.i.h.bf16 %v19992_v57  ;;  %v3518_v17 = vsel %vm24393_vm5, %v15839_v21, %v15844_v19  ;;  %v15863_v13 = vunpack.i.l.bf16 %v20024_v8 }
 0x4f5   : > { %v20061_v18 = vpop.permute.xlu0 %15871  ;;  %v20063_v1 = vpop.permute.xlu1 %15866  ;;  %v12991_v62 = vpack.c.bf16 %v3514_v16, %v3513_v48  ;;  %v15854_v63 = vunpack.i.h.bf16 %v20026_v28 }
 0x4f6   : > { %12950 = vmatpush1.bf16.msk.msra.mxu0 %vm19887_vm12, %v12949_v12  ;;  %v15833_v12 = vunpack.i.l.bf16 %v19929_v43  ;;  %v12988_v43 = vpack.c.bf16 %v3530_v30, %v3529_v49  ;;  %v3536_v53 = vsel %vm24393_vm5, %v15859_v44, %v15849_v0 }
 0x4f7   : > { %12953 = vmatprep.subr.msk.bf16.mxu0 %vm19856_vm6, %v12952_v10  ;;  %v12985_v10 = vpack.c.bf16 %v3512_v6, %v3511_v7  ;;  %v3538_v7 = vsel %vm24393_vm5, %v15864_v46, %v15854_v63  ;;  %v3522_v48 = vsel %vm24393_vm5, %v15854_v63, %v15864_v46  ;;  %v17271_v63 = vld [vmem:[%s24303_s5 + $0xe0] sm:$0xff]  }
 0x4f8   : > { %v3531_v52 = vsel %vm24393_vm5, %v15833_v12, %v15828_v32  ;;  %v3515_v14 = vsel %vm24393_vm5, %v15828_v32, %v15833_v12  ;;  %v15874_v12 = vunpack.i.h.bf16 %v20061_v18  ;;  %v15869_v32 = vunpack.i.h.bf16 %v20063_v1 }
 0x4f9   : > { %3147 = vmatmul.mubr.bf16.gmra.mrb[68].mxu0 %v17266_v27  ;;  %v15838_v27 = vunpack.i.l.bf16 %v19962_v25  ;;  %v20099_v35 = vpop.permute.xlu0 %15881  ;;  %v20101_v60 = vpop.permute.xlu1 %15876  ;;  %v3516_v25 = vsel %vm24393_vm5, %v15829_v38, %v15834_v3  ;;  %v12994_v47 = vpack.c.bf16 %v3532_v5, %v3531_v52  ;;  %v15873_v38 = vunpack.i.l.bf16 %v20061_v18 }
 0x4fa   : > { %12956 = vmatpush1.bf16.msk.msra.mxu0 %vm19887_vm12, %v12955_v11  ;;  %3387 = vmatprep.mubr.bf16.mxu0 %v24541_v41  ;;  %v17268_v11 = vld [vmem:[%s24303_s5 + $0xc8] sm:$0xff]   ;;  %v15884_v19 = vunpack.i.h.bf16 %v20099_v35  ;;  %v15878_v21 = vunpack.i.l.bf16 %v20101_v60 }
 0x4fb   : > { %12959 = vmatprep.subr.msk.bf16.mxu0 %vm19856_vm6, %v12958_v55  ;;  %v3533_v55 = vsel %vm24393_vm5, %v15843_v36, %v15838_v27  ;;  %v3517_v33 = vsel %vm24393_vm5, %v15838_v27, %v15843_v36  ;;  %v15879_v36 = vunpack.i.h.bf16 %v20101_v60  ;;  %v17270_v27 = vld [vmem:[%s24303_s5 + $0xd8] sm:$0xff]  }
 0x4fc   : > { %v13003_v8 = vpack.c.bf16 %v3518_v17, %v3517_v33 }
 0x4fd   : > { %v20129_v2 = vpop.permute.xlu0 %15891  ;;  %v20131_v61 = vpop.permute.xlu1 %15886 }
 0x4fe   : > { %12962 = vmatpush1.bf16.msk.msra.mxu0 %vm19887_vm12, %v12961_v23  ;;  %v15848_v23 = vunpack.i.l.bf16 %v19992_v57  ;;  %v13000_v57 = vpack.c.bf16 %v3534_v51, %v3533_v55  ;;  %vm24602_vm12 = vcmp.le.f32.partialorder %v18814_v31, 14.0  ;;  %v15889_v9 = vunpack.i.h.bf16 %v20131_v61 }
 0x4ff   : > { %12977 = vmatprep.subr.msk.bf16.mxu0 %vm20044_vm14, %v12976_v37  ;;  %v12997_v37 = vpack.c.bf16 %v3516_v25, %v3515_v14  ;;  %vm646_vm6 = vmand %vm24602_vm12, %vm24601_vm7  ;;  %v3797_v14 = vsel %vm24603_vm0, %v15884_v19, %v15879_v36  ;;  %v15888_v31 = vunpack.i.l.bf16 %v20131_v61  ;;  %vm24610_vm12 = vcmp.le.f32.partialorder %v18977_v54, 14.0 }
 0x500   : > { %v3519_v6 = vsel %vm24393_vm5, %v15848_v23, %v15858_v15  ;;  %vm20220_vm0 = vmpackc.low %vm646_vm6, %vm646_vm6 }
 0x501   : > { %3388 = vmatmul.mubr.bf16.vlgmr.msra.gmra.mrb[56].mxu0 %v17267_v4  ;;  %v15853_v4 = vunpack.i.l.bf16 %v20026_v28  ;;  %v3520_v28 = vsel %vm24393_vm5, %v15849_v0, %v15859_v44  ;;  %v20162_v49 = vpop.permute.xlu0 %15901  ;;  %v15893_v44 = vunpack.i.l.bf16 %v20129_v2  ;;  %vm24608_vm7 = vmmov %vm24604_vm13 }
 0x502   : > { %12980 = vmatpush1.bf16.msk.msra.mxu0 %vm20070_vm9, %v12979_v58  ;;  %3397 = vmatprep.mubr.bf16.mxu0 %v24541_v41  ;;  %v3535_v58 = vsel %vm24393_vm5, %v15858_v15, %v15848_v23  ;;  %v13009_v16 = vpack.c.bf16 %v3520_v28, %v3519_v6  ;;  %v24605_v15 = vmov 0  ;;  %v3781_v23 = vsel %vm24608_vm7, %v15879_v36, %v15884_v19  ;;  %vm24612_vm6 = vmmov %vm24608_vm7 }
 0x503   : > { %12983 = vmatprep.subr.msk.bf16.mxu0 %vm20044_vm14, %v12982_v34  ;;  %v3537_v30 = vsel %vm24393_vm5, %v15863_v13, %v15853_v4  ;;  %v20164_v34 = vpop.permute.xlu1 %15896  ;;  %v13006_v3 = vpack.c.bf16 %v3536_v53, %v3535_v58  ;;  %v24606_v15 = vsel %vm20220_vm0, 4294967295, %v24605_v15  ;;  %v15903_v17 = vunpack.i.l.bf16 %v20162_v49 }
 0x504   : > { %v13012_v18 = vpack.c.bf16 %v3538_v7, %v3537_v30  ;;  %24607 = vst [vmem:[#allocation28_spill] sm:$0xff] %v24606_v15  ;;  %v15899_v33 = vunpack.i.h.bf16 %v20164_v34 }
 0x506   : > { %12986 = vmatpush1.bf16.msk.msra.mxu0 %vm20070_vm9, %v12985_v10  ;;  %v15868_v10 = vunpack.i.l.bf16 %v20063_v1  ;;  %v15883_v1 = vunpack.i.l.bf16 %v20099_v35  ;;  %v20193_v35 = vpop.permute.xlu0 %15911 }
 0x507   : > { %12989 = vmatprep.subr.msk.bf16.mxu0 %vm20044_vm14, %v12988_v43  ;;  %v3521_v43 = vsel %vm24393_vm5, %v15853_v4, %v15863_v13  ;;  %v20195_v52 = vpop.permute.xlu1 %15906  ;;  %v24614_v4 = vmov 0  ;;  %v15914_v7 = vunpack.i.h.bf16 %v20193_v35  ;;  %v15913_v30 = vunpack.i.l.bf16 %v20193_v35 }
 0x508   : > { %v3539_v5 = vsel %vm24393_vm5, %v15873_v38, %v15868_v10  ;;  %v13015_v60 = vpack.c.bf16 %v3522_v48, %v3521_v43  ;;  %v3523_v25 = vsel %vm24393_vm5, %v15868_v10, %v15873_v38  ;;  %v3796_v51 = vsel %vm24604_vm13, %v15883_v1, %v15878_v21  ;;  %vm24609_vm13 = vmmov %vm24608_vm7 }
 0x509   : > { %3398 = vmatmul.mubr.bf16.gmra.mrb[60].mxu0 %v17268_v11  ;;  %v3540_v11 = vsel %vm24393_vm5, %v15874_v12, %v15869_v32  ;;  %v13036_v61 = vpack.c.bf16 %v3797_v14, %v3796_v51  ;;  %vm24613_vm7 = vmmov %vm24612_vm6 }
 0x50a   : > { %12992 = vmatpush1.bf16.msk.msra.mxu0 %vm20070_vm9, %v12991_v62  ;;  %3407 = vmatprep.mubr.bf16.mxu0 %v24541_v41  ;;  %v3524_v62 = vsel %vm24393_vm5, %v15869_v32, %v15874_v12  ;;  %v13018_v55 = vpack.c.bf16 %v3540_v11, %v3539_v5  ;;  %vm24611_vm5 = vcmp.le.f32.partialorder %v18816_v56, 14.0  ;;  %v15922_v46 = vpop.permute.xlu0 %15921  ;;  %v3798_v56 = vsel %vm24613_vm7, %v15893_v44, %v15888_v31  ;;  %vm24619_vm7 = vmmov %vm24612_vm6 }
 0x50b   : > { %12995 = vmatprep.subr.msk.bf16.mxu0 %vm20044_vm14, %v12994_v47  ;;  %v15894_v47 = vunpack.i.h.bf16 %v20129_v2  ;;  %v13021_v0 = vpack.c.bf16 %v3524_v62, %v3523_v25  ;;  %v3780_v2 = vsel %vm24609_vm13, %v15878_v21, %v15883_v1  ;;  %vm645_vm8 = vmand %vm24611_vm5, %vm24610_vm12  ;;  %v15917_v13 = vpop.permute.xlu1 %15916  ;;  %v15924_v48 = vunpack.i.h.bf16 %v15922_v46  ;;  %v17272_v1 = vld [vmem:[%s24303_s5 + $0xe8] sm:$0xff]  }
 0x50c   : > { %vm20247_vm5 = vmpackc.low %vm645_vm8, %vm645_vm8  ;;  %v15923_v43 = vunpack.i.l.bf16 %v15922_v46  ;;  %v15918_v19 = vunpack.i.l.bf16 %v15917_v13 }
 0x50d   : > { %v3799_v54 = vsel %vm24612_vm6, %v15894_v47, %v15889_v9  ;;  %v24615_v4 = vsel %vm20247_vm5, 4294967295, %v24614_v4  ;;  %vm24617_vm13 = vmmov %vm24612_vm6 }
 0x50e   : > { %12998 = vmatpush1.bf16.msk.msra.mxu0 %vm20070_vm9, %v12997_v37  ;;  %v15904_v37 = vunpack.i.h.bf16 %v20162_v49  ;;  %24616 = vst [vmem:[#allocation26_spill] sm:$0xff] %v24615_v4  ;;  %v3783_v53 = vsel %vm24617_vm13, %v15889_v9, %v15894_v47  ;;  %vm24618_vm12 = vmmov %vm24612_vm6  ;;  %v13042_v6 = vpack.c.bf16 %v3799_v54, %v3798_v56  ;;  %v15909_v49 = vunpack.i.h.bf16 %v20195_v52 }
 0x50f   : > { %13001 = vmatprep.subr.msk.bf16.mxu0 %vm20044_vm14, %v13000_v57  ;;  %v15898_v57 = vunpack.i.l.bf16 %v20164_v34  ;;  %v3782_v58 = vsel %vm24618_vm12, %v15888_v31, %v15893_v44  ;;  %v15908_v34 = vunpack.i.l.bf16 %v20195_v52  ;;  %v15927_v12 = vpop.permute.xlu1 %15926  ;;  %vm24620_vm8 = vmmov %vm24612_vm6 }
 0x510   : > { %v13045_v38 = vpack.c.bf16 %v3783_v53, %v3782_v58  ;;  %v3785_v32 = vsel %vm24620_vm8, %v15899_v33, %v15904_v37  ;;  %vm24621_vm13 = vmmov %vm24612_vm6  ;;  %v15928_v47 = vunpack.i.l.bf16 %v15927_v12 }
 0x511   : > { %3408 = vmatmul.mubr.bf16.gmra.mrb[64].mxu0 %v17269_v42  ;;  %v13039_v42 = vpack.c.bf16 %v3781_v23, %v3780_v2  ;;  %v3800_v28 = vsel %vm24619_vm7, %v15903_v17, %v15898_v57  ;;  %v3784_v10 = vsel %vm24621_vm13, %v15898_v57, %v15903_v17  ;;  %vm24622_vm12 = vmmov %vm24612_vm6  ;;  %v3802_v21 = vsel %vm24612_vm6, %v15913_v30, %v15908_v34  ;;  %v17273_v17 = vld [vmem:[%s24303_s5 + $0xf0] sm:$0xff]  }
 0x512   : > { %13004 = vmatpush1.bf16.msk.msra.mxu0 %vm20070_vm9, %v13003_v8  ;;  %3417 = vmatprep.mubr.bf16.mxu0 %v24541_v41  ;;  %v3801_v8 = vsel %vm24612_vm6, %v15904_v37, %v15899_v33  ;;  %v3803_v36 = vsel %vm24622_vm12, %v15914_v7, %v15909_v49  ;;  %vm24623_vm7 = vmmov %vm24612_vm6 }
 0x513   : > { %13007 = vmatprep.subr.msk.bf16.mxu0 %vm20044_vm14, %v13006_v3  ;;  %v15937_v3 = vpop.permute.xlu0 %15936  ;;  %v3787_v11 = vsel %vm24623_vm7, %v15909_v49, %v15914_v7  ;;  %vm24624_vm8 = vmmov %vm24612_vm6  ;;  %v15932_v62 = vpop.permute.xlu1 %15931  ;;  %v13054_v25 = vpack.c.bf16 %v3803_v36, %v3802_v21  ;;  %v17277_v36 = vld [vmem:[%s24303_s5 + $0x110] sm:$0xff]   ;;  %v17278_v21 = vld [vmem:[%s24303_s5 + $0x118] sm:$0xff]  }
 0x514   : > { %v3786_v5 = vsel %vm24624_vm8, %v15908_v34, %v15913_v30  ;;  %vm24625_vm13 = vmmov %vm24612_vm6  ;;  %v15939_v14 = vunpack.i.h.bf16 %v15937_v3  ;;  %v15938_v51 = vunpack.i.l.bf16 %v15937_v3  ;;  %v15933_v37 = vunpack.i.l.bf16 %v15932_v62 }
 0x515   : > { %vm24626_vm12 = vmmov %vm24612_vm6  ;;  %v13057_v44 = vpack.c.bf16 %v3787_v11, %v3786_v5 }
 0x516   : > { %13010 = vmatpush1.bf16.msk.msra.mxu0 %vm20070_vm9, %v13009_v16  ;;  %v13048_v16 = vpack.c.bf16 %v3801_v8, %v3800_v28  ;;  %v3804_v52 = vsel %vm24626_vm12, %v15923_v43, %v15918_v19  ;;  %vm24627_vm7 = vmmov %vm24612_vm6  ;;  %v3790_v56 = vsel %vm24612_vm6, %v15928_v47, %v15938_v51 }
 0x517   : > { %13013 = vmatprep.subr.msk.bf16.mxu0 %vm20044_vm14, %v13012_v18  ;;  %v15919_v18 = vunpack.i.h.bf16 %v15917_v13  ;;  %v3788_v31 = vsel %vm24627_vm7, %v15918_v19, %v15923_v43  ;;  %vm24628_vm8 = vmmov %vm24612_vm6  ;;  %v15947_v13 = vpop.permute.xlu1 %15946  ;;  %v17275_v19 = vld [vmem:[%s24303_s5 + $0x100] sm:$0xff]  }
 0x518   : > { %vm24630_vm12 = vmmov %vm24612_vm6  ;;  %v15948_v7 = vunpack.i.l.bf16 %v15947_v13 }
 0x519   : > { %3418 = vmatmul.mubr.bf16.gmra.mrb[68].mxu0 %v17270_v27  ;;  %v13051_v27 = vpack.c.bf16 %v3785_v32, %v3784_v10  ;;  %v3805_v35 = vsel %vm24625_vm13, %v15924_v48, %v15919_v18  ;;  %v3789_v9 = vsel %vm24612_vm6, %v15919_v18, %v15924_v48  ;;  %vm24629_vm13 = vmmov %vm24612_vm6 }
 0x51a   : > { %13016 = vmatpush1.bf16.msk.msra.mxu0 %vm20070_vm9, %v13015_v60  ;;  %3658 = vmatprep.mubr.bf16.mxu0 %v24541_v41  ;;  %v15942_v60 = vpop.permute.xlu0 %15941  ;;  %v3806_v57 = vsel %vm24629_vm13, %v15938_v51, %v15928_v47  ;;  %vm24631_vm7 = vmmov %vm24612_vm6 }
 0x51b   : > { %13019 = vmatprep.subr.msk.bf16.mxu0 %vm20044_vm14, %v13018_v55  ;;  %v15929_v55 = vunpack.i.h.bf16 %v15927_v12  ;;  %v15944_v23 = vunpack.i.h.bf16 %v15942_v60  ;;  %v15943_v2 = vunpack.i.l.bf16 %v15942_v60  ;;  %vm24633_vm13 = vmmov %vm24612_vm6  ;;  %v17274_v12 = vld [vmem:[%s24303_s5 + $0xf8] sm:$0xff]  }
 0x51d   : > { %v3807_v33 = vsel %vm24628_vm8, %v15939_v14, %v15929_v55  ;;  %v3791_v54 = vsel %vm24630_vm12, %v15929_v55, %v15939_v14  ;;  %vm24632_vm8 = vmmov %vm24612_vm6 }
 0x51e   : > { %13022 = vmatpush1.bf16.msk.msra.mxu0 %vm20070_vm9, %v13021_v0  ;;  %v13060_v0 = vpack.c.bf16 %v3805_v35, %v3804_v52  ;;  %v15952_v46 = vpop.permute.xlu0 %15951  ;;  %v3808_v53 = vsel %vm24632_vm8, %v15943_v2, %v15933_v37  ;;  %v13066_v58 = vpack.c.bf16 %v3807_v33, %v3806_v57  ;;  %v13069_v30 = vpack.c.bf16 %v3791_v54, %v3790_v56  ;;  %vm24634_vm12 = vmmov %vm24612_vm6 }
 0x51f   : > { %13037 = vmatprep.subr.msk.bf16.mxu0 %vm20220_vm0, %v13036_v61  ;;  %v15934_v61 = vunpack.i.h.bf16 %v15932_v62  ;;  %v15954_v8 = vunpack.i.h.bf16 %v15952_v46  ;;  %v15953_v28 = vunpack.i.l.bf16 %v15952_v46  ;;  %v3792_v34 = vsel %vm24634_vm12, %v15933_v37, %v15943_v2  ;;  %vm24636_vm8 = vmmov %vm24612_vm6 }
 0x520   : > { %vm24408_vm12 = vcmask 523264  }
 0x521   : > { %3659 = vmatmul.mubr.bf16.vlgmr.msra.gmra.mrb[56].mxu0 %v17271_v63  ;;  %v13063_v63 = vpack.c.bf16 %v3789_v9, %v3788_v31  ;;  %v3793_v49 = vsel %vm24633_vm13, %v15934_v61, %v15944_v23  ;;  %vm24637_vm13 = vmmov %vm24612_vm6 }
 0x522   : > { %13040 = vmatpush1.bf16.msk.msra.mxu0 %vm20247_vm5, %v13039_v42  ;;  %3668 = vmatprep.mubr.bf16.mxu0 %v24541_v41  ;;  %v3809_v42 = vsel %vm24631_vm7, %v15944_v23, %v15934_v61  ;;  %vm24635_vm7 = vmmov %vm24612_vm6  ;;  %v13075_v10 = vpack.c.bf16 %v3793_v49, %v3792_v34  ;;  %v3794_v48 = vsel %vm24637_vm13, %v15948_v7, %v15953_v28 }
 0x523   : > { %13043 = vmatprep.subr.msk.bf16.mxu0 %vm20220_vm0, %v13042_v6  ;;  %v15949_v6 = vunpack.i.h.bf16 %v15947_v13  ;;  %v13072_v3 = vpack.c.bf16 %v3809_v42, %v3808_v53  ;;  %v3810_v32 = vsel %vm24635_vm7, %v15953_v28, %v15948_v7 }
 0x526   : > { %13046 = vmatpush1.bf16.msk.msra.mxu0 %vm20247_vm5, %v13045_v38  ;;  %v3811_v38 = vsel %vm24612_vm6, %v15954_v8, %v15949_v6  ;;  %v3989_v52 = vpop.permute.xlu1 %3988  ;;  %vm24642_vm6 = vcmp.lt.s32.totalorder %v18787_v22, 17 }
 0x527   : > { %13049 = vmatprep.subr.msk.bf16.mxu0 %vm20220_vm0, %v13048_v16  ;;  %v3795_v16 = vsel %vm24636_vm8, %v15949_v6, %v15954_v8  ;;  %v13078_v43 = vpack.c.bf16 %v3811_v38, %v3810_v32  ;;  %v3994_v5 = vpop.permute.xlu0 %3993  ;;  %vm24643_vm7 = vmmov %vm24642_vm6 }
 0x528   : > { %v13081_v18 = vpack.c.bf16 %v3795_v16, %v3794_v48  ;;  %vm24644_vm8 = vmmov %vm24642_vm6 }
 0x529   : > { %3669 = vmatmul.mubr.bf16.gmra.mrb[60].mxu0 %v17272_v1  ;;  %v17276_v1 = vld [vmem:[%s24303_s5 + $0x108] sm:$0xff]   ;;  %vm24645_vm13 = vmmov %vm24642_vm6 }
 0x52a   : > { %13052 = vmatpush1.bf16.msk.msra.mxu0 %vm20247_vm5, %v13051_v27  ;;  %3678 = vmatprep.mubr.bf16.mxu0 %v24541_v41  ;;  %v3999_v23 = vpop.permute.xlu1 %3998 }
 0x52b   : > { %13055 = vmatprep.subr.msk.bf16.mxu0 %vm20220_vm0, %v13054_v25  ;;  %v4004_v31 = vpop.permute.xlu0 %4003 }
 0x52e   : > { %13058 = vmatpush1.bf16.msk.msra.mxu0 %vm20247_vm5, %v13057_v44  ;;  %v4009_v42 = vpop.permute.xlu1 %4008 }
 0x52f   : > { %13061 = vmatprep.subr.msk.bf16.mxu0 %vm20220_vm0, %v13060_v0  ;;  %v4014_v54 = vpop.permute.xlu0 %4013 }
 0x531   : > { %3679 = vmatmul.mubr.bf16.gmra.mrb[64].mxu0 %v17273_v17 }
 0x532   : > { %13064 = vmatpush1.bf16.msk.msra.mxu0 %vm20247_vm5, %v13063_v63  ;;  %3688 = vmatprep.mubr.bf16.mxu0 %v24541_v41  ;;  %v4019_v38 = vpop.permute.xlu1 %4018 }
 0x533   : > { %13067 = vmatprep.subr.msk.bf16.mxu0 %vm20220_vm0, %v13066_v58 }
 0x536   : > { %13070 = vmatpush1.bf16.msk.msra.mxu0 %vm20247_vm5, %v13069_v30 }
 0x537   : > { %13073 = vmatprep.subr.msk.bf16.mxu0 %vm20220_vm0, %v13072_v3  ;;  %v4024_v3 = vpop.permute.xlu0 %4023 }
 0x539   : > { %3689 = vmatmul.mubr.bf16.gmra.mrb[68].mxu0 %v17274_v12 }
 0x53a   : > { %13076 = vmatpush1.bf16.msk.msra.mxu0 %vm20247_vm5, %v13075_v10  ;;  %3929 = vmatprep.mubr.bf16.mxu0 %v24541_v41 }
 0x53b   : > { %13079 = vmatprep.subr.msk.bf16.mxu0 %vm20220_vm0, %v13078_v43 }
 0x53e   : > { %13082 = vmatpush1.bf16.msk.msra.mxu0 %vm20247_vm5, %v13081_v18 }
 0x541   : > { %3930 = vmatmul.mubr.bf16.vlgmr.msra.gmra.mrb[56].mxu0 %v17275_v19 }
 0x542   : > { %3939 = vmatprep.mubr.bf16.mxu0 %v24541_v41 }
 0x549   : > { %3940 = vmatmul.mubr.bf16.gmra.mrb[60].mxu0 %v17276_v1  ;;  %v20417_v1 = vld [vmem:[%s24305_s7] sm:$0xff]  }
 0x54a   : > { %3949 = vmatprep.mubr.bf16.mxu0 %v24541_v41 }
 0x551   : > { %3950 = vmatmul.mubr.bf16.gmra.mrb[64].mxu0 %v17277_v36  ;;  %v20425_v36 = vld [vmem:[%s24305_s7 + $0x8] sm:$0xff]  }
 0x552   : > { %3959 = vmatprep.mubr.bf16.mxu0 %v24541_v41 }
 0x559   : > { %3960 = vmatmul.mubr.bf16.gmra.mrb[68].mxu0 %v17278_v21  ;;  %v20433_v21 = vld [vmem:[%s24305_s7 + $0x10] sm:$0xff]  }
 0x55a   : > { %6808 = vmatprep.mubr.bf16.mxu0 %v24541_v41 }
 0x614   : > { %v3931_v27 = vpop.f32.mrb[56].mxu0 }
 0x615   : > { %v3933_v11 = vpop.f32.mrb[57].mxu0  ;;  %v20372_v51 = vadd.f32 %v3989_v52, %v3931_v27  ;;  %v20441_v27 = vld [vmem:[%s24305_s7 + $0x18] sm:$0xff]  }
 0x616   : > { %v3935_v35 = vpop.f32.mrb[58].mxu0  ;;  %v20368_v25 = vadd.f32 %v3989_v52, %v3933_v11 }
 0x617   : > { %v20366_v60 = vadd.f32 %v3994_v5, %v3935_v35  ;;  %v3937_v62 = vpop.f32.mrb[59].mxu0 }
 0x618   : > { %v20370_v14 = vadd.f32 %v3994_v5, %v3937_v62 }
 0x619   : > { %v4066_v47 = vpack.c.bf16 %v20366_v60, %v20372_v51 }
 0x61a   : > { %v4067_v55 = vpack.c.bf16 %v20370_v14, %v20368_v25 }
 0x61c   : > { %v3941_v44 = vpop.f32.mrb[60].mxu0  ;;  %4107 = vmatprep.subr.bf16.mxu1 %v4067_v55 }
 0x61d   : > { %v3943_v9 = vpop.f32.mrb[61].mxu0  ;;  %4108 = vmatpush1.bf16.msra.mxu1 %v4066_v47  ;;  %v20384_v33 = vadd.f32 %v3999_v23, %v3941_v44 }
 0x61e   : > { %v3945_v0 = vpop.f32.mrb[62].mxu0  ;;  %v20380_v37 = vadd.f32 %v3999_v23, %v3943_v9 }
 0x61f   : > { %v20378_v2 = vadd.f32 %v4004_v31, %v3945_v0  ;;  %v3947_v61 = vpop.f32.mrb[63].mxu0 }
 0x620   : > { %v20382_v17 = vadd.f32 %v4004_v31, %v3947_v61 }
 0x621   : > { %v4068_v46 = vpack.c.bf16 %v20378_v2, %v20384_v33 }
 0x622   : > { %v4069_v57 = vpack.c.bf16 %v20382_v17, %v20380_v37 }
 0x624   : > { %v3951_v13 = vpop.f32.mrb[64].mxu0  ;;  %4109 = vmatprep.subr.bf16.mxu1 %v4069_v57 }
 0x625   : > { %v3953_v63 = vpop.f32.mrb[65].mxu0  ;;  %4110 = vmatpush1.bf16.msra.mxu1 %v4068_v46  ;;  %v20396_v6 = vadd.f32 %v4009_v42, %v3951_v13 }
 0x626   : > { %v3955_v56 = vpop.f32.mrb[66].mxu0  ;;  %v20392_v8 = vadd.f32 %v4009_v42, %v3953_v63 }
 0x627   : > { %v20390_v53 = vadd.f32 %v4014_v54, %v3955_v56  ;;  %v3957_v58 = vpop.f32.mrb[67].mxu0 }
 0x628   : > { %v20394_v28 = vadd.f32 %v4014_v54, %v3957_v58 }
 0x629   : > { %v4070_v30 = vpack.c.bf16 %v20390_v53, %v20396_v6 }
 0x62a   : > { %v4071_v7 = vpack.c.bf16 %v20394_v28, %v20392_v8 }
 0x62c   : > { %v3961_v49 = vpop.f32.mrb[68].mxu0  ;;  %4111 = vmatprep.subr.bf16.mxu1 %v4071_v7 }
 0x62d   : > { %v3963_v34 = vpop.f32.mrb[69].mxu0  ;;  %4112 = vmatpush1.bf16.msra.mxu1 %v4070_v30  ;;  %v20408_v43 = vadd.f32 %v4019_v38, %v3961_v49 }
 0x62e   : > { %v3965_v12 = vpop.f32.mrb[70].mxu0  ;;  %v20404_v16 = vadd.f32 %v4019_v38, %v3963_v34  ;;  %v4043_v34 = vld [vmem:[%s24306_s8 + $0x8] sm:$0xff] }
 0x62f   : > { %v20402_v32 = vadd.f32 %v4024_v3, %v3965_v12  ;;  %v3967_v10 = vpop.f32.mrb[71].mxu0  ;;  %v4050_v12 = vld [vmem:[%s24307_s9] sm:$0xff]  ;;  %v4051_v38 = vld [vmem:[%s24307_s9 + $0x8] sm:$0xff] }
 0x630   : > { %v20406_v48 = vadd.f32 %v4024_v3, %v3967_v10  ;;  %v4042_v3 = vld [vmem:[%s24306_s8] sm:$0xff]  ;;  %v4044_v10 = vld [vmem:[%s24306_s8 + $0x10] sm:$0xff] }
 0x631   : > { %v4072_v19 = vpack.c.bf16 %v20402_v32, %v20408_v43 }
 0x632   : > { %v4073_v18 = vpack.c.bf16 %v20406_v48, %v20404_v16 }
 0x634   : > { %4113 = vmatprep.subr.bf16.mxu1 %v4073_v18  ;;  %v4045_v18 = vld [vmem:[%s24306_s8 + $0x18] sm:$0xff] }
 0x635   : > { %4114 = vmatpush1.bf16.msra.mxu1 %v4072_v19  ;;  %v4052_v19 = vld [vmem:[%s24307_s9 + $0x10] sm:$0xff] }
 0x638   : > { %13087 = vmatmul.mubr.msk.bf16.vlgmr.msra.gmra.mrb[8].mxu1 %vm24408_vm12, %v20417_v1 }
 0x639   : > { %4149 = vmatprep.mubr.bf16.mxu1 %v24541_v41 }
 0x640   : > { %13088 = vmatmul.mubr.msk.bf16.gmra.mrb[12].mxu1 %vm24408_vm12, %v20425_v36 }
 0x641   : > { %4159 = vmatprep.mubr.bf16.mxu1 %v24541_v41 }
 0x648   : > { %13089 = vmatmul.mubr.msk.bf16.gmra.mrb[16].mxu1 %vm24408_vm12, %v20433_v21 }
 0x649   : > { %4169 = vmatprep.mubr.bf16.mxu1 %v24541_v41 }
 0x650   : > { %13090 = vmatmul.mubr.msk.bf16.gmra.mrb[20].mxu1 %vm24408_vm12, %v20441_v27 }
 0x651   : > { %4284 = vmatprep.mubr.bf16.mxu1 %v24541_v41 }
 0x70b   : > { %v4141_v11 = vpop.f32.mrb[8].mxu1 }
 0x70c   : > { %v4143_v5 = vpop.f32.mrb[9].mxu1 }
 0x70d   : > { %v4180_v35 = vadd.f32 %v4143_v5, %v4141_v11  ;;  %v4145_v52 = vpop.f32.mrb[10].mxu1  ;;  %v4053_v11 = vld [vmem:[%s24307_s9 + $0x18] sm:$0xff]  ;;  %v4046_v5 = vld [vmem:[%s24306_s8 + $0x20] sm:$0xff] }
 0x70e   : > { %v4147_v62 = vpop.f32.mrb[11].mxu1 }
 0x70f   : > { %v4183_v55 = vadd.f32 %v4147_v62, %v4145_v52  ;;  %4181 = vadd.xlane.f32.xlu1 %v4180_v35  ;;  %v4047_v35 = vld [vmem:[%s24306_s8 + $0x28] sm:$0xff]  ;;  %v4054_v52 = vld [vmem:[%s24307_s9 + $0x20] sm:$0xff] }
 0x710   : > { %v4055_v62 = vld [vmem:[%s24307_s9 + $0x28] sm:$0xff] }
 0x711   : > { %4184 = vadd.xlane.f32.xlu0 %v4183_v55  ;;  %v4048_v55 = vld [vmem:[%s24306_s8 + $0x30] sm:$0xff] }
 0x713   : > { %v4151_v47 = vpop.f32.mrb[12].mxu1 }
 0x714   : > { %v4153_v44 = vpop.f32.mrb[13].mxu1 }
 0x715   : > { %v4186_v9 = vadd.f32 %v4153_v44, %v4151_v47  ;;  %v4155_v31 = vpop.f32.mrb[14].mxu1  ;;  %v4049_v47 = vld [vmem:[%s24306_s8 + $0x38] sm:$0xff] }
 0x716   : > { %v4157_v0 = vpop.f32.mrb[15].mxu1 }
 0x717   : > { %v4189_v23 = vadd.f32 %v4157_v0, %v4155_v31  ;;  %4187 = vadd.xlane.f32.xlu0 %v4186_v9 }
 0x719   : > { %4190 = vadd.xlane.f32.xlu1 %v4189_v23 }
 0x71b   : > { %v4161_v61 = vpop.f32.mrb[16].mxu1 }
 0x71c   : > { %v4163_v57 = vpop.f32.mrb[17].mxu1 }
 0x71d   : > { %v4192_v46 = vadd.f32 %v4163_v57, %v4161_v61  ;;  %v4165_v13 = vpop.f32.mrb[18].mxu1 }
 0x71e   : > { %v4167_v63 = vpop.f32.mrb[19].mxu1 }
 0x71f   : > { %v4195_v54 = vadd.f32 %v4167_v63, %v4165_v13  ;;  %4193 = vadd.xlane.f32.xlu0 %v4192_v46 }
 0x721   : > { %4196 = vadd.xlane.f32.xlu1 %v4195_v54 }
 0x723   : > { %v4171_v56 = vpop.f32.mrb[20].mxu1 }
 0x724   : > { %v4173_v42 = vpop.f32.mrb[21].mxu1 }
 0x725   : > { %v4198_v58 = vadd.f32 %v4173_v42, %v4171_v56  ;;  %v4175_v7 = vpop.f32.mrb[22].mxu1 }
 0x726   : > { %v4177_v30 = vpop.f32.mrb[23].mxu1 }
 0x727   : > { %v4201_v49 = vadd.f32 %v4177_v30, %v4175_v7  ;;  %4199 = vadd.xlane.f32.xlu0 %v4198_v58 }
 0x729   : > { %4202 = vadd.xlane.f32.xlu1 %v4201_v49 }
 0x73a   : > { %4396 = vperm.xlu1 %15314, %v4043_v34  }
 0x73d   : > { %4391 = vperm.xlu0 %15313, %v4042_v3  }
 0x73e   : > { %4447 = vperm.xlu1 %15314, %v4050_v12  }
 0x741   : > { %4452 = vperm.xlu0 %15313, %v4051_v38  }
 0x742   : > { %4401 = vperm.xlu1 %15314, %v4044_v10  }
 0x745   : > { %4406 = vperm.xlu0 %15313, %v4045_v18  }
 0x746   : > { %4457 = vperm.xlu1 %15314, %v4052_v19  }
 0x749   : > { %4462 = vperm.xlu0 %15313, %v4053_v11  }
 0x74a   : > { %4411 = vperm.xlu1 %15314, %v4046_v5  }
 0x74d   : > { %4416 = vperm.xlu0 %15313, %v4047_v35  }
 0x74e   : > { %4467 = vperm.xlu1 %15314, %v4054_v52  }
 0x751   : > { %4472 = vperm.xlu0 %15313, %v4055_v62  }
 0x752   : > { %4421 = vperm.xlu1 %15314, %v4048_v55  }
 0x755   : > { %4426 = vperm.xlu0 %15313, %v4049_v47  }
 0x79c   : > { %v4182_v44 = vpop.xlane.xlu1 %4181 }
 0x79d   : > { %v4204_v9 = vmul.f32 0.001953125, %v4182_v44 }
 0x79e   : > { %v4185_v31 = vpop.xlane.xlu0 %4184 }
 0x79f   : > { %v20489_v0 = vsub.f32 %v20372_v51, %v4204_v9  ;;  %v20492_v23 = vsub.f32 %v20368_v25, %v4204_v9  ;;  %v4205_v61 = vmul.f32 0.001953125, %v4185_v31 }
 0x7a1   : > { %v20495_v57 = vsub.f32 %v20366_v60, %v4205_v61  ;;  %v20498_v46 = vsub.f32 %v20370_v14, %v4205_v61  ;;  %v4228_v13 = vmul.f32 %v20489_v0, %v20489_v0  ;;  %v4229_v63 = vmul.f32 %v20492_v23, %v20492_v23 }
 0x7a3   : > { %v4230_v51 = vmul.f32 %v20495_v57, %v20495_v57  ;;  %v4231_v25 = vmul.f32 %v20498_v46, %v20498_v46 }
 0x7a4   : > { %v4188_v54 = vpop.xlane.xlu0 %4187 }
 0x7a5   : > { %v4206_v56 = vmul.f32 0.001953125, %v4188_v54  ;;  %v4245_v42 = vpack.c.bf16 %v4231_v25, %v4229_v63  ;;  %v4244_v60 = vpack.c.bf16 %v4230_v51, %v4228_v13 }
 0x7a6   : > { %v4191_v58 = vpop.xlane.xlu1 %4190 }
 0x7a7   : > { %v20509_v14 = vsub.f32 %v20384_v33, %v4206_v56  ;;  %v20512_v7 = vsub.f32 %v20380_v37, %v4206_v56  ;;  %v4207_v30 = vmul.f32 0.001953125, %v4191_v58  ;;  %4252 = vmatprep.subr.bf16.mxu1 %v4245_v42 }
 0x7a8   : > { %4253 = vmatpush1.bf16.msra.mxu1 %v4244_v60 }
 0x7a9   : > { %v20515_v49 = vsub.f32 %v20378_v2, %v4207_v30  ;;  %v20518_v34 = vsub.f32 %v20382_v17, %v4207_v30  ;;  %v4232_v3 = vmul.f32 %v20509_v14, %v20509_v14  ;;  %v4233_v12 = vmul.f32 %v20512_v7, %v20512_v7 }
 0x7ab   : > { %v4234_v33 = vmul.f32 %v20515_v49, %v20515_v49  ;;  %v4235_v37 = vmul.f32 %v20518_v34, %v20518_v34 }
 0x7ac   : > { %v4194_v38 = vpop.xlane.xlu0 %4193 }
 0x7ad   : > { %v4208_v10 = vmul.f32 0.001953125, %v4194_v38  ;;  %v4247_v18 = vpack.c.bf16 %v4235_v37, %v4233_v12  ;;  %v4246_v2 = vpack.c.bf16 %v4234_v33, %v4232_v3 }
 0x7ae   : > { %v4197_v19 = vpop.xlane.xlu1 %4196 }
 0x7af   : > { %v20529_v17 = vsub.f32 %v20396_v6, %v4208_v10  ;;  %v20532_v11 = vsub.f32 %v20392_v8, %v4208_v10  ;;  %v4209_v5 = vmul.f32 0.001953125, %v4197_v19  ;;  %4254 = vmatprep.subr.bf16.mxu1 %v4247_v18 }
 0x7b0   : > { %4255 = vmatpush1.bf16.msra.mxu1 %v4246_v2 }
 0x7b1   : > { %v20535_v35 = vsub.f32 %v20390_v53, %v4209_v5  ;;  %v20538_v52 = vsub.f32 %v20394_v28, %v4209_v5  ;;  %v4236_v62 = vmul.f32 %v20529_v17, %v20529_v17  ;;  %v4237_v55 = vmul.f32 %v20532_v11, %v20532_v11 }
 0x7b3   : > { %v4238_v6 = vmul.f32 %v20535_v35, %v20535_v35  ;;  %v4239_v8 = vmul.f32 %v20538_v52, %v20538_v52 }
 0x7b4   : > { %v4200_v47 = vpop.xlane.xlu0 %4199 }
 0x7b5   : > { %v4210_v44 = vmul.f32 0.001953125, %v4200_v47  ;;  %v4249_v9 = vpack.c.bf16 %v4239_v8, %v4237_v55  ;;  %v4248_v53 = vpack.c.bf16 %v4238_v6, %v4236_v62 }
 0x7b6   : > { %v4203_v31 = vpop.xlane.xlu1 %4202 }
 0x7b7   : > { %v20549_v28 = vsub.f32 %v20408_v43, %v4210_v44  ;;  %v20552_v61 = vsub.f32 %v20404_v16, %v4210_v44  ;;  %v4211_v13 = vmul.f32 0.001953125, %v4203_v31  ;;  %4256 = vmatprep.subr.bf16.mxu1 %v4249_v9  ;;  %v4056_v44 = vld [vmem:[%s24307_s9 + $0x30] sm:$0xff]  ;;  %v4057_v9 = vld [vmem:[%s24307_s9 + $0x38] sm:$0xff] }
 0x7b8   : > { %4257 = vmatpush1.bf16.msra.mxu1 %v4248_v53 }
 0x7b9   : > { %v20555_v63 = vsub.f32 %v20402_v32, %v4211_v13  ;;  %v20558_v51 = vsub.f32 %v20406_v48, %v4211_v13  ;;  %v4240_v25 = vmul.f32 %v20549_v28, %v20549_v28  ;;  %v4241_v54 = vmul.f32 %v20552_v61, %v20552_v61 }
 0x7ba   : > { %v4397_v31 = vpop.permute.xlu1 %4396 }
 0x7bb   : > { %v4242_v43 = vmul.f32 %v20555_v63, %v20555_v63  ;;  %v4243_v16 = vmul.f32 %v20558_v51, %v20558_v51 }
 0x7bc   : > { %v4392_v53 = vpop.permute.xlu0 %4391 }
 0x7bd   : > { %v4251_v56 = vpack.c.bf16 %v4243_v16, %v4241_v54  ;;  %v4250_v42 = vpack.c.bf16 %v4242_v43, %v4240_v25 }
 0x7be   : > { %v4448_v25 = vpop.permute.xlu1 %4447 }
 0x7bf   : > { %4258 = vmatprep.subr.bf16.mxu1 %v4251_v56 }
 0x7c0   : > { %4259 = vmatpush1.bf16.msra.mxu1 %v4250_v42  ;;  %v4453_v13 = vpop.permute.xlu0 %4452 }
 0x7c2   : > { %v20588_v43 = vpop.permute.xlu1 %4401 }
 0x7c3   : > { %13091 = vmatmul.mubr.msk.bf16.vlgmr.msra.gmra.mrb[24].mxu1 %vm24408_vm12, %v20417_v1 }
 0x7c4   : > { %4294 = vmatprep.mubr.bf16.mxu1 %v24541_v41  ;;  %v20586_v54 = vpop.permute.xlu0 %4406 }
 0x7c6   : > { %v20592_v56 = vpop.permute.xlu1 %4457 }
 0x7c8   : > { %v20590_v16 = vpop.permute.xlu0 %4462 }
 0x7cb   : > { %13092 = vmatmul.mubr.msk.bf16.gmra.mrb[28].mxu1 %vm24408_vm12, %v20425_v36 }
 0x7cc   : > { %4304 = vmatprep.mubr.bf16.mxu1 %v24541_v41  ;;  %v20594_v42 = vpop.permute.xlu0 %4416 }
 0x7d3   : > { %13093 = vmatmul.mubr.msk.bf16.gmra.mrb[32].mxu1 %vm24408_vm12, %v20433_v21 }
 0x7d4   : > { %4314 = vmatprep.mubr.bf16.mxu1 %v24541_v41 }
 0x7db   : > { %13094 = vmatmul.mubr.msk.bf16.gmra.mrb[36].mxu1 %vm24408_vm12, %v20441_v27 }
 0x7dc   : > { %4773 = vmatprep.mubr.bf16.mxu1 %v24541_v41 }
 0x896   : > { %v4286_v32 = vpop.f32.mrb[24].mxu1 }
 0x897   : > { %v4288_v48 = vpop.f32.mrb[25].mxu1 }
 0x898   : > { %v4325_v1 = vadd.f32 %v4288_v48, %v4286_v32  ;;  %v4290_v60 = vpop.f32.mrb[26].mxu1  ;;  %v20596_v32 = vpop.permute.xlu1 %4411 }
 0x899   : > { %v4292_v58 = vpop.f32.mrb[27].mxu1  ;;  %v20598_v48 = vpop.permute.xlu0 %4472 }
 0x89a   : > { %v4328_v30 = vadd.f32 %v4292_v58, %v4290_v60  ;;  %4326 = vadd.xlane.f32.xlu0 %v4325_v1 }
 0x89c   : > { %4329 = vadd.xlane.f32.xlu1 %v4328_v30  ;;  %v20600_v1 = vpop.permute.xlu1 %4467 }
 0x89d   : > { %v20602_v60 = vpop.permute.xlu0 %4426 }
 0x89e   : > { %v4296_v36 = vpop.f32.mrb[28].mxu1 }
 0x89f   : > { %v4298_v3 = vpop.f32.mrb[29].mxu1 }
 0x8a0   : > { %v4331_v12 = vadd.f32 %v4298_v3, %v4296_v36  ;;  %v4300_v33 = vpop.f32.mrb[30].mxu1  ;;  %v20604_v58 = vpop.permute.xlu1 %4421 }
 0x8a1   : > { %v4302_v21 = vpop.f32.mrb[31].mxu1 }
 0x8a2   : > { %v4334_v37 = vadd.f32 %v4302_v21, %v4300_v33  ;;  %4332 = vadd.xlane.f32.xlu0 %v4331_v12 }
 0x8a4   : > { %4335 = vadd.xlane.f32.xlu1 %v4334_v37 }
 0x8a6   : > { %v4306_v38 = vpop.f32.mrb[32].mxu1 }
 0x8a7   : > { %v4308_v27 = vpop.f32.mrb[33].mxu1 }
 0x8a8   : > { %v4337_v10 = vadd.f32 %v4308_v27, %v4306_v38  ;;  %v4310_v18 = vpop.f32.mrb[34].mxu1 }
 0x8a9   : > { %v4312_v2 = vpop.f32.mrb[35].mxu1 }
 0x8aa   : > { %v4340_v19 = vadd.f32 %v4312_v2, %v4310_v18  ;;  %4338 = vadd.xlane.f32.xlu0 %v4337_v10 }
 0x8ac   : > { %4341 = vadd.xlane.f32.xlu1 %v4340_v19 }
 0x8ae   : > { %v4316_v5 = vpop.f32.mrb[36].mxu1 }
 0x8af   : > { %v4318_v62 = vpop.f32.mrb[37].mxu1 }
 0x8b0   : > { %v4343_v55 = vadd.f32 %v4318_v62, %v4316_v5  ;;  %v4320_v6 = vpop.f32.mrb[38].mxu1 }
 0x8b1   : > { %v4322_v8 = vpop.f32.mrb[39].mxu1 }
 0x8b2   : > { %v4346_v47 = vadd.f32 %v4322_v8, %v4320_v6  ;;  %4344 = vadd.xlane.f32.xlu0 %v4343_v55 }
 0x8b4   : > { %4347 = vadd.xlane.f32.xlu1 %v4346_v47 }
 0x8c5   : > { %4477 = vperm.xlu1 %15314, %v4056_v44  }
 0x8c8   : > { %4482 = vperm.xlu0 %15313, %v4057_v9  }
 0x927   : > { %v4327_v30 = vpop.xlane.xlu0 %4326 }
 0x928   : > { %v4349_v36 = vmul.f32 0.001953125, %v4327_v30 }
 0x929   : > { %v4330_v3 = vpop.xlane.xlu1 %4329 }
 0x92a   : > { %v4357_v12 = vadd.f32 1e-06, %v4349_v36  ;;  %v4350_v33 = vmul.f32 0.001953125, %v4330_v3 }
 0x92c   : > { %17627 = vrsqrt.f32 %v4357_v12  ;;  %v4358_v21 = vadd.f32 1e-06, %v4350_v33 }
 0x92e   : > { %17629 = vrsqrt.f32 %v4358_v21 }
 0x92f   : > { %v4333_v37 = vpop.xlane.xlu0 %4332 }
 0x930   : > { %v4351_v38 = vmul.f32 0.001953125, %v4333_v37 }
 0x931   : > { %v4336_v27 = vpop.xlane.xlu1 %4335 }
 0x932   : > { %v4359_v10 = vadd.f32 1e-06, %v4351_v38  ;;  %v4352_v18 = vmul.f32 0.001953125, %v4336_v27 }
 0x934   : > { %17631 = vrsqrt.f32 %v4359_v10  ;;  %v4360_v2 = vadd.f32 1e-06, %v4352_v18 }
 0x936   : > { %v17628_v19 = vpop.eup %17627  ;;  %17633 = vrsqrt.f32 %v4360_v2 }
 0x937   : > { %v4373_v5 = vmul.f32 %v17628_v19, %v20489_v0  ;;  %v4374_v62 = vmul.f32 %v17628_v19, %v20492_v23  ;;  %v4339_v55 = vpop.xlane.xlu0 %4338 }
 0x938   : > { %v17630_v6 = vpop.eup %17629  ;;  %v4353_v8 = vmul.f32 0.001953125, %v4339_v55 }
 0x939   : > { %v4429_v47 = vmul.f32 %v4392_v53, %v4373_v5  ;;  %v4430_v44 = vmul.f32 %v4392_v53, %v4374_v62  ;;  %v4375_v9 = vmul.f32 %v17630_v6, %v20495_v57  ;;  %v4376_v30 = vmul.f32 %v17630_v6, %v20498_v46  ;;  %v4342_v36 = vpop.xlane.xlu1 %4341 }
 0x93a   : > { %v4361_v3 = vadd.f32 1e-06, %v4353_v8  ;;  %v4354_v12 = vmul.f32 0.001953125, %v4342_v36 }
 0x93b   : > { %v20610_v33 = vadd.f32 %v4448_v25, %v4429_v47  ;;  %v20612_v21 = vadd.f32 %v4448_v25, %v4430_v44  ;;  %v4431_v37 = vmul.f32 %v4397_v31, %v4375_v9  ;;  %v4432_v0 = vmul.f32 %v4397_v31, %v4376_v30 }
 0x93c   : > { %17635 = vrsqrt.f32 %v4361_v3  ;;  %v4362_v23 = vadd.f32 1e-06, %v4354_v12 }
 0x93d   : > { %v13095_v38 = vmul.f32 -1.442695, %v20610_v33  ;;  %v13096_v27 = vmul.f32 -1.442695, %v20612_v21  ;;  %v20616_v53 = vadd.f32 %v4453_v13, %v4431_v37  ;;  %v20618_v57 = vadd.f32 %v4453_v13, %v4432_v0 }
 0x93e   : > { %v17632_v46 = vpop.eup %17631  ;;  %17637 = vrsqrt.f32 %v4362_v23 }
 0x93f   : > { %17639 = vpow2.f32 %v13095_v38  ;;  %v13097_v10 = vmul.f32 -1.442695, %v20616_v53  ;;  %v13098_v25 = vmul.f32 -1.442695, %v20618_v57  ;;  %v4377_v18 = vmul.f32 %v17632_v46, %v20509_v14  ;;  %v4345_v31 = vpop.xlane.xlu0 %4344 }
 0x940   : > { %v17634_v2 = vpop.eup %17633  ;;  %17641 = vpow2.f32 %v13096_v27  ;;  %v4378_v19 = vmul.f32 %v17632_v46, %v20512_v7  ;;  %v4355_v5 = vmul.f32 0.001953125, %v4345_v31 }
 0x941   : > { %17643 = vpow2.f32 %v13097_v10  ;;  %v4433_v62 = vmul.f32 %v20588_v43, %v4377_v18  ;;  %v4379_v13 = vmul.f32 %v17634_v2, %v20515_v49  ;;  %v4380_v55 = vmul.f32 %v17634_v2, %v20518_v34  ;;  %v4348_v6 = vpop.xlane.xlu1 %4347 }
 0x942   : > { %17645 = vpow2.f32 %v13098_v25  ;;  %v4434_v8 = vmul.f32 %v20588_v43, %v4378_v19  ;;  %v4363_v47 = vadd.f32 1e-06, %v4355_v5  ;;  %v4356_v44 = vmul.f32 0.001953125, %v4348_v6 }
 0x943   : > { %v20629_v14 = vadd.f32 %v20592_v56, %v4433_v62  ;;  %v4435_v9 = vmul.f32 %v20586_v54, %v4379_v13  ;;  %v4436_v7 = vmul.f32 %v20586_v54, %v4380_v55 }
 0x944   : > { %v20634_v30 = vadd.f32 %v20592_v56, %v4434_v8  ;;  %17647 = vrsqrt.f32 %v4363_v47  ;;  %v4364_v49 = vadd.f32 1e-06, %v4356_v44 }
 0x945   : > { %v13099_v34 = vmul.f32 -1.442695, %v20629_v14  ;;  %v20638_v36 = vadd.f32 %v20590_v16, %v4435_v9  ;;  %v20641_v43 = vadd.f32 %v20590_v16, %v4436_v7 }
 0x946   : > { %v17636_v3 = vpop.eup %17635  ;;  %v13100_v12 = vmul.f32 -1.442695, %v20634_v30  ;;  %17649 = vrsqrt.f32 %v4364_v49 }
 0x947   : > { %17651 = vpow2.f32 %v13099_v34  ;;  %v13101_v54 = vmul.f32 -1.442695, %v20638_v36  ;;  %v13102_v56 = vmul.f32 -1.442695, %v20641_v43  ;;  %v4381_v37 = vmul.f32 %v17636_v3, %v20529_v17 }
 0x948   : > { %v17638_v0 = vpop.eup %17637  ;;  %17653 = vpow2.f32 %v13100_v12  ;;  %v4382_v23 = vmul.f32 %v17636_v3, %v20532_v11 }
 0x949   : > { %v17640_v38 = vpop.eup %17639  ;;  %17655 = vpow2.f32 %v13101_v54  ;;  %v4437_v16 = vmul.f32 %v20596_v32, %v4381_v37  ;;  %v4383_v27 = vmul.f32 %v17638_v0, %v20535_v35  ;;  %v4384_v46 = vmul.f32 %v17638_v0, %v20538_v52  ;;  %v4478_v54 = vpop.permute.xlu1 %4477 }
 0x94a   : > { %v17642_v10 = vpop.eup %17641  ;;  %v4549_v25 = vadd.f32 1.0, %v17640_v38  ;;  %17657 = vpow2.f32 %v13102_v56  ;;  %v4438_v18 = vmul.f32 %v20596_v32, %v4382_v23 }
 0x94b   : > { %v17644_v31 = vpop.eup %17643  ;;  %v4550_v2 = vadd.f32 1.0, %v17642_v10  ;;  %v20653_v17 = vadd.f32 %v20600_v1, %v4437_v16  ;;  %v4439_v11 = vmul.f32 %v20594_v42, %v4383_v27  ;;  %v4440_v19 = vmul.f32 %v20594_v42, %v4384_v46  ;;  %v4483_v46 = vpop.permute.xlu0 %4482 }
 0x94c   : > { %v17646_v5 = vpop.eup %17645  ;;  %17659 = vrcp.f32 %v4549_v25  ;;  %v4551_v62 = vadd.f32 1.0, %v17644_v31  ;;  %v20658_v35 = vadd.f32 %v20600_v1, %v4438_v18 }
 0x94d   : > { %17661 = vrcp.f32 %v4550_v2  ;;  %v4552_v52 = vadd.f32 1.0, %v17646_v5  ;;  %v13103_v13 = vmul.f32 -1.442695, %v20653_v17  ;;  %v20662_v32 = vadd.f32 %v20598_v48, %v4439_v11 }
 0x94e   : > { %v17648_v55 = vpop.eup %17647  ;;  %17663 = vrcp.f32 %v4551_v62  ;;  %v13104_v6 = vmul.f32 -1.442695, %v20658_v35  ;;  %v20666_v8 = vadd.f32 %v20598_v48, %v4440_v19 }
 0x94f   : > { %17665 = vrcp.f32 %v4552_v52  ;;  %v13105_v42 = vmul.f32 -1.442695, %v20662_v32  ;;  %v4385_v1 = vmul.f32 %v17648_v55, %v20549_v28  ;;  %v4386_v47 = vmul.f32 %v17648_v55, %v20552_v61 }
 0x950   : > { %v17650_v44 = vpop.eup %17649  ;;  %17667 = vpow2.f32 %v13103_v13  ;;  %v13106_v9 = vmul.f32 -1.442695, %v20666_v8 }
 0x951   : > { %v17652_v7 = vpop.eup %17651  ;;  %17669 = vpow2.f32 %v13104_v6  ;;  %v4441_v49 = vmul.f32 %v20604_v58, %v4385_v1  ;;  %v4442_v34 = vmul.f32 %v20604_v58, %v4386_v47  ;;  %v4387_v48 = vmul.f32 %v17650_v44, %v20555_v63 }
 0x952   : > { %v17654_v3 = vpop.eup %17653  ;;  %v4553_v12 = vadd.f32 1.0, %v17652_v7  ;;  %17671 = vpow2.f32 %v13105_v42  ;;  %v4388_v28 = vmul.f32 %v17650_v44, %v20558_v51 }
 0x953   : > { %v17656_v56 = vpop.eup %17655  ;;  %v4554_v61 = vadd.f32 1.0, %v17654_v3  ;;  %17673 = vpow2.f32 %v13106_v9  ;;  %v20676_v37 = vadd.f32 %v4478_v54, %v4441_v49  ;;  %v20678_v0 = vadd.f32 %v4478_v54, %v4442_v34 }
 0x954   : > { %v17658_v23 = vpop.eup %17657  ;;  %17675 = vrcp.f32 %v4553_v12  ;;  %v4555_v38 = vadd.f32 1.0, %v17656_v56  ;;  %v4443_v58 = vmul.f32 %v20602_v60, %v4387_v48  ;;  %v4444_v63 = vmul.f32 %v20602_v60, %v4388_v28 }
 0x955   : > { %17677 = vrcp.f32 %v4554_v61  ;;  %v4556_v16 = vadd.f32 1.0, %v17658_v23  ;;  %v13107_v27 = vmul.f32 -1.442695, %v20676_v37  ;;  %v13108_v51 = vmul.f32 -1.442695, %v20678_v0 }
 0x956   : > { %v17660_v10 = vpop.eup %17659  ;;  %17679 = vrcp.f32 %v4555_v38  ;;  %v20684_v25 = vadd.f32 %v4483_v46, %v4443_v58  ;;  %v20686_v18 = vadd.f32 %v4483_v46, %v4444_v63 }
 0x957   : > { %v17662_v31 = vpop.eup %17661  ;;  %17681 = vrcp.f32 %v4556_v16  ;;  %v20691_v5 = vmul.f32 %v17660_v10, %v20610_v33 }
 0x958   : > { %v17664_v2 = vpop.eup %17663  ;;  %17683 = vpow2.f32 %v13107_v27  ;;  %v13109_v11 = vmul.f32 -1.442695, %v20684_v25  ;;  %v13110_v60 = vmul.f32 -1.442695, %v20686_v18  ;;  %v20697_v13 = vmul.f32 %v17662_v31, %v20612_v21 }
 0x959   : > { %v17666_v19 = vpop.eup %17665  ;;  %v20694_v62 = vmul.f32 %v17664_v2, %v20616_v53  ;;  %17685 = vpow2.f32 %v13108_v51 }
 0x95a   : > { %v17668_v52 = vpop.eup %17667  ;;  %v20700_v55 = vmul.f32 %v17666_v19, %v20618_v57  ;;  %17687 = vpow2.f32 %v13109_v11 }
 0x95b   : > { %v17670_v6 = vpop.eup %17669  ;;  %v4557_v42 = vadd.f32 1.0, %v17668_v52  ;;  %17689 = vpow2.f32 %v13110_v60  ;;  %v20704_v1 = vpack.i.bf16 %v20694_v62, %v20691_v5  ;;  %v5526_v61 = vpack.c.bf16 %v20694_v62, %v20691_v5 }
 0x95c   : > { %v17672_v33 = vpop.eup %17671  ;;  %v4558_v47 = vadd.f32 1.0, %v17670_v6  ;;  %v20708_v53 = vpack.i.bf16 %v20700_v55, %v20697_v13  ;;  %v5527_v56 = vpack.c.bf16 %v20700_v55, %v20697_v13 }
 0x95d   : > { %v17674_v44 = vpop.eup %17673  ;;  %17691 = vrcp.f32 %v4557_v42  ;;  %v4559_v21 = vadd.f32 1.0, %v17672_v33  ;;  %15956 = vrot.lane.b32.xlu1 %v20704_v1, %s24406_s27 }
 0x95e   : > { %v17676_v57 = vpop.eup %17675  ;;  %17693 = vrcp.f32 %v4558_v47  ;;  %v4560_v9 = vadd.f32 1.0, %v17674_v44  ;;  %15961 = vrot.lane.b32.xlu0 %v20708_v53, %s24406_s27 }
 0x95f   : > { %v17678_v7 = vpop.eup %17677  ;;  %17695 = vrcp.f32 %v4559_v21  ;;  %v20715_v34 = vmul.f32 %v17676_v57, %v20629_v14 }
 0x960   : > { %v17680_v49 = vpop.eup %17679  ;;  %17697 = vrcp.f32 %v4560_v9  ;;  %v20721_v54 = vmul.f32 %v17678_v7, %v20634_v30 }
 0x961   : > { %v17682_v48 = vpop.eup %17681  ;;  %v20718_v3 = vmul.f32 %v17680_v49, %v20638_v36 }
 0x962   : > { %v17684_v12 = vpop.eup %17683  ;;  %v20724_v28 = vmul.f32 %v17682_v48, %v20641_v43 }
 0x963   : > { %v17686_v14 = vpop.eup %17685  ;;  %v4561_v23 = vadd.f32 1.0, %v17684_v12  ;;  %v20732_v38 = vpack.i.bf16 %v20718_v3, %v20715_v34  ;;  %v5528_v31 = vpack.c.bf16 %v20718_v3, %v20715_v34 }
 0x964   : > { %v17688_v36 = vpop.eup %17687  ;;  %v4562_v58 = vadd.f32 1.0, %v17686_v14  ;;  %v20736_v30 = vpack.i.bf16 %v20724_v28, %v20721_v54  ;;  %v5529_v10 = vpack.c.bf16 %v20724_v28, %v20721_v54  ;;  %v17301_v28 = vld [vmem:[%s24308_s10 + $0x70] sm:$0xff]  }
 0x965   : > { %v17690_v43 = vpop.eup %17689  ;;  %17699 = vrcp.f32 %v4561_v23  ;;  %v4563_v63 = vadd.f32 1.0, %v17688_v36  ;;  %15966 = vrot.lane.b32.xlu1 %v20732_v38, %s24406_s27 }
 0x966   : > { %17701 = vrcp.f32 %v4562_v58  ;;  %v4564_v16 = vadd.f32 1.0, %v17690_v43  ;;  %15971 = vrot.lane.b32.xlu0 %v20736_v30, %s24406_s27 }
 0x967   : > { %v17692_v27 = vpop.eup %17691  ;;  %17703 = vrcp.f32 %v4563_v63 }
 0x968   : > { %v17694_v51 = vpop.eup %17693  ;;  %17705 = vrcp.f32 %v4564_v16  ;;  %v20747_v11 = vmul.f32 %v17692_v27, %v20653_v17 }
 0x969   : > { %v17696_v46 = vpop.eup %17695  ;;  %v20753_v19 = vmul.f32 %v17694_v51, %v20658_v35  ;;  %v17400_v51 = vld [vmem:[%s24313_s15 + $0x68] sm:$0xff]  }
 0x96a   : > { %v17698_v2 = vpop.eup %17697  ;;  %v20750_v60 = vmul.f32 %v17696_v46, %v20662_v32 }
 0x96b   : > { %v20756_v52 = vmul.f32 %v17698_v2, %v20666_v8 }
 0x96c   : > { %v20760_v6 = vpack.i.bf16 %v20750_v60, %v20747_v11  ;;  %v24731_v54 = vpack.c.bf16 %v20750_v60, %v20747_v11  ;;  %v17302_v11 = vld [vmem:[%s24308_s10 + $0x78] sm:$0xff]  }
 0x96d   : > { %v20764_v42 = vpack.i.bf16 %v20756_v52, %v20753_v19  ;;  %v5531_v32 = vpack.c.bf16 %v20756_v52, %v20753_v19 }
 0x96e   : > { %15976 = vrot.lane.b32.xlu1 %v20760_v6, %s24406_s27 }
 0x96f   : > { %v17700_v17 = vpop.eup %17699  ;;  %15981 = vrot.lane.b32.xlu0 %v20764_v42, %s24406_s27 }
 0x970   : > { %v17702_v35 = vpop.eup %17701  ;;  %v20775_v44 = vmul.f32 %v17700_v17, %v20676_v37 }
 0x971   : > { %v17704_v33 = vpop.eup %17703  ;;  %v20781_v57 = vmul.f32 %v17702_v35, %v20678_v0 }
 0x972   : > { %v17706_v47 = vpop.eup %17705  ;;  %v20778_v21 = vmul.f32 %v17704_v33, %v20684_v25 }
 0x973   : > { %v20784_v9 = vmul.f32 %v17706_v47, %v20686_v18 }
 0x974   : > { %v20788_v7 = vpack.i.bf16 %v20778_v21, %v20775_v44 }
 0x975   : > { %v20792_v49 = vpack.i.bf16 %v20784_v9, %v20781_v57  ;;  %v24732_v34 = vpack.c.bf16 %v20784_v9, %v20781_v57 }
 0x976   : > { %15986 = vrot.lane.b32.xlu1 %v20788_v7, %s24406_s27 }
 0x977   : > { %15991 = vrot.lane.b32.xlu0 %v20792_v49, %s24406_s27  ;;  %s24814_s27 = smov 15  }
 0x97a   : > { %15996 = vrot.lane.b32.xlu1 %v20704_v1, %s24420_s26 }
 0x97b   : > { %16001 = vrot.lane.b32.xlu0 %v20708_v53, %s24420_s26 }
 0x97e   : > { %16006 = vrot.lane.b32.xlu1 %v20732_v38, %s24420_s26 }
 0x97f   : > { %16011 = vrot.lane.b32.xlu0 %v20736_v30, %s24420_s26 }
 0x982   : > { %16016 = vrot.lane.b32.xlu1 %v20760_v6, %s24420_s26 }
 0x983   : > { %16021 = vrot.lane.b32.xlu0 %v20764_v42, %s24420_s26 }
 0x986   : > { %16026 = vrot.lane.b32.xlu1 %v20788_v7, %s24420_s26 }
 0x987   : > { %16031 = vrot.lane.b32.xlu0 %v20792_v49, %s24420_s26 }
 0x98a   : > { %16036 = vrot.lane.b32.xlu1 %v20704_v1, %s24404_s28 }
 0x98b   : > { %16041 = vrot.lane.b32.xlu0 %v20708_v53, %s24404_s28 }
 0x98e   : > { %16046 = vrot.lane.b32.xlu1 %v20732_v38, %s24404_s28 }
 0x98f   : > { %16051 = vrot.lane.b32.xlu0 %v20736_v30, %s24404_s28 }
 0x992   : > { %16056 = vrot.lane.b32.xlu1 %v20760_v6, %s24404_s28 }
 0x993   : > { %16061 = vrot.lane.b32.xlu0 %v20764_v42, %s24404_s28 }
 0x996   : > { %16066 = vrot.lane.b32.xlu1 %v20788_v7, %s24404_s28 }
 0x997   : > { %16071 = vrot.lane.b32.xlu0 %v20792_v49, %s24404_s28 }
 0x99a   : > { %16076 = vrot.lane.b32.xlu1 %v20704_v1, %s24638_s1 }
 0x99b   : > { %16081 = vrot.lane.b32.xlu0 %v20708_v53, %s24638_s1 }
 0x99e   : > { %16086 = vrot.lane.b32.xlu1 %v20732_v38, %s24638_s1 }
 0x99f   : > { %16091 = vrot.lane.b32.xlu0 %v20736_v30, %s24638_s1 }
 0x9a2   : > { %16096 = vrot.lane.b32.xlu1 %v20760_v6, %s24638_s1 }
 0x9a3   : > { %16101 = vrot.lane.b32.xlu0 %v20764_v42, %s24638_s1 }
 0x9a6   : > { %16106 = vrot.lane.b32.xlu1 %v20788_v7, %s24638_s1 }
 0x9a7   : > { %16111 = vrot.lane.b32.xlu0 %v20792_v49, %s24638_s1 }
 0x9aa   : > { %16116 = vrot.lane.b32.xlu1 %v20704_v1, %s24639_s21 }
 0x9ab   : > { %16121 = vrot.lane.b32.xlu0 %v20708_v53, %s24639_s21 }
 0x9ae   : > { %16126 = vrot.lane.b32.xlu1 %v20732_v38, %s24639_s21 }
 0x9af   : > { %16131 = vrot.lane.b32.xlu0 %v20736_v30, %s24639_s21 }
 0x9b2   : > { %16136 = vrot.lane.b32.xlu1 %v20760_v6, %s24639_s21 }
 0x9b3   : > { %16141 = vrot.lane.b32.xlu0 %v20764_v42, %s24639_s21 }
 0x9b6   : > { %16146 = vrot.lane.b32.xlu1 %v20788_v7, %s24639_s21 }
 0x9b7   : > { %16151 = vrot.lane.b32.xlu0 %v20792_v49, %s24639_s21 }
 0x9ba   : > { %16156 = vrot.lane.b32.xlu1 %v20704_v1, %s24640_s22 }
 0x9bb   : > { %16161 = vrot.lane.b32.xlu0 %v20708_v53, %s24640_s22 }
 0x9be   : > { %16166 = vrot.lane.b32.xlu1 %v20732_v38, %s24640_s22 }
 0x9bf   : > { %16171 = vrot.lane.b32.xlu0 %v20736_v30, %s24640_s22 }
 0x9c2   : > { %16176 = vrot.lane.b32.xlu1 %v20760_v6, %s24640_s22 }
 0x9c3   : > { %16181 = vrot.lane.b32.xlu0 %v20764_v42, %s24640_s22 }
 0x9c6   : > { %16186 = vrot.lane.b32.xlu1 %v20788_v7, %s24640_s22 }
 0x9c7   : > { %16191 = vrot.lane.b32.xlu0 %v20792_v49, %s24640_s22 }
 0x9ca   : > { %16196 = vrot.lane.b32.xlu1 %v20704_v1, %s24641_s23 }
 0x9cb   : > { %16201 = vrot.lane.b32.xlu0 %v20708_v53, %s24641_s23 }
 0x9ce   : > { %16206 = vrot.lane.b32.xlu1 %v20732_v38, %s24641_s23 }
 0x9cf   : > { %16211 = vrot.lane.b32.xlu0 %v20736_v30, %s24641_s23  ;;  %v15957_v25 = vpop.permute.xlu1 %15956 }
 0x9d0   : > { %v15962_v18 = vpop.permute.xlu0 %15961  ;;  %v15959_v48 = vunpack.i.h.bf16 %v15957_v25  ;;  %v15958_v12 = vunpack.i.l.bf16 %v15957_v25 }
 0x9d1   : > { %v15964_v14 = vunpack.i.h.bf16 %v15962_v18  ;;  %v15963_v23 = vunpack.i.l.bf16 %v15962_v18 }
 0x9d2   : > { %16216 = vrot.lane.b32.xlu1 %v20760_v6, %s24641_s23 }
 0x9d3   : > { %v4662_v36 = vsel %vm24642_vm6, %v15959_v48, %v15964_v14  ;;  %v4670_v58 = vsel %vm24643_vm7, %v15964_v14, %v15959_v48  ;;  %v4661_v43 = vsel %vm24644_vm8, %v15958_v12, %v15963_v23  ;;  %v4669_v63 = vsel %vm24645_vm13, %v15963_v23, %v15958_v12  ;;  %16221 = vrot.lane.b32.xlu0 %v20764_v42, %s24641_s23  ;;  %vm24648_vm7 = vmmov %vm24642_vm6 }
 0x9d4   : > { %v13119_v16 = vpack.c.bf16 %v4670_v58, %v4669_v63  ;;  %v13116_v27 = vpack.c.bf16 %v4662_v36, %v4661_v43  ;;  %vm24649_vm8 = vmmov %vm24642_vm6 }
 0x9d5   : > { %vm24650_vm13 = vmmov %vm24642_vm6 }
 0x9d6   : > { %16226 = vrot.lane.b32.xlu1 %v20788_v7, %s24641_s23  ;;  %13117 = vmatprep.subr.msk.bf16.mxu1 %vm19039_vm10, %v13116_v27 }
 0x9d7   : > { %16231 = vrot.lane.b32.xlu0 %v20792_v49, %s24641_s23  ;;  %13120 = vmatpush1.bf16.msk.msra.mxu1 %vm19048_vm11, %v13119_v16  ;;  %v15967_v46 = vpop.permute.xlu1 %15966 }
 0x9d8   : > { %v15972_v2 = vpop.permute.xlu0 %15971  ;;  %v15969_v17 = vunpack.i.h.bf16 %v15967_v46  ;;  %v15968_v35 = vunpack.i.l.bf16 %v15967_v46 }
 0x9d9   : > { %v15974_v33 = vunpack.i.h.bf16 %v15972_v2  ;;  %v15973_v47 = vunpack.i.l.bf16 %v15972_v2 }
 0x9da   : > { %16236 = vrot.lane.b32.xlu1 %v20704_v1, %s24647_s20 }
 0x9db   : > { %v4664_v25 = vsel %vm24642_vm6, %v15969_v17, %v15974_v33  ;;  %v4672_v18 = vsel %vm24648_vm7, %v15974_v33, %v15969_v17  ;;  %v4663_v48 = vsel %vm24649_vm8, %v15968_v35, %v15973_v47  ;;  %v4671_v12 = vsel %vm24650_vm13, %v15973_v47, %v15968_v35  ;;  %16241 = vrot.lane.b32.xlu0 %v20708_v53, %s24647_s20  ;;  %vm24651_vm7 = vmmov %vm24642_vm6  ;;  %v4622_v17 = vld [vmem:[%s24310_s12 + $0x8] sm:$0xff] }
 0x9dc   : > { %v13125_v14 = vpack.c.bf16 %v4672_v18, %v4671_v12  ;;  %v13122_v23 = vpack.c.bf16 %v4664_v25, %v4663_v48  ;;  %vm24652_vm8 = vmmov %vm24642_vm6  ;;  %v4623_v25 = vld [vmem:[%s24310_s12 + $0x10] sm:$0xff] }
 0x9dd   : > { %vm24653_vm13 = vmmov %vm24642_vm6 }
 0x9de   : > { %16246 = vrot.lane.b32.xlu1 %v20732_v38, %s24647_s20  ;;  %13123 = vmatprep.subr.msk.bf16.mxu1 %vm19039_vm10, %v13122_v23  ;;  %v4624_v23 = vld [vmem:[%s24310_s12 + $0x18] sm:$0xff] }
 0x9df   : > { %16251 = vrot.lane.b32.xlu0 %v20736_v30, %s24647_s20  ;;  %13126 = vmatpush1.bf16.msk.msra.mxu1 %vm19048_vm11, %v13125_v14 }
 0x9e0   : > { %v15977_v1 = vpop.permute.xlu1 %15976 }
 0x9e1   : > { %v15982_v36 = vpop.permute.xlu0 %15981  ;;  %v15979_v58 = vunpack.i.h.bf16 %v15977_v1  ;;  %v15978_v43 = vunpack.i.l.bf16 %v15977_v1 }
 0x9e2   : > { %v15984_v63 = vunpack.i.h.bf16 %v15982_v36  ;;  %v15983_v53 = vunpack.i.l.bf16 %v15982_v36  ;;  %16256 = vrot.lane.b32.xlu1 %v20760_v6, %s24647_s20  ;;  %v4621_v6 = vld [vmem:[%s24310_s12] sm:$0xff] }
 0x9e3   : > { %16261 = vrot.lane.b32.xlu0 %v20764_v42, %s24647_s20 }
 0x9e4   : > { %v4666_v38 = vsel %vm24642_vm6, %v15979_v58, %v15984_v63  ;;  %v4674_v30 = vsel %vm24651_vm7, %v15984_v63, %v15979_v58  ;;  %v4665_v16 = vsel %vm24652_vm8, %v15978_v43, %v15983_v53  ;;  %v4673_v27 = vsel %vm24653_vm13, %v15983_v53, %v15978_v43  ;;  %vm24654_vm7 = vmmov %vm24642_vm6  ;;  %v4625_v58 = vld [vmem:[%s24310_s12 + $0x20] sm:$0xff]  ;;  %v4626_v63 = vld [vmem:[%s24310_s12 + $0x28] sm:$0xff] }
 0x9e5   : > { %v13131_v46 = vpack.c.bf16 %v4674_v30, %v4673_v27  ;;  %v13128_v2 = vpack.c.bf16 %v4666_v38, %v4665_v16  ;;  %vm24655_vm8 = vmmov %vm24642_vm6  ;;  %v17283_v43 = vld [vmem:[%s24308_s10] sm:$0xff]   ;;  %v4627_v38 = vld [vmem:[%s24310_s12 + $0x30] sm:$0xff] }
 0x9e6   : > { %16266 = vrot.lane.b32.xlu1 %v20788_v7, %s24647_s20  ;;  %vm24656_vm13 = vmmov %vm24642_vm6  ;;  %v24657_v53 = vld [vmem:[#allocation2_spill] sm:$0xff]  ;;  %v24658_v30 = vld [vmem:[#allocation3_spill] sm:$0xff] }
 0x9e7   : > { %16271 = vrot.lane.b32.xlu0 %v20792_v49, %s24647_s20  ;;  %13129 = vmatprep.subr.msk.bf16.mxu1 %vm19039_vm10, %v13128_v2  ;;  %v4628_v16 = vld [vmem:[%s24310_s12 + $0x38] sm:$0xff]  ;;  %v24659_v27 = vld [vmem:[#allocation4_spill] sm:$0xff] }
 0x9e8   : > { %13132 = vmatpush1.bf16.msk.msra.mxu1 %vm19048_vm11, %v13131_v46  ;;  %v15987_v42 = vpop.permute.xlu1 %15986  ;;  %v17284_v46 = vld [vmem:[%s24308_s10 + $0x8] sm:$0xff]   ;;  %v24660_v2 = vld [vmem:[#allocation5_spill] sm:$0xff] }
 0x9e9   : > { %v15992_v35 = vpop.permute.xlu0 %15991  ;;  %v15989_v7 = vunpack.i.h.bf16 %v15987_v42  ;;  %v15988_v33 = vunpack.i.l.bf16 %v15987_v42  ;;  %v24662_v42 = vld [vmem:[#allocation7_spill] sm:$0xff] }
 0x9ea   : > { %v15994_v47 = vunpack.i.h.bf16 %v15992_v35  ;;  %v15993_v49 = vunpack.i.l.bf16 %v15992_v35  ;;  %6465 = vperm.xlu1 %15314, %v4621_v6   ;;  %v24661_v6 = vld [vmem:[#allocation6_spill] sm:$0xff] }
 0x9eb   : > { %6470 = vperm.xlu0 %15313, %v4622_v17  }
 0x9ec   : > { %v4668_v18 = vsel %vm24642_vm6, %v15989_v7, %v15994_v47  ;;  %v4676_v48 = vsel %vm24654_vm7, %v15994_v47, %v15989_v7  ;;  %v4667_v12 = vsel %vm24655_vm8, %v15988_v33, %v15993_v49  ;;  %v4675_v14 = vsel %vm24656_vm13, %v15993_v49, %v15988_v33  ;;  %v15997_v35 = vpop.permute.xlu1 %15996  ;;  %v24663_v7 = vld [vmem:[#allocation8_spill] sm:$0xff]  ;;  %v24664_v47 = vld [vmem:[#allocation9_spill] sm:$0xff]  ;;  %v24665_v49 = vld [vmem:[#allocation10_spill] sm:$0xff] }
 0x9ed   : > { %v13137_v1 = vpack.c.bf16 %v4676_v48, %v4675_v14  ;;  %v13134_v36 = vpack.c.bf16 %v4668_v18, %v4667_v12  ;;  %v16002_v17 = vpop.permute.xlu0 %16001  ;;  %v17285_v33 = vld [vmem:[%s24308_s10 + $0x10] sm:$0xff]   ;;  %v24666_v48 = vld [vmem:[#allocation11_spill] sm:$0xff]  ;;  %v17286_v14 = vld [vmem:[%s24308_s10 + $0x18] sm:$0xff]   ;;  %vm24670_vm6 = vcmp.lt.s32.totalorder %v18787_v22, 16 }
 0x9ee   : > { %6475 = vperm.xlu1 %15314, %v4623_v25   ;;  %v24667_v12 = vld [vmem:[#allocation12_spill] sm:$0xff]  ;;  %vm24671_vm7 = vmmov %vm24670_vm6 }
 0x9ef   : > { %6480 = vperm.xlu0 %15313, %v4624_v23   ;;  %13135 = vmatprep.subr.msk.bf16.mxu1 %vm19039_vm10, %v13134_v36  ;;  %v16004_v23 = vunpack.i.h.bf16 %v16002_v17  ;;  %v15999_v36 = vunpack.i.h.bf16 %v15997_v35  ;;  %vm24674_vm8 = vmmov %vm24670_vm6 }
 0x9f0   : > { %13138 = vmatpush1.bf16.msk.msra.mxu1 %vm19048_vm11, %v13137_v1  ;;  %v16007_v18 = vpop.permute.xlu1 %16006  ;;  %v16003_v1 = vunpack.i.l.bf16 %v16002_v17  ;;  %v24673_v17 = vld [vmem:[#allocation16_spill] sm:$0xff]  ;;  %vm24675_vm13 = vmmov %vm24670_vm6 }
 0x9f1   : > { %4838 = vmatprep.subr.bf16.mxu1 %v24657_v53  ;;  %v16012_v25 = vpop.permute.xlu0 %16011 }
 0x9f2   : > { %6485 = vperm.xlu1 %15314, %v4625_v58   ;;  %v15998_v58 = vunpack.i.l.bf16 %v15997_v35  ;;  %v4952_v35 = vsel %vm24674_vm8, %v16004_v23, %v15999_v36  ;;  %vm24681_vm8 = vmmov %vm24670_vm6 }
 0x9f3   : > { %6490 = vperm.xlu0 %15313, %v4626_v63   ;;  %13139 = vmatmul.mubr.msk.bf16.vlgmr.msra.gmra.mrb[40].mxu1 %vm24408_vm12, %v17283_v43  ;;  %v24668_v43 = vld [vmem:[#allocation13_spill] sm:$0xff] }
 0x9f4   : > { %4839 = vmatpush1.bf16.msra.mxu1 %v24658_v30  ;;  %4783 = vmatprep.mubr.bf16.mxu1 %v24541_v41  ;;  %v16017_v53 = vpop.permute.xlu1 %16016  ;;  %v16014_v30 = vunpack.i.h.bf16 %v16012_v25 }
 0x9f5   : > { %4840 = vmatprep.subr.bf16.mxu1 %v24659_v27  ;;  %v16022_v63 = vpop.permute.xlu0 %16021  ;;  %v16009_v27 = vunpack.i.h.bf16 %v16007_v18 }
 0x9f6   : > { %6495 = vperm.xlu1 %15314, %v4627_v38   ;;  %v24669_v38 = vld [vmem:[#allocation14_spill] sm:$0xff] }
 0x9f7   : > { %6500 = vperm.xlu0 %15313, %v4628_v16   ;;  %v16013_v16 = vunpack.i.l.bf16 %v16012_v25 }
 0x9f8   : > { %4841 = vmatpush1.bf16.msra.mxu1 %v24660_v2  ;;  %v4944_v2 = vsel %vm24670_vm6, %v15999_v36, %v16004_v23  ;;  %v16027_v25 = vpop.permute.xlu1 %16026  ;;  %v16018_v23 = vunpack.i.l.bf16 %v16017_v53  ;;  %v24677_v36 = vld [vmem:[#allocation17_spill] sm:$0xff] }
 0x9f9   : > { %4842 = vmatprep.subr.bf16.mxu1 %v24661_v6  ;;  %v4943_v6 = vsel %vm24671_vm7, %v15998_v58, %v16003_v1  ;;  %vm24680_vm7 = vmmov %vm24670_vm6  ;;  %v16029_v0 = vunpack.i.h.bf16 %v16027_v25  ;;  %v16028_v37 = vunpack.i.l.bf16 %v16027_v25 }
 0x9fb   : > { %13140 = vmatmul.mubr.msk.bf16.gmra.mrb[44].mxu1 %vm24408_vm12, %v17284_v46  ;;  %v16008_v46 = vunpack.i.l.bf16 %v16007_v18  ;;  %v13160_v18 = vpack.c.bf16 %v4944_v2, %v4943_v6 }
 0x9fc   : > { %4843 = vmatpush1.bf16.msra.mxu1 %v24662_v42  ;;  %4793 = vmatprep.mubr.bf16.mxu1 %v24541_v41  ;;  %v24672_v42 = vld [vmem:[#allocation15_spill] sm:$0xff] }
 0x9fd   : > { %4844 = vmatprep.subr.bf16.mxu1 %v24663_v7  ;;  %v4951_v7 = vsel %vm24675_vm13, %v16003_v1, %v15998_v58  ;;  %v4953_v2 = vsel %vm24680_vm7, %v16013_v16, %v16008_v46  ;;  %vm24682_vm13 = vmmov %vm24670_vm6 }
 0x9fe   : > { %v13163_v58 = vpack.c.bf16 %v4952_v35, %v4951_v7  ;;  %vm24685_vm7 = vmmov %vm24670_vm6 }
 0xa00   : > { %4845 = vmatpush1.bf16.msra.mxu1 %v24664_v47  ;;  %v4945_v47 = vsel %vm24670_vm6, %v16008_v46, %v16013_v16 }
 0xa01   : > { %4846 = vmatprep.subr.bf16.mxu1 %v24665_v49  ;;  %v16032_v49 = vpop.permute.xlu0 %16031 }
 0xa03   : > { %13141 = vmatmul.mubr.msk.bf16.gmra.mrb[48].mxu1 %vm24408_vm12, %v17285_v33 }
 0xa04   : > { %4847 = vmatpush1.bf16.msra.mxu1 %v24666_v48  ;;  %4803 = vmatprep.mubr.bf16.mxu1 %v24541_v41  ;;  %v17287_v48 = vld [vmem:[%s24309_s11] sm:$0xff]  }
 0xa05   : > { %4848 = vmatprep.subr.bf16.mxu1 %v24667_v12  ;;  %v16024_v12 = vunpack.i.h.bf16 %v16022_v63  ;;  %v16042_v35 = vpop.permute.xlu0 %16041 }
 0xa06   : > { %v16044_v25 = vunpack.i.h.bf16 %v16042_v35 }
 0xa08   : > { %4849 = vmatpush1.bf16.msra.mxu1 %v24668_v43  ;;  %v16019_v43 = vunpack.i.h.bf16 %v16017_v53 }
 0xa09   : > { %4850 = vmatprep.subr.bf16.mxu1 %v24669_v38 }
 0xa0b   : > { %13142 = vmatmul.mubr.msk.bf16.gmra.mrb[52].mxu1 %vm24408_vm12, %v17286_v14  ;;  %vm24676_vm12 = vmmov %vm24670_vm6  ;;  %v16023_v14 = vunpack.i.l.bf16 %v16022_v63  ;;  %v4948_v63 = vsel %vm24681_vm8, %v16019_v43, %v16024_v12 }
 0xa0c   : > { %4851 = vmatpush1.bf16.msra.mxu1 %v24672_v42  ;;  %4870 = vmatprep.mubr.bf16.mxu1 %v24541_v41  ;;  %v4946_v33 = vsel %vm24676_vm12, %v16009_v27, %v16014_v30  ;;  %vm24679_vm12 = vmmov %vm24670_vm6  ;;  %v16034_v42 = vunpack.i.h.bf16 %v16032_v49 }
 0xa0d   : > { %4852 = vmatprep.subr.bf16.mxu1 %v24673_v17  ;;  %v4954_v38 = vsel %vm24679_vm12, %v16014_v30, %v16009_v27  ;;  %v13166_v6 = vpack.c.bf16 %v4946_v33, %v4945_v47  ;;  %v16033_v17 = vunpack.i.l.bf16 %v16032_v49  ;;  %v4947_v53 = vsel %vm24682_vm13, %v16018_v23, %v16023_v14  ;;  %v16037_v30 = vpop.permute.xlu1 %16036  ;;  %vm24684_vm12 = vmmov %vm24670_vm6  ;;  %v17288_v49 = vld [vmem:[%s24309_s11 + $0x8] sm:$0xff]  }
 0xa0e   : > { %v13169_v16 = vpack.c.bf16 %v4954_v38, %v4953_v2  ;;  %v4956_v27 = vsel %vm24670_vm6, %v16024_v12, %v16019_v43  ;;  %v4955_v46 = vsel %vm24684_vm12, %v16023_v14, %v16018_v23  ;;  %v4950_v7 = vsel %vm24685_vm7, %v16029_v0, %v16034_v42  ;;  %vm24686_vm8 = vmmov %vm24670_vm6 }
 0xa0f   : > { %v4949_v33 = vsel %vm24686_vm8, %v16028_v37, %v16033_v17  ;;  %v13172_v47 = vpack.c.bf16 %v4948_v63, %v4947_v53  ;;  %v13175_v12 = vpack.c.bf16 %v4956_v27, %v4955_v46  ;;  %vm24687_vm13 = vmmov %vm24670_vm6  ;;  %v4957_v43 = vsel %vm24670_vm6, %v16033_v17, %v16028_v37  ;;  %v17289_v37 = vld [vmem:[%s24309_s11 + $0x10] sm:$0xff]   ;;  %v16052_v17 = vpop.permute.xlu0 %16051  ;;  %v17290_v53 = vld [vmem:[%s24309_s11 + $0x18] sm:$0xff]  }
 0xa10   : > { %4853 = vmatpush1.bf16.msra.mxu1 %v24677_v36  ;;  %v16039_v36 = vunpack.i.h.bf16 %v16037_v30  ;;  %v4958_v14 = vsel %vm24687_vm13, %v16034_v42, %v16029_v0  ;;  %v13178_v23 = vpack.c.bf16 %v4950_v7, %v4949_v33  ;;  %vm24688_vm12 = vcmp.lt.s32.totalorder %v18787_v22, 15  ;;  %v24690_v42 = vld [vmem:[#allocation25_spill] sm:$0xff] }
 0xa11   : > { %13161 = vmatprep.subr.msk.bf16.mxu1 %vm18838_vm3, %v13160_v18  ;;  %vm24689_vm7 = vmmov %vm24688_vm12  ;;  %v13181_v0 = vpack.c.bf16 %v4958_v14, %v4957_v43  ;;  %v16047_v63 = vpop.permute.xlu1 %16046  ;;  %v16053_v27 = vunpack.i.l.bf16 %v16052_v17 }
 0xa12   : > { %v5146_v38 = vsel %vm24688_vm12, %v16039_v36, %v16044_v25  ;;  %v16049_v46 = vunpack.i.h.bf16 %v16047_v63  ;;  %v16048_v7 = vunpack.i.l.bf16 %v16047_v63  ;;  %vm24691_vm8 = vmmov %vm24689_vm7 }
 0xa13   : > { %4871 = vmatmul.mubr.bf16.vlgmr.msra.gmra.mrb[40].mxu1 %v17287_v48  ;;  %v16043_v48 = vunpack.i.l.bf16 %v16042_v35  ;;  %v16062_v35 = vpop.permute.xlu0 %16061  ;;  %v5154_v33 = vsel %vm24691_vm8, %v16044_v25, %v16039_v36  ;;  %vm24692_vm13 = vmmov %vm24689_vm7 }
 0xa14   : > { %13164 = vmatpush1.bf16.msk.msra.mxu1 %vm18847_vm4, %v13163_v58  ;;  %4880 = vmatprep.mubr.bf16.mxu1 %v24541_v41  ;;  %v16038_v58 = vunpack.i.l.bf16 %v16037_v30  ;;  %vm24693_vm6 = vmmov %vm24689_vm7 }
 0xa15   : > { %13167 = vmatprep.subr.msk.bf16.mxu1 %vm18838_vm3, %v13166_v6  ;;  %v16057_v30 = vpop.permute.xlu1 %16056  ;;  %vm24694_vm12 = vmmov %vm24693_vm6 }
 0xa16   : > { %v5145_v2 = vsel %vm24689_vm7, %v16038_v58, %v16043_v48  ;;  %vm24695_vm7 = vmmov %vm24693_vm6 }
 0xa17   : > { %v13200_v6 = vpack.c.bf16 %v5146_v38, %v5145_v2  ;;  %v16072_v14 = vpop.permute.xlu0 %16071  ;;  %v16064_v38 = vunpack.i.h.bf16 %v16062_v35  ;;  %v16063_v2 = vunpack.i.l.bf16 %v16062_v35  ;;  %vm24696_vm8 = vmmov %vm24693_vm6 }
 0xa18   : > { %13170 = vmatpush1.bf16.msk.msra.mxu1 %vm18847_vm4, %v13169_v16  ;;  %v16054_v16 = vunpack.i.h.bf16 %v16052_v17  ;;  %v5155_v36 = vsel %vm24696_vm8, %v16053_v27, %v16048_v7  ;;  %v16073_v17 = vunpack.i.l.bf16 %v16072_v14  ;;  %vm24701_vm8 = vmmov %vm24693_vm6 }
 0xa19   : > { %13173 = vmatprep.subr.msk.bf16.mxu1 %vm18838_vm3, %v13172_v47  ;;  %v5153_v47 = vsel %vm24692_vm13, %v16043_v48, %v16038_v58  ;;  %v16067_v43 = vpop.permute.xlu1 %16066  ;;  %vm24697_vm13 = vcmask 523264  }
 0xa1a   : > { %v13203_v25 = vpack.c.bf16 %v5154_v33, %v5153_v47  ;;  %v5156_v48 = vsel %vm24695_vm7, %v16054_v16, %v16049_v46  ;;  %v16069_v63 = vunpack.i.h.bf16 %v16067_v43  ;;  %vm24700_vm7 = vmmov %vm24693_vm6 }
 0xa1b   : > { %4881 = vmatmul.mubr.bf16.gmra.mrb[44].mxu1 %v17288_v49  ;;  %v5148_v49 = vsel %vm24693_vm6, %v16049_v46, %v16054_v16  ;;  %v16082_v16 = vpop.permute.xlu0 %16081 }
 0xa1c   : > { %13176 = vmatpush1.bf16.msk.msra.mxu1 %vm18847_vm4, %v13175_v12  ;;  %4890 = vmatprep.mubr.bf16.mxu1 %v24541_v41  ;;  %v5147_v12 = vsel %vm24694_vm12, %v16048_v7, %v16053_v27  ;;  %vm24698_vm12 = vmmov %vm24693_vm6  ;;  %v13209_v27 = vpack.c.bf16 %v5156_v48, %v5155_v36 }
 0xa1d   : > { %13179 = vmatprep.subr.msk.bf16.mxu1 %vm18838_vm3, %v13178_v23  ;;  %v17291_v23 = vld [vmem:[%s24308_s10 + $0x20] sm:$0xff]   ;;  %v13206_v58 = vpack.c.bf16 %v5148_v49, %v5147_v12  ;;  %v16077_v46 = vpop.permute.xlu1 %16076 }
 0xa1e   : > { %v16078_v48 = vunpack.i.l.bf16 %v16077_v46 }
 0xa20   : > { %13182 = vmatpush1.bf16.msk.msra.mxu1 %vm18847_vm4, %v13181_v0  ;;  %v16059_v0 = vunpack.i.h.bf16 %v16057_v30 }
 0xa21   : > { %13201 = vmatprep.subr.msk.bf16.mxu1 %vm19207_vm1, %v13200_v6  ;;  %v16058_v6 = vunpack.i.l.bf16 %v16057_v30  ;;  %v24699_v30 = vld [vmem:[#allocation31_spill] sm:$0xff] }
 0xa22   : > { %v5150_v8 = vsel %vm24693_vm6, %v16059_v0, %v16064_v38  ;;  %v5158_v7 = vsel %vm24700_vm7, %v16064_v38, %v16059_v0  ;;  %vm24704_vm7 = vmmov %vm24693_vm6 }
 0xa23   : > { %4891 = vmatmul.mubr.bf16.gmra.mrb[48].mxu1 %v17289_v37  ;;  %v16074_v37 = vunpack.i.h.bf16 %v16072_v14  ;;  %v5149_v35 = vsel %vm24698_vm12, %v16058_v6, %v16063_v2  ;;  %v5157_v33 = vsel %vm24701_vm8, %v16063_v2, %v16058_v6  ;;  %v17292_v14 = vld [vmem:[%s24308_s10 + $0x28] sm:$0xff]   ;;  %vm24703_vm12 = vmmov %vm24693_vm6  ;;  %vm24705_vm8 = vcmask 523264  }
 0xa24   : > { %4900 = vmatprep.mubr.bf16.mxu1 %v24541_v41  ;;  %v13212_v12 = vpack.c.bf16 %v5150_v8, %v5149_v35  ;;  %v13215_v38 = vpack.c.bf16 %v5158_v7, %v5157_v33  ;;  %v17294_v35 = vld [vmem:[%s24308_s10 + $0x38] sm:$0xff]  }
 0xa25   : > { %v5160_v2 = vsel %vm24703_vm12, %v16074_v37, %v16069_v63  ;;  %vm24708_vm12 = vmmov %vm24705_vm8 }
 0xa2b   : > { %4901 = vmatmul.mubr.bf16.gmra.mrb[52].mxu1 %v17290_v53  ;;  %v16068_v53 = vunpack.i.l.bf16 %v16067_v43  ;;  %v16084_v43 = vunpack.i.h.bf16 %v16082_v16 }
 0xa2c   : > { %5056 = vmatprep.mubr.bf16.mxu1 %v24541_v41 }
 0xa2d   : > { %v5151_v49 = vsel %vm24693_vm6, %v16068_v53, %v16073_v17  ;;  %v5159_v8 = vsel %vm24704_vm7, %v16073_v17, %v16068_v53  ;;  %v17293_v17 = vld [vmem:[%s24308_s10 + $0x30] sm:$0xff]   ;;  %v16087_v53 = vpop.permute.xlu1 %16086  ;;  %vm24709_vm7 = vmmov %vm24705_vm8 }
 0xa2e   : > { %v16089_v33 = vunpack.i.h.bf16 %v16087_v53 }
 0xa33   : > { %13183 = vmatmul.mubr.msk.bf16.vlgmr.msra.gmra.mrb[40].mxu1 %vm24697_vm13, %v17291_v23  ;;  %vm24702_vm13 = vmmov %vm24693_vm6  ;;  %v16083_v23 = vunpack.i.l.bf16 %v16082_v16 }
 0xa34   : > { %13204 = vmatpush1.bf16.msk.msra.mxu1 %vm19218_vm2, %v13203_v25  ;;  %5066 = vmatprep.mubr.bf16.mxu1 %v24541_v41  ;;  %v5152_v47 = vsel %vm24702_vm13, %v16069_v63, %v16074_v37  ;;  %v16079_v25 = vunpack.i.h.bf16 %v16077_v46  ;;  %vm24706_vm13 = vcmp.lt.s32.totalorder %v18787_v22, 1  ;;  %v16092_v63 = vpop.permute.xlu0 %16091  ;;  %v16097_v46 = vpop.permute.xlu1 %16096 }
 0xa35   : > { %13207 = vmatprep.subr.msk.bf16.mxu1 %vm19207_vm1, %v13206_v58  ;;  %v13218_v0 = vpack.c.bf16 %v5152_v47, %v5151_v49  ;;  %vm24707_vm6 = vmmov %vm24706_vm13  ;;  %v13221_v58 = vpack.c.bf16 %v5160_v2, %v5159_v8  ;;  %v16093_v7 = vunpack.i.l.bf16 %v16092_v63  ;;  %v16088_v47 = vunpack.i.l.bf16 %v16087_v53 }
 0xa36   : > { %v5348_v6 = vsel %vm24706_vm13, %v16079_v25, %v16084_v43  ;;  %v5347_v36 = vsel %vm24707_vm6, %v16078_v48, %v16083_v23  ;;  %vm24711_vm13 = vmmov %vm24707_vm6  ;;  %v16099_v2 = vunpack.i.h.bf16 %v16097_v46  ;;  %v16098_v8 = vunpack.i.l.bf16 %v16097_v46 }
 0xa37   : > { %v13240_v37 = vpack.c.bf16 %v5348_v6, %v5347_v36 }
 0xa38   : > { %13210 = vmatpush1.bf16.msk.msra.mxu1 %vm19218_vm2, %v13209_v27  ;;  %v16102_v16 = vpop.permute.xlu0 %16101  ;;  %v16094_v27 = vunpack.i.h.bf16 %v16092_v63 }
 0xa39   : > { %13213 = vmatprep.subr.msk.bf16.mxu1 %vm19207_vm1, %v13212_v12  ;;  %v5355_v12 = vsel %vm24711_vm13, %v16083_v23, %v16078_v48  ;;  %vm24715_vm13 = vmmov %vm24707_vm6 }
 0xa3a   : > { %v5350_v6 = vsel %vm24707_vm6, %v16089_v33, %v16094_v27 }
 0xa3b   : > { %13184 = vmatmul.mubr.msk.bf16.gmra.mrb[44].mxu1 %vm24705_vm8, %v17292_v14  ;;  %vm24710_vm8 = vmmov %vm24707_vm6  ;;  %v16104_v14 = vunpack.i.h.bf16 %v16102_v16 }
 0xa3c   : > { %13216 = vmatpush1.bf16.msk.msra.mxu1 %vm19218_vm2, %v13215_v38  ;;  %5076 = vmatprep.mubr.bf16.mxu1 %v24541_v41  ;;  %v5356_v49 = vsel %vm24710_vm8, %v16084_v43, %v16079_v25  ;;  %v16103_v38 = vunpack.i.l.bf16 %v16102_v16  ;;  %vm24714_vm8 = vmmov %vm24707_vm6 }
 0xa3d   : > { %13219 = vmatprep.subr.msk.bf16.mxu1 %vm19207_vm1, %v13218_v0  ;;  %v17295_v0 = vld [vmem:[%s24308_s10 + $0x40] sm:$0xff]   ;;  %v13243_v43 = vpack.c.bf16 %v5356_v49, %v5355_v12  ;;  %v5357_v25 = vsel %vm24714_vm8, %v16093_v7, %v16088_v47  ;;  %v5352_v48 = vsel %vm24715_vm13, %v16099_v2, %v16104_v14  ;;  %vm24717_vm1 = vcmask 523264   ;;  %v17296_v49 = vld [vmem:[%s24308_s10 + $0x48] sm:$0xff]  }
 0xa40   : > { %13222 = vmatpush1.bf16.msk.msra.mxu1 %vm19218_vm2, %v13221_v58  ;;  %v16112_v58 = vpop.permute.xlu0 %16111  ;;  %vm24716_vm2 = vmmov %vm24707_vm6 }
 0xa41   : > { %13241 = vmatprep.subr.msk.bf16.mxu1 %vm19366_vm15, %v13240_v37  ;;  %v16107_v37 = vpop.permute.xlu1 %16106  ;;  %v16114_v53 = vunpack.i.h.bf16 %v16112_v58 }
 0xa42   : > { %v16109_v16 = vunpack.i.h.bf16 %v16107_v37  ;;  %v16108_v46 = vunpack.i.l.bf16 %v16107_v37  ;;  %v17299_v37 = vld [vmem:[%s24308_s10 + $0x60] sm:$0xff]  }
 0xa43   : > { %13185 = vmatmul.mubr.msk.bf16.gmra.mrb[48].mxu1 %vm24708_vm12, %v17293_v17  ;;  %vm24712_vm12 = vmmov %vm24707_vm6  ;;  %v5351_v17 = vsel %vm24716_vm2, %v16098_v8, %v16103_v38 }
 0xa44   : > { %5086 = vmatprep.mubr.bf16.mxu1 %v24541_v41  ;;  %v5349_v36 = vsel %vm24712_vm12, %v16088_v47, %v16093_v7  ;;  %vm24719_vm12 = vmmov %vm24716_vm2  ;;  %v13252_v47 = vpack.c.bf16 %v5352_v48, %v5351_v17  ;;  %v16122_v13 = vpop.permute.xlu0 %16121 }
 0xa45   : > { %v13246_v63 = vpack.c.bf16 %v5350_v6, %v5349_v36  ;;  %v5360_v7 = vsel %vm24719_vm12, %v16104_v14, %v16099_v2  ;;  %vm24724_vm12 = vcmask 523264   ;;  %v17297_v36 = vld [vmem:[%s24308_s10 + $0x50] sm:$0xff]   ;;  %v16117_v55 = vpop.permute.xlu1 %16116 }
 0xa46   : > { %v16118_v48 = vunpack.i.l.bf16 %v16117_v55 }
 0xa4b   : > { %13186 = vmatmul.mubr.msk.bf16.gmra.mrb[52].mxu1 %vm24709_vm7, %v17294_v35  ;;  %vm24713_vm7 = vmmov %vm24707_vm6  ;;  %v16113_v35 = vunpack.i.l.bf16 %v16112_v58  ;;  %vm24718_vm6 = vnez %v24554_v50  ;;  %v17298_v58 = vld [vmem:[%s24308_s10 + $0x58] sm:$0xff]  }
 0xa4c   : > { %5258 = vmatprep.mubr.bf16.mxu1 %v24541_v41  ;;  %v5358_v23 = vsel %vm24713_vm7, %v16094_v27, %v16089_v33  ;;  %v5359_v33 = vsel %vm24716_vm2, %v16103_v38, %v16098_v8 }
 0xa4d   : > { %v13249_v27 = vpack.c.bf16 %v5358_v23, %v5357_v25  ;;  %v13255_v14 = vpack.c.bf16 %v5360_v7, %v5359_v33  ;;  %v16123_v23 = vunpack.i.l.bf16 %v16122_v13  ;;  %v16119_v25 = vunpack.i.h.bf16 %v16117_v55 }
 0xa53   : > { %13223 = vmatmul.mubr.msk.bf16.vlgmr.msra.gmra.mrb[40].mxu1 %vm24717_vm1, %v17295_v0  ;;  %vm24720_vm1 = vmmov %vm24716_vm2 }
 0xa54   : > { %13244 = vmatpush1.bf16.msk.msra.mxu1 %vm24718_vm6, %v13243_v43  ;;  %5268 = vmatprep.mubr.bf16.mxu1 %v24541_v41  ;;  %v5354_v12 = vsel %vm24720_vm1, %v16109_v16, %v16114_v53  ;;  %vm24721_vm7 = vmmov %vm24720_vm1  ;;  %v16124_v43 = vunpack.i.h.bf16 %v16122_v13 }
 0xa55   : > { %13247 = vmatprep.subr.msk.bf16.mxu1 %vm19366_vm15, %v13246_v63  ;;  %v5353_v0 = vsel %vm24721_vm7, %v16108_v46, %v16113_v35  ;;  %vm24722_vm8 = vmmov %vm24720_vm1 }
 0xa56   : > { %v5362_v38 = vsel %vm24722_vm8, %v16114_v53, %v16109_v16  ;;  %vm24723_vm13 = vmmov %vm24720_vm1  ;;  %v13258_v8 = vpack.c.bf16 %v5354_v12, %v5353_v0  ;;  %v17303_v16 = vld [vmem:[%s24308_s10 + $0x80] sm:$0xff]  }
 0xa57   : > { %v5361_v2 = vsel %vm24723_vm13, %v16113_v35, %v16108_v46  ;;  %vm24725_vm2 = vmmov %vm24724_vm12  ;;  %vm24729_vm13 = vcmp.lt.s32.totalorder %v18787_v22, 127 }
 0xa58   : > { %13250 = vmatpush1.bf16.msk.msra.mxu1 %vm24718_vm6, %v13249_v27  ;;  %v13261_v6 = vpack.c.bf16 %v5362_v38, %v5361_v2  ;;  %vm24726_vm1 = vmmov %vm24725_vm2  ;;  %v5696_v5 = vsel %vm24729_vm13, %v16124_v43, %v16119_v25 }
 0xa59   : > { %13253 = vmatprep.subr.msk.bf16.mxu1 %vm19366_vm15, %v13252_v47  ;;  %vm24727_vm7 = vmmov %vm24726_vm1 }
 0xa5a   : > { %vm24728_vm8 = vmmov %vm24726_vm1 }
 0xa5b   : > { %13224 = vmatmul.mubr.msk.bf16.gmra.mrb[44].mxu1 %vm24724_vm12, %v17296_v49  ;;  %vm24730_vm12 = vmmov %vm24729_vm13 }
 0xa5c   : > { %13256 = vmatpush1.bf16.msk.msra.mxu1 %vm24718_vm6, %v13255_v14  ;;  %5278 = vmatprep.mubr.bf16.mxu1 %v24541_v41  ;;  %v5695_v62 = vsel %vm24730_vm12, %v16123_v23, %v16118_v48 }
 0xa5d   : > { %13259 = vmatprep.subr.msk.bf16.mxu1 %vm19366_vm15, %v13258_v8  ;;  %v13296_v3 = vpack.c.bf16 %v5696_v5, %v5695_v62 }
 0xa60   : > { %13262 = vmatpush1.bf16.msk.msra.mxu1 %vm24718_vm6, %v13261_v6  ;;  %vm24744_vm6 = vnez %v24583_v20 }
 0xa61   : > { %5566 = vmatprep.subr.bf16.mxu1 %v5527_v56  ;;  %v17300_v56 = vld [vmem:[%s24308_s10 + $0x68] sm:$0xff]  }
 0xa63   : > { %13225 = vmatmul.mubr.msk.bf16.gmra.mrb[48].mxu1 %vm24725_vm2, %v17297_v36  ;;  %vm24734_vm2 = vnez %v24577_v26 }
 0xa64   : > { %5288 = vmatprep.mubr.bf16.mxu1 %v24541_v41 }
 0xa6b   : > { %13226 = vmatmul.mubr.msk.bf16.gmra.mrb[52].mxu1 %vm24726_vm1, %v17298_v58 }
 0xa6c   : > { %5460 = vmatprep.mubr.bf16.mxu1 %v24541_v41 }
 0xa73   : > { %13263 = vmatmul.mubr.msk.bf16.vlgmr.msra.gmra.mrb[40].mxu1 %vm24727_vm7, %v17299_v37  ;;  %vm24735_vm7 = vmmov %vm24726_vm1 }
 0xa74   : > { %5567 = vmatpush1.bf16.msra.mxu1 %v5526_v61  ;;  %5470 = vmatprep.mubr.bf16.mxu1 %v24541_v41  ;;  %v24733_v61 = vpack.c.bf16 %v20778_v21, %v20775_v44 }
 0xa75   : > { %5568 = vmatprep.subr.bf16.mxu1 %v5529_v10  ;;  %v16132_v10 = vpop.permute.xlu0 %16131 }
 0xa76   : > { %v16134_v52 = vunpack.i.h.bf16 %v16132_v10 }
 0xa78   : > { %5569 = vmatpush1.bf16.msra.mxu1 %v5528_v31  ;;  %v16127_v31 = vpop.permute.xlu1 %16126 }
 0xa79   : > { %5570 = vmatprep.subr.bf16.mxu1 %v5531_v32  ;;  %v16142_v60 = vpop.permute.xlu0 %16141  ;;  %v16133_v32 = vunpack.i.l.bf16 %v16132_v10  ;;  %v16129_v57 = vunpack.i.h.bf16 %v16127_v31  ;;  %v16128_v44 = vunpack.i.l.bf16 %v16127_v31 }
 0xa7a   : > { %v16144_v46 = vunpack.i.h.bf16 %v16142_v60  ;;  %v16143_v27 = vunpack.i.l.bf16 %v16142_v60 }
 0xa7b   : > { %13264 = vmatmul.mubr.msk.bf16.gmra.mrb[44].mxu1 %vm24728_vm8, %v17300_v56  ;;  %vm24736_vm8 = vmmov %vm24730_vm12 }
 0xa7c   : > { %5571 = vmatpush1.bf16.msra.mxu1 %v24731_v54  ;;  %5480 = vmatprep.mubr.bf16.mxu1 %v24541_v41  ;;  %v16137_v19 = vpop.permute.xlu1 %16136  ;;  %v5688_v21 = vsel %vm24736_vm8, %v16119_v25, %v16124_v43  ;;  %vm24737_vm13 = vmmov %vm24736_vm8 }
 0xa7d   : > { %5572 = vmatprep.subr.bf16.mxu1 %v24732_v34  ;;  %v5687_v9 = vsel %vm24737_vm13, %v16118_v48, %v16123_v23  ;;  %vm24738_vm12 = vmmov %vm24736_vm8  ;;  %v16152_v53 = vpop.permute.xlu0 %16151  ;;  %v16139_v7 = vunpack.i.h.bf16 %v16137_v19  ;;  %v16138_v33 = vunpack.i.l.bf16 %v16137_v19  ;;  %vm24742_vm13 = vcmask 523264   ;;  %v17304_v48 = vld [vmem:[%s24308_s10 + $0x88] sm:$0xff]  }
 0xa7e   : > { %v5698_v17 = vsel %vm24738_vm12, %v16134_v52, %v16129_v57  ;;  %v13299_v47 = vpack.c.bf16 %v5688_v21, %v5687_v9  ;;  %v16154_v14 = vunpack.i.h.bf16 %v16152_v53  ;;  %v16153_v38 = vunpack.i.l.bf16 %v16152_v53 }
 0xa80   : > { %5573 = vmatpush1.bf16.msra.mxu1 %v24733_v61  ;;  %v16147_v35 = vpop.permute.xlu1 %16146 }
 0xa81   : > { %13297 = vmatprep.subr.msk.bf16.mxu1 %vm24734_vm2, %v13296_v3  ;;  %v16149_v2 = vunpack.i.h.bf16 %v16147_v35  ;;  %v16148_v8 = vunpack.i.l.bf16 %v16147_v35  ;;  %v16162_v58 = vpop.permute.xlu0 %16161 }
 0xa82   : > { %v16164_v5 = vunpack.i.h.bf16 %v16162_v58  ;;  %v16163_v62 = vunpack.i.l.bf16 %v16162_v58 }
 0xa83   : > { %13265 = vmatmul.mubr.msk.bf16.gmra.mrb[48].mxu1 %vm24726_vm1, %v17301_v28  ;;  %vm24739_vm1 = vmmov %vm24736_vm8 }
 0xa84   : > { %5490 = vmatprep.mubr.bf16.mxu1 %v24541_v41  ;;  %v5697_v63 = vsel %vm24739_vm1, %v16133_v32, %v16128_v44  ;;  %vm24741_vm8 = vmmov %vm24739_vm1  ;;  %v5699_v36 = vsel %vm24739_vm1, %v16143_v27, %v16138_v33  ;;  %v16157_v37 = vpop.permute.xlu1 %16156  ;;  %v5694_v28 = vsel %vm24739_vm1, %v16149_v2, %v16154_v14 }
 0xa85   : > { %v5689_v12 = vsel %vm24741_vm8, %v16128_v44, %v16133_v32  ;;  %v13302_v0 = vpack.c.bf16 %v5698_v17, %v5697_v63  ;;  %vm24743_vm12 = vmmov %vm24739_vm1  ;;  %v16159_v54 = vunpack.i.h.bf16 %v16157_v37  ;;  %v16158_v34 = vunpack.i.l.bf16 %v16157_v37  ;;  %v16172_v32 = vpop.permute.xlu0 %16171  ;;  %v17306_v44 = vld [vmem:[%s24308_s10 + $0x98] sm:$0xff]  }
 0xa86   : > { %v5700_v6 = vsel %vm24743_vm12, %v16144_v46, %v16139_v7  ;;  %vm24746_vm8 = vmmov %vm24739_vm1  ;;  %v16174_v17 = vunpack.i.h.bf16 %v16172_v32  ;;  %v16173_v63 = vunpack.i.l.bf16 %v16172_v32 }
 0xa87   : > { %v5691_v56 = vsel %vm24746_vm8, %v16138_v33, %v16143_v27  ;;  %vm24748_vm12 = vmmov %vm24739_vm1  ;;  %v13308_v25 = vpack.c.bf16 %v5700_v6, %v5699_v36  ;;  %vm24750_vm8 = vcmask 523264  }
 0xa88   : > { %v5701_v23 = vsel %vm24748_vm12, %v16153_v38, %v16148_v8 }
 0xa89   : > { %v16182_v21 = vpop.permute.xlu0 %16181 }
 0xa8b   : > { %13266 = vmatmul.mubr.msk.bf16.gmra.mrb[52].mxu1 %vm24735_vm7, %v17302_v11  ;;  %vm24740_vm7 = vmmov %vm24739_vm1 }
 0xa8c   : > { %5598 = vmatprep.mubr.bf16.mxu1 %v24541_v41  ;;  %v5690_v49 = vsel %vm24740_vm7, %v16129_v57, %v16134_v52  ;;  %vm24745_vm7 = vmmov %vm24739_vm1  ;;  %v17305_v52 = vld [vmem:[%s24308_s10 + $0x90] sm:$0xff]   ;;  %v16167_v57 = vpop.permute.xlu1 %16166 }
 0xa8d   : > { %v13305_v13 = vpack.c.bf16 %v5690_v49, %v5689_v12  ;;  %v5692_v55 = vsel %vm24745_vm7, %v16139_v7, %v16144_v46  ;;  %vm24749_vm7 = vmmov %vm24739_vm1  ;;  %v16169_v53 = vunpack.i.h.bf16 %v16167_v57  ;;  %v16168_v35 = vunpack.i.l.bf16 %v16167_v57  ;;  %v16192_v33 = vpop.permute.xlu0 %16191  ;;  %v17307_v49 = vld [vmem:[%s24308_s10 + $0xa0] sm:$0xff]  }
 0xa8e   : > { %v13311_v3 = vpack.c.bf16 %v5692_v55, %v5691_v56  ;;  %v5693_v61 = vsel %vm24749_vm7, %v16148_v8, %v16153_v38  ;;  %vm24754_vm7 = vmmov %vm24750_vm8  ;;  %v16184_v12 = vunpack.i.h.bf16 %v16182_v21  ;;  %v16194_v58 = vunpack.i.h.bf16 %v16192_v33 }
 0xa8f   : > { %v13317_v60 = vpack.c.bf16 %v5694_v28, %v5693_v61  ;;  %v16193_v37 = vunpack.i.l.bf16 %v16192_v33  ;;  %v17308_v28 = vld [vmem:[%s24308_s10 + $0xa8] sm:$0xff]  }
 0xa90   : > { %v16177_v9 = vpop.permute.xlu1 %16176 }
 0xa91   : > { %v16178_v38 = vunpack.i.l.bf16 %v16177_v9 }
 0xa93   : > { %13279 = vmatmul.mubr.msk.bf16.vlgmr.msra.gmra.mrb[40].mxu1 %vm24742_vm13, %v17303_v16  ;;  %vm24747_vm13 = vmmov %vm24739_vm1  ;;  %vm24753_vm1 = vnez %v24588_v24 }
 0xa94   : > { %13300 = vmatpush1.bf16.msk.msra.mxu1 %vm24744_vm6, %v13299_v47  ;;  %5608 = vmatprep.mubr.bf16.mxu1 %v24541_v41  ;;  %v5702_v43 = vsel %vm24747_vm13, %v16154_v14, %v16149_v2  ;;  %vm24751_vm13 = vcmp.lt.s32.totalorder %v18787_v22, 113  ;;  %v16187_v47 = vpop.permute.xlu1 %16186  ;;  %v16179_v14 = vunpack.i.h.bf16 %v16177_v9 }
 0xa95   : > { %13303 = vmatprep.subr.msk.bf16.mxu1 %vm24734_vm2, %v13302_v0  ;;  %v13314_v10 = vpack.c.bf16 %v5702_v43, %v5701_v23  ;;  %v5898_v31 = vsel %vm24751_vm13, %v16164_v5, %v16159_v54  ;;  %vm24752_vm12 = vmmov %vm24751_vm13  ;;  %v16183_v0 = vunpack.i.l.bf16 %v16182_v21  ;;  %v16188_v55 = vunpack.i.l.bf16 %v16187_v47  ;;  %v16202_v23 = vpop.permute.xlu0 %16201 }
 0xa96   : > { %v5897_v11 = vsel %vm24752_vm12, %v16163_v62, %v16158_v34  ;;  %vm24756_vm13 = vmmov %vm24752_vm12  ;;  %v5889_v46 = vsel %vm24752_vm12, %v16158_v34, %v16163_v62  ;;  %v16204_v61 = vunpack.i.h.bf16 %v16202_v23 }
 0xa97   : > { %v13336_v19 = vpack.c.bf16 %v5898_v31, %v5897_v11  ;;  %v5890_v16 = vsel %vm24756_vm13, %v16159_v54, %v16164_v5 }
 0xa98   : > { %13306 = vmatpush1.bf16.msk.msra.mxu1 %vm24744_vm6, %v13305_v13  ;;  %v13339_v2 = vpack.c.bf16 %v5890_v16, %v5889_v46  ;;  %v16189_v13 = vunpack.i.h.bf16 %v16187_v47 }
 0xa99   : > { %13309 = vmatprep.subr.msk.bf16.mxu1 %vm24734_vm2, %v13308_v25  ;;  %v16197_v25 = vpop.permute.xlu1 %16196 }
 0xa9a   : > { %v16199_v31 = vunpack.i.h.bf16 %v16197_v25  ;;  %v16198_v11 = vunpack.i.l.bf16 %v16197_v25 }
 0xa9b   : > { %13280 = vmatmul.mubr.msk.bf16.gmra.mrb[44].mxu1 %vm24750_vm8, %v17304_v48  ;;  %vm24755_vm8 = vmmov %vm24754_vm7 }
 0xa9c   : > { %13312 = vmatpush1.bf16.msk.msra.mxu1 %vm24744_vm6, %v13311_v3  ;;  %5618 = vmatprep.mubr.bf16.mxu1 %v24541_v41 }
 0xa9d   : > { %13315 = vmatprep.subr.msk.bf16.mxu1 %vm24734_vm2, %v13314_v10  ;;  %vm24763_vm2 = vnez %v24592_v59  ;;  %v16203_v10 = vunpack.i.l.bf16 %v16202_v23 }
 0xaa0   : > { %13318 = vmatpush1.bf16.msk.msra.mxu1 %vm24744_vm6, %v13317_v60 }
 0xaa1   : > { %13337 = vmatprep.subr.msk.bf16.mxu1 %vm24753_vm1, %v13336_v19 }
 0xaa3   : > { %13281 = vmatmul.mubr.msk.bf16.gmra.mrb[48].mxu1 %vm24754_vm7, %v17305_v52  ;;  %vm24757_vm7 = vmmov %vm24752_vm12 }
 0xaa4   : > { %5628 = vmatprep.mubr.bf16.mxu1 %v24541_v41  ;;  %v5900_v27 = vsel %vm24757_vm7, %v16174_v17, %v16169_v53  ;;  %vm24758_vm6 = vmmov %vm24757_vm7  ;;  %v5901_v43 = vsel %vm24757_vm7, %v16183_v0, %v16178_v38 }
 0xaa5   : > { %v5899_v7 = vsel %vm24758_vm6, %v16173_v63, %v16168_v35  ;;  %vm24760_vm13 = vmmov %vm24758_vm6 }
 0xaa6   : > { %v5891_v6 = vsel %vm24760_vm13, %v16168_v35, %v16173_v63  ;;  %v13342_v36 = vpack.c.bf16 %v5900_v27, %v5899_v7  ;;  %vm24762_vm12 = vmmov %vm24757_vm7  ;;  %v16212_v63 = vpop.permute.xlu0 %16211  ;;  %v17310_v35 = vld [vmem:[%s24308_s10 + $0xb8] sm:$0xff]  }
 0xaa7   : > { %v5902_v56 = vsel %vm24762_vm12, %v16184_v12, %v16179_v14  ;;  %vm24765_vm13 = vmmov %vm24757_vm7  ;;  %v16214_v27 = vunpack.i.h.bf16 %v16212_v63  ;;  %v16213_v7 = vunpack.i.l.bf16 %v16212_v63 }
 0xaa8   : > { %v5893_v62 = vsel %vm24765_vm13, %v16178_v38, %v16183_v0  ;;  %v13348_v3 = vpack.c.bf16 %v5902_v56, %v5901_v43  ;;  %vm24770_vm13 = vcmask 523264  }
 0xaaa   : > { %v16222_v16 = vpop.permute.xlu0 %16221 }
 0xaab   : > { %13282 = vmatmul.mubr.msk.bf16.gmra.mrb[52].mxu1 %vm24755_vm8, %v17306_v44  ;;  %vm24759_vm8 = vmmov %vm24758_vm6  ;;  %vm24761_vm6 = vcmask 523264  }
 0xaac   : > { %5800 = vmatprep.mubr.bf16.mxu1 %v24541_v41  ;;  %v5892_v8 = vsel %vm24759_vm8, %v16169_v53, %v16174_v17  ;;  %vm24764_vm8 = vmmov %vm24757_vm7  ;;  %v17309_v17 = vld [vmem:[%s24308_s10 + $0xb0] sm:$0xff]   ;;  %v16207_v53 = vpop.permute.xlu1 %16206 }
 0xaad   : > { %v13345_v48 = vpack.c.bf16 %v5892_v8, %v5891_v6  ;;  %v5894_v5 = vsel %vm24764_vm8, %v16179_v14, %v16184_v12  ;;  %v16209_v33 = vunpack.i.h.bf16 %v16207_v53  ;;  %v16208_v47 = vunpack.i.l.bf16 %v16207_v53  ;;  %v17311_v8 = vld [vmem:[%s24308_s10 + $0xc0] sm:$0xff]  }
 0xaae   : > { %v13351_v60 = vpack.c.bf16 %v5894_v5, %v5893_v62  ;;  %v16232_v38 = vpop.permute.xlu0 %16231  ;;  %v16224_v6 = vunpack.i.h.bf16 %v16222_v16 }
 0xaaf   : > { %v16234_v23 = vunpack.i.h.bf16 %v16232_v38  ;;  %v16233_v25 = vunpack.i.l.bf16 %v16232_v38 }
 0xab0   : > { %v16217_v46 = vpop.permute.xlu1 %16216 }
 0xab3   : > { %13319 = vmatmul.mubr.msk.bf16.vlgmr.msra.gmra.mrb[40].mxu1 %vm24761_vm6, %v17307_v49  ;;  %vm24766_vm6 = vmmov %vm24757_vm7 }
 0xab4   : > { %13340 = vmatpush1.bf16.msk.msra.mxu1 %vm24763_vm2, %v13339_v2  ;;  %5810 = vmatprep.mubr.bf16.mxu1 %v24541_v41  ;;  %v5904_v54 = vsel %vm24766_vm6, %v16194_v58, %v16189_v13  ;;  %vm24767_vm12 = vmmov %vm24766_vm6  ;;  %v16227_v2 = vpop.permute.xlu1 %16226 }
 0xab5   : > { %13343 = vmatprep.subr.msk.bf16.mxu1 %vm24753_vm1, %v13342_v36  ;;  %v5903_v34 = vsel %vm24767_vm12, %v16193_v37, %v16188_v55  ;;  %vm24768_vm7 = vmmov %vm24766_vm6  ;;  %v16223_v36 = vunpack.i.l.bf16 %v16222_v16  ;;  %v16228_v5 = vunpack.i.l.bf16 %v16227_v2 }
 0xab6   : > { %v5896_v19 = vsel %vm24768_vm7, %v16189_v13, %v16194_v58  ;;  %vm24769_vm8 = vmmov %vm24766_vm6  ;;  %v13354_v32 = vpack.c.bf16 %v5904_v54, %v5903_v34  ;;  %vm24771_vm6 = vcmp.lt.s32.totalorder %v18787_v22, 112  ;;  %v16219_v58 = vunpack.i.h.bf16 %v16217_v46  ;;  %v16242_v34 = vpop.permute.xlu0 %16241 }
 0xab7   : > { %v5895_v52 = vsel %vm24769_vm8, %v16188_v55, %v16193_v37  ;;  %v6100_v57 = vsel %vm24771_vm6, %v16204_v61, %v16199_v31  ;;  %vm24772_vm12 = vmmov %vm24771_vm6  ;;  %v6091_v12 = vsel %vm24771_vm6, %v16198_v11, %v16203_v10  ;;  %v16218_v37 = vunpack.i.l.bf16 %v16217_v46 }
 0xab8   : > { %13346 = vmatpush1.bf16.msk.msra.mxu1 %vm24763_vm2, %v13345_v48  ;;  %v6099_v44 = vsel %vm24772_vm12, %v16203_v10, %v16198_v11  ;;  %v13357_v21 = vpack.c.bf16 %v5896_v19, %v5895_v52  ;;  %vm24773_vm7 = vmmov %vm24770_vm13  ;;  %v16229_v48 = vunpack.i.h.bf16 %v16227_v2  ;;  %v17312_v19 = vld [vmem:[%s24308_s10 + $0xc8] sm:$0xff]   ;;  %v16244_v52 = vunpack.i.h.bf16 %v16242_v34 }
 0xab9   : > { %13349 = vmatprep.subr.msk.bf16.mxu1 %vm24753_vm1, %v13348_v3  ;;  %v13376_v9 = vpack.c.bf16 %v6100_v57, %v6099_v44  ;;  %vm24774_vm8 = vmmov %vm24773_vm7  ;;  %v16237_v3 = vpop.permute.xlu1 %16236 }
 0xaba   : > { %vm24776_vm12 = vmmov %vm24771_vm6  ;;  %v16239_v57 = vunpack.i.h.bf16 %v16237_v3  ;;  %v16238_v44 = vunpack.i.l.bf16 %v16237_v3 }
 0xabb   : > { %13320 = vmatmul.mubr.msk.bf16.gmra.mrb[44].mxu1 %vm24770_vm13, %v17308_v28  ;;  %vm24775_vm13 = vmmov %vm24771_vm6  ;;  %v6102_v0 = vsel %vm24776_vm12, %v16214_v27, %v16209_v33 }
 0xabc   : > { %13352 = vmatpush1.bf16.msk.msra.mxu1 %vm24763_vm2, %v13351_v60  ;;  %5820 = vmatprep.mubr.bf16.mxu1 %v24541_v41  ;;  %v6092_v49 = vsel %vm24775_vm13, %v16199_v31, %v16204_v61  ;;  %vm24779_vm13 = vmmov %vm24771_vm6 }
 0xabd   : > { %13355 = vmatprep.subr.msk.bf16.mxu1 %vm24753_vm1, %v13354_v32  ;;  %v13379_v13 = vpack.c.bf16 %v6092_v49, %v6091_v12  ;;  %v6093_v56 = vsel %vm24779_vm13, %v16208_v47, %v16213_v7  ;;  %v16243_v32 = vunpack.i.l.bf16 %v16242_v34 }
 0xac0   : > { %13358 = vmatpush1.bf16.msk.msra.mxu1 %vm24763_vm2, %v13357_v21 }
 0xac1   : > { %13377 = vmatprep.subr.msk.bf16.mxu1 %vm20044_vm14, %v13376_v9 }
 0xac3   : > { %13321 = vmatmul.mubr.msk.bf16.gmra.mrb[48].mxu1 %vm24773_vm7, %v17309_v17  ;;  %vm24777_vm7 = vmmov %vm24771_vm6 }
 0xac4   : > { %5830 = vmatprep.mubr.bf16.mxu1 %v24541_v41  ;;  %v6101_v14 = vsel %vm24777_vm7, %v16213_v7, %v16208_v47  ;;  %vm24781_vm12 = vmmov %vm24777_vm7  ;;  %v6103_v54 = vsel %vm24777_vm7, %v16223_v36, %v16218_v37  ;;  %v16252_v7 = vpop.permute.xlu0 %16251  ;;  %v17314_v47 = vld [vmem:[%s24308_s10 + $0xd8] sm:$0xff]  }
 0xac5   : > { %v13382_v43 = vpack.c.bf16 %v6102_v0, %v6101_v14  ;;  %v6104_v62 = vsel %vm24781_vm12, %v16224_v6, %v16219_v58  ;;  %vm24783_vm13 = vmmov %vm24777_vm7  ;;  %v16254_v0 = vunpack.i.h.bf16 %v16252_v7  ;;  %v16253_v14 = vunpack.i.l.bf16 %v16252_v7  ;;  %v17321_v7 = vld [vmem:[%s24308_s10 + $0x110] sm:$0xff]  }
 0xac6   : > { %v6095_v10 = vsel %vm24783_vm13, %v16218_v37, %v16223_v36  ;;  %v13388_v60 = vpack.c.bf16 %v6104_v62, %v6103_v54  ;;  %vm24788_vm13 = vcmask 523264  }
 0xac8   : > { %v16262_v49 = vpop.permute.xlu0 %16261 }
 0xac9   : > { %v16264_v36 = vunpack.i.h.bf16 %v16262_v49 }
 0xacb   : > { %13322 = vmatmul.mubr.msk.bf16.gmra.mrb[52].mxu1 %vm24774_vm8, %v17310_v35  ;;  %vm24778_vm8 = vmmov %vm24771_vm6  ;;  %vm24780_vm6 = vcmask 523264  }
 0xacc   : > { %6002 = vmatprep.mubr.bf16.mxu1 %v24541_v41  ;;  %v6094_v55 = vsel %vm24778_vm8, %v16209_v33, %v16214_v27  ;;  %vm24782_vm8 = vmmov %vm24777_vm7  ;;  %v17313_v27 = vld [vmem:[%s24308_s10 + $0xd0] sm:$0xff]   ;;  %v16247_v33 = vpop.permute.xlu1 %16246 }
 0xacd   : > { %v13385_v28 = vpack.c.bf16 %v6094_v55, %v6093_v56  ;;  %v6096_v61 = vsel %vm24782_vm8, %v16219_v58, %v16224_v6  ;;  %v16249_v38 = vunpack.i.h.bf16 %v16247_v33  ;;  %v16248_v2 = vunpack.i.l.bf16 %v16247_v33  ;;  %v17315_v55 = vld [vmem:[%s24308_s10 + $0xe0] sm:$0xff]   ;;  %v17322_v33 = vld [vmem:[%s24308_s10 + $0x118] sm:$0xff]  }
 0xace   : > { %v13391_v21 = vpack.c.bf16 %v6096_v61, %v6095_v10  ;;  %v16263_v58 = vunpack.i.l.bf16 %v16262_v49 }
 0xad0   : > { %v16257_v12 = vpop.permute.xlu1 %16256 }
 0xad1   : > { %v16259_v37 = vunpack.i.h.bf16 %v16257_v12 }
 0xad3   : > { %13359 = vmatmul.mubr.msk.bf16.vlgmr.msra.gmra.mrb[40].mxu1 %vm24780_vm6, %v17311_v8  ;;  %vm24784_vm6 = vmmov %vm24777_vm7 }
 0xad4   : > { %13380 = vmatpush1.bf16.msk.msra.mxu1 %vm20070_vm9, %v13379_v13  ;;  %6012 = vmatprep.mubr.bf16.mxu1 %v24541_v41  ;;  %v6106_v31 = vsel %vm24784_vm6, %v16234_v23, %v16229_v48  ;;  %vm24785_vm12 = vmmov %vm24784_vm6  ;;  %v16258_v13 = vunpack.i.l.bf16 %v16257_v12 }
 0xad5   : > { %13383 = vmatprep.subr.msk.bf16.mxu1 %vm20044_vm14, %v13382_v43  ;;  %v6105_v11 = vsel %vm24785_vm12, %v16233_v25, %v16228_v5  ;;  %vm24786_vm7 = vmmov %vm24784_vm6 }
 0xad6   : > { %v6098_v9 = vsel %vm24786_vm7, %v16229_v48, %v16234_v23  ;;  %vm24787_vm8 = vmmov %vm24784_vm6  ;;  %v13394_v63 = vpack.c.bf16 %v6106_v31, %v6105_v11  ;;  %vm24789_vm6 = vcmp.lt.s32.totalorder %v18787_v22, 111  ;;  %v16272_v23 = vpop.permute.xlu0 %16271 }
 0xad7   : > { %v6097_v17 = vsel %vm24787_vm8, %v16228_v5, %v16233_v25  ;;  %v6302_v53 = vsel %vm24789_vm6, %v16244_v52, %v16239_v57  ;;  %vm24790_vm12 = vmmov %vm24789_vm6  ;;  %v6293_v6 = vsel %vm24789_vm6, %v16238_v44, %v16243_v32  ;;  %v16267_v25 = vpop.permute.xlu1 %16266  ;;  %v6306_v54 = vsel %vm24789_vm6, %v16264_v36, %v16259_v37 }
 0xad8   : > { %13386 = vmatpush1.bf16.msk.msra.mxu1 %vm20070_vm9, %v13385_v28  ;;  %v6301_v35 = vsel %vm24790_vm12, %v16243_v32, %v16238_v44  ;;  %v13397_v16 = vpack.c.bf16 %v6098_v9, %v6097_v17  ;;  %vm24791_vm7 = vmmov %vm24788_vm13  ;;  %v16274_v28 = vunpack.i.h.bf16 %v16272_v23  ;;  %v16273_v61 = vunpack.i.l.bf16 %v16272_v23  ;;  %v17316_v32 = vld [vmem:[%s24308_s10 + $0xe8] sm:$0xff]  }
 0xad9   : > { %13389 = vmatprep.subr.msk.bf16.mxu1 %vm20044_vm14, %v13388_v60  ;;  %v13416_v46 = vpack.c.bf16 %v6302_v53, %v6301_v35  ;;  %vm24792_vm8 = vmmov %vm24791_vm7  ;;  %v16269_v10 = vunpack.i.h.bf16 %v16267_v25  ;;  %v16268_v31 = vunpack.i.l.bf16 %v16267_v25  ;;  %v17317_v35 = vld [vmem:[%s24308_s10 + $0xf0] sm:$0xff]  }
 0xada   : > { %vm24794_vm12 = vmmov %vm24789_vm6 }
 0xadb   : > { %13360 = vmatmul.mubr.msk.bf16.gmra.mrb[44].mxu1 %vm24788_vm13, %v17312_v19  ;;  %vm24793_vm13 = vmmov %vm24789_vm6  ;;  %v6304_v56 = vsel %vm24794_vm12, %v16254_v0, %v16249_v38  ;;  %v6466_v49 = vpop.permute.xlu1 %6465 }
 0xadc   : > { %13392 = vmatpush1.bf16.msk.msra.mxu1 %vm20070_vm9, %v13391_v21  ;;  %6022 = vmatprep.mubr.bf16.mxu1 %v24541_v41  ;;  %v6294_v8 = vsel %vm24793_vm13, %v16239_v57, %v16244_v52  ;;  %vm24797_vm13 = vmmov %vm24789_vm6 }
 0xadd   : > { %13395 = vmatprep.subr.msk.bf16.mxu1 %vm20044_vm14, %v13394_v63  ;;  %v13419_v48 = vpack.c.bf16 %v6294_v8, %v6293_v6  ;;  %v6295_v62 = vsel %vm24797_vm13, %v16248_v2, %v16253_v14  ;;  %vm24799_vm14 = vcmask 523264   ;;  %vm24800_vm12 = vmmov %vm24789_vm6 }
 0xade   : > { %v6298_v60 = vsel %vm24800_vm12, %v16259_v37, %v16264_v36  ;;  %vm24805_vm13 = vmmov %vm24789_vm6 }
 0xadf   : > { %v6299_v17 = vsel %vm24805_vm13, %v16268_v31, %v16273_v61 }
 0xae0   : > { %13398 = vmatpush1.bf16.msk.msra.mxu1 %vm20070_vm9, %v13397_v16  ;;  %vm24798_vm9 = vmmov %vm24789_vm6  ;;  %v17318_v16 = vld [vmem:[%s24308_s10 + $0xf8] sm:$0xff]  }
 0xae1   : > { %13417 = vmatprep.subr.msk.bf16.mxu1 %vm20220_vm0, %v13416_v46  ;;  %v6305_v34 = vsel %vm24798_vm9, %v16263_v58, %v16258_v13  ;;  %vm24801_vm9 = vmmov %vm24789_vm6  ;;  %v17319_v46 = vld [vmem:[%s24308_s10 + $0x100] sm:$0xff]  }
 0xae2   : > { %v6297_v19 = vsel %vm24801_vm9, %v16258_v13, %v16263_v58  ;;  %v13428_v52 = vpack.c.bf16 %v6306_v54, %v6305_v34 }
 0xae3   : > { %13361 = vmatmul.mubr.msk.bf16.gmra.mrb[48].mxu1 %vm24791_vm7, %v17313_v27  ;;  %vm24795_vm7 = vmmov %vm24789_vm6  ;;  %v13431_v21 = vpack.c.bf16 %v6298_v60, %v6297_v19  ;;  %v17320_v27 = vld [vmem:[%s24308_s10 + $0x108] sm:$0xff]  }
 0xae4   : > { %6032 = vmatprep.mubr.bf16.mxu1 %v24541_v41  ;;  %v6303_v43 = vsel %vm24795_vm7, %v16253_v14, %v16248_v2  ;;  %vm24803_vm7 = vmmov %vm24789_vm6 }
 0xae5   : > { %v13422_v3 = vpack.c.bf16 %v6304_v56, %v6303_v43  ;;  %v6307_v44 = vsel %vm24803_vm7, %v16273_v61, %v16268_v31 }
 0xaeb   : > { %13362 = vmatmul.mubr.msk.bf16.gmra.mrb[52].mxu1 %vm24792_vm8, %v17314_v47  ;;  %vm24796_vm8 = vmmov %vm24789_vm6 }
 0xaec   : > { %6204 = vmatprep.mubr.bf16.mxu1 %v24541_v41  ;;  %v6296_v5 = vsel %vm24796_vm8, %v16249_v38, %v16254_v0  ;;  %vm24804_vm8 = vmmov %vm24789_vm6  ;;  %v6471_v0 = vpop.permute.xlu0 %6470 }
 0xaed   : > { %v13425_v11 = vpack.c.bf16 %v6296_v5, %v6295_v62  ;;  %v6300_v9 = vsel %vm24804_vm8, %v16269_v10, %v16274_v28 }
 0xaee   : > { %v13437_v53 = vpack.c.bf16 %v6300_v9, %v6299_v17 }
 0xaf0   : > { %v6481_v25 = vpop.permute.xlu0 %6480 }
 0xaf3   : > { %13399 = vmatmul.mubr.msk.bf16.vlgmr.msra.gmra.mrb[40].mxu1 %vm24799_vm14, %v17315_v55  ;;  %vm24802_vm14 = vmmov %vm24789_vm6  ;;  %vm24806_vm6 = vcmask 523264   ;;  %v6476_v55 = vpop.permute.xlu1 %6475 }
 0xaf4   : > { %13420 = vmatpush1.bf16.msk.msra.mxu1 %vm20247_vm5, %v13419_v48  ;;  %6214 = vmatprep.mubr.bf16.mxu1 %v24541_v41  ;;  %v6308_v57 = vsel %vm24802_vm14, %v16274_v28, %v16269_v10  ;;  %vm24807_vm12 = vmmov %vm24806_vm6 }
 0xaf5   : > { %13423 = vmatprep.subr.msk.bf16.mxu1 %vm20220_vm0, %v13422_v3  ;;  %v13434_v63 = vpack.c.bf16 %v6308_v57, %v6307_v44  ;;  %vm24808_vm9 = vmmov %vm24806_vm6 }
 0xaf6   : > { %vm24809_vm14 = vmmov %vm24806_vm6 }
 0xaf7   : > { %vm24810_vm7 = vmmov %vm24806_vm6  ;;  %v6486_v31 = vpop.permute.xlu1 %6485 }
 0xaf8   : > { %13426 = vmatpush1.bf16.msk.msra.mxu1 %vm20247_vm5, %v13425_v11  ;;  %vm24811_vm8 = vmmov %vm24806_vm6 }
 0xaf9   : > { %13429 = vmatprep.subr.msk.bf16.mxu1 %vm20220_vm0, %v13428_v52  ;;  %vm24812_vm13 = vmmov %vm24806_vm6  ;;  %v6491_v52 = vpop.permute.xlu0 %6490 }
 0xafb   : > { %13400 = vmatmul.mubr.msk.bf16.gmra.mrb[44].mxu1 %vm24806_vm6, %v17316_v32  ;;  %vm24815_vm6 = vcmp.lt.s32.totalorder %v18787_v22, 16 }
 0xafc   : > { %13432 = vmatpush1.bf16.msk.msra.mxu1 %vm20247_vm5, %v13431_v21  ;;  %6224 = vmatprep.mubr.bf16.mxu1 %v24541_v41 }
 0xafd   : > { %13435 = vmatprep.subr.msk.bf16.mxu1 %vm20220_vm0, %v13434_v63 }
 0xb00   : > { %13438 = vmatpush1.bf16.msk.msra.mxu1 %vm20247_vm5, %v13437_v53 }
 0xb03   : > { %13401 = vmatmul.mubr.msk.bf16.gmra.mrb[48].mxu1 %vm24807_vm12, %v17317_v35  ;;  %vm24816_vm12 = vmmov %vm24815_vm6 }
 0xb04   : > { %6234 = vmatprep.mubr.bf16.mxu1 %v24541_v41 }
 0xb0b   : > { %13402 = vmatmul.mubr.msk.bf16.gmra.mrb[52].mxu1 %vm24808_vm9, %v17318_v16  ;;  %v6496_v16 = vpop.permute.xlu1 %6495  ;;  %vm24817_vm9 = vmmov %vm24815_vm6 }
 0xb0c   : > { %6406 = vmatprep.mubr.bf16.mxu1 %v24541_v41 }
 0xb13   : > { %13439 = vmatmul.mubr.msk.bf16.vlgmr.msra.gmra.mrb[40].mxu1 %vm24809_vm14, %v17319_v46  ;;  %vm24818_vm14 = vmmov %vm24815_vm6 }
 0xb14   : > { %6416 = vmatprep.mubr.bf16.mxu1 %v24541_v41 }
 0xb1b   : > { %13440 = vmatmul.mubr.msk.bf16.gmra.mrb[44].mxu1 %vm24810_vm7, %v17320_v27  ;;  %vm24819_vm7 = vmmov %vm24815_vm6 }
 0xb1c   : > { %6426 = vmatprep.mubr.bf16.mxu1 %v24541_v41 }
 0xb23   : > { %13441 = vmatmul.mubr.msk.bf16.gmra.mrb[48].mxu1 %vm24811_vm8, %v17321_v7  ;;  %vm24820_vm8 = vmmov %vm24815_vm6 }
 0xb24   : > { %6436 = vmatprep.mubr.bf16.mxu1 %v24541_v41 }
 0xb2b   : > { %13442 = vmatmul.mubr.msk.bf16.gmra.mrb[52].mxu1 %vm24812_vm13, %v17322_v33  ;;  %v6501_v33 = vpop.permute.xlu0 %6500  ;;  %vm24821_vm13 = vmmov %vm24815_vm6 }
 0xb2c   : > { %9713 = vmatprep.mubr.bf16.mxu1 %v24541_v41 }
 0xbe6   : > { %v6408_v47 = vpop.f32.mrb[40].mxu1 }
 0xbe7   : > { %v6410_v12 = vpop.f32.mrb[41].mxu1  ;;  %v21558_v38 = vadd.f32 %v6466_v49, %v6408_v47 }
 0xbe8   : > { %v6412_v14 = vpop.f32.mrb[42].mxu1  ;;  %v21562_v6 = vadd.f32 %v6466_v49, %v6410_v12 }
 0xbe9   : > { %v21560_v2 = vadd.f32 %v6471_v0, %v6412_v14  ;;  %v6414_v8 = vpop.f32.mrb[43].mxu1 }
 0xbea   : > { %v21564_v36 = vadd.f32 %v6471_v0, %v6414_v8 }
 0xbeb   : > { %v21568_v58 = vpack.i.bf16 %v21560_v2, %v21558_v38  ;;  %v7679_v23 = vpack.c.bf16 %v21560_v2, %v21558_v38 }
 0xbec   : > { %v21572_v37 = vpack.i.bf16 %v21564_v36, %v21562_v6  ;;  %v7680_v43 = vpack.c.bf16 %v21564_v36, %v21562_v6  ;;  %v17344_v6 = vld [vmem:[%s24311_s13 + $0xa8] sm:$0xff]   ;;  %v17345_v36 = vld [vmem:[%s24311_s13 + $0xb0] sm:$0xff]  }
 0xbed   : > { %16276 = vrot.lane.b32.xlu1 %v21568_v58, %s24420_s26 }
 0xbee   : > { %16281 = vrot.lane.b32.xlu0 %v21572_v37, %s24420_s26  ;;  %v6418_v13 = vpop.f32.mrb[44].mxu1 }
 0xbef   : > { %v6420_v56 = vpop.f32.mrb[45].mxu1  ;;  %v21582_v5 = vadd.f32 %v6476_v55, %v6418_v13 }
 0xbf0   : > { %v6422_v48 = vpop.f32.mrb[46].mxu1  ;;  %v21586_v34 = vadd.f32 %v6476_v55, %v6420_v56 }
 0xbf1   : > { %v21584_v62 = vadd.f32 %v6481_v25, %v6422_v48  ;;  %v6424_v54 = vpop.f32.mrb[47].mxu1 }
 0xbf2   : > { %v21588_v3 = vadd.f32 %v6481_v25, %v6424_v54 }
 0xbf3   : > { %v21592_v28 = vpack.i.bf16 %v21584_v62, %v21582_v5  ;;  %v7681_v19 = vpack.c.bf16 %v21584_v62, %v21582_v5 }
 0xbf4   : > { %v21596_v61 = vpack.i.bf16 %v21588_v3, %v21586_v34  ;;  %v7682_v60 = vpack.c.bf16 %v21588_v3, %v21586_v34  ;;  %v17349_v3 = vld [vmem:[%s24311_s13 + $0xd0] sm:$0xff]  }
 0xbf5   : > { %16286 = vrot.lane.b32.xlu1 %v21592_v28, %s24420_s26 }
 0xbf6   : > { %16291 = vrot.lane.b32.xlu0 %v21596_v61, %s24420_s26  ;;  %v6428_v10 = vpop.f32.mrb[48].mxu1 }
 0xbf7   : > { %v6430_v11 = vpop.f32.mrb[49].mxu1  ;;  %v21606_v57 = vadd.f32 %v6486_v31, %v6428_v10 }
 0xbf8   : > { %v6432_v32 = vpop.f32.mrb[50].mxu1  ;;  %v21610_v9 = vadd.f32 %v6486_v31, %v6430_v11 }
 0xbf9   : > { %v21608_v44 = vadd.f32 %v6491_v52, %v6432_v32  ;;  %v6434_v21 = vpop.f32.mrb[51].mxu1 }
 0xbfa   : > { %v21612_v17 = vadd.f32 %v6491_v52, %v6434_v21 }
 0xbfb   : > { %v21616_v63 = vpack.i.bf16 %v21608_v44, %v21606_v57  ;;  %v24903_v34 = vpack.c.bf16 %v21608_v44, %v21606_v57  ;;  %v17351_v57 = vld [vmem:[%s24311_s13 + $0xe0] sm:$0xff]   ;;  %v17352_v44 = vld [vmem:[%s24311_s13 + $0xe8] sm:$0xff]  }
 0xbfc   : > { %v21620_v53 = vpack.i.bf16 %v21612_v17, %v21610_v9  ;;  %v24899_v38 = vpack.c.bf16 %v21612_v17, %v21610_v9  ;;  %v17353_v9 = vld [vmem:[%s24311_s13 + $0xf0] sm:$0xff]  }
 0xbfd   : > { %16296 = vrot.lane.b32.xlu1 %v21616_v63, %s24420_s26 }
 0xbfe   : > { %16301 = vrot.lane.b32.xlu0 %v21620_v53, %s24420_s26  ;;  %v6438_v35 = vpop.f32.mrb[52].mxu1 }
 0xbff   : > { %v6440_v46 = vpop.f32.mrb[53].mxu1  ;;  %v21630_v49 = vadd.f32 %v6496_v16, %v6438_v35 }
 0xc00   : > { %v6442_v47 = vpop.f32.mrb[54].mxu1  ;;  %v21634_v14 = vadd.f32 %v6496_v16, %v6440_v46 }
 0xc01   : > { %v21632_v12 = vadd.f32 %v6501_v33, %v6442_v47  ;;  %v6444_v0 = vpop.f32.mrb[55].mxu1 }
 0xc02   : > { %v21636_v8 = vadd.f32 %v6501_v33, %v6444_v0 }
 0xc03   : > { %v21640_v13 = vpack.i.bf16 %v21632_v12, %v21630_v49 }
 0xc04   : > { %v21644_v55 = vpack.i.bf16 %v21636_v8, %v21634_v14  ;;  %v24904_v5 = vpack.c.bf16 %v21636_v8, %v21634_v14 }
 0xc05   : > { %16306 = vrot.lane.b32.xlu1 %v21640_v13, %s24420_s26 }
 0xc06   : > { %16311 = vrot.lane.b32.xlu0 %v21644_v55, %s24420_s26  ;;  %s25008_s26 = smov 16  }
 0xc09   : > { %16316 = vrot.lane.b32.xlu1 %v21568_v58, %s24813_s0 }
 0xc0a   : > { %16321 = vrot.lane.b32.xlu0 %v21572_v37, %s24813_s0 }
 0xc0d   : > { %16326 = vrot.lane.b32.xlu1 %v21592_v28, %s24813_s0 }
 0xc0e   : > { %16331 = vrot.lane.b32.xlu0 %v21596_v61, %s24813_s0 }
 0xc11   : > { %16336 = vrot.lane.b32.xlu1 %v21616_v63, %s24813_s0 }
 0xc12   : > { %16341 = vrot.lane.b32.xlu0 %v21620_v53, %s24813_s0 }
 0xc15   : > { %16346 = vrot.lane.b32.xlu1 %v21640_v13, %s24813_s0 }
 0xc16   : > { %16351 = vrot.lane.b32.xlu0 %v21644_v55, %s24813_s0 }
 0xc19   : > { %16356 = vrot.lane.b32.xlu1 %v21568_v58, %s24814_s27 }
 0xc1a   : > { %16361 = vrot.lane.b32.xlu0 %v21572_v37, %s24814_s27 }
 0xc1d   : > { %16366 = vrot.lane.b32.xlu1 %v21592_v28, %s24814_s27 }
 0xc1e   : > { %16371 = vrot.lane.b32.xlu0 %v21596_v61, %s24814_s27 }
 0xc21   : > { %16376 = vrot.lane.b32.xlu1 %v21616_v63, %s24814_s27 }
 0xc22   : > { %16381 = vrot.lane.b32.xlu0 %v21620_v53, %s24814_s27 }
 0xc25   : > { %16386 = vrot.lane.b32.xlu1 %v21640_v13, %s24814_s27 }
 0xc26   : > { %16391 = vrot.lane.b32.xlu0 %v21644_v55, %s24814_s27 }
 0xc29   : > { %16396 = vrot.lane.b32.xlu1 %v21568_v58, %s24638_s1 }
 0xc2a   : > { %16401 = vrot.lane.b32.xlu0 %v21572_v37, %s24638_s1 }
 0xc2d   : > { %16406 = vrot.lane.b32.xlu1 %v21592_v28, %s24638_s1 }
 0xc2e   : > { %16411 = vrot.lane.b32.xlu0 %v21596_v61, %s24638_s1 }
 0xc31   : > { %16416 = vrot.lane.b32.xlu1 %v21616_v63, %s24638_s1 }
 0xc32   : > { %16421 = vrot.lane.b32.xlu0 %v21620_v53, %s24638_s1 }
 0xc35   : > { %16426 = vrot.lane.b32.xlu1 %v21640_v13, %s24638_s1 }
 0xc36   : > { %16431 = vrot.lane.b32.xlu0 %v21644_v55, %s24638_s1 }
 0xc39   : > { %16436 = vrot.lane.b32.xlu1 %v21568_v58, %s24639_s21 }
 0xc3a   : > { %16441 = vrot.lane.b32.xlu0 %v21572_v37, %s24639_s21 }
 0xc3d   : > { %16446 = vrot.lane.b32.xlu1 %v21592_v28, %s24639_s21 }
 0xc3e   : > { %16451 = vrot.lane.b32.xlu0 %v21596_v61, %s24639_s21 }
 0xc41   : > { %16456 = vrot.lane.b32.xlu1 %v21616_v63, %s24639_s21 }
 0xc42   : > { %16461 = vrot.lane.b32.xlu0 %v21620_v53, %s24639_s21 }
 0xc45   : > { %16466 = vrot.lane.b32.xlu1 %v21640_v13, %s24639_s21 }
 0xc46   : > { %16471 = vrot.lane.b32.xlu0 %v21644_v55, %s24639_s21 }
 0xc49   : > { %16476 = vrot.lane.b32.xlu1 %v21568_v58, %s24640_s22 }
 0xc4a   : > { %16481 = vrot.lane.b32.xlu0 %v21572_v37, %s24640_s22 }
 0xc4d   : > { %16486 = vrot.lane.b32.xlu1 %v21592_v28, %s24640_s22 }
 0xc4e   : > { %16491 = vrot.lane.b32.xlu0 %v21596_v61, %s24640_s22 }
 0xc51   : > { %16496 = vrot.lane.b32.xlu1 %v21616_v63, %s24640_s22 }
 0xc52   : > { %16501 = vrot.lane.b32.xlu0 %v21620_v53, %s24640_s22 }
 0xc55   : > { %16506 = vrot.lane.b32.xlu1 %v21640_v13, %s24640_s22 }
 0xc56   : > { %16511 = vrot.lane.b32.xlu0 %v21644_v55, %s24640_s22 }
 0xc59   : > { %16516 = vrot.lane.b32.xlu1 %v21568_v58, %s24641_s23 }
 0xc5a   : > { %16521 = vrot.lane.b32.xlu0 %v21572_v37, %s24641_s23 }
 0xc5d   : > { %16526 = vrot.lane.b32.xlu1 %v21592_v28, %s24641_s23 }
 0xc5e   : > { %16531 = vrot.lane.b32.xlu0 %v21596_v61, %s24641_s23 }
 0xc5f   : > { %v16277_v48 = vpop.permute.xlu1 %16276 }
 0xc60   : > { %v16279_v54 = vunpack.i.h.bf16 %v16277_v48  ;;  %v16278_v10 = vunpack.i.l.bf16 %v16277_v48  ;;  %v16282_v31 = vpop.permute.xlu0 %16281 }
 0xc61   : > { %v16284_v11 = vunpack.i.h.bf16 %v16282_v31  ;;  %v16283_v52 = vunpack.i.l.bf16 %v16282_v31  ;;  %16536 = vrot.lane.b32.xlu1 %v21616_v63, %s24641_s23 }
 0xc62   : > { %16541 = vrot.lane.b32.xlu0 %v21620_v53, %s24641_s23 }
 0xc63   : > { %v6656_v32 = vsel %vm24815_vm6, %v16279_v54, %v16284_v11  ;;  %v6664_v21 = vsel %vm24816_vm12, %v16284_v11, %v16279_v54  ;;  %v6655_v35 = vsel %vm24817_vm9, %v16278_v10, %v16283_v52  ;;  %v6663_v16 = vsel %vm24818_vm14, %v16283_v52, %v16278_v10  ;;  %vm24822_vm12 = vmmov %vm24815_vm6 }
 0xc64   : > { %v13471_v46 = vpack.c.bf16 %v6664_v21, %v6663_v16  ;;  %v13468_v33 = vpack.c.bf16 %v6656_v32, %v6655_v35  ;;  %vm24823_vm9 = vmmov %vm24815_vm6 }
 0xc65   : > { %16546 = vrot.lane.b32.xlu1 %v21640_v13, %s24641_s23  ;;  %vm24824_vm14 = vmmov %vm24815_vm6 }
 0xc66   : > { %13469 = vmatprep.subr.msk.bf16.mxu0 %vm18838_vm3, %v13468_v33  ;;  %16551 = vrot.lane.b32.xlu0 %v21644_v55, %s24641_s23 }
 0xc67   : > { %13472 = vmatpush1.bf16.msk.msra.mxu0 %vm18847_vm4, %v13471_v46  ;;  %v16287_v47 = vpop.permute.xlu1 %16286 }
 0xc68   : > { %v16289_v0 = vunpack.i.h.bf16 %v16287_v47  ;;  %v16288_v48 = vunpack.i.l.bf16 %v16287_v47  ;;  %v16292_v54 = vpop.permute.xlu0 %16291 }
 0xc69   : > { %v16294_v31 = vunpack.i.h.bf16 %v16292_v54  ;;  %v16293_v10 = vunpack.i.l.bf16 %v16292_v54  ;;  %16556 = vrot.lane.b32.xlu1 %v21568_v58, %s24647_s20 }
 0xc6a   : > { %16561 = vrot.lane.b32.xlu0 %v21572_v37, %s24647_s20 }
 0xc6b   : > { %v6658_v11 = vsel %vm24819_vm7, %v16289_v0, %v16294_v31  ;;  %v6666_v52 = vsel %vm24820_vm8, %v16294_v31, %v16289_v0  ;;  %v6657_v32 = vsel %vm24821_vm13, %v16288_v48, %v16293_v10  ;;  %v6665_v21 = vsel %vm24815_vm6, %v16293_v10, %v16288_v48  ;;  %vm24825_vm7 = vmmov %vm24815_vm6 }
 0xc6c   : > { %v13477_v35 = vpack.c.bf16 %v6666_v52, %v6665_v21  ;;  %v13474_v16 = vpack.c.bf16 %v6658_v11, %v6657_v32  ;;  %v6520_v11 = vld [vmem:[%s24312_s14 + $0x8] sm:$0xff]  ;;  %vm24826_vm8 = vmmov %vm24815_vm6 }
 0xc6d   : > { %16566 = vrot.lane.b32.xlu1 %v21592_v28, %s24647_s20  ;;  %vm24827_vm13 = vmmov %vm24815_vm6 }
 0xc6e   : > { %13475 = vmatprep.subr.msk.bf16.mxu0 %vm18838_vm3, %v13474_v16  ;;  %16571 = vrot.lane.b32.xlu0 %v21596_v61, %s24647_s20 }
 0xc6f   : > { %13478 = vmatpush1.bf16.msk.msra.mxu0 %vm18847_vm4, %v13477_v35  ;;  %v16297_v58 = vpop.permute.xlu1 %16296 }
 0xc70   : > { %v16299_v37 = vunpack.i.h.bf16 %v16297_v58  ;;  %v16298_v46 = vunpack.i.l.bf16 %v16297_v58  ;;  %v16302_v33 = vpop.permute.xlu0 %16301 }
 0xc71   : > { %v16304_v47 = vunpack.i.h.bf16 %v16302_v33  ;;  %v16303_v0 = vunpack.i.l.bf16 %v16302_v33  ;;  %16576 = vrot.lane.b32.xlu1 %v21616_v63, %s24647_s20  ;;  %v6519_v63 = vld [vmem:[%s24312_s14] sm:$0xff] }
 0xc72   : > { %16581 = vrot.lane.b32.xlu0 %v21620_v53, %s24647_s20 }
 0xc73   : > { %v6660_v28 = vsel %vm24822_vm12, %v16299_v37, %v16304_v47  ;;  %v6668_v61 = vsel %vm24823_vm9, %v16304_v47, %v16299_v37  ;;  %v6659_v48 = vsel %vm24824_vm14, %v16298_v46, %v16303_v0  ;;  %v6667_v54 = vsel %vm24825_vm7, %v16303_v0, %v16298_v46  ;;  %vm24828_vm12 = vmmov %vm24815_vm6  ;;  %v6522_v47 = vld [vmem:[%s24312_s14 + $0x18] sm:$0xff] }
 0xc74   : > { %v13483_v31 = vpack.c.bf16 %v6668_v61, %v6667_v54  ;;  %v13480_v10 = vpack.c.bf16 %v6660_v28, %v6659_v48  ;;  %vm24829_vm9 = vcmp.lt.s32.totalorder %v18787_v22, 17 }
 0xc75   : > { %16586 = vrot.lane.b32.xlu1 %v21640_v13, %s24647_s20  ;;  %vm24830_vm14 = vmmov %vm24829_vm9 }
 0xc76   : > { %13481 = vmatprep.subr.msk.bf16.mxu0 %vm18838_vm3, %v13480_v10  ;;  %16591 = vrot.lane.b32.xlu0 %v21644_v55, %s24647_s20  ;;  %v6521_v55 = vld [vmem:[%s24312_s14 + $0x10] sm:$0xff]  ;;  %vm24831_vm7 = vmmov %vm24829_vm9 }
 0xc77   : > { %13484 = vmatpush1.bf16.msk.msra.mxu0 %vm18847_vm4, %v13483_v31  ;;  %v16307_v53 = vpop.permute.xlu1 %16306 }
 0xc78   : > { %v16309_v52 = vunpack.i.h.bf16 %v16307_v53  ;;  %v16308_v13 = vunpack.i.l.bf16 %v16307_v53  ;;  %v16312_v32 = vpop.permute.xlu0 %16311  ;;  %v17323_v53 = vld [vmem:[%s24311_s13 + $0x40] sm:$0xff]  }
 0xc79   : > { %v16314_v21 = vunpack.i.h.bf16 %v16312_v32  ;;  %v16313_v35 = vunpack.i.l.bf16 %v16312_v32  ;;  %9090 = vperm.xlu1 %15314, %v6519_v63   ;;  %v6523_v63 = vld [vmem:[%s24312_s14 + $0x20] sm:$0xff] }
 0xc7a   : > { %9095 = vperm.xlu0 %15313, %v6520_v11  }
 0xc7b   : > { %v6662_v16 = vsel %vm24826_vm8, %v16309_v52, %v16314_v21  ;;  %v6670_v58 = vsel %vm24827_vm13, %v16314_v21, %v16309_v52  ;;  %v6661_v37 = vsel %vm24815_vm6, %v16308_v13, %v16313_v35  ;;  %v6669_v46 = vsel %vm24828_vm12, %v16313_v35, %v16308_v13  ;;  %v16317_v33 = vpop.permute.xlu1 %16316  ;;  %vm24832_vm8 = vmmov %vm24831_vm7  ;;  %v6524_v35 = vld [vmem:[%s24312_s14 + $0x28] sm:$0xff] }
 0xc7c   : > { %v13489_v0 = vpack.c.bf16 %v6670_v58, %v6669_v46  ;;  %v16319_v28 = vunpack.i.h.bf16 %v16317_v33  ;;  %v16318_v61 = vunpack.i.l.bf16 %v16317_v33  ;;  %v16322_v48 = vpop.permute.xlu0 %16321  ;;  %v13486_v54 = vpack.c.bf16 %v6662_v16, %v6661_v37  ;;  %vm24834_vm6 = vmmov %vm24831_vm7 }
 0xc7d   : > { %v16324_v31 = vunpack.i.h.bf16 %v16322_v48  ;;  %v16323_v10 = vunpack.i.l.bf16 %v16322_v48  ;;  %9100 = vperm.xlu1 %15314, %v6521_v55   ;;  %vm24833_vm13 = vcmask 523264   ;;  %vm24835_vm12 = vmmov %vm24834_vm6 }
 0xc7e   : > { %9105 = vperm.xlu0 %15313, %v6522_v47   ;;  %13487 = vmatprep.subr.msk.bf16.mxu0 %vm18838_vm3, %v13486_v54 }
 0xc7f   : > { %v6568_v11 = vsel %vm24829_vm9, %v16319_v28, %v16324_v31  ;;  %v6576_v52 = vsel %vm24830_vm14, %v16324_v31, %v16319_v28  ;;  %v6567_v13 = vsel %vm24831_vm7, %v16318_v61, %v16323_v10  ;;  %v6575_v32 = vsel %vm24832_vm8, %v16323_v10, %v16318_v61  ;;  %v16327_v21 = vpop.permute.xlu1 %16326  ;;  %13490 = vmatpush1.bf16.msk.msra.mxu0 %vm18847_vm4, %v13489_v0  ;;  %v6525_v28 = vld [vmem:[%s24312_s14 + $0x30] sm:$0xff]  ;;  %vm24836_vm9 = vmmov %vm24834_vm6  ;;  %v6526_v10 = vld [vmem:[%s24312_s14 + $0x38] sm:$0xff] }
 0xc80   : > { %v13511_v55 = vpack.c.bf16 %v6576_v52, %v6575_v32  ;;  %v16329_v16 = vunpack.i.h.bf16 %v16327_v21  ;;  %v16328_v58 = vunpack.i.l.bf16 %v16327_v21  ;;  %v16332_v37 = vpop.permute.xlu0 %16331  ;;  %v13508_v46 = vpack.c.bf16 %v6568_v11, %v6567_v13  ;;  %vm24837_vm14 = vmmov %vm24834_vm6 }
 0xc81   : > { %v16334_v33 = vunpack.i.h.bf16 %v16332_v37  ;;  %v16333_v47 = vunpack.i.l.bf16 %v16332_v37  ;;  %9110 = vperm.xlu1 %15314, %v6523_v63   ;;  %vm24838_vm7 = vmmov %vm24834_vm6 }
 0xc82   : > { %9115 = vperm.xlu0 %15313, %v6524_v35   ;;  %13491 = vmatmul.mubr.msk.bf16.vlgmr.msra.gmra.mrb[72].mxu0 %vm24833_vm13, %v17323_v53  ;;  %v6527_v35 = vld [vmem:[%s24312_s14 + $0x40] sm:$0xff]  ;;  %vm24839_vm8 = vmmov %vm24834_vm6 }
 0xc83   : > { %v6570_v0 = vsel %vm24834_vm6, %v16329_v16, %v16334_v33  ;;  %v6578_v61 = vsel %vm24835_vm12, %v16334_v33, %v16329_v16  ;;  %v6569_v48 = vsel %vm24836_vm9, %v16328_v58, %v16333_v47  ;;  %v6577_v54 = vsel %vm24837_vm14, %v16333_v47, %v16328_v58  ;;  %13509 = vmatprep.subr.msk.bf16.mxu0 %vm19039_vm10, %v13508_v46  ;;  %v16337_v31 = vpop.permute.xlu1 %16336  ;;  %v17324_v16 = vld [vmem:[%s24311_s13 + $0x48] sm:$0xff]   ;;  %vm24840_vm13 = vmmov %vm24834_vm6 }
 0xc84   : > { %v13517_v63 = vpack.c.bf16 %v6578_v61, %v6577_v54  ;;  %v16339_v53 = vunpack.i.h.bf16 %v16337_v31  ;;  %v16338_v11 = vunpack.i.l.bf16 %v16337_v31  ;;  %13512 = vmatpush1.bf16.msk.msra.mxu0 %vm19048_vm11, %v13511_v55  ;;  %v16342_v52 = vpop.permute.xlu0 %16341  ;;  %v13514_v13 = vpack.c.bf16 %v6570_v0, %v6569_v48  ;;  %6818 = vmatprep.mubr.bf16.mxu0 %v24541_v41  ;;  %v6528_v47 = vld [vmem:[%s24312_s14 + $0x48] sm:$0xff]  ;;  %vm24842_vm9 = vmmov %vm24834_vm6 }
 0xc85   : > { %v16344_v32 = vunpack.i.h.bf16 %v16342_v52  ;;  %v16343_v21 = vunpack.i.l.bf16 %v16342_v52  ;;  %9120 = vperm.xlu1 %15314, %v6525_v28   ;;  %vm24841_vm12 = vcmask 523264   ;;  %vm24843_vm14 = vmmov %vm24834_vm6 }
 0xc86   : > { %9125 = vperm.xlu0 %15313, %v6526_v10   ;;  %13515 = vmatprep.subr.msk.bf16.mxu0 %vm19039_vm10, %v13514_v13 }
 0xc87   : > { %v6572_v55 = vsel %vm24838_vm7, %v16339_v53, %v16344_v32  ;;  %v6580_v58 = vsel %vm24839_vm8, %v16344_v32, %v16339_v53  ;;  %v6571_v37 = vsel %vm24840_vm13, %v16338_v11, %v16343_v21  ;;  %v6579_v46 = vsel %vm24834_vm6, %v16343_v21, %v16338_v11  ;;  %v16347_v33 = vpop.permute.xlu1 %16346  ;;  %v6529_v53 = vld [vmem:[%s24312_s14 + $0x50] sm:$0xff]  ;;  %vm24844_vm7 = vmmov %vm24834_vm6  ;;  %v6530_v21 = vld [vmem:[%s24312_s14 + $0x58] sm:$0xff] }
 0xc88   : > { %v13523_v28 = vpack.c.bf16 %v6580_v58, %v6579_v46  ;;  %v16349_v0 = vunpack.i.h.bf16 %v16347_v33  ;;  %v16348_v61 = vunpack.i.l.bf16 %v16347_v33  ;;  %13518 = vmatpush1.bf16.msk.msra.mxu0 %vm19048_vm11, %v13517_v63  ;;  %v16352_v48 = vpop.permute.xlu0 %16351  ;;  %v13520_v54 = vpack.c.bf16 %v6572_v55, %v6571_v37  ;;  %vm24845_vm8 = vmmov %vm24834_vm6 }
 0xc89   : > { %v16354_v31 = vunpack.i.h.bf16 %v16352_v48  ;;  %v16353_v10 = vunpack.i.l.bf16 %v16352_v48  ;;  %9130 = vperm.xlu1 %15314, %v6527_v35   ;;  %vm24846_vm13 = vcmp.lt.s32.totalorder %v18787_v22, 15  ;;  %v6532_v48 = vld [vmem:[%s24312_s14 + $0x68] sm:$0xff] }
 0xc8a   : > { %9135 = vperm.xlu0 %15313, %v6528_v47   ;;  %13492 = vmatmul.mubr.msk.bf16.gmra.mrb[76].mxu0 %vm24841_vm12, %v17324_v16  ;;  %v6531_v47 = vld [vmem:[%s24312_s14 + $0x60] sm:$0xff]  ;;  %vm24847_vm6 = vmmov %vm24846_vm13 }
 0xc8b   : > { %v6574_v11 = vsel %vm24842_vm9, %v16349_v0, %v16354_v31  ;;  %v6582_v52 = vsel %vm24843_vm14, %v16354_v31, %v16349_v0  ;;  %v6573_v63 = vsel %vm24844_vm7, %v16348_v61, %v16353_v10  ;;  %v6581_v13 = vsel %vm24845_vm8, %v16353_v10, %v16348_v61  ;;  %13521 = vmatprep.subr.msk.bf16.mxu0 %vm19039_vm10, %v13520_v54  ;;  %v16357_v32 = vpop.permute.xlu1 %16356  ;;  %v17325_v0 = vld [vmem:[%s24311_s13 + $0x50] sm:$0xff]   ;;  %v6534_v10 = vld [vmem:[%s24312_s14 + $0x78] sm:$0xff]  ;;  %vm24849_vm14 = vmmov %vm24841_vm12 }
 0xc8c   : > { %v13529_v35 = vpack.c.bf16 %v6582_v52, %v6581_v13  ;;  %v16359_v16 = vunpack.i.h.bf16 %v16357_v32  ;;  %v16358_v55 = vunpack.i.l.bf16 %v16357_v32  ;;  %13524 = vmatpush1.bf16.msk.msra.mxu0 %vm19048_vm11, %v13523_v28  ;;  %v16362_v58 = vpop.permute.xlu0 %16361  ;;  %v13526_v37 = vpack.c.bf16 %v6574_v11, %v6573_v63  ;;  %6828 = vmatprep.mubr.bf16.mxu0 %v24541_v41  ;;  %v6533_v31 = vld [vmem:[%s24312_s14 + $0x70] sm:$0xff]  ;;  %v17327_v11 = vld [vmem:[%s24311_s13 + $0x60] sm:$0xff]   ;;  %vm24850_vm7 = vmmov %vm24841_vm12 }
 0xc8d   : > { %v16364_v46 = vunpack.i.h.bf16 %v16362_v58  ;;  %v16363_v33 = vunpack.i.l.bf16 %v16362_v58  ;;  %9140 = vperm.xlu1 %15314, %v6529_v53   ;;  %vm24848_vm9 = vnez %v24690_v42  ;;  %v17326_v53 = vld [vmem:[%s24311_s13 + $0x58] sm:$0xff]   ;;  %v17328_v52 = vld [vmem:[%s24311_s13 + $0x68] sm:$0xff]   ;;  %vm24851_vm8 = vmmov %vm24850_vm7 }
 0xc8e   : > { %9145 = vperm.xlu0 %15313, %v6530_v21   ;;  %13527 = vmatprep.subr.msk.bf16.mxu0 %vm19039_vm10, %v13526_v37  ;;  %v17329_v63 = vld [vmem:[%s24311_s13 + $0x70] sm:$0xff]   ;;  %v17330_v21 = vld [vmem:[%s24311_s13 + $0x78] sm:$0xff]  }
 0xc8f   : > { %v7099_v28 = vsel %vm24846_vm13, %v16359_v16, %v16364_v46  ;;  %v7098_v61 = vsel %vm24847_vm6, %v16358_v55, %v16363_v33  ;;  %v16367_v13 = vpop.permute.xlu1 %16366  ;;  %vm24852_vm13 = vmmov %vm24850_vm7 }
 0xc90   : > { %13530 = vmatpush1.bf16.msk.msra.mxu0 %vm19048_vm11, %v13529_v35  ;;  %v13564_v54 = vpack.c.bf16 %v7099_v28, %v7098_v61  ;;  %v16372_v32 = vpop.permute.xlu0 %16371  ;;  %v16369_v37 = vunpack.i.h.bf16 %v16367_v13  ;;  %vm24853_vm6 = vmmov %vm24850_vm7 }
 0xc91   : > { %9150 = vperm.xlu1 %15314, %v6531_v47   ;;  %v16368_v47 = vunpack.i.l.bf16 %v16367_v13  ;;  %v16373_v28 = vunpack.i.l.bf16 %v16372_v32 }
 0xc92   : > { %9155 = vperm.xlu0 %15313, %v6532_v48   ;;  %13493 = vmatmul.mubr.msk.bf16.gmra.mrb[80].mxu0 %vm24841_vm12, %v17325_v0  ;;  %v16374_v0 = vunpack.i.h.bf16 %v16372_v32  ;;  %vm24854_vm12 = vcmp.lt.s32.totalorder %v18787_v22, 15 }
 0xc93   : > { %13565 = vmatprep.subr.msk.bf16.mxu0 %vm24848_vm9, %v13564_v54  ;;  %6838 = vmatprep.mubr.bf16.mxu0 %v24541_v41  ;;  %v16377_v35 = vpop.permute.xlu1 %16376  ;;  %v7107_v61 = vsel %vm24854_vm12, %v16364_v46, %v16359_v16 }
 0xc94   : > { %v16382_v58 = vpop.permute.xlu0 %16381 }
 0xc95   : > { %9160 = vperm.xlu1 %15314, %v6533_v31   ;;  %v16384_v13 = vunpack.i.h.bf16 %v16382_v58  ;;  %v16383_v32 = vunpack.i.l.bf16 %v16382_v58 }
 0xc96   : > { %9165 = vperm.xlu0 %15313, %v6534_v10  }
 0xc97   : > { %v16387_v10 = vpop.permute.xlu1 %16386 }
 0xc98   : > { %v16388_v25 = vunpack.i.l.bf16 %v16387_v10 }
 0xc9a   : > { %13494 = vmatmul.mubr.msk.bf16.gmra.mrb[84].mxu0 %vm24849_vm14, %v17326_v53  ;;  %vm24855_vm14 = vmmov %vm24854_vm12  ;;  %v16392_v53 = vpop.permute.xlu0 %16391 }
 0xc9b   : > { %6848 = vmatprep.mubr.bf16.mxu0 %v24541_v41  ;;  %v7106_v48 = vsel %vm24855_vm14, %v16363_v33, %v16358_v55  ;;  %v16394_v56 = vunpack.i.h.bf16 %v16392_v53  ;;  %v16393_v7 = vunpack.i.l.bf16 %v16392_v53  ;;  %v16397_v58 = vpop.permute.xlu1 %16396 }
 0xc9c   : > { %v13567_v16 = vpack.c.bf16 %v7107_v61, %v7106_v48  ;;  %v16398_v53 = vunpack.i.l.bf16 %v16397_v58 }
 0xca2   : > { %13495 = vmatmul.mubr.msk.bf16.gmra.mrb[88].mxu0 %vm24850_vm7, %v17327_v11  ;;  %vm24856_vm7 = vmmov %vm24854_vm12  ;;  %v17331_v11 = vld [vmem:[%s24311_s13] sm:$0xff]   ;;  %vm24860_vm12 = vcmask 523264  }
 0xca3   : > { %6858 = vmatprep.mubr.bf16.mxu0 %v24541_v41  ;;  %v7101_v54 = vsel %vm24856_vm7, %v16369_v37, %v16374_v0 }
 0xcaa   : > { %13496 = vmatmul.mubr.msk.bf16.gmra.mrb[92].mxu0 %vm24851_vm8, %v17328_v52  ;;  %vm24857_vm8 = vmmov %vm24856_vm7  ;;  %v16379_v52 = vunpack.i.h.bf16 %v16377_v35 }
 0xcab   : > { %6868 = vmatprep.mubr.bf16.mxu0 %v24541_v41  ;;  %v7100_v31 = vsel %vm24857_vm8, %v16368_v47, %v16373_v28  ;;  %vm24863_vm8 = vnez %v24699_v30 }
 0xcac   : > { %v13570_v33 = vpack.c.bf16 %v7101_v54, %v7100_v31  ;;  %v17332_v31 = vld [vmem:[%s24311_s13 + $0x8] sm:$0xff]  }
 0xcb2   : > { %13497 = vmatmul.mubr.msk.bf16.gmra.mrb[96].mxu0 %vm24852_vm13, %v17329_v63  ;;  %v16378_v63 = vunpack.i.l.bf16 %v16377_v35  ;;  %vm24858_vm13 = vmmov %vm24856_vm7 }
 0xcb3   : > { %6878 = vmatprep.mubr.bf16.mxu0 %v24541_v41  ;;  %v7109_v55 = vsel %vm24858_vm13, %v16374_v0, %v16369_v37  ;;  %v16402_v37 = vpop.permute.xlu0 %16401 }
 0xcba   : > { %13498 = vmatmul.mubr.msk.bf16.gmra.mrb[100].mxu0 %vm24853_vm6, %v17330_v21  ;;  %vm24859_vm6 = vmmov %vm24856_vm7  ;;  %v16389_v21 = vunpack.i.h.bf16 %v16387_v10  ;;  %v16399_v10 = vunpack.i.h.bf16 %v16397_v58  ;;  %v16407_v58 = vpop.permute.xlu1 %16406 }
 0xcbb   : > { %6985 = vmatprep.mubr.bf16.mxu0 %v24541_v41  ;;  %v7108_v46 = vsel %vm24859_vm6, %v16373_v28, %v16368_v47  ;;  %vm24861_vm14 = vmmov %vm24859_vm6  ;;  %v7110_v28 = vsel %vm24859_vm6, %v16383_v32, %v16378_v63 }
 0xcbc   : > { %v7103_v27 = vsel %vm24861_vm14, %v16379_v52, %v16384_v13  ;;  %vm24862_vm7 = vmmov %vm24859_vm6  ;;  %v13573_v47 = vpack.c.bf16 %v7109_v55, %v7108_v46 }
 0xcbd   : > { %v7102_v35 = vsel %vm24862_vm7, %v16378_v63, %v16383_v32  ;;  %vm24864_vm13 = vmmov %vm24859_vm6 }
 0xcbe   : > { %v7111_v0 = vsel %vm24864_vm13, %v16384_v13, %v16379_v52  ;;  %vm24866_vm14 = vmmov %vm24859_vm6  ;;  %v13576_v54 = vpack.c.bf16 %v7103_v27, %v7102_v35  ;;  %v17337_v35 = vld [vmem:[%s24311_s13 + $0x30] sm:$0xff]  }
 0xcbf   : > { %v7104_v48 = vsel %vm24866_vm14, %v16388_v25, %v16393_v7  ;;  %v13579_v52 = vpack.c.bf16 %v7111_v0, %v7110_v28  ;;  %vm24867_vm7 = vmmov %vm24859_vm6  ;;  %v16417_v0 = vpop.permute.xlu1 %16416 }
 0xcc0   : > { %v7113_v63 = vsel %vm24867_vm7, %v16394_v56, %v16389_v21  ;;  %vm24868_vm13 = vmmov %vm24859_vm6 }
 0xcc1   : > { %v7112_v27 = vsel %vm24868_vm13, %v16393_v7, %v16388_v25  ;;  %v17333_v7 = vld [vmem:[%s24311_s13 + $0x10] sm:$0xff]   ;;  %v17334_v25 = vld [vmem:[%s24311_s13 + $0x18] sm:$0xff]  }
 0xcc2   : > { %13531 = vmatmul.mubr.msk.bf16.vlgmr.msra.gmra.mrb[72].mxu0 %vm24860_vm12, %v17331_v11  ;;  %vm24865_vm12 = vmmov %vm24859_vm6  ;;  %v16404_v11 = vunpack.i.h.bf16 %v16402_v37  ;;  %vm24869_vm6 = vcmask 523264  }
 0xcc3   : > { %13568 = vmatpush1.bf16.msk.msra.mxu0 %vm24863_vm8, %v13567_v16  ;;  %6995 = vmatprep.mubr.bf16.mxu0 %v24541_v41  ;;  %v7105_v61 = vsel %vm24865_vm12, %v16389_v21, %v16394_v56  ;;  %v16403_v16 = vunpack.i.l.bf16 %v16402_v37  ;;  %vm24870_vm12 = vcmp.lt.s32.totalorder %v18787_v22, 1  ;;  %v13585_v56 = vpack.c.bf16 %v7113_v63, %v7112_v27  ;;  %vm24872_vm7 = vmmov %vm24869_vm6  ;;  %v17336_v21 = vld [vmem:[%s24311_s13 + $0x28] sm:$0xff]   ;;  %v16412_v37 = vpop.permute.xlu0 %16411 }
 0xcc4   : > { %13571 = vmatprep.subr.msk.bf16.mxu0 %vm24848_vm9, %v13570_v33  ;;  %v13582_v13 = vpack.c.bf16 %v7105_v61, %v7104_v48  ;;  %v7397_v32 = vsel %vm24870_vm12, %v16399_v10, %v16404_v11  ;;  %vm24871_vm14 = vmmov %vm24870_vm12  ;;  %v17335_v33 = vld [vmem:[%s24311_s13 + $0x20] sm:$0xff]   ;;  %v16409_v61 = vunpack.i.h.bf16 %v16407_v58  ;;  %v16408_v48 = vunpack.i.l.bf16 %v16407_v58 }
 0xcc5   : > { %v7396_v55 = vsel %vm24871_vm14, %v16398_v53, %v16403_v16  ;;  %vm24873_vm13 = vmmov %vm24869_vm6  ;;  %v16419_v27 = vunpack.i.h.bf16 %v16417_v0 }
 0xcc6   : > { %v13620_v46 = vpack.c.bf16 %v7397_v32, %v7396_v55  ;;  %vm24874_vm12 = vmmov %vm24869_vm6 }
 0xcc7   : > { %13574 = vmatpush1.bf16.msk.msra.mxu0 %vm24863_vm8, %v13573_v47  ;;  %vm24875_vm14 = vmmov %vm24869_vm6  ;;  %v17338_v47 = vld [vmem:[%s24311_s13 + $0x38] sm:$0xff]   ;;  %v16422_v28 = vpop.permute.xlu0 %16421 }
 0xcc8   : > { %13577 = vmatprep.subr.msk.bf16.mxu0 %vm24848_vm9, %v13576_v54  ;;  %v16414_v54 = vunpack.i.h.bf16 %v16412_v37  ;;  %v16424_v32 = vunpack.i.h.bf16 %v16422_v28  ;;  %v16423_v55 = vunpack.i.l.bf16 %v16422_v28 }
 0xcca   : > { %13532 = vmatmul.mubr.msk.bf16.gmra.mrb[76].mxu0 %vm24869_vm6, %v17332_v31  ;;  %v16413_v31 = vunpack.i.l.bf16 %v16412_v37 }
 0xccb   : > { %13580 = vmatpush1.bf16.msk.msra.mxu0 %vm24863_vm8, %v13579_v52  ;;  %7005 = vmatprep.mubr.bf16.mxu0 %v24541_v41 }
 0xccc   : > { %13583 = vmatprep.subr.msk.bf16.mxu0 %vm24848_vm9, %v13582_v13  ;;  %v16418_v13 = vunpack.i.l.bf16 %v16417_v0  ;;  %vm24884_vm9 = vcmask 523264  }
 0xccf   : > { %13586 = vmatpush1.bf16.msk.msra.mxu0 %vm24863_vm8, %v13585_v56  ;;  %v17339_v56 = vld [vmem:[%s24311_s13 + $0x80] sm:$0xff]  }
 0xcd0   : > { %13621 = vmatprep.subr.msk.bf16.mxu0 %vm19366_vm15, %v13620_v46 }
 0xcd2   : > { %13533 = vmatmul.mubr.msk.bf16.gmra.mrb[80].mxu0 %vm24872_vm7, %v17333_v7  ;;  %vm24876_vm7 = vmmov %vm24869_vm6 }
 0xcd3   : > { %7015 = vmatprep.mubr.bf16.mxu0 %v24541_v41 }
 0xcda   : > { %13534 = vmatmul.mubr.msk.bf16.gmra.mrb[84].mxu0 %vm24873_vm13, %v17334_v25  ;;  %vm24877_vm13 = vcmp.lt.s32.totalorder %v18787_v22, 1  ;;  %v16427_v25 = vpop.permute.xlu1 %16426 }
 0xcdb   : > { %7025 = vmatprep.mubr.bf16.mxu0 %v24541_v41  ;;  %v7405_v52 = vsel %vm24877_vm13, %v16404_v11, %v16399_v10  ;;  %v16429_v58 = vunpack.i.h.bf16 %v16427_v25  ;;  %v16428_v37 = vunpack.i.l.bf16 %v16427_v25  ;;  %v17343_v25 = vld [vmem:[%s24311_s13 + $0xa0] sm:$0xff]  }
 0xce2   : > { %13535 = vmatmul.mubr.msk.bf16.gmra.mrb[88].mxu0 %vm24869_vm6, %v17335_v33  ;;  %vm24878_vm6 = vmmov %vm24877_vm13  ;;  %v16432_v33 = vpop.permute.xlu0 %16431 }
 0xce3   : > { %7035 = vmatprep.mubr.bf16.mxu0 %v24541_v41  ;;  %v7404_v63 = vsel %vm24878_vm6, %v16403_v16, %v16398_v53  ;;  %vm24882_vm13 = vmmov %vm24878_vm6  ;;  %v7401_v16 = vsel %vm24878_vm6, %v16419_v27, %v16424_v32  ;;  %v16433_v0 = vunpack.i.l.bf16 %v16432_v33 }
 0xce4   : > { %v13623_v10 = vpack.c.bf16 %v7405_v52, %v7404_v63  ;;  %v7406_v11 = vsel %vm24882_vm13, %v16413_v31, %v16408_v48  ;;  %vm24883_vm8 = vmmov %vm24878_vm6 }
 0xce5   : > { %vm24890_vm13 = vmmov %vm24878_vm6 }
 0xcea   : > { %13536 = vmatmul.mubr.msk.bf16.gmra.mrb[92].mxu0 %vm24874_vm12, %v17336_v21  ;;  %vm24879_vm12 = vmmov %vm24878_vm6  ;;  %v7400_v21 = vsel %vm24883_vm8, %v16418_v13, %v16423_v55 }
 0xceb   : > { %7045 = vmatprep.mubr.bf16.mxu0 %v24541_v41  ;;  %v7399_v46 = vsel %vm24879_vm12, %v16409_v61, %v16414_v54  ;;  %vm24885_vm12 = vnez %v24554_v50  ;;  %vm24887_vm8 = vmmov %vm24878_vm6 }
 0xcf2   : > { %13537 = vmatmul.mubr.msk.bf16.gmra.mrb[96].mxu0 %vm24875_vm14, %v17337_v35  ;;  %vm24880_vm14 = vmmov %vm24878_vm6 }
 0xcf3   : > { %7055 = vmatprep.mubr.bf16.mxu0 %v24541_v41  ;;  %v7398_v7 = vsel %vm24880_vm14, %v16408_v48, %v16413_v31  ;;  %vm24886_vm14 = vmmov %vm24878_vm6  ;;  %v7408_v48 = vsel %vm24887_vm8, %v16423_v55, %v16418_v13  ;;  %v17340_v31 = vld [vmem:[%s24311_s13 + $0x88] sm:$0xff]  }
 0xcf4   : > { %v13626_v35 = vpack.c.bf16 %v7399_v46, %v7398_v7  ;;  %v17341_v46 = vld [vmem:[%s24311_s13 + $0x90] sm:$0xff]   ;;  %v17342_v7 = vld [vmem:[%s24311_s13 + $0x98] sm:$0xff]  }
 0xcfa   : > { %13538 = vmatmul.mubr.msk.bf16.gmra.mrb[100].mxu0 %vm24876_vm7, %v17338_v47  ;;  %vm24881_vm7 = vmmov %vm24878_vm6  ;;  %v16434_v47 = vunpack.i.h.bf16 %v16432_v33  ;;  %v17347_v33 = vld [vmem:[%s24311_s13 + $0xc0] sm:$0xff]  }
 0xcfb   : > { %7251 = vmatprep.mubr.bf16.mxu0 %v24541_v41  ;;  %v7407_v53 = vsel %vm24881_vm7, %v16414_v54, %v16409_v61  ;;  %v7409_v61 = vsel %vm24886_vm14, %v16424_v32, %v16419_v27  ;;  %v13632_v54 = vpack.c.bf16 %v7401_v16, %v7400_v21  ;;  %vm24889_vm7 = vmmov %vm24878_vm6  ;;  %v7410_v32 = vsel %vm24878_vm6, %v16433_v0, %v16428_v37 }
 0xcfc   : > { %v13629_v28 = vpack.c.bf16 %v7407_v53, %v7406_v11  ;;  %v7402_v63 = vsel %vm24889_vm7, %v16428_v37, %v16433_v0  ;;  %v13635_v27 = vpack.c.bf16 %v7409_v61, %v7408_v48  ;;  %v7411_v13 = vsel %vm24890_vm13, %v16434_v47, %v16429_v58  ;;  %v16442_v53 = vpop.permute.xlu0 %16441  ;;  %v17348_v11 = vld [vmem:[%s24311_s13 + $0xc8] sm:$0xff]  }
 0xcfd   : > { %vm24891_vm14 = vcmask 523264  }
 0xcfe   : > { %vm24892_vm8 = vmmov %vm24891_vm14 }
 0xcff   : > { %vm24894_vm7 = vmmov %vm24892_vm8 }
 0xd00   : > { %vm24895_vm13 = vmmov %vm24894_vm7 }
 0xd02   : > { %13587 = vmatmul.mubr.msk.bf16.vlgmr.msra.gmra.mrb[72].mxu0 %vm24884_vm9, %v17339_v56  ;;  %vm24888_vm9 = vmmov %vm24878_vm6  ;;  %v13641_v56 = vpack.c.bf16 %v7411_v13, %v7410_v32 }
 0xd03   : > { %13624 = vmatpush1.bf16.msk.msra.mxu0 %vm24885_vm12, %v13623_v10  ;;  %7261 = vmatprep.mubr.bf16.mxu0 %v24541_v41  ;;  %v7403_v52 = vsel %vm24888_vm9, %v16429_v58, %v16434_v47  ;;  %vm24893_vm9 = vmmov %vm24892_vm8  ;;  %v16437_v10 = vpop.permute.xlu1 %16436  ;;  %v16443_v58 = vunpack.i.l.bf16 %v16442_v53 }
 0xd04   : > { %13627 = vmatprep.subr.msk.bf16.mxu0 %vm19366_vm15, %v13626_v35  ;;  %v13638_v55 = vpack.c.bf16 %v7403_v52, %v7402_v63  ;;  %vm24896_vm6 = vmmov %vm24894_vm7  ;;  %v16439_v16 = vunpack.i.h.bf16 %v16437_v10  ;;  %v16438_v21 = vunpack.i.l.bf16 %v16437_v10  ;;  %v16444_v35 = vunpack.i.h.bf16 %v16442_v53 }
 0xd07   : > { %13630 = vmatpush1.bf16.msk.msra.mxu0 %vm24885_vm12, %v13629_v28  ;;  %v16447_v17 = vpop.permute.xlu1 %16446 }
 0xd08   : > { %13633 = vmatprep.subr.msk.bf16.mxu0 %vm19366_vm15, %v13632_v54  ;;  %v16449_v37 = vunpack.i.h.bf16 %v16447_v17  ;;  %v16448_v47 = vunpack.i.l.bf16 %v16447_v17 }
 0xd0a   : > { %13588 = vmatmul.mubr.msk.bf16.gmra.mrb[76].mxu0 %vm24891_vm14, %v17340_v31  ;;  %vm24897_vm14 = vmmov %vm24896_vm6 }
 0xd0b   : > { %13636 = vmatpush1.bf16.msk.msra.mxu0 %vm24885_vm12, %v13635_v27  ;;  %7271 = vmatprep.mubr.bf16.mxu0 %v24541_v41  ;;  %v16457_v14 = vpop.permute.xlu1 %16456  ;;  %v17355_v27 = vld [vmem:[%s24311_s13 + $0x100] sm:$0xff]  }
 0xd0c   : > { %13639 = vmatprep.subr.msk.bf16.mxu0 %vm19366_vm15, %v13638_v55  ;;  %v16459_v13 = vunpack.i.h.bf16 %v16457_v14  ;;  %v16458_v32 = vunpack.i.l.bf16 %v16457_v14 }
 0xd0f   : > { %13642 = vmatpush1.bf16.msk.msra.mxu0 %vm24885_vm12, %v13641_v56  ;;  %v16467_v52 = vpop.permute.xlu1 %16466  ;;  %vm24920_vm12 = vnez %v24583_v20 }
 0xd10   : > { %7751 = vmatprep.subr.bf16.mxu0 %v7680_v43  ;;  %v17346_v43 = vld [vmem:[%s24311_s13 + $0xb8] sm:$0xff]  }
 0xd12   : > { %13589 = vmatmul.mubr.msk.bf16.gmra.mrb[80].mxu0 %vm24892_vm8, %v17341_v46  ;;  %vm24898_vm8 = vmmov %vm24896_vm6 }
 0xd13   : > { %7281 = vmatprep.mubr.bf16.mxu0 %v24541_v41 }
 0xd1a   : > { %13590 = vmatmul.mubr.msk.bf16.gmra.mrb[84].mxu0 %vm24893_vm9, %v17342_v7  ;;  %vm24900_vm9 = vmmov %vm24896_vm6 }
 0xd1b   : > { %7291 = vmatprep.mubr.bf16.mxu0 %v24541_v41 }
 0xd22   : > { %13591 = vmatmul.mubr.msk.bf16.gmra.mrb[88].mxu0 %vm24894_vm7, %v17343_v25  ;;  %vm24901_vm7 = vcmp.lt.s32.totalorder %v18787_v22, 127 }
 0xd23   : > { %7301 = vmatprep.mubr.bf16.mxu0 %v24541_v41  ;;  %v7937_v2 = vsel %vm24901_vm7, %v16444_v35, %v16439_v16 }
 0xd2a   : > { %13592 = vmatmul.mubr.msk.bf16.gmra.mrb[92].mxu0 %vm24895_vm13, %v17344_v6  ;;  %vm24902_vm13 = vmmov %vm24901_vm7 }
 0xd2b   : > { %7311 = vmatprep.mubr.bf16.mxu0 %v24541_v41  ;;  %vm24909_vm7 = vmmov %vm24898_vm8 }
 0xd32   : > { %13593 = vmatmul.mubr.msk.bf16.gmra.mrb[96].mxu0 %vm24896_vm6, %v17345_v36  ;;  %vm24906_vm6 = vnez %v24577_v26  ;;  %v16469_v36 = vunpack.i.h.bf16 %v16467_v52 }
 0xd33   : > { %7321 = vmatprep.mubr.bf16.mxu0 %v24541_v41 }
 0xd3a   : > { %13594 = vmatmul.mubr.msk.bf16.gmra.mrb[100].mxu0 %vm24897_vm14, %v17346_v43  ;;  %vm24907_vm14 = vmmov %vm24898_vm8  ;;  %v16468_v43 = vunpack.i.l.bf16 %v16467_v52 }
 0xd3b   : > { %7549 = vmatprep.mubr.bf16.mxu0 %v24541_v41 }
 0xd42   : > { %13643 = vmatmul.mubr.msk.bf16.vlgmr.msra.gmra.mrb[72].mxu0 %vm24898_vm8, %v17347_v33 }
 0xd43   : > { %7752 = vmatpush1.bf16.msra.mxu0 %v7679_v23  ;;  %7559 = vmatprep.mubr.bf16.mxu0 %v24541_v41  ;;  %v7936_v23 = vsel %vm24902_vm13, %v16443_v58, %v16438_v21  ;;  %vm24910_vm13 = vmmov %vm24909_vm7 }
 0xd44   : > { %7753 = vmatprep.subr.bf16.mxu0 %v7682_v60  ;;  %v13708_v62 = vpack.c.bf16 %v7937_v2, %v7936_v23  ;;  %v24905_v60 = vpack.c.bf16 %v21632_v12, %v21630_v49  ;;  %v16452_v49 = vpop.permute.xlu0 %16451  ;;  %v17354_v12 = vld [vmem:[%s24311_s13 + $0xf8] sm:$0xff]  }
 0xd45   : > { %v16454_v0 = vunpack.i.h.bf16 %v16452_v49  ;;  %v16453_v28 = vunpack.i.l.bf16 %v16452_v49 }
 0xd47   : > { %7754 = vmatpush1.bf16.msra.mxu0 %v7681_v19  ;;  %v17350_v19 = vld [vmem:[%s24311_s13 + $0xd8] sm:$0xff]  }
 0xd48   : > { %7755 = vmatprep.subr.bf16.mxu0 %v24899_v38  ;;  %v16462_v8 = vpop.permute.xlu0 %16461 }
 0xd49   : > { %v16464_v55 = vunpack.i.h.bf16 %v16462_v8  ;;  %v16463_v56 = vunpack.i.l.bf16 %v16462_v8 }
 0xd4a   : > { %13644 = vmatmul.mubr.msk.bf16.gmra.mrb[76].mxu0 %vm24900_vm9, %v17348_v11  ;;  %vm24908_vm9 = vmmov %vm24898_vm8 }
 0xd4b   : > { %7756 = vmatpush1.bf16.msra.mxu0 %v24903_v34  ;;  %7569 = vmatprep.mubr.bf16.mxu0 %v24541_v41 }
 0xd4c   : > { %7757 = vmatprep.subr.bf16.mxu0 %v24904_v5  ;;  %v16472_v63 = vpop.permute.xlu0 %16471  ;;  %v17356_v5 = vld [vmem:[%s24311_s13 + $0x108] sm:$0xff]  }
 0xd4d   : > { %v16474_v33 = vunpack.i.h.bf16 %v16472_v63  ;;  %v16473_v10 = vunpack.i.l.bf16 %v16472_v63 }
 0xd4f   : > { %7758 = vmatpush1.bf16.msra.mxu0 %v24905_v60 }
 0xd50   : > { %13709 = vmatprep.subr.msk.bf16.mxu0 %vm24906_vm6, %v13708_v62 }
 0xd52   : > { %13645 = vmatmul.mubr.msk.bf16.gmra.mrb[80].mxu0 %vm24907_vm14, %v17349_v3  ;;  %vm24911_vm14 = vmmov %vm24909_vm7 }
 0xd53   : > { %7579 = vmatprep.mubr.bf16.mxu0 %v24541_v41 }
 0xd5a   : > { %13646 = vmatmul.mubr.msk.bf16.gmra.mrb[84].mxu0 %vm24898_vm8, %v17350_v19  ;;  %vm24912_vm8 = vcmp.lt.s32.totalorder %v18787_v22, 127 }
 0xd5b   : > { %7589 = vmatprep.mubr.bf16.mxu0 %v24541_v41  ;;  %v7929_v61 = vsel %vm24912_vm8, %v16439_v16, %v16444_v35  ;;  %v16477_v16 = vpop.permute.xlu1 %16476 }
 0xd5c   : > { %v16479_v62 = vunpack.i.h.bf16 %v16477_v16  ;;  %v16478_v3 = vunpack.i.l.bf16 %v16477_v16 }
 0xd62   : > { %13647 = vmatmul.mubr.msk.bf16.gmra.mrb[88].mxu0 %vm24908_vm9, %v17351_v57  ;;  %vm24913_vm9 = vmmov %vm24912_vm8 }
 0xd63   : > { %7599 = vmatprep.mubr.bf16.mxu0 %v24541_v41  ;;  %v7928_v48 = vsel %vm24913_vm9, %v16438_v21, %v16443_v58  ;;  %vm24918_vm9 = vcmask 523264   ;;  %v16482_v21 = vpop.permute.xlu0 %16481 }
 0xd64   : > { %v13711_v46 = vpack.c.bf16 %v7929_v61, %v7928_v48  ;;  %v16484_v60 = vunpack.i.h.bf16 %v16482_v21  ;;  %v16483_v19 = vunpack.i.l.bf16 %v16482_v21  ;;  %v17361_v61 = vld [vmem:[%s24311_s13 + $0x130] sm:$0xff]   ;;  %v16487_v48 = vpop.permute.xlu1 %16486 }
 0xd68   : > { %v16497_v52 = vpop.permute.xlu1 %16496 }
 0xd6a   : > { %13648 = vmatmul.mubr.msk.bf16.gmra.mrb[92].mxu0 %vm24909_vm7, %v17352_v44  ;;  %vm24914_vm7 = vmmov %vm24912_vm8 }
 0xd6b   : > { %7609 = vmatprep.mubr.bf16.mxu0 %v24541_v41  ;;  %v7939_v54 = vsel %vm24914_vm7, %v16454_v0, %v16449_v37  ;;  %vm24917_vm8 = vmmov %vm24914_vm7  ;;  %v7941_v53 = vsel %vm24914_vm7, %v16464_v55, %v16459_v13  ;;  %v7942_v23 = vsel %vm24914_vm7, %v16473_v10, %v16468_v43 }
 0xd6c   : > { %v7930_v25 = vsel %vm24917_vm8, %v16448_v47, %v16453_v28  ;;  %vm24922_vm8 = vmmov %vm24914_vm7 }
 0xd6d   : > { %v7932_v38 = vsel %vm24922_vm8, %v16458_v32, %v16463_v56  ;;  %vm24926_vm8 = vcmask 523264  }
 0xd72   : > { %13649 = vmatmul.mubr.msk.bf16.gmra.mrb[96].mxu0 %vm24910_vm13, %v17353_v9  ;;  %vm24915_vm13 = vmmov %vm24914_vm7 }
 0xd73   : > { %7619 = vmatprep.mubr.bf16.mxu0 %v24541_v41  ;;  %v7938_v31 = vsel %vm24915_vm13, %v16453_v28, %v16448_v47  ;;  %vm24919_vm13 = vmmov %vm24914_vm7  ;;  %v17358_v47 = vld [vmem:[%s24311_s13 + $0x118] sm:$0xff]   ;;  %v17360_v28 = vld [vmem:[%s24311_s13 + $0x128] sm:$0xff]  }
 0xd74   : > { %v13714_v6 = vpack.c.bf16 %v7939_v54, %v7938_v31  ;;  %v7940_v11 = vsel %vm24919_vm13, %v16463_v56, %v16458_v32  ;;  %vm24924_vm13 = vmmov %vm24914_vm7  ;;  %v16492_v54 = vpop.permute.xlu0 %16491  ;;  %v17362_v31 = vld [vmem:[%s24311_s13 + $0x138] sm:$0xff]  }
 0xd75   : > { %v13720_v34 = vpack.c.bf16 %v7941_v53, %v7940_v11  ;;  %v7935_v44 = vsel %vm24924_vm13, %v16469_v36, %v16474_v33  ;;  %vm24929_vm13 = vmmov %vm24926_vm8  ;;  %v16494_v32 = vunpack.i.h.bf16 %v16492_v54 }
 0xd78   : > { %v16502_v63 = vpop.permute.xlu0 %16501 }
 0xd79   : > { %v16504_v53 = vunpack.i.h.bf16 %v16502_v63  ;;  %v16503_v11 = vunpack.i.l.bf16 %v16502_v63 }
 0xd7a   : > { %13650 = vmatmul.mubr.msk.bf16.gmra.mrb[100].mxu0 %vm24911_vm14, %v17354_v12  ;;  %vm24916_vm14 = vmmov %vm24914_vm7 }
 0xd7b   : > { %7783 = vmatprep.mubr.bf16.mxu0 %v24541_v41  ;;  %v7931_v7 = vsel %vm24916_vm14, %v16449_v37, %v16454_v0  ;;  %vm24921_vm14 = vmmov %vm24914_vm7  ;;  %v17357_v37 = vld [vmem:[%s24311_s13 + $0x110] sm:$0xff]   ;;  %v17359_v0 = vld [vmem:[%s24311_s13 + $0x120] sm:$0xff]  }
 0xd7c   : > { %v13717_v35 = vpack.c.bf16 %v7931_v7, %v7930_v25  ;;  %v7933_v58 = vsel %vm24921_vm14, %v16459_v13, %v16464_v55  ;;  %vm24925_vm14 = vmmov %vm24914_vm7  ;;  %v16488_v13 = vunpack.i.l.bf16 %v16487_v48  ;;  %v16493_v55 = vunpack.i.l.bf16 %v16492_v54 }
 0xd7d   : > { %v13723_v57 = vpack.c.bf16 %v7933_v58, %v7932_v38  ;;  %v7934_v9 = vsel %vm24925_vm14, %v16468_v43, %v16473_v10  ;;  %vm24930_vm14 = vmmov %vm24926_vm8  ;;  %v17363_v43 = vld [vmem:[%s24311_s13 + $0x140] sm:$0xff]   ;;  %v16498_v10 = vunpack.i.l.bf16 %v16497_v52 }
 0xd7e   : > { %v13729_v14 = vpack.c.bf16 %v7935_v44, %v7934_v9 }
 0xd82   : > { %13675 = vmatmul.mubr.msk.bf16.vlgmr.msra.gmra.mrb[72].mxu0 %vm24918_vm9, %v17355_v27  ;;  %vm24923_vm9 = vmmov %vm24914_vm7  ;;  %v16489_v27 = vunpack.i.h.bf16 %v16487_v48 }
 0xd83   : > { %13712 = vmatpush1.bf16.msk.msra.mxu0 %vm24920_vm12, %v13711_v46  ;;  %7793 = vmatprep.mubr.bf16.mxu0 %v24541_v41  ;;  %v7943_v2 = vsel %vm24923_vm9, %v16474_v33, %v16469_v36  ;;  %vm24927_vm9 = vcmp.lt.s32.totalorder %v18787_v22, 113  ;;  %v16512_v36 = vpop.permute.xlu0 %16511  ;;  %v16499_v33 = vunpack.i.h.bf16 %v16497_v52 }
 0xd84   : > { %13715 = vmatprep.subr.msk.bf16.mxu0 %vm24906_vm6, %v13714_v6  ;;  %v13726_v17 = vpack.c.bf16 %v7943_v2, %v7942_v23  ;;  %v8235_v49 = vsel %vm24927_vm9, %v16484_v60, %v16479_v62  ;;  %vm24928_vm7 = vmmov %vm24927_vm9  ;;  %v16507_v6 = vpop.permute.xlu1 %16506  ;;  %v16514_v23 = vunpack.i.h.bf16 %v16512_v36 }
 0xd85   : > { %v8234_v12 = vsel %vm24928_vm7, %v16483_v19, %v16478_v3  ;;  %vm24931_vm9 = vmmov %vm24926_vm8  ;;  %v16509_v38 = vunpack.i.h.bf16 %v16507_v6  ;;  %v16508_v2 = vunpack.i.l.bf16 %v16507_v6 }
 0xd86   : > { %v13764_v8 = vpack.c.bf16 %v8235_v49, %v8234_v12  ;;  %vm24932_vm7 = vmmov %vm24926_vm8  ;;  %v17364_v12 = vld [vmem:[%s24311_s13 + $0x148] sm:$0xff]  }
 0xd87   : > { %13718 = vmatpush1.bf16.msk.msra.mxu0 %vm24920_vm12, %v13717_v35 }
 0xd88   : > { %13721 = vmatprep.subr.msk.bf16.mxu0 %vm24906_vm6, %v13720_v34  ;;  %v16513_v34 = vunpack.i.l.bf16 %v16512_v36 }
 0xd8a   : > { %13676 = vmatmul.mubr.msk.bf16.gmra.mrb[76].mxu0 %vm24926_vm8, %v17356_v5 }
 0xd8b   : > { %13724 = vmatpush1.bf16.msk.msra.mxu0 %vm24920_vm12, %v13723_v57  ;;  %7803 = vmatprep.mubr.bf16.mxu0 %v24541_v41 }
 0xd8c   : > { %13727 = vmatprep.subr.msk.bf16.mxu0 %vm24906_vm6, %v13726_v17 }
 0xd8f   : > { %13730 = vmatpush1.bf16.msk.msra.mxu0 %vm24920_vm12, %v13729_v14 }
 0xd90   : > { %13765 = vmatprep.subr.msk.bf16.mxu0 %vm24753_vm1, %v13764_v8 }
 0xd92   : > { %13677 = vmatmul.mubr.msk.bf16.gmra.mrb[80].mxu0 %vm24929_vm13, %v17357_v37  ;;  %vm24933_vm13 = vmmov %vm24932_vm7 }
 0xd93   : > { %7813 = vmatprep.mubr.bf16.mxu0 %v24541_v41 }
 0xd9a   : > { %13678 = vmatmul.mubr.msk.bf16.gmra.mrb[84].mxu0 %vm24930_vm14, %v17358_v47  ;;  %vm24934_vm14 = vcmp.lt.s32.totalorder %v18787_v22, 113 }
 0xd9b   : > { %7823 = vmatprep.mubr.bf16.mxu0 %v24541_v41  ;;  %v8227_v56 = vsel %vm24934_vm14, %v16479_v62, %v16484_v60  ;;  %v16522_v60 = vpop.permute.xlu0 %16521 }
 0xd9c   : > { %v16524_v37 = vunpack.i.h.bf16 %v16522_v60  ;;  %v16523_v47 = vunpack.i.l.bf16 %v16522_v60 }
 0xda2   : > { %13679 = vmatmul.mubr.msk.bf16.gmra.mrb[88].mxu0 %vm24926_vm8, %v17359_v0  ;;  %vm24935_vm8 = vmmov %vm24934_vm14 }
 0xda3   : > { %7833 = vmatprep.mubr.bf16.mxu0 %v24541_v41  ;;  %v8226_v46 = vsel %vm24935_vm8, %v16478_v3, %v16483_v19  ;;  %v16517_v3 = vpop.permute.xlu1 %16516 }
 0xda4   : > { %v13767_v16 = vpack.c.bf16 %v8227_v56, %v8226_v46  ;;  %v16519_v14 = vunpack.i.h.bf16 %v16517_v3  ;;  %v16518_v8 = vunpack.i.l.bf16 %v16517_v3  ;;  %v17369_v56 = vld [vmem:[%s24311_s13 + $0x170] sm:$0xff]  }
 0xda7   : > { %v16527_v46 = vpop.permute.xlu1 %16526 }
 0xdaa   : > { %13680 = vmatmul.mubr.msk.bf16.gmra.mrb[92].mxu0 %vm24931_vm9, %v17360_v28  ;;  %vm24936_vm9 = vmmov %vm24935_vm8 }
 0xdab   : > { %7843 = vmatprep.mubr.bf16.mxu0 %v24541_v41  ;;  %v8237_v7 = vsel %vm24936_vm9, %v16494_v32, %v16489_v27  ;;  %v16537_v6 = vpop.permute.xlu1 %16536 }
 0xdb2   : > { %13681 = vmatmul.mubr.msk.bf16.gmra.mrb[96].mxu0 %vm24932_vm7, %v17361_v61  ;;  %vm24937_vm7 = vmmov %vm24935_vm8  ;;  %vm24940_vm8 = vcmask 523264  }
 0xdb3   : > { %7853 = vmatprep.mubr.bf16.mxu0 %v24541_v41  ;;  %v8236_v25 = vsel %vm24937_vm7, %v16493_v55, %v16488_v13  ;;  %vm24939_vm14 = vmmov %vm24937_vm7  ;;  %v8238_v62 = vsel %vm24937_vm7, %v16503_v11, %v16498_v10  ;;  %v8233_v28 = vsel %vm24937_vm7, %v16509_v38, %v16514_v23 }
 0xdb4   : > { %v8228_v35 = vsel %vm24939_vm14, %v16488_v13, %v16493_v55  ;;  %v13770_v58 = vpack.c.bf16 %v8237_v7, %v8236_v25  ;;  %vm24941_vm9 = vmmov %vm24937_vm7  ;;  %v17366_v13 = vld [vmem:[%s24311_s13 + $0x158] sm:$0xff]   ;;  %v17368_v55 = vld [vmem:[%s24311_s13 + $0x168] sm:$0xff]   ;;  %v16532_v7 = vpop.permute.xlu0 %16531 }
 0xdb5   : > { %v8239_v5 = vsel %vm24941_vm9, %v16504_v53, %v16499_v33  ;;  %vm24943_vm14 = vmmov %vm24937_vm7  ;;  %v17370_v25 = vld [vmem:[%s24311_s13 + $0x178] sm:$0xff]  }
 0xdb6   : > { %v8230_v44 = vsel %vm24943_vm14, %v16498_v10, %v16503_v11  ;;  %vm24945_vm9 = vmmov %vm24937_vm7  ;;  %v13776_v49 = vpack.c.bf16 %v8239_v5, %v8238_v62  ;;  %vm24947_vm14 = vcmask 523264   ;;  %v16534_v10 = vunpack.i.h.bf16 %v16532_v7 }
 0xdb7   : > { %v8240_v17 = vsel %vm24945_vm9, %v16513_v34, %v16508_v2 }
 0xdb8   : > { %v16542_v36 = vpop.permute.xlu0 %16541 }
 0xdb9   : > { %v16544_v5 = vunpack.i.h.bf16 %v16542_v36  ;;  %v16543_v62 = vunpack.i.l.bf16 %v16542_v36 }
 0xdba   : > { %13682 = vmatmul.mubr.msk.bf16.gmra.mrb[100].mxu0 %vm24933_vm13, %v17362_v31  ;;  %vm24938_vm13 = vmmov %vm24937_vm7 }
 0xdbb   : > { %8081 = vmatprep.mubr.bf16.mxu0 %v24541_v41  ;;  %v8229_v21 = vsel %vm24938_vm13, %v16489_v27, %v16494_v32  ;;  %vm24942_vm13 = vmmov %vm24937_vm7  ;;  %v17365_v27 = vld [vmem:[%s24311_s13 + $0x150] sm:$0xff]   ;;  %v17367_v32 = vld [vmem:[%s24311_s13 + $0x160] sm:$0xff]  }
 0xdbc   : > { %v13773_v19 = vpack.c.bf16 %v8229_v21, %v8228_v35  ;;  %v8231_v57 = vsel %vm24942_vm13, %v16499_v33, %v16504_v53  ;;  %vm24946_vm13 = vmmov %vm24937_vm7  ;;  %v16528_v33 = vunpack.i.l.bf16 %v16527_v46  ;;  %v16533_v53 = vunpack.i.l.bf16 %v16532_v7 }
 0xdbd   : > { %v13779_v0 = vpack.c.bf16 %v8231_v57, %v8230_v44  ;;  %v8232_v61 = vsel %vm24946_vm13, %v16508_v2, %v16513_v34  ;;  %vm24951_vm13 = vmmov %vm24947_vm14  ;;  %v17371_v2 = vld [vmem:[%s24311_s13 + $0x180] sm:$0xff]   ;;  %v16538_v34 = vunpack.i.l.bf16 %v16537_v6 }
 0xdbe   : > { %v13785_v52 = vpack.c.bf16 %v8233_v28, %v8232_v61 }
 0xdc2   : > { %13731 = vmatmul.mubr.msk.bf16.vlgmr.msra.gmra.mrb[72].mxu0 %vm24940_vm8, %v17363_v43  ;;  %vm24944_vm8 = vmmov %vm24937_vm7  ;;  %vm24950_vm7 = vnez %v24596_v40  ;;  %v16529_v43 = vunpack.i.h.bf16 %v16527_v46 }
 0xdc3   : > { %13768 = vmatpush1.bf16.msk.msra.mxu0 %vm24763_vm2, %v13767_v16  ;;  %8091 = vmatprep.mubr.bf16.mxu0 %v24541_v41  ;;  %v8241_v9 = vsel %vm24944_vm8, %v16514_v23, %v16509_v38  ;;  %vm24948_vm8 = vcmp.lt.s32.totalorder %v18787_v22, 112  ;;  %v16552_v38 = vpop.permute.xlu0 %16551  ;;  %v16539_v23 = vunpack.i.h.bf16 %v16537_v6 }
 0xdc4   : > { %13771 = vmatprep.subr.msk.bf16.mxu0 %vm24753_vm1, %v13770_v58  ;;  %v13782_v48 = vpack.c.bf16 %v8241_v9, %v8240_v17  ;;  %v8533_v54 = vsel %vm24948_vm8, %v16524_v37, %v16519_v14  ;;  %vm24949_vm9 = vmmov %vm24948_vm8  ;;  %v16547_v58 = vpop.permute.xlu1 %16546  ;;  %v16554_v17 = vunpack.i.h.bf16 %v16552_v38 }
 0xdc5   : > { %v8532_v31 = vsel %vm24949_vm9, %v16523_v47, %v16518_v8  ;;  %vm24953_vm8 = vmmov %vm24951_vm13  ;;  %v16549_v44 = vunpack.i.h.bf16 %v16547_v58  ;;  %v16548_v9 = vunpack.i.l.bf16 %v16547_v58 }
 0xdc6   : > { %v13820_v63 = vpack.c.bf16 %v8533_v54, %v8532_v31  ;;  %vm24954_vm9 = vmmov %vm24953_vm8  ;;  %v17372_v31 = vld [vmem:[%s24311_s13 + $0x188] sm:$0xff]  }
 0xdc7   : > { %13774 = vmatpush1.bf16.msk.msra.mxu0 %vm24763_vm2, %v13773_v19 }
 0xdc8   : > { %13777 = vmatprep.subr.msk.bf16.mxu0 %vm24753_vm1, %v13776_v49  ;;  %v16553_v49 = vunpack.i.l.bf16 %v16552_v38 }
 0xdca   : > { %13732 = vmatmul.mubr.msk.bf16.gmra.mrb[76].mxu0 %vm24947_vm14, %v17364_v12  ;;  %vm24952_vm14 = vmmov %vm24951_vm13 }
 0xdcb   : > { %13780 = vmatpush1.bf16.msk.msra.mxu0 %vm24763_vm2, %v13779_v0  ;;  %8101 = vmatprep.mubr.bf16.mxu0 %v24541_v41 }
 0xdcc   : > { %13783 = vmatprep.subr.msk.bf16.mxu0 %vm24753_vm1, %v13782_v48  ;;  %vm24966_vm1 = vnez %v24599_v29 }
 0xdcf   : > { %13786 = vmatpush1.bf16.msk.msra.mxu0 %vm24763_vm2, %v13785_v52 }
 0xdd0   : > { %13821 = vmatprep.subr.msk.bf16.mxu0 %vm24950_vm7, %v13820_v63 }
 0xdd2   : > { %13733 = vmatmul.mubr.msk.bf16.gmra.mrb[80].mxu0 %vm24951_vm13, %v17365_v27  ;;  %vm24955_vm13 = vmmov %vm24953_vm8 }
 0xdd3   : > { %8111 = vmatprep.mubr.bf16.mxu0 %v24541_v41 }
 0xdda   : > { %13734 = vmatmul.mubr.msk.bf16.gmra.mrb[84].mxu0 %vm24952_vm14, %v17366_v13  ;;  %vm24956_vm14 = vmmov %vm24953_vm8 }
 0xddb   : > { %8121 = vmatprep.mubr.bf16.mxu0 %v24541_v41 }
 0xde2   : > { %13735 = vmatmul.mubr.msk.bf16.gmra.mrb[88].mxu0 %vm24953_vm8, %v17367_v32  ;;  %vm24957_vm8 = vcmp.lt.s32.totalorder %v18787_v22, 112 }
 0xde3   : > { %8131 = vmatprep.mubr.bf16.mxu0 %v24541_v41  ;;  %v8525_v11 = vsel %vm24957_vm8, %v16519_v14, %v16524_v37  ;;  %vm24960_vm2 = vmmov %vm24957_vm8  ;;  %v16562_v37 = vpop.permute.xlu0 %16561 }
 0xde4   : > { %v8534_v35 = vsel %vm24960_vm2, %v16533_v53, %v16528_v33  ;;  %v16564_v27 = vunpack.i.h.bf16 %v16562_v37  ;;  %v16563_v13 = vunpack.i.l.bf16 %v16562_v37 }
 0xdea   : > { %13736 = vmatmul.mubr.msk.bf16.gmra.mrb[92].mxu0 %vm24954_vm9, %v17368_v55  ;;  %vm24958_vm9 = vmmov %vm24957_vm8 }
 0xdeb   : > { %8141 = vmatprep.mubr.bf16.mxu0 %v24541_v41  ;;  %v8524_v16 = vsel %vm24958_vm9, %v16518_v8, %v16523_v47  ;;  %v16557_v8 = vpop.permute.xlu1 %16556 }
 0xdec   : > { %v13823_v3 = vpack.c.bf16 %v8525_v11, %v8524_v16  ;;  %v16559_v52 = vunpack.i.h.bf16 %v16557_v8  ;;  %v16558_v63 = vunpack.i.l.bf16 %v16557_v8  ;;  %v17377_v11 = vld [vmem:[%s24311_s13 + $0x1b0] sm:$0xff]  }
 0xdef   : > { %v16567_v16 = vpop.permute.xlu1 %16566 }
 0xdf2   : > { %13737 = vmatmul.mubr.msk.bf16.gmra.mrb[96].mxu0 %vm24955_vm13, %v17369_v56  ;;  %vm24959_vm13 = vmmov %vm24957_vm8 }
 0xdf3   : > { %8151 = vmatprep.mubr.bf16.mxu0 %v24541_v41  ;;  %v8535_v21 = vsel %vm24959_vm13, %v16534_v10, %v16529_v43  ;;  %vm24962_vm8 = vmmov %vm24960_vm2  ;;  %v16577_v58 = vpop.permute.xlu1 %16576 }
 0xdf4   : > { %v8526_v19 = vsel %vm24962_vm8, %v16528_v33, %v16533_v53  ;;  %v13826_v57 = vpack.c.bf16 %v8535_v21, %v8534_v35  ;;  %vm24964_vm9 = vmmov %vm24962_vm8  ;;  %v8528_v28 = vsel %vm24962_vm8, %v16538_v34, %v16543_v62  ;;  %v17374_v33 = vld [vmem:[%s24311_s13 + $0x198] sm:$0xff]   ;;  %v17376_v53 = vld [vmem:[%s24311_s13 + $0x1a8] sm:$0xff]   ;;  %v16572_v21 = vpop.permute.xlu0 %16571 }
 0xdf5   : > { %v8537_v12 = vsel %vm24964_vm9, %v16544_v5, %v16539_v23  ;;  %vm24965_vm13 = vmmov %vm24962_vm8  ;;  %v17378_v35 = vld [vmem:[%s24311_s13 + $0x1b8] sm:$0xff]  }
 0xdf6   : > { %v8536_v14 = vsel %vm24965_vm13, %v16543_v62, %v16538_v34  ;;  %v16574_v34 = vunpack.i.h.bf16 %v16572_v21 }
 0xdf7   : > { %v13832_v54 = vpack.c.bf16 %v8537_v12, %v8536_v14  ;;  %v16587_v12 = vpop.permute.xlu1 %16586 }
 0xdf8   : > { %v16582_v38 = vpop.permute.xlu0 %16581 }
 0xdfa   : > { %13738 = vmatmul.mubr.msk.bf16.gmra.mrb[100].mxu0 %vm24956_vm14, %v17370_v25  ;;  %vm24961_vm14 = vmmov %vm24960_vm2  ;;  %vm24963_vm2 = vcmask 523264  }
 0xdfb   : > { %8379 = vmatprep.mubr.bf16.mxu0 %v24541_v41  ;;  %v8527_v60 = vsel %vm24961_vm14, %v16529_v43, %v16534_v10  ;;  %vm24967_vm14 = vmmov %vm24962_vm8  ;;  %v17373_v43 = vld [vmem:[%s24311_s13 + $0x190] sm:$0xff]   ;;  %v17375_v10 = vld [vmem:[%s24311_s13 + $0x1a0] sm:$0xff]  }
 0xdfc   : > { %v13829_v47 = vpack.c.bf16 %v8527_v60, %v8526_v19  ;;  %v8529_v0 = vsel %vm24967_vm14, %v16539_v23, %v16544_v5  ;;  %v16568_v23 = vunpack.i.l.bf16 %v16567_v16  ;;  %v16573_v5 = vunpack.i.l.bf16 %v16572_v21  ;;  %v16592_v14 = vpop.permute.xlu0 %16591  ;;  %v17386_v21 = vld [vmem:[%s24311_s13 + $0x1f8] sm:$0xff]  }
 0xdfd   : > { %v13835_v32 = vpack.c.bf16 %v8529_v0, %v8528_v28  ;;  %v16579_v60 = vunpack.i.h.bf16 %v16577_v58  ;;  %v16578_v19 = vunpack.i.l.bf16 %v16577_v58  ;;  %v17388_v58 = vld [vmem:[%s24311_s13 + $0x208] sm:$0xff]  }
 0xe02   : > { %13787 = vmatmul.mubr.msk.bf16.vlgmr.msra.gmra.mrb[72].mxu0 %vm24963_vm2, %v17371_v2  ;;  %vm24968_vm2 = vmmov %vm24962_vm8  ;;  %vm24972_vm8 = vcmask 523264   ;;  %v16569_v2 = vunpack.i.h.bf16 %v16567_v16  ;;  %v17385_v16 = vld [vmem:[%s24311_s13 + $0x1f0] sm:$0xff]  }
 0xe03   : > { %13824 = vmatpush1.bf16.msk.msra.mxu0 %vm24966_vm1, %v13823_v3  ;;  %8389 = vmatprep.mubr.bf16.mxu0 %v24541_v41  ;;  %v8539_v61 = vsel %vm24968_vm2, %v16554_v17, %v16549_v44  ;;  %vm24969_vm9 = vmmov %vm24968_vm2 }
 0xe04   : > { %13827 = vmatprep.subr.msk.bf16.mxu0 %vm24950_vm7, %v13826_v57  ;;  %v8538_v48 = vsel %vm24969_vm9, %v16553_v49, %v16548_v9  ;;  %vm24970_vm13 = vmmov %vm24968_vm2  ;;  %v16584_v57 = vunpack.i.h.bf16 %v16582_v38 }
 0xe05   : > { %v8531_v55 = vsel %vm24970_vm13, %v16549_v44, %v16554_v17  ;;  %vm24971_vm14 = vmmov %vm24968_vm2  ;;  %v13838_v46 = vpack.c.bf16 %v8539_v61, %v8538_v48  ;;  %vm24973_vm2 = vcmp.lt.s32.totalorder %v18787_v22, 111  ;;  %v16583_v44 = vunpack.i.l.bf16 %v16582_v38  ;;  %v17389_v38 = vld [vmem:[%s24311_s13 + $0x210] sm:$0xff]  }
 0xe06   : > { %v8530_v56 = vsel %vm24971_vm14, %v16548_v9, %v16553_v49  ;;  %v8831_v7 = vsel %vm24973_vm2, %v16564_v27, %v16559_v52  ;;  %vm24974_vm9 = vmmov %vm24973_vm2  ;;  %v17379_v9 = vld [vmem:[%s24311_s13 + $0x1c0] sm:$0xff]   ;;  %v16589_v48 = vunpack.i.h.bf16 %v16587_v12 }
 0xe07   : > { %13830 = vmatpush1.bf16.msk.msra.mxu0 %vm24966_vm1, %v13829_v47  ;;  %v8830_v25 = vsel %vm24974_vm9, %v16563_v13, %v16558_v63  ;;  %v13841_v6 = vpack.c.bf16 %v8531_v55, %v8530_v56  ;;  %vm24975_vm13 = vmmov %vm24972_vm8  ;;  %v17380_v55 = vld [vmem:[%s24311_s13 + $0x1c8] sm:$0xff]  }
 0xe08   : > { %13833 = vmatprep.subr.msk.bf16.mxu0 %vm24950_vm7, %v13832_v54  ;;  %v13876_v36 = vpack.c.bf16 %v8831_v7, %v8830_v25  ;;  %vm24976_vm14 = vmmov %vm24972_vm8  ;;  %v16588_v54 = vunpack.i.l.bf16 %v16587_v12 }
 0xe09   : > { %vm24977_vm2 = vmmov %vm24972_vm8 }
 0xe0a   : > { %13788 = vmatmul.mubr.msk.bf16.gmra.mrb[76].mxu0 %vm24972_vm8, %v17372_v31  ;;  %vm24978_vm9 = vmmov %vm24977_vm2  ;;  %v16594_v31 = vunpack.i.h.bf16 %v16592_v14 }
 0xe0b   : > { %13836 = vmatpush1.bf16.msk.msra.mxu0 %vm24966_vm1, %v13835_v32  ;;  %8399 = vmatprep.mubr.bf16.mxu0 %v24541_v41 }
 0xe0c   : > { %13839 = vmatprep.subr.msk.bf16.mxu0 %vm24950_vm7, %v13838_v46  ;;  %vm24988_vm7 = vcmask 523264  }
 0xe0f   : > { %13842 = vmatpush1.bf16.msk.msra.mxu0 %vm24966_vm1, %v13841_v6 }
 0xe10   : > { %13877 = vmatprep.subr.msk.bf16.mxu0 %vm20220_vm0, %v13876_v36 }
 0xe12   : > { %13789 = vmatmul.mubr.msk.bf16.gmra.mrb[80].mxu0 %vm24975_vm13, %v17373_v43  ;;  %vm24979_vm13 = vmmov %vm24977_vm2 }
 0xe13   : > { %8409 = vmatprep.mubr.bf16.mxu0 %v24541_v41 }
 0xe1a   : > { %13790 = vmatmul.mubr.msk.bf16.gmra.mrb[84].mxu0 %vm24976_vm14, %v17374_v33  ;;  %vm24980_vm14 = vcmp.lt.s32.totalorder %v18787_v22, 111  ;;  %v17381_v33 = vld [vmem:[%s24311_s13 + $0x1d0] sm:$0xff]  }
 0xe1b   : > { %8419 = vmatprep.mubr.bf16.mxu0 %v24541_v41  ;;  %v8823_v62 = vsel %vm24980_vm14, %v16559_v52, %v16564_v27  ;;  %v16593_v52 = vunpack.i.l.bf16 %v16592_v14 }
 0xe22   : > { %13791 = vmatmul.mubr.msk.bf16.gmra.mrb[88].mxu0 %vm24972_vm8, %v17375_v10  ;;  %vm24981_vm8 = vmmov %vm24980_vm14  ;;  %v17382_v10 = vld [vmem:[%s24311_s13 + $0x1d8] sm:$0xff]  }
 0xe23   : > { %8429 = vmatprep.mubr.bf16.mxu0 %v24541_v41  ;;  %v8822_v3 = vsel %vm24981_vm8, %v16558_v63, %v16563_v13 }
 0xe24   : > { %v13879_v8 = vpack.c.bf16 %v8823_v62, %v8822_v3  ;;  %v17394_v62 = vld [vmem:[%s24311_s13 + $0x238] sm:$0xff]   ;;  %v9091_v3 = vpop.permute.xlu1 %9090 }
 0xe2a   : > { %13792 = vmatmul.mubr.msk.bf16.gmra.mrb[92].mxu0 %vm24977_vm2, %v17376_v53  ;;  %vm24982_vm2 = vmmov %vm24981_vm8  ;;  %v17383_v53 = vld [vmem:[%s24311_s13 + $0x1e0] sm:$0xff]  }
 0xe2b   : > { %8439 = vmatprep.mubr.bf16.mxu0 %v24541_v41  ;;  %v8833_v17 = vsel %vm24982_vm2, %v16574_v34, %v16569_v2  ;;  %vm24985_vm14 = vmmov %vm24982_vm2 }
 0xe2c   : > { %v8824_v47 = vsel %vm24985_vm14, %v16568_v23, %v16573_v5  ;;  %vm24986_vm8 = vmmov %vm24982_vm2 }
 0xe2d   : > { %v8835_v0 = vsel %vm24986_vm8, %v16584_v57, %v16579_v60  ;;  %vm24987_vm1 = vmmov %vm24982_vm2  ;;  %vm24994_vm8 = vcmask 523264  }
 0xe2e   : > { %v8834_v28 = vsel %vm24987_vm1, %v16583_v44, %v16578_v19  ;;  %v8826_v13 = vsel %vm24987_vm1, %v16578_v19, %v16583_v44  ;;  %vm24993_vm14 = vmmov %vm24987_vm1  ;;  %v9096_v44 = vpop.permute.xlu0 %9095 }
 0xe2f   : > { %v13888_v32 = vpack.c.bf16 %v8835_v0, %v8834_v28  ;;  %v8828_v6 = vsel %vm24993_vm14, %v16588_v54, %v16593_v52 }
 0xe32   : > { %13793 = vmatmul.mubr.msk.bf16.gmra.mrb[96].mxu0 %vm24978_vm9, %v17377_v11  ;;  %vm24983_vm9 = vmmov %vm24982_vm2  ;;  %v17384_v11 = vld [vmem:[%s24311_s13 + $0x1e8] sm:$0xff]  }
 0xe33   : > { %8449 = vmatprep.mubr.bf16.mxu0 %v24541_v41  ;;  %v8832_v49 = vsel %vm24983_vm9, %v16573_v5, %v16568_v23  ;;  %vm24991_vm9 = vmmov %vm24987_vm1  ;;  %v17391_v23 = vld [vmem:[%s24311_s13 + $0x220] sm:$0xff]   ;;  %v17393_v5 = vld [vmem:[%s24311_s13 + $0x230] sm:$0xff]  }
 0xe34   : > { %v13882_v61 = vpack.c.bf16 %v8833_v17, %v8832_v49  ;;  %v8836_v46 = vsel %vm24991_vm9, %v16593_v52, %v16588_v54  ;;  %v9101_v54 = vpop.permute.xlu1 %9100 }
 0xe3a   : > { %13794 = vmatmul.mubr.msk.bf16.gmra.mrb[100].mxu0 %vm24979_vm13, %v17378_v35  ;;  %vm24984_vm13 = vmmov %vm24982_vm2  ;;  %v17387_v35 = vld [vmem:[%s24311_s13 + $0x200] sm:$0xff]  }
 0xe3b   : > { %8677 = vmatprep.mubr.bf16.mxu0 %v24541_v41  ;;  %v8825_v37 = vsel %vm24984_vm13, %v16569_v2, %v16574_v34  ;;  %vm24989_vm2 = vmmov %vm24987_vm1  ;;  %v17390_v2 = vld [vmem:[%s24311_s13 + $0x218] sm:$0xff]   ;;  %v17392_v34 = vld [vmem:[%s24311_s13 + $0x228] sm:$0xff]  }
 0xe3c   : > { %v13885_v63 = vpack.c.bf16 %v8825_v37, %v8824_v47  ;;  %v8827_v27 = vsel %vm24989_vm2, %v16579_v60, %v16584_v57  ;;  %vm24992_vm13 = vmmov %vm24987_vm1 }
 0xe3d   : > { %v13891_v7 = vpack.c.bf16 %v8827_v27, %v8826_v13  ;;  %v8829_v25 = vsel %vm24992_vm13, %v16589_v48, %v16594_v31  ;;  %vm24995_vm2 = vmmov %vm24994_vm8 }
 0xe3e   : > { %v13897_v43 = vpack.c.bf16 %v8829_v25, %v8828_v6 }
 0xe42   : > { %13843 = vmatmul.mubr.msk.bf16.vlgmr.msra.gmra.mrb[72].mxu0 %vm24988_vm7, %v17379_v9  ;;  %vm24990_vm7 = vmmov %vm24987_vm1 }
 0xe43   : > { %13880 = vmatpush1.bf16.msk.msra.mxu0 %vm20247_vm5, %v13879_v8  ;;  %8687 = vmatprep.mubr.bf16.mxu0 %v24541_v41  ;;  %v8837_v56 = vsel %vm24990_vm7, %v16594_v31, %v16589_v48  ;;  %vm24996_vm1 = vmmov %vm24995_vm2 }
 0xe44   : > { %13883 = vmatprep.subr.msk.bf16.mxu0 %vm20220_vm0, %v13882_v61  ;;  %v13894_v36 = vpack.c.bf16 %v8837_v56, %v8836_v46  ;;  %vm24997_vm7 = vmmov %vm24996_vm1 }
 0xe45   : > { %vm24998_vm9 = vmmov %vm24996_vm1 }
 0xe46   : > { %vm24999_vm13 = vmmov %vm24996_vm1 }
 0xe47   : > { %13886 = vmatpush1.bf16.msk.msra.mxu0 %vm20247_vm5, %v13885_v63  ;;  %vm25000_vm14 = vmmov %vm24996_vm1 }
 0xe48   : > { %13889 = vmatprep.subr.msk.bf16.mxu0 %vm20220_vm0, %v13888_v32 }
 0xe4a   : > { %13844 = vmatmul.mubr.msk.bf16.gmra.mrb[76].mxu0 %vm24994_vm8, %v17380_v55  ;;  %vm25001_vm8 = vmmov %vm24996_vm1  ;;  %v9106_v55 = vpop.permute.xlu0 %9105 }
 0xe4b   : > { %13892 = vmatpush1.bf16.msk.msra.mxu0 %vm20247_vm5, %v13891_v7  ;;  %8697 = vmatprep.mubr.bf16.mxu0 %v24541_v41 }
 0xe4c   : > { %13895 = vmatprep.subr.msk.bf16.mxu0 %vm20220_vm0, %v13894_v36 }
 0xe4f   : > { %13898 = vmatpush1.bf16.msk.msra.mxu0 %vm20247_vm5, %v13897_v43 }
 0xe52   : > { %13845 = vmatmul.mubr.msk.bf16.gmra.mrb[80].mxu0 %vm24995_vm2, %v17381_v33  ;;  %vm25002_vm2 = vmmov %vm24996_vm1 }
 0xe53   : > { %8707 = vmatprep.mubr.bf16.mxu0 %v24541_v41 }
 0xe5a   : > { %13846 = vmatmul.mubr.msk.bf16.gmra.mrb[84].mxu0 %vm24996_vm1, %v17382_v10 }
 0xe5b   : > { %8717 = vmatprep.mubr.bf16.mxu0 %v24541_v41 }
 0xe62   : > { %13847 = vmatmul.mubr.msk.bf16.gmra.mrb[88].mxu0 %vm24997_vm7, %v17383_v53  ;;  %vm25003_vm7 = vmmov %vm24996_vm1 }
 0xe63   : > { %8727 = vmatprep.mubr.bf16.mxu0 %v24541_v41 }
 0xe6a   : > { %13848 = vmatmul.mubr.msk.bf16.gmra.mrb[92].mxu0 %vm24998_vm9, %v17384_v11  ;;  %vm25004_vm9 = vmmov %vm24996_vm1 }
 0xe6b   : > { %8737 = vmatprep.mubr.bf16.mxu0 %v24541_v41 }
 0xe72   : > { %13849 = vmatmul.mubr.msk.bf16.gmra.mrb[96].mxu0 %vm24999_vm13, %v17385_v16  ;;  %vm25005_vm13 = vmmov %vm24996_vm1 }
 0xe73   : > { %8747 = vmatprep.mubr.bf16.mxu0 %v24541_v41 }
 0xe7a   : > { %13850 = vmatmul.mubr.msk.bf16.gmra.mrb[100].mxu0 %vm25000_vm14, %v17386_v21  ;;  %vm25006_vm14 = vmmov %vm24996_vm1  ;;  %v9111_v21 = vpop.permute.xlu1 %9110 }
 0xe7b   : > { %8975 = vmatprep.mubr.bf16.mxu0 %v24541_v41 }
 0xe82   : > { %13899 = vmatmul.mubr.msk.bf16.vlgmr.msra.gmra.mrb[72].mxu0 %vm25001_vm8, %v17387_v35  ;;  %vm25007_vm8 = vmmov %vm24996_vm1 }
 0xe83   : > { %8985 = vmatprep.mubr.bf16.mxu0 %v24541_v41 }
 0xe8a   : > { %13900 = vmatmul.mubr.msk.bf16.gmra.mrb[76].mxu0 %vm25002_vm2, %v17388_v58 }
 0xe8b   : > { %8995 = vmatprep.mubr.bf16.mxu0 %v24541_v41 }
 0xe92   : > { %13901 = vmatmul.mubr.msk.bf16.gmra.mrb[80].mxu0 %vm24996_vm1, %v17389_v38 }
 0xe93   : > { %9005 = vmatprep.mubr.bf16.mxu0 %v24541_v41 }
 0xe9a   : > { %13902 = vmatmul.mubr.msk.bf16.gmra.mrb[84].mxu0 %vm25003_vm7, %v17390_v2 }
 0xe9b   : > { %9015 = vmatprep.mubr.bf16.mxu0 %v24541_v41 }
 0xea2   : > { %13903 = vmatmul.mubr.msk.bf16.gmra.mrb[88].mxu0 %vm25004_vm9, %v17391_v23 }
 0xea3   : > { %9025 = vmatprep.mubr.bf16.mxu0 %v24541_v41 }
 0xeaa   : > { %13904 = vmatmul.mubr.msk.bf16.gmra.mrb[92].mxu0 %vm25005_vm13, %v17392_v34 }
 0xeab   : > { %9035 = vmatprep.mubr.bf16.mxu0 %v24541_v41 }
 0xeb2   : > { %13905 = vmatmul.mubr.msk.bf16.gmra.mrb[96].mxu0 %vm25006_vm14, %v17393_v5  ;;  %v9116_v5 = vpop.permute.xlu0 %9115 }
 0xeb3   : > { %9045 = vmatprep.mubr.bf16.mxu0 %v24541_v41 }
 0xeba   : > { %13906 = vmatmul.mubr.msk.bf16.gmra.mrb[100].mxu0 %vm25007_vm8, %v17394_v62 }
 0xf55   : > { %v8977_v60 = vpop.f32.mrb[72].mxu0 }
 0xf56   : > { %v9168_v19 = vadd.f32 %v9091_v3, %v8977_v60  ;;  %v8979_v57 = vpop.f32.mrb[73].mxu0 }
 0xf57   : > { %v9169_v9 = vadd.f32 %v9091_v3, %v8979_v57  ;;  %v8981_v17 = vpop.f32.mrb[74].mxu0 }
 0xf58   : > { %v9232_v49 = vmul.f32 0.2, %v9168_v19  ;;  %v9170_v12 = vadd.f32 %v9096_v44, %v8981_v17  ;;  %v8983_v14 = vpop.f32.mrb[75].mxu0  ;;  %vm9200_vm2 = vcmp.ge.f32.partialorder %v9168_v19, 0.0 }
 0xf59   : > { %vm9201_vm1 = vcmp.ge.f32.partialorder %v9169_v9, 0.0  ;;  %v9233_v8 = vmul.f32 0.2, %v9169_v9  ;;  %v9171_v37 = vadd.f32 %v9096_v44, %v8983_v14 }
 0xf5a   : > { %vm9202_vm7 = vcmp.ge.f32.partialorder %v9170_v12, 0.0  ;;  %v9234_v47 = vmul.f32 0.2, %v9170_v12  ;;  %v22581_v28 = vsel %vm9200_vm2, %v9168_v19, %v9232_v49 }
 0xf5b   : > { %vm9203_vm9 = vcmp.ge.f32.partialorder %v9171_v37, 0.0  ;;  %v9235_v0 = vmul.f32 0.2, %v9171_v37  ;;  %v22583_v61 = vsel %vm9201_vm1, %v9169_v9, %v9233_v8 }
 0xf5c   : > { %v22585_v48 = vsel %vm9202_vm7, %v9170_v12, %v9234_v47 }
 0xf5d   : > { %v22587_v31 = vsel %vm9203_vm9, %v9171_v37, %v9235_v0  ;;  %v8987_v52 = vpop.f32.mrb[76].mxu0  ;;  %v22591_v63 = vpack.i.bf16 %v22585_v48, %v22581_v28  ;;  %v9121_v37 = vpop.permute.xlu1 %9120 }
 0xf5e   : > { %v9172_v27 = vadd.f32 %v9101_v54, %v8987_v52  ;;  %v8989_v13 = vpop.f32.mrb[77].mxu0  ;;  %v22595_v32 = vpack.i.bf16 %v22587_v31, %v22583_v61 }
 0xf5f   : > { %v9173_v56 = vadd.f32 %v9101_v54, %v8989_v13  ;;  %16596 = vrot.lane.b32.xlu1 %v22591_v63, %s25008_s26  ;;  %v8991_v46 = vpop.f32.mrb[78].mxu0 }
 0xf60   : > { %vm9204_vm13 = vcmp.ge.f32.partialorder %v9172_v27, 0.0  ;;  %v9236_v7 = vmul.f32 0.2, %v9172_v27  ;;  %v9174_v25 = vadd.f32 %v9106_v55, %v8991_v46  ;;  %16601 = vrot.lane.b32.xlu0 %v22595_v32, %s25008_s26  ;;  %v8993_v6 = vpop.f32.mrb[79].mxu0 }
 0xf61   : > { %vm9205_vm14 = vcmp.ge.f32.partialorder %v9173_v56, 0.0  ;;  %v9237_v36 = vmul.f32 0.2, %v9173_v56  ;;  %v9175_v43 = vadd.f32 %v9106_v55, %v8993_v6  ;;  %v9126_v55 = vpop.permute.xlu0 %9125 }
 0xf62   : > { %v22601_v33 = vsel %vm9204_vm13, %v9172_v27, %v9236_v7  ;;  %vm9206_vm8 = vcmp.ge.f32.partialorder %v9174_v25, 0.0  ;;  %v9238_v10 = vmul.f32 0.2, %v9174_v25 }
 0xf63   : > { %v22603_v53 = vsel %vm9205_vm14, %v9173_v56, %v9237_v36  ;;  %vm9207_vm2 = vcmp.ge.f32.partialorder %v9175_v43, 0.0  ;;  %v9239_v11 = vmul.f32 0.2, %v9175_v43 }
 0xf64   : > { %v22605_v16 = vsel %vm9206_vm8, %v9174_v25, %v9238_v10 }
 0xf65   : > { %v22607_v35 = vsel %vm9207_vm2, %v9175_v43, %v9239_v11  ;;  %v8997_v58 = vpop.f32.mrb[80].mxu0  ;;  %v22611_v38 = vpack.i.bf16 %v22605_v16, %v22601_v33 }
 0xf66   : > { %v9176_v2 = vadd.f32 %v9111_v21, %v8997_v58  ;;  %v8999_v23 = vpop.f32.mrb[81].mxu0  ;;  %v22615_v34 = vpack.i.bf16 %v22607_v35, %v22603_v53 }
 0xf67   : > { %v9177_v62 = vadd.f32 %v9111_v21, %v8999_v23  ;;  %16606 = vrot.lane.b32.xlu1 %v22611_v38, %s25008_s26  ;;  %v9001_v3 = vpop.f32.mrb[82].mxu0  ;;  %v9131_v23 = vpop.permute.xlu1 %9130 }
 0xf68   : > { %vm9208_vm1 = vcmp.ge.f32.partialorder %v9176_v2, 0.0  ;;  %v9240_v60 = vmul.f32 0.2, %v9176_v2  ;;  %v9178_v19 = vadd.f32 %v9116_v5, %v9001_v3  ;;  %16611 = vrot.lane.b32.xlu0 %v22615_v34, %s25008_s26  ;;  %v9003_v57 = vpop.f32.mrb[83].mxu0 }
 0xf69   : > { %vm9209_vm7 = vcmp.ge.f32.partialorder %v9177_v62, 0.0  ;;  %v9241_v44 = vmul.f32 0.2, %v9177_v62  ;;  %v9179_v9 = vadd.f32 %v9116_v5, %v9003_v57 }
 0xf6a   : > { %v22621_v17 = vsel %vm9208_vm1, %v9176_v2, %v9240_v60  ;;  %vm9210_vm9 = vcmp.ge.f32.partialorder %v9178_v19, 0.0  ;;  %v9242_v49 = vmul.f32 0.2, %v9178_v19 }
 0xf6b   : > { %v22623_v12 = vsel %vm9209_vm7, %v9177_v62, %v9241_v44  ;;  %vm9211_vm13 = vcmp.ge.f32.partialorder %v9179_v9, 0.0  ;;  %v9243_v14 = vmul.f32 0.2, %v9179_v9  ;;  %v9136_v44 = vpop.permute.xlu0 %9135 }
 0xf6c   : > { %v22625_v8 = vsel %vm9210_vm9, %v9178_v19, %v9242_v49 }
 0xf6d   : > { %v22627_v47 = vsel %vm9211_vm13, %v9179_v9, %v9243_v14  ;;  %v9007_v0 = vpop.f32.mrb[84].mxu0  ;;  %v22631_v54 = vpack.i.bf16 %v22625_v8, %v22621_v17 }
 0xf6e   : > { %v9180_v52 = vadd.f32 %v9121_v37, %v9007_v0  ;;  %v9009_v27 = vpop.f32.mrb[85].mxu0  ;;  %v22635_v13 = vpack.i.bf16 %v22627_v47, %v22623_v12 }
 0xf6f   : > { %v9181_v56 = vadd.f32 %v9121_v37, %v9009_v27  ;;  %16616 = vrot.lane.b32.xlu1 %v22631_v54, %s25008_s26  ;;  %v9011_v46 = vpop.f32.mrb[86].mxu0 }
 0xf70   : > { %vm9212_vm14 = vcmp.ge.f32.partialorder %v9180_v52, 0.0  ;;  %v9244_v7 = vmul.f32 0.2, %v9180_v52  ;;  %v9182_v25 = vadd.f32 %v9126_v55, %v9011_v46  ;;  %16621 = vrot.lane.b32.xlu0 %v22635_v13, %s25008_s26  ;;  %v9013_v6 = vpop.f32.mrb[87].mxu0 }
 0xf71   : > { %vm9213_vm8 = vcmp.ge.f32.partialorder %v9181_v56, 0.0  ;;  %v9245_v36 = vmul.f32 0.2, %v9181_v56  ;;  %v9183_v43 = vadd.f32 %v9126_v55, %v9013_v6  ;;  %v9141_v6 = vpop.permute.xlu1 %9140 }
 0xf72   : > { %v22641_v10 = vsel %vm9212_vm14, %v9180_v52, %v9244_v7  ;;  %vm9214_vm2 = vcmp.ge.f32.partialorder %v9182_v25, 0.0  ;;  %v9246_v11 = vmul.f32 0.2, %v9182_v25 }
 0xf73   : > { %v22643_v21 = vsel %vm9213_vm8, %v9181_v56, %v9245_v36  ;;  %vm9215_vm1 = vcmp.ge.f32.partialorder %v9183_v43, 0.0  ;;  %v9247_v58 = vmul.f32 0.2, %v9183_v43 }
 0xf74   : > { %v22645_v2 = vsel %vm9214_vm2, %v9182_v25, %v9246_v11 }
 0xf75   : > { %v22647_v5 = vsel %vm9215_vm1, %v9183_v43, %v9247_v58  ;;  %v9017_v62 = vpop.f32.mrb[88].mxu0  ;;  %v22651_v3 = vpack.i.bf16 %v22645_v2, %v22641_v10 }
 0xf76   : > { %v9184_v60 = vadd.f32 %v9131_v23, %v9017_v62  ;;  %v9019_v19 = vpop.f32.mrb[89].mxu0  ;;  %v22655_v57 = vpack.i.bf16 %v22647_v5, %v22643_v21 }
 0xf77   : > { %v9185_v9 = vadd.f32 %v9131_v23, %v9019_v19  ;;  %16626 = vrot.lane.b32.xlu1 %v22651_v3, %s25008_s26  ;;  %v9021_v49 = vpop.f32.mrb[90].mxu0 }
 0xf78   : > { %vm9216_vm7 = vcmp.ge.f32.partialorder %v9184_v60, 0.0  ;;  %v9248_v14 = vmul.f32 0.2, %v9184_v60  ;;  %v9186_v37 = vadd.f32 %v9136_v44, %v9021_v49  ;;  %16631 = vrot.lane.b32.xlu0 %v22655_v57, %s25008_s26  ;;  %v9023_v0 = vpop.f32.mrb[91].mxu0 }
 0xf79   : > { %vm9217_vm9 = vcmp.ge.f32.partialorder %v9185_v9, 0.0  ;;  %v9249_v52 = vmul.f32 0.2, %v9185_v9  ;;  %v9187_v27 = vadd.f32 %v9136_v44, %v9023_v0 }
 0xf7a   : > { %v22661_v55 = vsel %vm9216_vm7, %v9184_v60, %v9248_v14  ;;  %vm9218_vm13 = vcmp.ge.f32.partialorder %v9186_v37, 0.0  ;;  %v9250_v56 = vmul.f32 0.2, %v9186_v37  ;;  %v9146_v60 = vpop.permute.xlu0 %9145 }
 0xf7b   : > { %25009 = vst [vmem:[#allocation19_spill] sm:$0xff] %v22661_v55  ;;  %v22663_v46 = vsel %vm9217_vm9, %v9185_v9, %v9249_v52  ;;  %vm9219_vm14 = vcmp.ge.f32.partialorder %v9187_v27, 0.0  ;;  %v9251_v7 = vmul.f32 0.2, %v9187_v27 }
 0xf7c   : > { %v22665_v25 = vsel %vm9218_vm13, %v9186_v37, %v9250_v56 }
 0xf7d   : > { %25010 = vst [vmem:[#allocation18_spill] sm:$0xff] %v22665_v25  ;;  %v22667_v36 = vsel %vm9219_vm14, %v9187_v27, %v9251_v7  ;;  %v9027_v43 = vpop.f32.mrb[92].mxu0  ;;  %v22671_v11 = vpack.i.bf16 %v22665_v25, %v22661_v55 }
 0xf7e   : > { %v9188_v58 = vadd.f32 %v9141_v6, %v9027_v43  ;;  %v9029_v23 = vpop.f32.mrb[93].mxu0  ;;  %v22675_v62 = vpack.i.bf16 %v22667_v36, %v22663_v46  ;;  %v9151_v43 = vpop.permute.xlu1 %9150 }
 0xf7f   : > { %v9189_v19 = vadd.f32 %v9141_v6, %v9029_v23  ;;  %16636 = vrot.lane.b32.xlu1 %v22671_v11, %s25008_s26  ;;  %v9031_v44 = vpop.f32.mrb[94].mxu0 }
 0xf80   : > { %vm9220_vm8 = vcmp.ge.f32.partialorder %v9188_v58, 0.0  ;;  %v9252_v9 = vmul.f32 0.2, %v9188_v58  ;;  %v9190_v49 = vadd.f32 %v9146_v60, %v9031_v44  ;;  %16641 = vrot.lane.b32.xlu0 %v22675_v62, %s25008_s26  ;;  %v9033_v14 = vpop.f32.mrb[95].mxu0 }
 0xf81   : > { %vm9221_vm2 = vcmp.ge.f32.partialorder %v9189_v19, 0.0  ;;  %v9253_v37 = vmul.f32 0.2, %v9189_v19  ;;  %v9191_v0 = vadd.f32 %v9146_v60, %v9033_v14 }
 0xf82   : > { %v22681_v52 = vsel %vm9220_vm8, %v9188_v58, %v9252_v9  ;;  %vm9222_vm1 = vcmp.ge.f32.partialorder %v9190_v49, 0.0  ;;  %v9254_v27 = vmul.f32 0.2, %v9190_v49  ;;  %v9161_v59 = vpop.permute.xlu1 %9160 }
 0xf83   : > { %25011 = vst [vmem:[#allocation24_spill] sm:$0xff] %v22681_v52  ;;  %v22683_v56 = vsel %vm9221_vm2, %v9189_v19, %v9253_v37  ;;  %vm9223_vm7 = vcmp.ge.f32.partialorder %v9191_v0, 0.0  ;;  %v9255_v7 = vmul.f32 0.2, %v9191_v0  ;;  %v9156_v19 = vpop.permute.xlu0 %9155 }
 0xf84   : > { %25012 = vst [vmem:[#allocation2_spill] sm:$0xff] %v22683_v56  ;;  %v22685_v6 = vsel %vm9222_vm1, %v9190_v49, %v9254_v27 }
 0xf85   : > { %25013 = vst [vmem:[#allocation3_spill] sm:$0xff] %v22685_v6  ;;  %v22687_v23 = vsel %vm9223_vm7, %v9191_v0, %v9255_v7  ;;  %v9037_v44 = vpop.f32.mrb[96].mxu0  ;;  %v22691_v4 = vpack.i.bf16 %v22685_v6, %v22681_v52 }
 0xf86   : > { %25014 = vst [vmem:[#allocation4_spill] sm:$0xff] %v22687_v23  ;;  %v9192_v15 = vadd.f32 %v9151_v43, %v9037_v44  ;;  %v9039_v60 = vpop.f32.mrb[97].mxu0  ;;  %v22695_v58 = vpack.i.bf16 %v22687_v23, %v22683_v56 }
 0xf87   : > { %v9193_v9 = vadd.f32 %v9151_v43, %v9039_v60  ;;  %16646 = vrot.lane.b32.xlu1 %v22691_v4, %s25008_s26  ;;  %v9041_v49 = vpop.f32.mrb[98].mxu0 }
 0xf88   : > { %vm9224_vm9 = vcmp.ge.f32.partialorder %v9192_v15, 0.0  ;;  %v9256_v14 = vmul.f32 0.2, %v9192_v15  ;;  %v9194_v37 = vadd.f32 %v9156_v19, %v9041_v49  ;;  %16651 = vrot.lane.b32.xlu0 %v22695_v58, %s25008_s26  ;;  %v9043_v0 = vpop.f32.mrb[99].mxu0 }
 0xf89   : > { %vm9225_vm13 = vcmp.ge.f32.partialorder %v9193_v9, 0.0  ;;  %v9257_v27 = vmul.f32 0.2, %v9193_v9  ;;  %v9195_v7 = vadd.f32 %v9156_v19, %v9043_v0 }
 0xf8a   : > { %v22701_v44 = vsel %vm9224_vm9, %v9192_v15, %v9256_v14  ;;  %vm9226_vm14 = vcmp.ge.f32.partialorder %v9194_v37, 0.0  ;;  %v9258_v29 = vmul.f32 0.2, %v9194_v37 }
 0xf8b   : > { %25015 = vst [vmem:[#allocation5_spill] sm:$0xff] %v22701_v44  ;;  %v22703_v40 = vsel %vm9225_vm13, %v9193_v9, %v9257_v27  ;;  %vm9227_vm8 = vcmp.ge.f32.partialorder %v9195_v7, 0.0  ;;  %v9259_v43 = vmul.f32 0.2, %v9195_v7  ;;  %v9166_v9 = vpop.permute.xlu0 %9165  ;;  %vm25023_vm13 = vcmp.lt.s32.totalorder %v18787_v22, 16 }
 0xf8c   : > { %25016 = vst [vmem:[#allocation6_spill] sm:$0xff] %v22703_v40  ;;  %v22705_v60 = vsel %vm9226_vm14, %v9194_v37, %v9258_v29  ;;  %vm25024_vm14 = vmmov %vm25023_vm13 }
 0xf8d   : > { %25017 = vst [vmem:[#allocation7_spill] sm:$0xff] %v22705_v60  ;;  %v22707_v24 = vsel %vm9227_vm8, %v9195_v7, %v9259_v43  ;;  %v9047_v49 = vpop.f32.mrb[100].mxu0  ;;  %v22711_v20 = vpack.i.bf16 %v22705_v60, %v22701_v44  ;;  %vm25025_vm8 = vmmov %vm25023_vm13 }
 0xf8e   : > { %25018 = vst [vmem:[#allocation8_spill] sm:$0xff] %v22707_v24  ;;  %v9196_v26 = vadd.f32 %v9161_v59, %v9047_v49  ;;  %v9049_v19 = vpop.f32.mrb[101].mxu0  ;;  %v22715_v15 = vpack.i.bf16 %v22707_v24, %v22703_v40 }
 0xf8f   : > { %v9197_v14 = vadd.f32 %v9161_v59, %v9049_v19  ;;  %16656 = vrot.lane.b32.xlu1 %v22711_v20, %s25008_s26  ;;  %v9051_v29 = vpop.f32.mrb[102].mxu0 }
 0xf90   : > { %vm9228_vm2 = vcmp.ge.f32.partialorder %v9196_v26, 0.0  ;;  %v9260_v37 = vmul.f32 0.2, %v9196_v26  ;;  %v9198_v0 = vadd.f32 %v9166_v9, %v9051_v29  ;;  %16661 = vrot.lane.b32.xlu0 %v22715_v15, %s25008_s26  ;;  %v9053_v27 = vpop.f32.mrb[103].mxu0 }
 0xf91   : > { %vm9229_vm1 = vcmp.ge.f32.partialorder %v9197_v14, 0.0  ;;  %v9261_v7 = vmul.f32 0.2, %v9197_v14  ;;  %v9199_v43 = vadd.f32 %v9166_v9, %v9053_v27 }
 0xf92   : > { %v22721_v49 = vsel %vm9228_vm2, %v9196_v26, %v9260_v37  ;;  %vm9230_vm7 = vcmp.ge.f32.partialorder %v9198_v0, 0.0  ;;  %v9262_v50 = vmul.f32 0.2, %v9198_v0  ;;  %vm25026_vm2 = vmmov %vm25025_vm8 }
 0xf93   : > { %25019 = vst [vmem:[#allocation9_spill] sm:$0xff] %v22721_v49  ;;  %v22723_v45 = vsel %vm9229_vm1, %v9197_v14, %v9261_v7  ;;  %vm9231_vm9 = vcmp.ge.f32.partialorder %v9199_v43, 0.0  ;;  %v9263_v59 = vmul.f32 0.2, %v9199_v43  ;;  %vm25027_vm1 = vmmov %vm25026_vm2 }
 0xf94   : > { %25020 = vst [vmem:[#allocation10_spill] sm:$0xff] %v22723_v45  ;;  %v22725_v19 = vsel %vm9230_vm7, %v9198_v0, %v9262_v50  ;;  %vm25028_vm7 = vmmov %vm25027_vm1 }
 0xf95   : > { %25021 = vst [vmem:[#allocation11_spill] sm:$0xff] %v22725_v19  ;;  %v22727_v30 = vsel %vm9231_vm9, %v9199_v43, %v9263_v59  ;;  %v22731_v29 = vpack.i.bf16 %v22725_v19, %v22721_v49  ;;  %vm25029_vm9 = vmmov %vm25027_vm1 }
 0xf96   : > { %25022 = vst [vmem:[#allocation12_spill] sm:$0xff] %v22727_v30  ;;  %v22735_v42 = vpack.i.bf16 %v22727_v30, %v22723_v45 }
 0xf97   : > { %16666 = vrot.lane.b32.xlu1 %v22731_v29, %s25008_s26 }
 0xf98   : > { %16671 = vrot.lane.b32.xlu0 %v22735_v42, %s25008_s26  ;;  %s14494_s26 = sshll.u32 %s25313_s25, 7 }
 0xf9b   : > { %16676 = vrot.lane.b32.xlu1 %v22591_v63, %s24813_s0 }
 0xf9c   : > { %16681 = vrot.lane.b32.xlu0 %v22595_v32, %s24813_s0 }
 0xf9f   : > { %16686 = vrot.lane.b32.xlu1 %v22611_v38, %s24813_s0 }
 0xfa0   : > { %16691 = vrot.lane.b32.xlu0 %v22615_v34, %s24813_s0 }
 0xfa3   : > { %16696 = vrot.lane.b32.xlu1 %v22631_v54, %s24813_s0 }
 0xfa4   : > { %16701 = vrot.lane.b32.xlu0 %v22635_v13, %s24813_s0 }
 0xfa7   : > { %16706 = vrot.lane.b32.xlu1 %v22651_v3, %s24813_s0 }
 0xfa8   : > { %16711 = vrot.lane.b32.xlu0 %v22655_v57, %s24813_s0 }
 0xfab   : > { %16716 = vrot.lane.b32.xlu1 %v22671_v11, %s24813_s0 }
 0xfac   : > { %16721 = vrot.lane.b32.xlu0 %v22675_v62, %s24813_s0 }
 0xfaf   : > { %16726 = vrot.lane.b32.xlu1 %v22691_v4, %s24813_s0 }
 0xfb0   : > { %16731 = vrot.lane.b32.xlu0 %v22695_v58, %s24813_s0 }
 0xfb3   : > { %16736 = vrot.lane.b32.xlu1 %v22711_v20, %s24813_s0 }
 0xfb4   : > { %16741 = vrot.lane.b32.xlu0 %v22715_v15, %s24813_s0 }
 0xfb7   : > { %16746 = vrot.lane.b32.xlu1 %v22731_v29, %s24813_s0 }
 0xfb8   : > { %16751 = vrot.lane.b32.xlu0 %v22735_v42, %s24813_s0  ;;  %s25311_s0 = sld [smem:[#allocation36_spill]] }
 0xfbb   : > { %16756 = vrot.lane.b32.xlu1 %v22591_v63, %s24814_s27 }
 0xfbc   : > { %16761 = vrot.lane.b32.xlu0 %v22595_v32, %s24814_s27 }
 0xfbf   : > { %16766 = vrot.lane.b32.xlu1 %v22611_v38, %s24814_s27 }
 0xfc0   : > { %16771 = vrot.lane.b32.xlu0 %v22615_v34, %s24814_s27 }
 0xfc3   : > { %16776 = vrot.lane.b32.xlu1 %v22631_v54, %s24814_s27 }
 0xfc4   : > { %16781 = vrot.lane.b32.xlu0 %v22635_v13, %s24814_s27 }
 0xfc7   : > { %16786 = vrot.lane.b32.xlu1 %v22651_v3, %s24814_s27 }
 0xfc8   : > { %16791 = vrot.lane.b32.xlu0 %v22655_v57, %s24814_s27 }
 0xfcb   : > { %16796 = vrot.lane.b32.xlu1 %v22671_v11, %s24814_s27 }
 0xfcc   : > { %16801 = vrot.lane.b32.xlu0 %v22675_v62, %s24814_s27 }
 0xfcf   : > { %16806 = vrot.lane.b32.xlu1 %v22691_v4, %s24814_s27 }
 0xfd0   : > { %16811 = vrot.lane.b32.xlu0 %v22695_v58, %s24814_s27 }
 0xfd1   : > { %v16597_v59 = vpop.permute.xlu1 %16596 }
 0xfd2   : > { %v16599_v43 = vunpack.i.h.bf16 %v16597_v59  ;;  %v16598_v7 = vunpack.i.l.bf16 %v16597_v59  ;;  %v16602_v0 = vpop.permute.xlu0 %16601 }
 0xfd3   : > { %v16604_v27 = vunpack.i.h.bf16 %v16602_v0  ;;  %v16603_v37 = vunpack.i.l.bf16 %v16602_v0  ;;  %16816 = vrot.lane.b32.xlu1 %v22711_v20, %s24814_s27 }
 0xfd4   : > { %16821 = vrot.lane.b32.xlu0 %v22715_v15, %s24814_s27 }
 0xfd5   : > { %v9537_v14 = vsel %vm25023_vm13, %v16599_v43, %v16604_v27  ;;  %v9553_v9 = vsel %vm25024_vm14, %v16604_v27, %v16599_v43  ;;  %v9536_v26 = vsel %vm25025_vm8, %v16598_v7, %v16603_v37  ;;  %v9552_v59 = vsel %vm25026_vm2, %v16603_v37, %v16598_v7  ;;  %vm25030_vm13 = vmmov %vm25027_vm1 }
 0xfd6   : > { %v13935_v50 = vpack.c.bf16 %v9553_v9, %v9552_v59  ;;  %v13932_v0 = vpack.c.bf16 %v9537_v14, %v9536_v26  ;;  %vm25031_vm14 = vmmov %vm25027_vm1 }
 0xfd7   : > { %16826 = vrot.lane.b32.xlu1 %v22731_v29, %s24814_s27  ;;  %vm25032_vm8 = vmmov %vm25027_vm1 }
 0xfd8   : > { %13933 = vmatprep.subr.msk.bf16.mxu1 %vm18838_vm3, %v13932_v0  ;;  %16831 = vrot.lane.b32.xlu0 %v22735_v42, %s24814_s27  ;;  %vm25033_vm2 = vmmov %vm25027_vm1 }
 0xfd9   : > { %13936 = vmatpush1.bf16.msk.msra.mxu1 %vm18847_vm4, %v13935_v50  ;;  %v16607_v27 = vpop.permute.xlu1 %16606 }
 0xfda   : > { %v16609_v43 = vunpack.i.h.bf16 %v16607_v27  ;;  %v16608_v49 = vunpack.i.l.bf16 %v16607_v27  ;;  %v16612_v19 = vpop.permute.xlu0 %16611 }
 0xfdb   : > { %v16614_v45 = vunpack.i.h.bf16 %v16612_v19  ;;  %v16613_v37 = vunpack.i.l.bf16 %v16612_v19  ;;  %16836 = vrot.lane.b32.xlu1 %v22591_v63, %s24638_s1 }
 0xfdc   : > { %16841 = vrot.lane.b32.xlu0 %v22595_v32, %s24638_s1 }
 0xfdd   : > { %v9539_v26 = vsel %vm25027_vm1, %v16609_v43, %v16614_v45  ;;  %v9555_v9 = vsel %vm25028_vm7, %v16614_v45, %v16609_v43  ;;  %v9538_v50 = vsel %vm25029_vm9, %v16608_v49, %v16613_v37  ;;  %v9554_v14 = vsel %vm25030_vm13, %v16613_v37, %v16608_v49  ;;  %vm25034_vm7 = vmmov %vm25027_vm1 }
 0xfde   : > { %v13941_v7 = vpack.c.bf16 %v9555_v9, %v9554_v14  ;;  %v13938_v19 = vpack.c.bf16 %v9539_v26, %v9538_v50  ;;  %vm25035_vm9 = vmmov %vm25027_vm1 }
 0xfdf   : > { %16846 = vrot.lane.b32.xlu1 %v22611_v38, %s24638_s1  ;;  %vm25036_vm13 = vmmov %vm25027_vm1 }
 0xfe0   : > { %13939 = vmatprep.subr.msk.bf16.mxu1 %vm18838_vm3, %v13938_v19  ;;  %16851 = vrot.lane.b32.xlu0 %v22615_v34, %s24638_s1 }
 0xfe1   : > { %13942 = vmatpush1.bf16.msk.msra.mxu1 %vm18847_vm4, %v13941_v7  ;;  %v16617_v45 = vpop.permute.xlu1 %16616 }
 0xfe2   : > { %v16619_v59 = vunpack.i.h.bf16 %v16617_v45  ;;  %v16618_v0 = vunpack.i.l.bf16 %v16617_v45  ;;  %v16622_v27 = vpop.permute.xlu0 %16621 }
 0xfe3   : > { %v16624_v43 = vunpack.i.h.bf16 %v16622_v27  ;;  %v16623_v49 = vunpack.i.l.bf16 %v16622_v27  ;;  %16856 = vrot.lane.b32.xlu1 %v22631_v54, %s24638_s1 }
 0xfe4   : > { %16861 = vrot.lane.b32.xlu0 %v22635_v13, %s24638_s1 }
 0xfe5   : > { %v9541_v37 = vsel %vm25031_vm14, %v16619_v59, %v16624_v43  ;;  %v9557_v26 = vsel %vm25032_vm8, %v16624_v43, %v16619_v59  ;;  %v9540_v9 = vsel %vm25033_vm2, %v16618_v0, %v16623_v49  ;;  %v9556_v50 = vsel %vm25027_vm1, %v16623_v49, %v16618_v0  ;;  %vm25037_vm14 = vmmov %vm25027_vm1 }
 0xfe6   : > { %v13947_v14 = vpack.c.bf16 %v9557_v26, %v9556_v50  ;;  %v13944_v7 = vpack.c.bf16 %v9541_v37, %v9540_v9  ;;  %vm25038_vm8 = vmmov %vm25027_vm1 }
 0xfe7   : > { %16866 = vrot.lane.b32.xlu1 %v22651_v3, %s24638_s1  ;;  %vm25039_vm2 = vmmov %vm25027_vm1 }
 0xfe8   : > { %13945 = vmatprep.subr.msk.bf16.mxu1 %vm18838_vm3, %v13944_v7  ;;  %16871 = vrot.lane.b32.xlu0 %v22655_v57, %s24638_s1 }
 0xfe9   : > { %13948 = vmatpush1.bf16.msk.msra.mxu1 %vm18847_vm4, %v13947_v14  ;;  %v16627_v19 = vpop.permute.xlu1 %16626 }
 0xfea   : > { %v16629_v45 = vunpack.i.h.bf16 %v16627_v19  ;;  %v16628_v59 = vunpack.i.l.bf16 %v16627_v19  ;;  %v16632_v27 = vpop.permute.xlu0 %16631 }
 0xfeb   : > { %v16634_v43 = vunpack.i.h.bf16 %v16632_v27  ;;  %v16633_v0 = vunpack.i.l.bf16 %v16632_v27  ;;  %16876 = vrot.lane.b32.xlu1 %v22671_v11, %s24638_s1 }
 0xfec   : > { %16881 = vrot.lane.b32.xlu0 %v22675_v62, %s24638_s1 }
 0xfed   : > { %v9543_v49 = vsel %vm25034_vm7, %v16629_v45, %v16634_v43  ;;  %v9559_v37 = vsel %vm25035_vm9, %v16634_v43, %v16629_v45  ;;  %v9542_v26 = vsel %vm25036_vm13, %v16628_v59, %v16633_v0  ;;  %v9558_v9 = vsel %vm25037_vm14, %v16633_v0, %v16628_v59  ;;  %vm25040_vm7 = vmmov %vm25027_vm1 }
 0xfee   : > { %v13953_v50 = vpack.c.bf16 %v9559_v37, %v9558_v9  ;;  %v13950_v14 = vpack.c.bf16 %v9543_v49, %v9542_v26  ;;  %vm25041_vm9 = vmmov %vm25027_vm1 }
 0xfef   : > { %16886 = vrot.lane.b32.xlu1 %v22691_v4, %s24638_s1  ;;  %vm25042_vm13 = vmmov %vm25027_vm1 }
 0xff0   : > { %13951 = vmatprep.subr.msk.bf16.mxu1 %vm18838_vm3, %v13950_v14  ;;  %16891 = vrot.lane.b32.xlu0 %v22695_v58, %s24638_s1  ;;  %vm25043_vm14 = vmmov %vm25027_vm1 }
 0xff1   : > { %13954 = vmatpush1.bf16.msk.msra.mxu1 %vm18847_vm4, %v13953_v50  ;;  %v16637_v7 = vpop.permute.xlu1 %16636 }
 0xff2   : > { %v16639_v19 = vunpack.i.h.bf16 %v16637_v7  ;;  %v16638_v45 = vunpack.i.l.bf16 %v16637_v7  ;;  %v16642_v27 = vpop.permute.xlu0 %16641 }
 0xff3   : > { %v16644_v43 = vunpack.i.h.bf16 %v16642_v27  ;;  %v16643_v59 = vunpack.i.l.bf16 %v16642_v27  ;;  %16896 = vrot.lane.b32.xlu1 %v22711_v20, %s24638_s1 }
 0xff4   : > { %16901 = vrot.lane.b32.xlu0 %v22715_v15, %s24638_s1 }
 0xff5   : > { %v9545_v0 = vsel %vm25038_vm8, %v16639_v19, %v16644_v43  ;;  %v9561_v49 = vsel %vm25039_vm2, %v16644_v43, %v16639_v19  ;;  %v9544_v37 = vsel %vm25027_vm1, %v16638_v45, %v16643_v59  ;;  %v9560_v26 = vsel %vm25040_vm7, %v16643_v59, %v16638_v45  ;;  %vm25044_vm8 = vmmov %vm25027_vm1 }
 0xff6   : > { %v13959_v9 = vpack.c.bf16 %v9561_v49, %v9560_v26  ;;  %v13956_v50 = vpack.c.bf16 %v9545_v0, %v9544_v37  ;;  %vm25045_vm2 = vmmov %vm25027_vm1 }
 0xff7   : > { %16906 = vrot.lane.b32.xlu1 %v22731_v29, %s24638_s1  ;;  %vm25046_vm7 = vmmov %vm25027_vm1 }
 0xff8   : > { %13957 = vmatprep.subr.msk.bf16.mxu1 %vm18838_vm3, %v13956_v50  ;;  %16911 = vrot.lane.b32.xlu0 %v22735_v42, %s24638_s1 }
 0xff9   : > { %13960 = vmatpush1.bf16.msk.msra.mxu1 %vm18847_vm4, %v13959_v9  ;;  %v16647_v14 = vpop.permute.xlu1 %16646 }
 0xffa   : > { %v16649_v7 = vunpack.i.h.bf16 %v16647_v14  ;;  %v16648_v19 = vunpack.i.l.bf16 %v16647_v14  ;;  %v16652_v27 = vpop.permute.xlu0 %16651 }
 0xffb   : > { %v16654_v43 = vunpack.i.h.bf16 %v16652_v27  ;;  %v16653_v45 = vunpack.i.l.bf16 %v16652_v27  ;;  %16916 = vrot.lane.b32.xlu1 %v22591_v63, %s24639_s21 }
 0xffc   : > { %16921 = vrot.lane.b32.xlu0 %v22595_v32, %s24639_s21 }
 0xffd   : > { %v9547_v59 = vsel %vm25041_vm9, %v16649_v7, %v16654_v43  ;;  %v9563_v0 = vsel %vm25042_vm13, %v16654_v43, %v16649_v7  ;;  %v9546_v49 = vsel %vm25043_vm14, %v16648_v19, %v16653_v45  ;;  %v9562_v37 = vsel %vm25044_vm8, %v16653_v45, %v16648_v19  ;;  %vm25047_vm9 = vmmov %vm25027_vm1 }
 0xffe   : > { %v13965_v26 = vpack.c.bf16 %v9563_v0, %v9562_v37  ;;  %v13962_v9 = vpack.c.bf16 %v9547_v59, %v9546_v49  ;;  %vm25048_vm13 = vmmov %vm25027_vm1 }
 0xfff   : > { %16926 = vrot.lane.b32.xlu1 %v22611_v38, %s24639_s21  ;;  %vm25049_vm14 = vmmov %vm25027_vm1 }
0x1000   : > { %13963 = vmatprep.subr.msk.bf16.mxu1 %vm18838_vm3, %v13962_v9  ;;  %16931 = vrot.lane.b32.xlu0 %v22615_v34, %s24639_s21  ;;  %vm25050_vm8 = vmmov %vm25027_vm1 }
0x1001   : > { %13966 = vmatpush1.bf16.msk.msra.mxu1 %vm18847_vm4, %v13965_v26  ;;  %v16657_v50 = vpop.permute.xlu1 %16656 }
0x1002   : > { %v16659_v14 = vunpack.i.h.bf16 %v16657_v50  ;;  %v16658_v7 = vunpack.i.l.bf16 %v16657_v50  ;;  %v16662_v27 = vpop.permute.xlu0 %16661 }
0x1003   : > { %v16664_v43 = vunpack.i.h.bf16 %v16662_v27  ;;  %v16663_v19 = vunpack.i.l.bf16 %v16662_v27  ;;  %16936 = vrot.lane.b32.xlu1 %v22631_v54, %s24639_s21 }
0x1004   : > { %16941 = vrot.lane.b32.xlu0 %v22635_v13, %s24639_s21 }
0x1005   : > { %v9549_v45 = vsel %vm25045_vm2, %v16659_v14, %v16664_v43  ;;  %v9565_v59 = vsel %vm25027_vm1, %v16664_v43, %v16659_v14  ;;  %v9548_v0 = vsel %vm25046_vm7, %v16658_v7, %v16663_v19  ;;  %v9564_v49 = vsel %vm25047_vm9, %v16663_v19, %v16658_v7  ;;  %vm25051_vm2 = vmmov %vm25027_vm1 }
0x1006   : > { %v13971_v37 = vpack.c.bf16 %v9565_v59, %v9564_v49  ;;  %v13968_v26 = vpack.c.bf16 %v9549_v45, %v9548_v0  ;;  %vm25052_vm1 = vcmp.lt.s32.totalorder %v18787_v22, 17 }
0x1007   : > { %16946 = vrot.lane.b32.xlu1 %v22651_v3, %s24639_s21  ;;  %vm25053_vm7 = vmmov %vm25052_vm1 }
0x1008   : > { %13969 = vmatprep.subr.msk.bf16.mxu1 %vm18838_vm3, %v13968_v26  ;;  %16951 = vrot.lane.b32.xlu0 %v22655_v57, %s24639_s21  ;;  %vm25054_vm9 = vmmov %vm25052_vm1 }
0x1009   : > { %13972 = vmatpush1.bf16.msk.msra.mxu1 %vm18847_vm4, %v13971_v37  ;;  %v16667_v9 = vpop.permute.xlu1 %16666 }
0x100a   : > { %v16669_v50 = vunpack.i.h.bf16 %v16667_v9  ;;  %v16668_v14 = vunpack.i.l.bf16 %v16667_v9  ;;  %v16672_v27 = vpop.permute.xlu0 %16671 }
0x100b   : > { %v16674_v43 = vunpack.i.h.bf16 %v16672_v27  ;;  %v16673_v7 = vunpack.i.l.bf16 %v16672_v27  ;;  %16956 = vrot.lane.b32.xlu1 %v22671_v11, %s24639_s21 }
0x100c   : > { %16961 = vrot.lane.b32.xlu0 %v22675_v62, %s24639_s21 }
0x100d   : > { %v9551_v19 = vsel %vm25048_vm13, %v16669_v50, %v16674_v43  ;;  %v9567_v45 = vsel %vm25049_vm14, %v16674_v43, %v16669_v50  ;;  %v9550_v59 = vsel %vm25050_vm8, %v16668_v14, %v16673_v7  ;;  %v9566_v0 = vsel %vm25051_vm2, %v16673_v7, %v16668_v14  ;;  %v16677_v49 = vpop.permute.xlu1 %16676  ;;  %v17395_v50 = vld [vmem:[%s24313_s15 + $0x40] sm:$0xff]   ;;  %vm25055_vm13 = vmmov %vm25052_vm1 }
0x100e   : > { %v13977_v37 = vpack.c.bf16 %v9567_v45, %v9566_v0  ;;  %v16679_v26 = vunpack.i.h.bf16 %v16677_v49  ;;  %v16678_v9 = vunpack.i.l.bf16 %v16677_v49  ;;  %v16682_v27 = vpop.permute.xlu0 %16681  ;;  %v13974_v30 = vpack.c.bf16 %v9551_v19, %v9550_v59  ;;  %vm25057_vm14 = vmmov %vm25052_vm1 }
0x100f   : > { %v16684_v44 = vunpack.i.h.bf16 %v16682_v27  ;;  %v16683_v60 = vunpack.i.l.bf16 %v16682_v27  ;;  %16966 = vrot.lane.b32.xlu1 %v22691_v4, %s24639_s21  ;;  %vm25059_vm8 = vmmov %vm25052_vm1 }
0x1010   : > { %16971 = vrot.lane.b32.xlu0 %v22695_v58, %s24639_s21  ;;  %13975 = vmatprep.subr.msk.bf16.mxu1 %vm18838_vm3, %v13974_v30  ;;  %vm25056_vm3 = vmmov %vm25052_vm1 }
0x1011   : > { %v9377_v14 = vsel %vm25052_vm1, %v16679_v26, %v16684_v44  ;;  %v9393_v43 = vsel %vm25053_vm7, %v16684_v44, %v16679_v26  ;;  %v9376_v7 = vsel %vm25054_vm9, %v16678_v9, %v16683_v60  ;;  %v9392_v19 = vsel %vm25055_vm13, %v16683_v60, %v16678_v9  ;;  %v16687_v45 = vpop.permute.xlu1 %16686  ;;  %13978 = vmatpush1.bf16.msk.msra.mxu1 %vm18847_vm4, %v13977_v37  ;;  %vm25058_vm4 = vmmov %vm25052_vm1 }
0x1012   : > { %v13991_v1 = vpack.c.bf16 %v9393_v43, %v9392_v19  ;;  %v16689_v30 = vunpack.i.h.bf16 %v16687_v45  ;;  %v16688_v59 = vunpack.i.l.bf16 %v16687_v45  ;;  %v16692_v0 = vpop.permute.xlu0 %16691  ;;  %v13988_v49 = vpack.c.bf16 %v9377_v14, %v9376_v7  ;;  %vm25060_vm2 = vmmov %vm25052_vm1 }
0x1013   : > { %v16694_v27 = vunpack.i.h.bf16 %v16692_v0  ;;  %v16693_v40 = vunpack.i.l.bf16 %v16692_v0  ;;  %16976 = vrot.lane.b32.xlu1 %v22711_v20, %s24639_s21  ;;  %vm25061_vm7 = vmmov %vm25052_vm1 }
0x1014   : > { %16981 = vrot.lane.b32.xlu0 %v22715_v15, %s24639_s21  ;;  %9714 = vmatmul.mubr.bf16.vlgmr.msra.gmra.mrb[56].mxu1 %v17395_v50  ;;  %vm25062_vm9 = vmmov %vm25052_vm1 }
0x1015   : > { %v9379_v44 = vsel %vm25056_vm3, %v16689_v30, %v16694_v27  ;;  %v9395_v18 = vsel %vm25057_vm14, %v16694_v27, %v16689_v30  ;;  %v9378_v60 = vsel %vm25058_vm4, %v16688_v59, %v16693_v40  ;;  %v9394_v37 = vsel %vm25059_vm8, %v16693_v40, %v16688_v59  ;;  %13989 = vmatprep.subr.msk.bf16.mxu1 %vm19039_vm10, %v13988_v49  ;;  %v16697_v26 = vpop.permute.xlu1 %16696  ;;  %v17396_v40 = vld [vmem:[%s24313_s15 + $0x48] sm:$0xff]   ;;  %vm25063_vm13 = vmmov %vm25052_vm1 }
0x1016   : > { %v13997_v9 = vpack.c.bf16 %v9395_v18, %v9394_v37  ;;  %v16699_v14 = vunpack.i.h.bf16 %v16697_v26  ;;  %v16698_v43 = vunpack.i.l.bf16 %v16697_v26  ;;  %13992 = vmatpush1.bf16.msk.msra.mxu1 %vm19048_vm11, %v13991_v1  ;;  %v16702_v50 = vpop.permute.xlu0 %16701  ;;  %v13994_v7 = vpack.c.bf16 %v9379_v44, %v9378_v60  ;;  %9723 = vmatprep.mubr.bf16.mxu1 %v24541_v41  ;;  %vm25064_vm3 = vmmov %vm25052_vm1 }
0x1017   : > { %v16704_v19 = vunpack.i.h.bf16 %v16702_v50  ;;  %v16703_v45 = vunpack.i.l.bf16 %v16702_v50  ;;  %16986 = vrot.lane.b32.xlu1 %v22731_v29, %s24639_s21  ;;  %vm25065_vm14 = vmmov %vm25052_vm1 }
0x1018   : > { %16991 = vrot.lane.b32.xlu0 %v22735_v42, %s24639_s21  ;;  %13995 = vmatprep.subr.msk.bf16.mxu1 %vm19039_vm10, %v13994_v7  ;;  %vm25066_vm4 = vmmov %vm25052_vm1  ;;  %s24249_s21 = scalar_lea.vmem %s24315_s17, %s14494_s26 }
0x1019   : > { %v9381_v1 = vsel %vm25060_vm2, %v16699_v14, %v16704_v19  ;;  %v9397_v30 = vsel %vm25052_vm1, %v16704_v19, %v16699_v14  ;;  %v9380_v59 = vsel %vm25061_vm7, %v16698_v43, %v16703_v45  ;;  %v9396_v0 = vsel %vm25062_vm9, %v16703_v45, %v16698_v43  ;;  %v16707_v49 = vpop.permute.xlu1 %16706  ;;  %vm25067_vm8 = vmmov %vm25052_vm1 }
0x101a   : > { %v14003_v27 = vpack.c.bf16 %v9397_v30, %v9396_v0  ;;  %v16709_v44 = vunpack.i.h.bf16 %v16707_v49  ;;  %v16708_v18 = vunpack.i.l.bf16 %v16707_v49  ;;  %13998 = vmatpush1.bf16.msk.msra.mxu1 %vm19048_vm11, %v13997_v9  ;;  %v16712_v60 = vpop.permute.xlu0 %16711  ;;  %v14000_v37 = vpack.c.bf16 %v9381_v1, %v9380_v59  ;;  %vm25068_vm2 = vmmov %vm25052_vm1 }
0x101b   : > { %v16714_v26 = vunpack.i.h.bf16 %v16712_v60  ;;  %v16713_v50 = vunpack.i.l.bf16 %v16712_v60  ;;  %16996 = vrot.lane.b32.xlu1 %v22591_v63, %s24640_s22  ;;  %vm25069_vm7 = vmmov %vm25052_vm1 }
0x101c   : > { %17001 = vrot.lane.b32.xlu0 %v22595_v32, %s24640_s22  ;;  %9724 = vmatmul.mubr.bf16.gmra.mrb[60].mxu1 %v17396_v40  ;;  %vm25070_vm9 = vmmov %vm25052_vm1 }
0x101d   : > { %v9383_v14 = vsel %vm25063_vm13, %v16709_v44, %v16714_v26  ;;  %v9399_v43 = vsel %vm25064_vm3, %v16714_v26, %v16709_v44  ;;  %v9382_v9 = vsel %vm25065_vm14, %v16708_v18, %v16713_v50  ;;  %v9398_v7 = vsel %vm25066_vm4, %v16713_v50, %v16708_v18  ;;  %14001 = vmatprep.subr.msk.bf16.mxu1 %vm19039_vm10, %v14000_v37  ;;  %v16717_v19 = vpop.permute.xlu1 %16716  ;;  %v17397_v44 = vld [vmem:[%s24313_s15 + $0x50] sm:$0xff]   ;;  %vm25071_vm13 = vmmov %vm25052_vm1 }
0x101e   : > { %v14009_v45 = vpack.c.bf16 %v9399_v43, %v9398_v7  ;;  %v16719_v1 = vunpack.i.h.bf16 %v16717_v19  ;;  %v16718_v30 = vunpack.i.l.bf16 %v16717_v19  ;;  %14004 = vmatpush1.bf16.msk.msra.mxu1 %vm19048_vm11, %v14003_v27  ;;  %v16722_v40 = vpop.permute.xlu0 %16721  ;;  %v14006_v59 = vpack.c.bf16 %v9383_v14, %v9382_v9  ;;  %9733 = vmatprep.mubr.bf16.mxu1 %v24541_v41  ;;  %vm25072_vm3 = vmmov %vm25052_vm1 }
0x101f   : > { %v16724_v0 = vunpack.i.h.bf16 %v16722_v40  ;;  %v16723_v49 = vunpack.i.l.bf16 %v16722_v40  ;;  %17006 = vrot.lane.b32.xlu1 %v22611_v38, %s24640_s22  ;;  %vm25073_vm14 = vmmov %vm25052_vm1 }
0x1020   : > { %17011 = vrot.lane.b32.xlu0 %v22615_v34, %s24640_s22  ;;  %14007 = vmatprep.subr.msk.bf16.mxu1 %vm19039_vm10, %v14006_v59  ;;  %vm25074_vm4 = vmmov %vm25052_vm1 }
0x1021   : > { %v9385_v27 = vsel %vm25067_vm8, %v16719_v1, %v16724_v0  ;;  %v9401_v18 = vsel %vm25068_vm2, %v16724_v0, %v16719_v1  ;;  %v9384_v60 = vsel %vm25052_vm1, %v16718_v30, %v16723_v49  ;;  %v9400_v37 = vsel %vm25069_vm7, %v16723_v49, %v16718_v30  ;;  %v16727_v26 = vpop.permute.xlu1 %16726  ;;  %vm25075_vm8 = vmmov %vm25052_vm1 }
0x1022   : > { %v14015_v50 = vpack.c.bf16 %v9401_v18, %v9400_v37  ;;  %v16729_v14 = vunpack.i.h.bf16 %v16727_v26  ;;  %v16728_v43 = vunpack.i.l.bf16 %v16727_v26  ;;  %14010 = vmatpush1.bf16.msk.msra.mxu1 %vm19048_vm11, %v14009_v45  ;;  %v16732_v9 = vpop.permute.xlu0 %16731  ;;  %v14012_v7 = vpack.c.bf16 %v9385_v27, %v9384_v60  ;;  %vm25076_vm2 = vmmov %vm25052_vm1 }
0x1023   : > { %v16734_v19 = vunpack.i.h.bf16 %v16732_v9  ;;  %v16733_v40 = vunpack.i.l.bf16 %v16732_v9  ;;  %17016 = vrot.lane.b32.xlu1 %v22631_v54, %s24640_s22  ;;  %vm25077_vm7 = vmmov %vm25052_vm1 }
0x1024   : > { %17021 = vrot.lane.b32.xlu0 %v22635_v13, %s24640_s22  ;;  %9734 = vmatmul.mubr.bf16.gmra.mrb[64].mxu1 %v17397_v44 }
0x1025   : > { %v9387_v1 = vsel %vm25070_vm9, %v16729_v14, %v16734_v19  ;;  %v9403_v30 = vsel %vm25071_vm13, %v16734_v19, %v16729_v14  ;;  %v9386_v45 = vsel %vm25072_vm3, %v16728_v43, %v16733_v40  ;;  %v9402_v59 = vsel %vm25073_vm14, %v16733_v40, %v16728_v43  ;;  %14013 = vmatprep.subr.msk.bf16.mxu1 %vm19039_vm10, %v14012_v7  ;;  %v16737_v0 = vpop.permute.xlu1 %16736  ;;  %v17398_v14 = vld [vmem:[%s24313_s15 + $0x58] sm:$0xff]   ;;  %vm25078_vm9 = vmmov %vm25052_vm1 }
0x1026   : > { %v14021_v49 = vpack.c.bf16 %v9403_v30, %v9402_v59  ;;  %v16739_v27 = vunpack.i.h.bf16 %v16737_v0  ;;  %v16738_v18 = vunpack.i.l.bf16 %v16737_v0  ;;  %14016 = vmatpush1.bf16.msk.msra.mxu1 %vm19048_vm11, %v14015_v50  ;;  %v16742_v44 = vpop.permute.xlu0 %16741  ;;  %v14018_v60 = vpack.c.bf16 %v9387_v1, %v9386_v45  ;;  %9743 = vmatprep.mubr.bf16.mxu1 %v24541_v41  ;;  %vm25079_vm13 = vmmov %vm25052_vm1 }
0x1027   : > { %v16744_v37 = vunpack.i.h.bf16 %v16742_v44  ;;  %v16743_v26 = vunpack.i.l.bf16 %v16742_v44  ;;  %17026 = vrot.lane.b32.xlu1 %v22651_v3, %s24640_s22  ;;  %vm25080_vm3 = vmmov %vm25052_vm1  ;;  %vm25081_vm14 = vcmp.lt.s32.totalorder %v18787_v22, 15 }
0x1028   : > { %17031 = vrot.lane.b32.xlu0 %v22655_v57, %s24640_s22  ;;  %14019 = vmatprep.subr.msk.bf16.mxu1 %vm19039_vm10, %v14018_v60 }
0x1029   : > { %v9389_v50 = vsel %vm25074_vm4, %v16739_v27, %v16744_v37  ;;  %v9405_v43 = vsel %vm25075_vm8, %v16744_v37, %v16739_v27  ;;  %v9388_v9 = vsel %vm25076_vm2, %v16738_v18, %v16743_v26  ;;  %v9404_v7 = vsel %vm25052_vm1, %v16743_v26, %v16738_v18  ;;  %v16747_v19 = vpop.permute.xlu1 %16746  ;;  %vm25082_vm4 = vmmov %vm25081_vm14 }
0x102a   : > { %v14027_v40 = vpack.c.bf16 %v9405_v43, %v9404_v7  ;;  %v16749_v1 = vunpack.i.h.bf16 %v16747_v19  ;;  %v16748_v30 = vunpack.i.l.bf16 %v16747_v19  ;;  %14022 = vmatpush1.bf16.msk.msra.mxu1 %vm19048_vm11, %v14021_v49  ;;  %v16752_v45 = vpop.permute.xlu0 %16751  ;;  %v14024_v59 = vpack.c.bf16 %v9389_v50, %v9388_v9  ;;  %vm25086_vm8 = vmmov %vm25082_vm4 }
0x102b   : > { %v16754_v0 = vunpack.i.h.bf16 %v16752_v45  ;;  %v16753_v44 = vunpack.i.l.bf16 %v16752_v45  ;;  %17036 = vrot.lane.b32.xlu1 %v22671_v11, %s24640_s22  ;;  %vm25087_vm2 = vmmov %vm25082_vm4 }
0x102c   : > { %17041 = vrot.lane.b32.xlu0 %v22675_v62, %s24640_s22  ;;  %9744 = vmatmul.mubr.bf16.gmra.mrb[68].mxu1 %v17398_v14  ;;  %vm25088_vm1 = vmmov %vm25087_vm2 }
0x102d   : > { %v9391_v27 = vsel %vm25077_vm7, %v16749_v1, %v16754_v0  ;;  %v9407_v18 = vsel %vm25078_vm9, %v16754_v0, %v16749_v1  ;;  %v9390_v49 = vsel %vm25079_vm13, %v16748_v30, %v16753_v44  ;;  %v9406_v60 = vsel %vm25080_vm3, %v16753_v44, %v16748_v30  ;;  %14025 = vmatprep.subr.msk.bf16.mxu1 %vm19039_vm10, %v14024_v59  ;;  %v16757_v37 = vpop.permute.xlu1 %16756  ;;  %v17399_v1 = vld [vmem:[%s24313_s15 + $0x60] sm:$0xff]   ;;  %v17401_v44 = vld [vmem:[%s24313_s15 + $0x70] sm:$0xff]   ;;  %vm25089_vm7 = vmmov %vm25088_vm1 }
0x102e   : > { %v14033_v26 = vpack.c.bf16 %v9407_v18, %v9406_v60  ;;  %v16759_v50 = vunpack.i.h.bf16 %v16757_v37  ;;  %v16758_v43 = vunpack.i.l.bf16 %v16757_v37  ;;  %14028 = vmatpush1.bf16.msk.msra.mxu1 %vm19048_vm11, %v14027_v40  ;;  %v16762_v14 = vpop.permute.xlu0 %16761  ;;  %v14030_v9 = vpack.c.bf16 %v9391_v27, %v9390_v49  ;;  %9753 = vmatprep.mubr.bf16.mxu1 %v24541_v41  ;;  %v17402_v37 = vld [vmem:[%s24313_s15 + $0x78] sm:$0xff]   ;;  %vm25090_vm9 = vmmov %vm25088_vm1 }
0x102f   : > { %v16764_v7 = vunpack.i.h.bf16 %v16762_v14  ;;  %v16763_v19 = vunpack.i.l.bf16 %v16762_v14  ;;  %17046 = vrot.lane.b32.xlu1 %v22691_v4, %s24640_s22  ;;  %vm25091_vm13 = vmmov %vm25088_vm1 }
0x1030   : > { %17051 = vrot.lane.b32.xlu0 %v22695_v58, %s24640_s22  ;;  %14031 = vmatprep.subr.msk.bf16.mxu1 %vm19039_vm10, %v14030_v9  ;;  %vm25084_vm10 = vnez %v25083_v39  ;;  %vm25092_vm3 = vmmov %vm25088_vm1 }
0x1031   : > { %v10020_v40 = vsel %vm25081_vm14, %v16759_v50, %v16764_v7  ;;  %v10019_v30 = vsel %vm25082_vm4, %v16758_v43, %v16763_v19  ;;  %v16767_v59 = vpop.permute.xlu1 %16766 }
0x1032   : > { %14034 = vmatpush1.bf16.msk.msra.mxu1 %vm19048_vm11, %v14033_v26  ;;  %v14060_v45 = vpack.c.bf16 %v10020_v40, %v10019_v30  ;;  %v16772_v0 = vpop.permute.xlu0 %16771  ;;  %v16769_v26 = vunpack.i.h.bf16 %v16767_v59  ;;  %v16768_v14 = vunpack.i.l.bf16 %v16767_v59  ;;  %vm25085_vm11 = vmmov %vm25082_vm4 }
0x1033   : > { %17056 = vrot.lane.b32.xlu1 %v22711_v20, %s24640_s22  ;;  %v16774_v9 = vunpack.i.h.bf16 %v16772_v0  ;;  %vm25095_vm4 = vmmov %vm25088_vm1 }
0x1034   : > { %17061 = vrot.lane.b32.xlu0 %v22715_v15, %s24640_s22  ;;  %9754 = vmatmul.mubr.bf16.gmra.mrb[72].mxu1 %v17399_v1  ;;  %v16773_v1 = vunpack.i.l.bf16 %v16772_v0 }
0x1035   : > { %14061 = vmatprep.subr.msk.bf16.mxu1 %vm25084_vm10, %v14060_v45  ;;  %9763 = vmatprep.mubr.bf16.mxu1 %v24541_v41  ;;  %v16777_v27 = vpop.permute.xlu1 %16776  ;;  %v10036_v45 = vsel %vm25085_vm11, %v16764_v7, %v16759_v50  ;;  %v10022_v59 = vsel %vm25087_vm2, %v16769_v26, %v16774_v9  ;;  %vm25096_vm11 = vmmov %vm25088_vm1 }
0x1036   : > { %v16782_v18 = vpop.permute.xlu0 %16781  ;;  %v10021_v0 = vsel %vm25088_vm1, %v16768_v14, %v16773_v1  ;;  %v16778_v24 = vunpack.i.l.bf16 %v16777_v27  ;;  %vm25098_vm2 = vmmov %vm25088_vm1 }
0x1037   : > { %17066 = vrot.lane.b32.xlu1 %v22731_v29, %s24640_s22  ;;  %v16784_v52 = vunpack.i.h.bf16 %v16782_v18  ;;  %v16783_v50 = vunpack.i.l.bf16 %v16782_v18  ;;  %v14066_v6 = vpack.c.bf16 %v10022_v59, %v10021_v0 }
0x1038   : > { %17071 = vrot.lane.b32.xlu0 %v22735_v42, %s24640_s22  ;;  %s24234_s22 = scalar_lea.vmem %s25311_s0, %s14494_s26 }
0x1039   : > { %v23173_v49 = vpop.permute.xlu1 %16786 }
0x103a   : > { %v23175_v60 = vpop.permute.xlu0 %16791  ;;  %v16789_v56 = vunpack.i.h.bf16 %v23173_v49  ;;  %v16788_v23 = vunpack.i.l.bf16 %v23173_v49 }
0x103b   : > { %17076 = vrot.lane.b32.xlu1 %v22591_v63, %s24641_s23  ;;  %v16794_v55 = vunpack.i.h.bf16 %v23175_v60 }
0x103c   : > { %17081 = vrot.lane.b32.xlu0 %v22595_v32, %s24641_s23  ;;  %9764 = vmatmul.mubr.bf16.gmra.mrb[76].mxu1 %v17400_v51  ;;  %v10035_v51 = vsel %vm25086_vm8, %v16763_v19, %v16758_v43  ;;  %v10038_v43 = vsel %vm25089_vm7, %v16774_v9, %v16769_v26  ;;  %v10037_v19 = vsel %vm25090_vm9, %v16773_v1, %v16768_v14  ;;  %v25093_v9 = vld [vmem:[#allocation31_spill] sm:$0xff]  ;;  %vm25097_vm8 = vmmov %vm25088_vm1 }
0x103d   : > { %9773 = vmatprep.mubr.bf16.mxu1 %v24541_v41  ;;  %v23187_v40 = vpop.permute.xlu1 %16796  ;;  %v14063_v7 = vpack.c.bf16 %v10036_v45, %v10035_v51  ;;  %v10023_v14 = vsel %vm25092_vm3, %v16778_v24, %v16783_v50  ;;  %vm25094_vm14 = vnez %v25093_v9  ;;  %v14069_v49 = vpack.c.bf16 %v10038_v43, %v10037_v19  ;;  %vm25099_vm7 = vmmov %vm25088_vm1  ;;  %v9300_v9 = vld [vmem:[%s24314_s16 + $0x20] sm:$0xff] }
0x103e   : > { %v23189_v30 = vpop.permute.xlu0 %16801  ;;  %v10039_v1 = vsel %vm25096_vm11, %v16783_v50, %v16778_v24  ;;  %v10026_v51 = vsel %vm25097_vm8, %v16789_v56, %v16794_v55  ;;  %v16799_v0 = vunpack.i.h.bf16 %v23187_v40  ;;  %v10042_v19 = vsel %vm25088_vm1, %v16794_v55, %v16789_v56  ;;  %vm25100_vm9 = vmmov %vm25088_vm1 }
0x103f   : > { %17086 = vrot.lane.b32.xlu1 %v22611_v38, %s24641_s23  ;;  %v16804_v24 = vunpack.i.h.bf16 %v23189_v30  ;;  %vm25102_vm3 = vmmov %vm25088_vm1 }
0x1040   : > { %17091 = vrot.lane.b32.xlu0 %v22615_v34, %s24641_s23  ;;  %vm25104_vm11 = vmmov %vm25088_vm1 }
0x1041   : > { %v23216_v18 = vpop.permute.xlu1 %16806  ;;  %v10028_v55 = vsel %vm25100_vm9, %v16799_v0, %v16804_v24  ;;  %vm25105_vm8 = vmmov %vm25088_vm1 }
0x1042   : > { %v16812_v45 = vpop.permute.xlu0 %16811  ;;  %vm25108_vm9 = vmmov %vm25088_vm1 }
0x1043   : > { %17096 = vrot.lane.b32.xlu1 %v22631_v54, %s24641_s23  ;;  %v16813_v25 = vunpack.i.l.bf16 %v16812_v45 }
0x1044   : > { %17101 = vrot.lane.b32.xlu0 %v22635_v13, %s24641_s23  ;;  %9774 = vmatmul.mubr.bf16.gmra.mrb[80].mxu1 %v17401_v44  ;;  %v17403_v44 = vld [vmem:[%s24313_s15] sm:$0xff]  }
0x1045   : > { %9783 = vmatprep.mubr.bf16.mxu1 %v24541_v41  ;;  %v16817_v50 = vpop.permute.xlu1 %16816 }
0x1047   : > { %17106 = vrot.lane.b32.xlu1 %v22651_v3, %s24641_s23 }
0x1048   : > { %17111 = vrot.lane.b32.xlu0 %v22655_v57, %s24641_s23 }
0x104b   : > { %17116 = vrot.lane.b32.xlu1 %v22671_v11, %s24641_s23 }
0x104c   : > { %17121 = vrot.lane.b32.xlu0 %v22675_v62, %s24641_s23  ;;  %9784 = vmatmul.mubr.bf16.gmra.mrb[84].mxu1 %v17402_v37  ;;  %v16779_v37 = vunpack.i.h.bf16 %v16777_v27  ;;  %v16793_v27 = vunpack.i.l.bf16 %v23175_v60 }
0x104d   : > { %9874 = vmatprep.mubr.bf16.mxu1 %v24541_v41 }
0x104e   : > { %v10024_v26 = vsel %vm25091_vm13, %v16779_v37, %v16784_v52  ;;  %v10040_v60 = vsel %vm25095_vm4, %v16784_v52, %v16779_v37  ;;  %v10025_v59 = vsel %vm25098_vm2, %v16788_v23, %v16793_v27  ;;  %v17404_v52 = vld [vmem:[%s24313_s15 + $0x8] sm:$0xff]   ;;  %v16803_v37 = vunpack.i.l.bf16 %v23189_v30  ;;  %vm25101_vm13 = vmmov %vm25088_vm1 }
0x104f   : > { %17126 = vrot.lane.b32.xlu1 %v22691_v4, %s24641_s23  ;;  %v14075_v43 = vpack.c.bf16 %v10040_v60, %v10039_v1  ;;  %v16809_v30 = vunpack.i.h.bf16 %v23216_v18  ;;  %vm25103_vm4 = vmmov %vm25088_vm1 }
0x1050   : > { %17131 = vrot.lane.b32.xlu0 %v22695_v58, %s24641_s23  ;;  %vm25106_vm2 = vmmov %vm25088_vm1 }
0x1053   : > { %17136 = vrot.lane.b32.xlu1 %v22711_v20, %s24641_s23 }
0x1054   : > { %17141 = vrot.lane.b32.xlu0 %v22715_v15, %s24641_s23  ;;  %9875 = vmatmul.mubr.bf16.vlgmr.msra.gmra.mrb[56].mxu1 %v17403_v44  ;;  %v16798_v44 = vunpack.i.l.bf16 %v23187_v40  ;;  %v14078_v40 = vpack.c.bf16 %v10026_v51, %v10025_v59  ;;  %v17405_v51 = vld [vmem:[%s24313_s15 + $0x10] sm:$0xff]   ;;  %v16818_v59 = vunpack.i.l.bf16 %v16817_v50 }
0x1055   : > { %14064 = vmatpush1.bf16.msk.msra.mxu1 %vm25094_vm14, %v14063_v7  ;;  %9884 = vmatprep.mubr.bf16.mxu1 %v24541_v41  ;;  %v16822_v7 = vpop.permute.xlu0 %16821 }
0x1056   : > { %14067 = vmatprep.subr.msk.bf16.mxu1 %vm25084_vm10, %v14066_v6  ;;  %v14072_v6 = vpack.c.bf16 %v10024_v26, %v10023_v14  ;;  %v10041_v26 = vsel %vm25099_vm7, %v16793_v27, %v16788_v23  ;;  %v16808_v14 = vunpack.i.l.bf16 %v23216_v18  ;;  %v10027_v56 = vsel %vm25101_vm13, %v16798_v44, %v16803_v37  ;;  %vm25107_vm7 = vmmov %vm25088_vm1 }
0x1057   : > { %17146 = vrot.lane.b32.xlu1 %v22731_v29, %s24641_s23  ;;  %v10044_v23 = vsel %vm25102_vm3, %v16804_v24, %v16799_v0  ;;  %v14084_v1 = vpack.c.bf16 %v10028_v55, %v10027_v56  ;;  %vm25109_vm13 = vmmov %vm25088_vm1  ;;  %v17406_v56 = vld [vmem:[%s24313_s15 + $0x18] sm:$0xff]  }
0x1058   : > { %17151 = vrot.lane.b32.xlu0 %v22735_v42, %s24641_s23  ;;  %v10029_v18 = vsel %vm25105_vm8, %v16808_v14, %v16813_v25  ;;  %vm25110_vm3 = vmmov %vm25088_vm1 }
0x1059   : > { %14070 = vmatpush1.bf16.msk.msra.mxu1 %vm25094_vm14, %v14069_v49  ;;  %v16814_v49 = vunpack.i.h.bf16 %v16812_v45  ;;  %v16827_v45 = vpop.permute.xlu1 %16826  ;;  %v16832_v60 = vpop.permute.xlu0 %16831  ;;  %vm25113_vm8 = vmmov %vm25088_vm1 }
0x105a   : > { %14073 = vmatprep.subr.msk.bf16.mxu1 %vm25084_vm10, %v14072_v6  ;;  %v16824_v6 = vunpack.i.h.bf16 %v16822_v7 }
0x105b   : > { %17156 = vrot.lane.b32.xlu1 %v22591_v63, %s24647_s20  ;;  %v14081_v63 = vpack.c.bf16 %v10042_v19, %v10041_v26  ;;  %v10030_v27 = vsel %vm25104_vm11, %v16809_v30, %v16814_v49  ;;  %vm25112_vm11 = vmmov %vm25088_vm1 }
0x105c   : > { %17161 = vrot.lane.b32.xlu0 %v22595_v32, %s24647_s20  ;;  %9885 = vmatmul.mubr.bf16.gmra.mrb[60].mxu1 %v17404_v52  ;;  %v10043_v32 = vsel %vm25103_vm4, %v16803_v37, %v16798_v44  ;;  %v16823_v52 = vunpack.i.l.bf16 %v16822_v7  ;;  %v10046_v44 = vsel %vm25106_vm2, %v16814_v49, %v16809_v30  ;;  %v14090_v24 = vpack.c.bf16 %v10030_v27, %v10029_v18  ;;  %vm25111_vm4 = vmmov %vm25088_vm1 }
0x105d   : > { %14076 = vmatpush1.bf16.msk.msra.mxu1 %vm25094_vm14, %v14075_v43  ;;  %9894 = vmatprep.mubr.bf16.mxu1 %v24541_v41  ;;  %v14087_v0 = vpack.c.bf16 %v10044_v23, %v10043_v32  ;;  %v16829_v37 = vunpack.i.h.bf16 %v16827_v45  ;;  %v16834_v7 = vunpack.i.h.bf16 %v16832_v60  ;;  %v16833_v43 = vunpack.i.l.bf16 %v16832_v60  ;;  %vm25114_vm2 = vmmov %vm25088_vm1 }
0x105e   : > { %14079 = vmatprep.subr.msk.bf16.mxu1 %vm25084_vm10, %v14078_v40  ;;  %v10031_v26 = vsel %vm25108_vm9, %v16818_v59, %v16823_v52  ;;  %v10047_v30 = vsel %vm25110_vm3, %v16823_v52, %v16818_v59  ;;  %v17409_v59 = vld [vmem:[%s24313_s15 + $0x30] sm:$0xff]  }
0x105f   : > { %17166 = vrot.lane.b32.xlu1 %v22611_v38, %s24647_s20  ;;  %v16819_v38 = vunpack.i.h.bf16 %v16817_v50  ;;  %v16828_v50 = vunpack.i.l.bf16 %v16827_v45  ;;  %v10050_v27 = vsel %vm25113_vm8, %v16834_v7, %v16829_v37 }
0x1060   : > { %17171 = vrot.lane.b32.xlu0 %v22615_v34, %s24647_s20  ;;  %v10045_v34 = vsel %vm25088_vm1, %v16813_v25, %v16808_v14  ;;  %v23304_v25 = vpop.permute.xlu1 %16836  ;;  %v10034_v14 = vsel %vm25111_vm4, %v16829_v37, %v16834_v7  ;;  %vm25115_vm1 = vcmp.lt.s32.totalorder %v18787_v22, 1  ;;  %v17410_v37 = vld [vmem:[%s24313_s15 + $0x38] sm:$0xff]  }
0x1061   : > { %14082 = vmatpush1.bf16.msk.msra.mxu1 %vm25094_vm14, %v14081_v63  ;;  %v10032_v19 = vsel %vm25107_vm7, %v16819_v38, %v16824_v6  ;;  %v10048_v40 = vsel %vm25109_vm13, %v16824_v6, %v16819_v38  ;;  %v10033_v49 = vsel %vm25112_vm11, %v16828_v50, %v16833_v43  ;;  %v16839_v63 = vunpack.i.h.bf16 %v23304_v25  ;;  %vm25116_vm7 = vmmov %vm25115_vm1  ;;  %v9301_v6 = vld [vmem:[%s24314_s16 + $0x28] sm:$0xff] }
0x1062   : > { %14085 = vmatprep.subr.msk.bf16.mxu1 %vm25084_vm10, %v14084_v1  ;;  %v14096_v55 = vpack.c.bf16 %v10032_v19, %v10031_v26  ;;  %v10049_v18 = vsel %vm25114_vm2, %v16833_v43, %v16828_v50  ;;  %v14102_v45 = vpack.c.bf16 %v10034_v14, %v10033_v49  ;;  %v9305_v50 = vld [vmem:[%s24314_s16 + $0x48] sm:$0xff]  ;;  %v9306_v19 = vld [vmem:[%s24314_s16 + $0x50] sm:$0xff]  ;;  %v9307_v14 = vld [vmem:[%s24314_s16 + $0x58] sm:$0xff] }
0x1063   : > { %17176 = vrot.lane.b32.xlu1 %v22631_v54, %s24647_s20  ;;  %v23306_v54 = vpop.permute.xlu0 %16841  ;;  %vm25120_vm9 = vmmov %vm25115_vm1  ;;  %v17416_v38 = vld [vmem:[%s24313_s15 + $0xa8] sm:$0xff]  }
0x1064   : > { %17181 = vrot.lane.b32.xlu0 %v22635_v13, %s24647_s20  ;;  %9895 = vmatmul.mubr.bf16.gmra.mrb[64].mxu1 %v17405_v51  ;;  %v14093_v13 = vpack.c.bf16 %v10046_v44, %v10045_v34  ;;  %v16844_v23 = vunpack.i.h.bf16 %v23306_v54  ;;  %v16843_v32 = vunpack.i.l.bf16 %v23306_v54  ;;  %v17407_v51 = vld [vmem:[%s24313_s15 + $0x20] sm:$0xff]   ;;  %v9302_v44 = vld [vmem:[%s24314_s16 + $0x30] sm:$0xff]  ;;  %v9303_v34 = vld [vmem:[%s24314_s16 + $0x38] sm:$0xff] }
0x1065   : > { %14088 = vmatpush1.bf16.msk.msra.mxu1 %vm25094_vm14, %v14087_v0  ;;  %9904 = vmatprep.mubr.bf16.mxu1 %v24541_v41  ;;  %v17411_v54 = vld [vmem:[%s24313_s15 + $0x80] sm:$0xff]   ;;  %vm25121_vm13 = vmmov %vm25115_vm1 }
0x1066   : > { %14091 = vmatprep.subr.msk.bf16.mxu1 %vm25084_vm10, %v14090_v24  ;;  %v10374_v60 = vsel %vm25115_vm1, %v16839_v63, %v16844_v23  ;;  %v9304_v24 = vld [vmem:[%s24314_s16 + $0x40] sm:$0xff]  ;;  %vm25122_vm3 = vmmov %vm25115_vm1 }
0x1067   : > { %17186 = vrot.lane.b32.xlu1 %v22651_v3, %s24647_s20  ;;  %v16838_v3 = vunpack.i.l.bf16 %v23304_v25  ;;  %v16852_v39 = vpop.permute.xlu0 %16851  ;;  %v9308_v25 = vld [vmem:[%s24314_s16 + $0x60] sm:$0xff]  ;;  %vm25123_vm4 = vmmov %vm25115_vm1 }
0x1068   : > { %17191 = vrot.lane.b32.xlu0 %v22655_v57, %s24647_s20  ;;  %v14099_v57 = vpack.c.bf16 %v10048_v40, %v10047_v30  ;;  %v16854_v40 = vunpack.i.h.bf16 %v16852_v39  ;;  %v16853_v30 = vunpack.i.l.bf16 %v16852_v39  ;;  %vm25124_vm11 = vmmov %vm25115_vm1  ;;  %v25126_v39 = vld [vmem:[#allocation34_spill] sm:$0xff] }
0x1069   : > { %14094 = vmatpush1.bf16.msk.msra.mxu1 %vm25094_vm14, %v14093_v13  ;;  %vm25125_vm8 = vmmov %vm25115_vm1  ;;  %vm25127_vm2 = vnez %v25126_v39  ;;  %v25148_v39 = vpack.c.bf16 %v22585_v48, %v22581_v28  ;;  %v25152_v28 = vpack.c.bf16 %v22625_v8, %v22621_v17  ;;  %v25153_v48 = vpack.c.bf16 %v22647_v5, %v22643_v21  ;;  %v25157_v17 = vld [vmem:[#allocation19_spill] sm:$0xff]  ;;  %v25159_v21 = vld [vmem:[#allocation4_spill] sm:$0xff] }
0x106a   : > { %14097 = vmatprep.subr.msk.bf16.mxu1 %vm25084_vm10, %v14096_v55  ;;  %v25160_v5 = vld [vmem:[#allocation2_spill] sm:$0xff] }
0x106b   : > { %17196 = vrot.lane.b32.xlu1 %v22671_v11, %s24647_s20  ;;  %v10373_v11 = vsel %vm25116_vm7, %v16838_v3, %v16843_v32  ;;  %v16862_v0 = vpop.permute.xlu0 %16861  ;;  %vm25128_vm7 = vmmov %vm25115_vm1 }
0x106c   : > { %17201 = vrot.lane.b32.xlu0 %v22675_v62, %s24647_s20  ;;  %9905 = vmatmul.mubr.bf16.gmra.mrb[68].mxu1 %v17406_v56  ;;  %v14105_v62 = vpack.c.bf16 %v10050_v27, %v10049_v18  ;;  %v14132_v1 = vpack.c.bf16 %v10374_v60, %v10373_v11  ;;  %v16864_v27 = vunpack.i.h.bf16 %v16862_v0  ;;  %v16863_v18 = vunpack.i.l.bf16 %v16862_v0 }
0x106d   : > { %14100 = vmatpush1.bf16.msk.msra.mxu1 %vm25094_vm14, %v14099_v57  ;;  %9914 = vmatprep.mubr.bf16.mxu1 %v24541_v41 }
0x106e   : > { %14103 = vmatprep.subr.msk.bf16.mxu1 %vm25084_vm10, %v14102_v45  ;;  %vm25118_vm10 = vmmov %vm25115_vm1 }
0x106f   : > { %17206 = vrot.lane.b32.xlu1 %v22691_v4, %s24647_s20  ;;  %v9296_v4 = vld [vmem:[%s24314_s16] sm:$0xff]  ;;  %v23424_v43 = vpop.permute.xlu0 %16871  ;;  %v10390_v49 = vsel %vm25118_vm10, %v16844_v23, %v16839_v63  ;;  %v9309_v23 = vld [vmem:[%s24314_s16 + $0x68] sm:$0xff]  ;;  %vm25129_vm10 = vmmov %vm25115_vm1 }
0x1070   : > { %17211 = vrot.lane.b32.xlu0 %v22695_v58, %s24647_s20  ;;  %v9297_v58 = vld [vmem:[%s24314_s16 + $0x8] sm:$0xff] }
0x1071   : > { %14106 = vmatpush1.bf16.msk.msra.mxu1 %vm25094_vm14, %v14105_v62  ;;  %vm25119_vm14 = vmmov %vm25115_vm1 }
0x1072   : > { %14133 = vmatprep.subr.msk.bf16.mxu1 %vm19366_vm15, %v14132_v1  ;;  %v10389_v55 = vsel %vm25119_vm14, %v16843_v32, %v16838_v3  ;;  %vm25130_vm14 = vmmov %vm25115_vm1 }
0x1073   : > { %17216 = vrot.lane.b32.xlu1 %v22711_v20, %s24647_s20  ;;  %v17408_v20 = vld [vmem:[%s24313_s15 + $0x28] sm:$0xff]   ;;  %v16882_v60 = vpop.permute.xlu0 %16881  ;;  %v14135_v32 = vpack.c.bf16 %v10390_v49, %v10389_v55 }
0x1074   : > { %17221 = vrot.lane.b32.xlu0 %v22715_v15, %s24647_s20  ;;  %9915 = vmatmul.mubr.bf16.gmra.mrb[72].mxu1 %v17407_v51  ;;  %v9298_v15 = vld [vmem:[%s24314_s16 + $0x10] sm:$0xff] }
0x1075   : > { %9924 = vmatprep.mubr.bf16.mxu1 %v24541_v41 }
0x1077   : > { %17226 = vrot.lane.b32.xlu1 %v22731_v29, %s24647_s20  ;;  %v16847_v29 = vpop.permute.xlu1 %16846 }
0x1078   : > { %17231 = vrot.lane.b32.xlu0 %v22735_v42, %s24647_s20  ;;  %v9299_v42 = vld [vmem:[%s24314_s16 + $0x18] sm:$0xff]  ;;  %v16849_v26 = vunpack.i.h.bf16 %v16847_v29  ;;  %v16848_v13 = vunpack.i.l.bf16 %v16847_v29  ;;  %v16873_v29 = vunpack.i.l.bf16 %v23424_v43 }
0x107a   : > { %v10376_v63 = vsel %vm25120_vm9, %v16849_v26, %v16854_v40  ;;  %v10375_v3 = vsel %vm25121_vm13, %v16848_v13, %v16853_v30  ;;  %v10392_v11 = vsel %vm25122_vm3, %v16854_v40, %v16849_v26  ;;  %v10391_v62 = vsel %vm25123_vm4, %v16853_v30, %v16848_v13  ;;  %vm25131_vm9 = vmmov %vm25115_vm1 }
0x107b   : > { %12307 = vperm.xlu1 %15314, %v9296_v4   ;;  %v23404_v52 = vpop.permute.xlu1 %16856  ;;  %v14138_v1 = vpack.c.bf16 %v10376_v63, %v10375_v3  ;;  %vm25132_vm13 = vmmov %vm25115_vm1 }
0x107c   : > { %12312 = vperm.xlu0 %15313, %v9297_v58   ;;  %9925 = vmatmul.mubr.bf16.gmra.mrb[76].mxu1 %v17408_v20  ;;  %v16859_v56 = vunpack.i.h.bf16 %v23404_v52  ;;  %v16858_v57 = vunpack.i.l.bf16 %v23404_v52  ;;  %v9310_v20 = vld [vmem:[%s24314_s16 + $0x70] sm:$0xff]  ;;  %v14141_v52 = vpack.c.bf16 %v10392_v11, %v10391_v62  ;;  %vm25133_vm3 = vmmov %vm25115_vm1 }
0x107d   : > { %9934 = vmatprep.mubr.bf16.mxu1 %v24541_v41  ;;  %vm25134_vm4 = vmmov %vm25115_vm1 }
0x107e   : > { %v10378_v51 = vsel %vm25124_vm11, %v16859_v56, %v16864_v27  ;;  %v10377_v4 = vsel %vm25125_vm8, %v16858_v57, %v16863_v18  ;;  %v10394_v0 = vsel %vm25115_vm1, %v16864_v27, %v16859_v56  ;;  %vm25135_vm11 = vmmov %vm25115_vm1 }
0x107f   : > { %12317 = vperm.xlu1 %15314, %v9298_v15   ;;  %v23422_v7 = vpop.permute.xlu1 %16866  ;;  %vm25136_vm8 = vmmov %vm25115_vm1 }
0x1080   : > { %12322 = vperm.xlu0 %15313, %v9299_v42   ;;  %v16869_v58 = vunpack.i.h.bf16 %v23422_v7  ;;  %v16868_v15 = vunpack.i.l.bf16 %v23422_v7  ;;  %v16874_v42 = vunpack.i.h.bf16 %v23424_v43  ;;  %v16883_v7 = vunpack.i.l.bf16 %v16882_v60  ;;  %v17412_v43 = vld [vmem:[%s24313_s15 + $0x88] sm:$0xff]  }
0x1082   : > { %v10379_v26 = vsel %vm25130_vm14, %v16868_v15, %v16873_v29  ;;  %v10396_v40 = vsel %vm25131_vm9, %v16874_v42, %v16869_v58  ;;  %v10395_v30 = vsel %vm25132_vm13, %v16873_v29, %v16868_v15  ;;  %vm25139_vm14 = vmmov %vm25115_vm1 }
0x1083   : > { %12327 = vperm.xlu1 %15314, %v9300_v9   ;;  %v23447_v45 = vpop.permute.xlu1 %16876  ;;  %v9311_v9 = vld [vmem:[%s24314_s16 + $0x78] sm:$0xff]  ;;  %vm25140_vm9 = vmmov %vm25115_vm1 }
0x1084   : > { %12332 = vperm.xlu0 %15313, %v9301_v6   ;;  %9935 = vmatmul.mubr.bf16.gmra.mrb[80].mxu1 %v17409_v59  ;;  %v16892_v6 = vpop.permute.xlu0 %16891  ;;  %vm25141_vm13 = vmmov %vm25115_vm1 }
0x1085   : > { %9944 = vmatprep.mubr.bf16.mxu1 %v24541_v41 }
0x1087   : > { %12337 = vperm.xlu1 %15314, %v9302_v44   ;;  %v16887_v59 = vpop.permute.xlu1 %16886  ;;  %v10393_v44 = vsel %vm25128_vm7, %v16863_v18, %v16858_v57  ;;  %vm25137_vm7 = vmmov %vm25115_vm1 }
0x1088   : > { %12342 = vperm.xlu0 %15313, %v9303_v34   ;;  %v14144_v34 = vpack.c.bf16 %v10378_v51, %v10377_v4  ;;  %v14147_v13 = vpack.c.bf16 %v10394_v0, %v10393_v44  ;;  %v16902_v57 = vpop.permute.xlu0 %16901  ;;  %v16889_v27 = vunpack.i.h.bf16 %v16887_v59  ;;  %v16888_v18 = vunpack.i.l.bf16 %v16887_v59 }
0x1089   : > { %v16904_v11 = vunpack.i.h.bf16 %v16902_v57  ;;  %v16903_v62 = vunpack.i.l.bf16 %v16902_v57  ;;  %v17417_v57 = vld [vmem:[%s24313_s15 + $0xb0] sm:$0xff]  }
0x108b   : > { %12347 = vperm.xlu1 %15314, %v9304_v24   ;;  %v16879_v24 = vunpack.i.h.bf16 %v23447_v45  ;;  %v16897_v56 = vpop.permute.xlu1 %16896 }
0x108c   : > { %12352 = vperm.xlu0 %15313, %v9305_v50   ;;  %9945 = vmatmul.mubr.bf16.gmra.mrb[84].mxu1 %v17410_v37  ;;  %v16878_v37 = vunpack.i.l.bf16 %v23447_v45  ;;  %v16884_v50 = vunpack.i.h.bf16 %v16882_v60  ;;  %v16894_v45 = vunpack.i.h.bf16 %v16892_v6  ;;  %v16893_v60 = vunpack.i.l.bf16 %v16892_v6 }
0x108d   : > { %10196 = vmatprep.mubr.bf16.mxu1 %v24541_v41 }
0x108e   : > { %v10382_v49 = vsel %vm25133_vm3, %v16879_v24, %v16884_v50  ;;  %v10381_v55 = vsel %vm25134_vm4, %v16878_v37, %v16883_v7  ;;  %v10397_v63 = vsel %vm25136_vm8, %v16883_v7, %v16878_v37  ;;  %v10384_v51 = vsel %vm25115_vm1, %v16889_v27, %v16894_v45  ;;  %vm25142_vm3 = vmmov %vm25115_vm1 }
0x108f   : > { %12357 = vperm.xlu1 %15314, %v9306_v19   ;;  %v10380_v19 = vsel %vm25129_vm10, %v16869_v58, %v16874_v42  ;;  %v14156_v3 = vpack.c.bf16 %v10382_v49, %v10381_v55  ;;  %v10383_v4 = vsel %vm25137_vm7, %v16888_v18, %v16893_v60  ;;  %v16912_v58 = vpop.permute.xlu0 %16911  ;;  %vm25138_vm10 = vmmov %vm25115_vm1  ;;  %v10399_v29 = vsel %vm25139_vm14, %v16893_v60, %v16888_v18  ;;  %v17415_v55 = vld [vmem:[%s24313_s15 + $0xa0] sm:$0xff]   ;;  %v17420_v18 = vld [vmem:[%s24313_s15 + $0xc8] sm:$0xff]  }
0x1090   : > { %12362 = vperm.xlu0 %15313, %v9307_v14   ;;  %v14150_v14 = vpack.c.bf16 %v10380_v19, %v10379_v26  ;;  %v10400_v42 = vsel %vm25138_vm10, %v16894_v45, %v16889_v27  ;;  %v16914_v44 = vunpack.i.h.bf16 %v16912_v58  ;;  %vm25143_vm4 = vmmov %vm25115_vm1  ;;  %v25149_v27 = vpack.c.bf16 %v22607_v35, %v22603_v53  ;;  %v25156_v35 = vld [vmem:[#allocation18_spill] sm:$0xff] }
0x1091   : > { %vm25145_vm8 = vmmov %vm25115_vm1  ;;  %v25150_v45 = vpack.c.bf16 %v22605_v16, %v22601_v33  ;;  %v25151_v60 = vpack.c.bf16 %v22627_v47, %v22623_v12  ;;  %v17421_v33 = vld [vmem:[%s24313_s15 + $0xd0] sm:$0xff]   ;;  %v25154_v53 = vpack.c.bf16 %v22645_v2, %v22641_v10  ;;  %v25155_v16 = vpack.c.bf16 %v22667_v36, %v22663_v46  ;;  %v17422_v10 = vld [vmem:[%s24313_s15 + $0xd8] sm:$0xff]  }
0x1092   : > { %vm25146_vm7 = vmmov %vm25115_vm1  ;;  %v25158_v12 = vpack.c.bf16 %v25156_v35, %v25157_v17 }
0x1093   : > { %12367 = vperm.xlu1 %15314, %v9308_v25   ;;  %v14153_v25 = vpack.c.bf16 %v10396_v40, %v10395_v30  ;;  %v16922_v47 = vpop.permute.xlu0 %16921 }
0x1094   : > { %12372 = vperm.xlu0 %15313, %v9309_v23   ;;  %10197 = vmatmul.mubr.bf16.vlgmr.msra.gmra.mrb[56].mxu1 %v17411_v54  ;;  %v10398_v54 = vsel %vm25135_vm11, %v16884_v50, %v16879_v24  ;;  %v16899_v23 = vunpack.i.h.bf16 %v16897_v56  ;;  %v14165_v24 = vpack.c.bf16 %v10400_v42, %v10399_v29  ;;  %vm25144_vm11 = vmmov %vm25115_vm1  ;;  %v16924_v36 = vunpack.i.h.bf16 %v16922_v47  ;;  %v25174_v42 = vld [vmem:[#allocation10_spill] sm:$0xff] }
0x1095   : > { %14136 = vmatpush1.bf16.msk.msra.mxu1 %vm25127_vm2, %v14135_v32  ;;  %10206 = vmatprep.mubr.bf16.mxu1 %v24541_v41  ;;  %v16898_v32 = vunpack.i.l.bf16 %v16897_v56  ;;  %v14159_v15 = vpack.c.bf16 %v10398_v54, %v10397_v63  ;;  %v25147_v56 = vpack.c.bf16 %v22587_v31, %v22583_v61  ;;  %v17418_v61 = vld [vmem:[%s24313_s15 + $0xb8] sm:$0xff]   ;;  %v17419_v31 = vld [vmem:[%s24313_s15 + $0xc0] sm:$0xff]   ;;  %v16923_v54 = vunpack.i.l.bf16 %v16922_v47  ;;  %v25162_v63 = vld [vmem:[#allocation3_spill] sm:$0xff] }
0x1096   : > { %14139 = vmatprep.subr.msk.bf16.mxu1 %vm19366_vm15, %v14138_v1  ;;  %v17413_v1 = vld [vmem:[%s24313_s15 + $0x90] sm:$0xff]   ;;  %v10386_v59 = vsel %vm25140_vm9, %v16899_v23, %v16904_v11  ;;  %v10402_v37 = vsel %vm25142_vm3, %v16904_v11, %v16899_v23  ;;  %v25166_v11 = vld [vmem:[#allocation6_spill] sm:$0xff] }
0x1097   : > { %12377 = vperm.xlu1 %15314, %v9310_v20   ;;  %v16907_v20 = vpop.permute.xlu1 %16906  ;;  %v10385_v6 = vsel %vm25141_vm13, %v16898_v32, %v16903_v62  ;;  %v10401_v50 = vsel %vm25143_vm4, %v16903_v62, %v16898_v32  ;;  %v25165_v32 = vld [vmem:[#allocation8_spill] sm:$0xff] }
0x1098   : > { %12382 = vperm.xlu0 %15313, %v9311_v9   ;;  %v14162_v9 = vpack.c.bf16 %v10384_v51, %v10383_v4  ;;  %v16908_v0 = vunpack.i.l.bf16 %v16907_v20  ;;  %v14168_v7 = vpack.c.bf16 %v10386_v59, %v10385_v6  ;;  %v25167_v62 = vpack.c.bf16 %v25165_v32, %v25166_v11  ;;  %v25170_v4 = vld [vmem:[#allocation7_spill] sm:$0xff]  ;;  %v17423_v59 = vld [vmem:[%s24313_s15 + $0xe0] sm:$0xff]  }
0x1099   : > { %14142 = vmatpush1.bf16.msk.msra.mxu1 %vm25127_vm2, %v14141_v52  ;;  %v16909_v52 = vunpack.i.h.bf16 %v16907_v20  ;;  %v25171_v20 = vld [vmem:[#allocation5_spill] sm:$0xff]  ;;  %v25176_v6 = vld [vmem:[#allocation11_spill] sm:$0xff] }
0x109a   : > { %14145 = vmatprep.subr.msk.bf16.mxu1 %vm19366_vm15, %v14144_v34  ;;  %v16913_v34 = vunpack.i.l.bf16 %v16912_v58  ;;  %v25172_v58 = vpack.c.bf16 %v25170_v4, %v25171_v20 }
0x109b   : > { %v10388_v19 = vsel %vm25144_vm11, %v16909_v52, %v16914_v44  ;;  %v10404_v40 = vsel %vm25115_vm1, %v16914_v44, %v16909_v52  ;;  %v16917_v8 = vpop.permute.xlu1 %16916  ;;  %v25177_v52 = vld [vmem:[#allocation9_spill] sm:$0xff]  ;;  %v17432_v44 = vld [vmem:[%s24313_s15 + $0x128] sm:$0xff]  }
0x109c   : > { %10207 = vmatmul.mubr.bf16.gmra.mrb[60].mxu1 %v17412_v43  ;;  %v17414_v43 = vld [vmem:[%s24313_s15 + $0x98] sm:$0xff]   ;;  %v10387_v26 = vsel %vm25145_vm8, %v16908_v0, %v16913_v34  ;;  %v10403_v30 = vsel %vm25146_vm7, %v16913_v34, %v16908_v0  ;;  %v16919_v2 = vunpack.i.h.bf16 %v16917_v8  ;;  %v16918_v46 = vunpack.i.l.bf16 %v16917_v8  ;;  %v17424_v34 = vld [vmem:[%s24313_s15 + $0xe8] sm:$0xff]  }
0x109d   : > { %14148 = vmatpush1.bf16.msk.msra.mxu1 %vm25127_vm2, %v14147_v13  ;;  %10216 = vmatprep.mubr.bf16.mxu1 %v24541_v41  ;;  %v14171_v13 = vpack.c.bf16 %v10402_v37, %v10401_v50  ;;  %v14177_v49 = vpack.c.bf16 %v10404_v40, %v10403_v30  ;;  %v25178_v0 = vpack.c.bf16 %v25176_v6, %v25177_v52  ;;  %v16932_v37 = vpop.permute.xlu0 %16931  ;;  %v17425_v50 = vld [vmem:[%s24313_s15 + $0xf0] sm:$0xff]  }
0x109e   : > { %14151 = vmatprep.subr.msk.bf16.mxu1 %vm19366_vm15, %v14150_v14  ;;  %v14174_v14 = vpack.c.bf16 %v10388_v19, %v10387_v26 }
0x10a1   : > { %14154 = vmatpush1.bf16.msk.msra.mxu1 %vm25127_vm2, %v14153_v25  ;;  %v25161_v25 = vpack.c.bf16 %v25159_v21, %v25160_v5 }
0x10a2   : > { %14157 = vmatprep.subr.msk.bf16.mxu1 %vm19366_vm15, %v14156_v3  ;;  %v25163_v3 = vld [vmem:[#allocation24_spill] sm:$0xff] }
0x10a3   : > { %v25164_v23 = vpack.c.bf16 %v25162_v63, %v25163_v3  ;;  %v17428_v3 = vld [vmem:[%s24313_s15 + $0x108] sm:$0xff]  }
0x10a4   : > { %10217 = vmatmul.mubr.bf16.gmra.mrb[64].mxu1 %v17413_v1 }
0x10a5   : > { %14160 = vmatpush1.bf16.msk.msra.mxu1 %vm25127_vm2, %v14159_v15  ;;  %10226 = vmatprep.mubr.bf16.mxu1 %v24541_v41  ;;  %v25173_v15 = vld [vmem:[#allocation12_spill] sm:$0xff] }
0x10a6   : > { %14163 = vmatprep.subr.msk.bf16.mxu1 %vm19366_vm15, %v14162_v9  ;;  %v25175_v29 = vpack.c.bf16 %v25173_v15, %v25174_v42 }
0x10a9   : > { %14166 = vmatpush1.bf16.msk.msra.mxu1 %vm25127_vm2, %v14165_v24  ;;  %v16927_v24 = vpop.permute.xlu1 %16926 }
0x10aa   : > { %14169 = vmatprep.subr.msk.bf16.mxu1 %vm19366_vm15, %v14168_v7  ;;  %v16929_v40 = vunpack.i.h.bf16 %v16927_v24  ;;  %v16928_v30 = vunpack.i.l.bf16 %v16927_v24 }
0x10ac   : > { %10227 = vmatmul.mubr.bf16.gmra.mrb[68].mxu1 %v17414_v43  ;;  %v16942_v43 = vpop.permute.xlu0 %16941 }
0x10ad   : > { %14172 = vmatpush1.bf16.msk.msra.mxu1 %vm25127_vm2, %v14171_v13  ;;  %10236 = vmatprep.mubr.bf16.mxu1 %v24541_v41  ;;  %v16937_v7 = vpop.permute.xlu1 %16936  ;;  %v17426_v13 = vld [vmem:[%s24313_s15 + $0xf8] sm:$0xff]  }
0x10ae   : > { %14175 = vmatprep.subr.msk.bf16.mxu1 %vm19366_vm15, %v14174_v14  ;;  %vm25168_vm15 = vcmp.lt.s32.totalorder %v18787_v22, 127  ;;  %v16934_v14 = vunpack.i.h.bf16 %v16932_v37 }
0x10af   : > { %v10970_v1 = vsel %vm25168_vm15, %v16924_v36, %v16919_v2 }
0x10b0   : > { %v16952_v26 = vpop.permute.xlu0 %16951 }
0x10b1   : > { %14178 = vmatpush1.bf16.msk.msra.mxu1 %vm25127_vm2, %v14177_v49  ;;  %vm25169_vm2 = vmmov %vm25168_vm15  ;;  %v16947_v19 = vpop.permute.xlu1 %16946  ;;  %v16933_v49 = vunpack.i.l.bf16 %v16932_v37  ;;  %v16954_v17 = vunpack.i.h.bf16 %v16952_v26 }
0x10b2   : > { %10744 = vmatprep.subr.bf16.mxu1 %v25147_v56  ;;  %v10969_v51 = vsel %vm25169_vm2, %v16923_v54, %v16918_v46  ;;  %vm25180_vm10 = vmmov %vm25169_vm2  ;;  %v16948_v35 = vunpack.i.l.bf16 %v16947_v19 }
0x10b3   : > { %v14228_v9 = vpack.c.bf16 %v10970_v1, %v10969_v51  ;;  %vm25181_vm14 = vmmov %vm25169_vm2 }
0x10b4   : > { %10237 = vmatmul.mubr.bf16.gmra.mrb[72].mxu1 %v17415_v55  ;;  %v16962_v56 = vpop.permute.xlu0 %16961  ;;  %vm25182_vm9 = vmmov %vm25169_vm2 }
0x10b5   : > { %10246 = vmatprep.mubr.bf16.mxu1 %v24541_v41  ;;  %v16957_v55 = vpop.permute.xlu1 %16956  ;;  %vm25183_vm13 = vmmov %vm25169_vm2  ;;  %v16964_v11 = vunpack.i.h.bf16 %v16962_v56 }
0x10b6   : > { %vm25184_vm3 = vmmov %vm25169_vm2  ;;  %v16958_v32 = vunpack.i.l.bf16 %v16957_v55 }
0x10b7   : > { %vm25185_vm4 = vmmov %vm25169_vm2 }
0x10b8   : > { %v16972_v47 = vpop.permute.xlu0 %16971  ;;  %vm25186_vm11 = vmmov %vm25169_vm2 }
0x10b9   : > { %v16967_v8 = vpop.permute.xlu1 %16966  ;;  %vm25187_vm8 = vmmov %vm25169_vm2 }
0x10ba   : > { %vm25189_vm1 = vmmov %vm25169_vm2  ;;  %v16969_v42 = vunpack.i.h.bf16 %v16967_v8 }
0x10bb   : > { %vm25190_vm7 = vmmov %vm25189_vm1 }
0x10bc   : > { %10247 = vmatmul.mubr.bf16.gmra.mrb[76].mxu1 %v17416_v38  ;;  %v10954_v38 = vsel %vm25180_vm10, %v16919_v2, %v16924_v36  ;;  %vm25191_vm15 = vmmov %vm25189_vm1  ;;  %v16982_v51 = vpop.permute.xlu0 %16981 }
0x10bd   : > { %10256 = vmatprep.mubr.bf16.mxu1 %v24541_v41  ;;  %vm25192_vm2 = vmmov %vm25189_vm1  ;;  %v16977_v1 = vpop.permute.xlu1 %16976 }
0x10be   : > { %vm25193_vm10 = vmmov %vm25189_vm1 }
0x10c4   : > { %10257 = vmatmul.mubr.bf16.gmra.mrb[80].mxu1 %v17417_v57  ;;  %v10953_v57 = vsel %vm25181_vm14, %v16918_v46, %v16923_v54  ;;  %vm25194_vm14 = vmmov %vm25189_vm1 }
0x10c5   : > { %10266 = vmatprep.mubr.bf16.mxu1 %v24541_v41 }
0x10cc   : > { %10267 = vmatmul.mubr.bf16.gmra.mrb[84].mxu1 %v17418_v61  ;;  %v10972_v61 = vsel %vm25182_vm9, %v16934_v14, %v16929_v40  ;;  %vm25195_vm9 = vmmov %vm25189_vm1 }
0x10cd   : > { %10550 = vmatprep.mubr.bf16.mxu1 %v24541_v41 }
0x10d4   : > { %10551 = vmatmul.mubr.bf16.vlgmr.msra.gmra.mrb[56].mxu1 %v17419_v31  ;;  %v10971_v31 = vsel %vm25183_vm13, %v16933_v49, %v16928_v30  ;;  %vm25196_vm13 = vmmov %vm25189_vm1 }
0x10d5   : > { %10745 = vmatpush1.bf16.msra.mxu1 %v25148_v39  ;;  %10560 = vmatprep.mubr.bf16.mxu1 %v24541_v41  ;;  %v17427_v39 = vld [vmem:[%s24313_s15 + $0x100] sm:$0xff]  }
0x10d6   : > { %10746 = vmatprep.subr.bf16.mxu1 %v25149_v27  ;;  %v16939_v27 = vunpack.i.h.bf16 %v16937_v7 }
0x10d9   : > { %10747 = vmatpush1.bf16.msra.mxu1 %v25150_v45  ;;  %v16944_v45 = vunpack.i.h.bf16 %v16942_v43 }
0x10da   : > { %10748 = vmatprep.subr.bf16.mxu1 %v25151_v60  ;;  %v16943_v60 = vunpack.i.l.bf16 %v16942_v43  ;;  %v16987_v43 = vpop.permute.xlu1 %16986 }
0x10db   : > { %v10974_v21 = vsel %vm25186_vm11, %v16944_v45, %v16939_v27  ;;  %v10958_v2 = vsel %vm25189_vm1, %v16939_v27, %v16944_v45  ;;  %vm25199_vm11 = vmmov %vm25189_vm1 }
0x10dc   : > { %10561 = vmatmul.mubr.bf16.gmra.mrb[60].mxu1 %v17420_v18  ;;  %v16938_v18 = vunpack.i.l.bf16 %v16937_v7 }
0x10dd   : > { %10749 = vmatpush1.bf16.msra.mxu1 %v25152_v28  ;;  %10570 = vmatprep.mubr.bf16.mxu1 %v24541_v41  ;;  %v14231_v28 = vpack.c.bf16 %v10954_v38, %v10953_v57  ;;  %v16989_v57 = vunpack.i.h.bf16 %v16987_v43 }
0x10de   : > { %10750 = vmatprep.subr.bf16.mxu1 %v25153_v48  ;;  %v10956_v48 = vsel %vm25184_vm3, %v16929_v40, %v16934_v14  ;;  %v10973_v5 = vsel %vm25187_vm8, %v16943_v60, %v16938_v18  ;;  %v10957_v46 = vsel %vm25190_vm7, %v16938_v18, %v16943_v60  ;;  %vm25197_vm3 = vmmov %vm25189_vm1  ;;  %v16978_v40 = vunpack.i.l.bf16 %v16977_v1  ;;  %v16997_v45 = vpop.permute.xlu1 %16996 }
0x10df   : > { %v14240_v36 = vpack.c.bf16 %v10974_v21, %v10973_v5  ;;  %v14243_v4 = vpack.c.bf16 %v10958_v2, %v10957_v46  ;;  %vm25200_vm8 = vmmov %vm25189_vm1  ;;  %v16983_v14 = vunpack.i.l.bf16 %v16982_v51 }
0x10e0   : > { %vm25201_vm7 = vmmov %vm25189_vm1 }
0x10e1   : > { %10751 = vmatpush1.bf16.msra.mxu1 %v25154_v53  ;;  %v14234_v53 = vpack.c.bf16 %v10972_v61, %v10971_v31  ;;  %v16988_v61 = vunpack.i.l.bf16 %v16987_v43 }
0x10e2   : > { %10752 = vmatprep.subr.bf16.mxu1 %v25155_v16  ;;  %v16949_v16 = vunpack.i.h.bf16 %v16947_v19  ;;  %v16992_v19 = vpop.permute.xlu0 %16991 }
0x10e3   : > { %v16994_v31 = vunpack.i.h.bf16 %v16992_v19 }
0x10e4   : > { %10571 = vmatmul.mubr.bf16.gmra.mrb[64].mxu1 %v17421_v33  ;;  %v10955_v33 = vsel %vm25185_vm4, %v16928_v30, %v16933_v49  ;;  %v10976_v54 = vsel %vm25191_vm15, %v16954_v17, %v16949_v16  ;;  %v10960_v20 = vsel %vm25193_vm10, %v16949_v16, %v16954_v17  ;;  %vm25198_vm4 = vmmov %vm25189_vm1  ;;  %v16984_v30 = vunpack.i.h.bf16 %v16982_v51  ;;  %v17430_v17 = vld [vmem:[%s24313_s15 + $0x118] sm:$0xff]  }
0x10e5   : > { %10753 = vmatpush1.bf16.msra.mxu1 %v25158_v12  ;;  %10580 = vmatprep.mubr.bf16.mxu1 %v24541_v41  ;;  %v16953_v12 = vunpack.i.l.bf16 %v16952_v26  ;;  %v17429_v26 = vld [vmem:[%s24313_s15 + $0x110] sm:$0xff]   ;;  %vm25202_vm15 = vmmov %vm25189_vm1 }
0x10e6   : > { %10754 = vmatprep.subr.bf16.mxu1 %v25161_v25  ;;  %v17002_v60 = vpop.permute.xlu0 %17001  ;;  %vm25204_vm10 = vmmov %vm25189_vm1  ;;  %v17433_v25 = vld [vmem:[%s24313_s15 + $0x130] sm:$0xff]  }
0x10e7   : > { %v10975_v63 = vsel %vm25192_vm2, %v16953_v12, %v16948_v35  ;;  %vm25203_vm2 = vmmov %vm25189_vm1  ;;  %v17003_v21 = vunpack.i.l.bf16 %v17002_v60 }
0x10e8   : > { %v14246_v15 = vpack.c.bf16 %v10976_v54, %v10975_v63  ;;  %v10981_v18 = vsel %vm25203_vm2, %v16983_v14, %v16978_v40 }
0x10e9   : > { %10755 = vmatpush1.bf16.msra.mxu1 %v25164_v23  ;;  %v16959_v23 = vunpack.i.h.bf16 %v16957_v55 }
0x10ea   : > { %10756 = vmatprep.subr.bf16.mxu1 %v25167_v62  ;;  %v16963_v62 = vunpack.i.l.bf16 %v16962_v56 }
0x10eb   : > { %v10978_v6 = vsel %vm25195_vm9, %v16964_v11, %v16959_v23  ;;  %vm25206_vm9 = vmmov %vm25189_vm1 }
0x10ec   : > { %10581 = vmatmul.mubr.bf16.gmra.mrb[68].mxu1 %v17422_v10  ;;  %v14237_v10 = vpack.c.bf16 %v10956_v48, %v10955_v33  ;;  %v10977_v52 = vsel %vm25196_vm13, %v16963_v62, %v16958_v32  ;;  %v10961_v24 = vsel %vm25198_vm4, %v16958_v32, %v16963_v62  ;;  %v10984_v16 = vsel %vm25206_vm9, %v16994_v31, %v16989_v57  ;;  %vm25207_vm13 = vmmov %vm25189_vm1  ;;  %v25212_v32 = vld [vmem:[#allocation23_spill] sm:$0xff]  ;;  %v17012_v62 = vpop.permute.xlu0 %17011 }
0x10ed   : > { %10757 = vmatpush1.bf16.msra.mxu1 %v25172_v58  ;;  %10590 = vmatprep.mubr.bf16.mxu1 %v24541_v41  ;;  %v10959_v58 = vsel %vm25194_vm14, %v16948_v35, %v16953_v12  ;;  %v14252_v37 = vpack.c.bf16 %v10978_v6, %v10977_v52  ;;  %vm25205_vm14 = vmmov %vm25189_vm1  ;;  %v16999_v12 = vunpack.i.h.bf16 %v16997_v45 }
0x10ee   : > { %10758 = vmatprep.subr.bf16.mxu1 %v25175_v29  ;;  %v16968_v29 = vunpack.i.l.bf16 %v16967_v8  ;;  %v10965_v33 = vsel %vm25205_vm14, %v16978_v40, %v16983_v14  ;;  %v16998_v8 = vunpack.i.l.bf16 %v16997_v45  ;;  %vm25209_vm4 = vmmov %vm25189_vm1 }
0x10f0   : > { %v17022_v51 = vpop.permute.xlu0 %17021 }
0x10f1   : > { %10759 = vmatpush1.bf16.msra.mxu1 %v25178_v0  ;;  %v14249_v0 = vpack.c.bf16 %v10960_v20, %v10959_v58  ;;  %v17434_v58 = vld [vmem:[%s24313_s15 + $0x138] sm:$0xff]   ;;  %v17024_v43 = vunpack.i.h.bf16 %v17022_v51 }
0x10f2   : > { %14229 = vmatprep.subr.msk.bf16.mxu1 %vm24906_vm6, %v14228_v9  ;;  %v16974_v9 = vunpack.i.h.bf16 %v16972_v47 }
0x10f4   : > { %10591 = vmatmul.mubr.bf16.gmra.mrb[72].mxu1 %v17423_v59  ;;  %v16973_v59 = vunpack.i.l.bf16 %v16972_v47  ;;  %v10964_v55 = vsel %vm25189_vm1, %v16969_v42, %v16974_v9  ;;  %v17004_v47 = vunpack.i.h.bf16 %v17002_v60  ;;  %v17032_v20 = vpop.permute.xlu0 %17031 }
0x10f5   : > { %10600 = vmatprep.mubr.bf16.mxu1 %v24541_v41 }
0x10f6   : > { %v10979_v7 = vsel %vm25200_vm8, %v16973_v59, %v16968_v29  ;;  %v10963_v56 = vsel %vm25201_vm7, %v16968_v29, %v16973_v59  ;;  %v17014_v29 = vunpack.i.h.bf16 %v17012_v62 }
0x10f8   : > { %v17042_v6 = vpop.permute.xlu0 %17041 }
0x10fc   : > { %10601 = vmatmul.mubr.bf16.gmra.mrb[76].mxu1 %v17424_v34  ;;  %v10962_v34 = vsel %vm25197_vm3, %v16959_v23, %v16964_v11  ;;  %vm25208_vm3 = vmmov %vm25189_vm1  ;;  %v17431_v23 = vld [vmem:[%s24313_s15 + $0x120] sm:$0xff]   ;;  %vm25213_vm1 = vnez %v25212_v32  ;;  %v17007_v11 = vpop.permute.xlu1 %17006  ;;  %v17440_v32 = vld [vmem:[%s24313_s15 + $0x168] sm:$0xff]  }
0x10fd   : > { %10610 = vmatprep.mubr.bf16.mxu1 %v24541_v41  ;;  %v14255_v49 = vpack.c.bf16 %v10962_v34, %v10961_v24 }
0x1104   : > { %10611 = vmatmul.mubr.bf16.gmra.mrb[80].mxu1 %v17425_v50  ;;  %v10980_v50 = vsel %vm25199_vm11, %v16974_v9, %v16969_v42  ;;  %vm25210_vm11 = vcmp.lt.s32.totalorder %v18787_v22, 113  ;;  %v17008_v42 = vunpack.i.l.bf16 %v17007_v11  ;;  %v17013_v9 = vunpack.i.l.bf16 %v17012_v62 }
0x1105   : > { %10620 = vmatprep.mubr.bf16.mxu1 %v24541_v41  ;;  %v14258_v38 = vpack.c.bf16 %v10980_v50, %v10979_v7  ;;  %vm25211_vm8 = vmmov %vm25210_vm11 }
0x1106   : > { %v11323_v54 = vsel %vm25211_vm8, %v17003_v21, %v16998_v8 }
0x110c   : > { %10621 = vmatmul.mubr.bf16.gmra.mrb[84].mxu1 %v17426_v13  ;;  %v16979_v13 = vunpack.i.h.bf16 %v16977_v1  ;;  %v17017_v1 = vpop.permute.xlu1 %17016 }
0x110d   : > { %10776 = vmatprep.mubr.bf16.mxu1 %v24541_v41  ;;  %v17019_v50 = vunpack.i.h.bf16 %v17017_v1  ;;  %v17018_v7 = vunpack.i.l.bf16 %v17017_v1 }
0x110e   : > { %v10982_v27 = vsel %vm25202_vm15, %v16984_v30, %v16979_v13  ;;  %v10966_v48 = vsel %vm25204_vm10, %v16979_v13, %v16984_v30 }
0x110f   : > { %v14267_v5 = vpack.c.bf16 %v10966_v48, %v10965_v33  ;;  %v17436_v33 = vld [vmem:[%s24313_s15 + $0x148] sm:$0xff]  }
0x1114   : > { %10777 = vmatmul.mubr.bf16.vlgmr.msra.gmra.mrb[56].mxu1 %v17427_v39  ;;  %v16993_v39 = vunpack.i.l.bf16 %v16992_v19  ;;  %v17023_v19 = vunpack.i.l.bf16 %v17022_v51 }
0x1115   : > { %14232 = vmatpush1.bf16.msk.msra.mxu1 %vm24920_vm12, %v14231_v28  ;;  %10786 = vmatprep.mubr.bf16.mxu1 %v24541_v41  ;;  %v14261_v28 = vpack.c.bf16 %v10964_v55, %v10963_v56  ;;  %v17034_v55 = vunpack.i.h.bf16 %v17032_v20  ;;  %v17033_v56 = vunpack.i.l.bf16 %v17032_v20  ;;  %v17437_v20 = vld [vmem:[%s24313_s15 + $0x150] sm:$0xff]  }
0x1116   : > { %14235 = vmatprep.subr.msk.bf16.mxu1 %vm24906_vm6, %v14234_v53  ;;  %v14264_v53 = vpack.c.bf16 %v10982_v27, %v10981_v18  ;;  %v10983_v35 = vsel %vm25207_vm13, %v16993_v39, %v16988_v61  ;;  %v10967_v2 = vsel %vm25209_vm4, %v16988_v61, %v16993_v39  ;;  %v25222_v39 = vld [vmem:[#allocation22_spill] sm:$0xff] }
0x1117   : > { %v14270_v46 = vpack.c.bf16 %v10984_v16, %v10983_v35  ;;  %vm25223_vm13 = vnez %v25222_v39  ;;  %v17044_v35 = vunpack.i.h.bf16 %v17042_v6  ;;  %v17441_v39 = vld [vmem:[%s24313_s15 + $0x170] sm:$0xff]  }
0x1119   : > { %14238 = vmatpush1.bf16.msk.msra.mxu1 %vm24920_vm12, %v14237_v10  ;;  %v10968_v10 = vsel %vm25208_vm3, %v16989_v57, %v16994_v31  ;;  %v17052_v57 = vpop.permute.xlu0 %17051 }
0x111a   : > { %14241 = vmatprep.subr.msk.bf16.mxu1 %vm24906_vm6, %v14240_v36  ;;  %v11324_v36 = vsel %vm25210_vm11, %v17004_v47, %v16999_v12  ;;  %v14273_v63 = vpack.c.bf16 %v10968_v10, %v10967_v2 }
0x111c   : > { %10787 = vmatmul.mubr.bf16.gmra.mrb[60].mxu1 %v17428_v3  ;;  %v14300_v3 = vpack.c.bf16 %v11324_v36, %v11323_v54  ;;  %v17054_v36 = vunpack.i.h.bf16 %v17052_v57  ;;  %v17053_v54 = vunpack.i.l.bf16 %v17052_v57 }
0x111d   : > { %14244 = vmatpush1.bf16.msk.msra.mxu1 %vm24920_vm12, %v14243_v4  ;;  %10796 = vmatprep.mubr.bf16.mxu1 %v24541_v41  ;;  %v17027_v4 = vpop.permute.xlu1 %17026 }
0x111e   : > { %14247 = vmatprep.subr.msk.bf16.mxu1 %vm24906_vm6, %v14246_v15  ;;  %v17009_v15 = vunpack.i.h.bf16 %v17007_v11  ;;  %v17029_v14 = vunpack.i.h.bf16 %v17027_v4 }
0x1121   : > { %14250 = vmatpush1.bf16.msk.msra.mxu1 %vm24920_vm12, %v14249_v0  ;;  %v17037_v59 = vpop.permute.xlu1 %17036 }
0x1122   : > { %14253 = vmatprep.subr.msk.bf16.mxu1 %vm24906_vm6, %v14252_v37  ;;  %v17435_v37 = vld [vmem:[%s24313_s15 + $0x140] sm:$0xff]   ;;  %v17038_v16 = vunpack.i.l.bf16 %v17037_v59 }
0x1124   : > { %10797 = vmatmul.mubr.bf16.gmra.mrb[64].mxu1 %v17429_v26 }
0x1125   : > { %14256 = vmatpush1.bf16.msk.msra.mxu1 %vm24920_vm12, %v14255_v49  ;;  %10806 = vmatprep.mubr.bf16.mxu1 %v24541_v41  ;;  %v17028_v49 = vunpack.i.l.bf16 %v17027_v4 }
0x1126   : > { %14259 = vmatprep.subr.msk.bf16.mxu1 %vm24906_vm6, %v14258_v38  ;;  %v17047_v38 = vpop.permute.xlu1 %17046 }
0x1127   : > { %v17049_v2 = vunpack.i.h.bf16 %v17047_v38 }
0x1129   : > { %14262 = vmatpush1.bf16.msk.msra.mxu1 %vm24920_vm12, %v14261_v28 }
0x112a   : > { %14265 = vmatprep.subr.msk.bf16.mxu1 %vm24906_vm6, %v14264_v53  ;;  %v17039_v53 = vunpack.i.h.bf16 %v17037_v59 }
0x112c   : > { %10807 = vmatmul.mubr.bf16.gmra.mrb[68].mxu1 %v17430_v17  ;;  %v17043_v17 = vunpack.i.l.bf16 %v17042_v6 }
0x112d   : > { %14268 = vmatpush1.bf16.msk.msra.mxu1 %vm24920_vm12, %v14267_v5  ;;  %10816 = vmatprep.mubr.bf16.mxu1 %v24541_v41 }
0x112e   : > { %14271 = vmatprep.subr.msk.bf16.mxu1 %vm24906_vm6, %v14270_v46  ;;  %vm25215_vm6 = vmmov %vm25211_vm8  ;;  %v17048_v46 = vunpack.i.l.bf16 %v17047_v38 }
0x112f   : > { %v11307_v0 = vsel %vm25215_vm6, %v16998_v8, %v17003_v21  ;;  %vm25216_vm7 = vmmov %vm25215_vm6  ;;  %v17062_v8 = vpop.permute.xlu0 %17061 }
0x1130   : > { %v11326_v34 = vsel %vm25216_vm7, %v17014_v29, %v17009_v15  ;;  %vm25217_vm15 = vmmov %vm25215_vm6 }
0x1131   : > { %14274 = vmatpush1.bf16.msk.msra.mxu1 %vm24920_vm12, %v14273_v63  ;;  %vm25214_vm12 = vmmov %vm25211_vm8  ;;  %v11325_v24 = vsel %vm25217_vm15, %v17013_v9, %v17008_v42 }
0x1132   : > { %14301 = vmatprep.subr.msk.bf16.mxu1 %vm25213_vm1, %v14300_v3  ;;  %v11308_v52 = vsel %vm25214_vm12, %v16999_v12, %v17004_v47  ;;  %vm25218_vm2 = vmmov %vm25215_vm6  ;;  %v14306_v30 = vpack.c.bf16 %v11326_v34, %v11325_v24  ;;  %v17057_v12 = vpop.permute.xlu1 %17056 }
0x1133   : > { %v14303_v26 = vpack.c.bf16 %v11308_v52, %v11307_v0  ;;  %v11310_v13 = vsel %vm25218_vm2, %v17009_v15, %v17014_v29  ;;  %vm25219_vm10 = vmmov %vm25218_vm2  ;;  %v17072_v4 = vpop.permute.xlu0 %17071  ;;  %v17058_v15 = vunpack.i.l.bf16 %v17057_v12  ;;  %v17063_v29 = vunpack.i.l.bf16 %v17062_v8 }
0x1134   : > { %10817 = vmatmul.mubr.bf16.gmra.mrb[72].mxu1 %v17431_v23  ;;  %v11309_v40 = vsel %vm25219_vm10, %v17008_v42, %v17013_v9  ;;  %vm25220_vm14 = vmmov %vm25218_vm2  ;;  %v17064_v42 = vunpack.i.h.bf16 %v17062_v8  ;;  %v17074_v24 = vunpack.i.h.bf16 %v17072_v4 }
0x1135   : > { %10826 = vmatprep.mubr.bf16.mxu1 %v24541_v41  ;;  %v11328_v61 = vsel %vm25220_vm14, %v17024_v43, %v17019_v50  ;;  %vm25221_vm9 = vmmov %vm25218_vm2  ;;  %v14309_v27 = vpack.c.bf16 %v11310_v13, %v11309_v40 }
0x1136   : > { %v11327_v31 = vsel %vm25221_vm9, %v17023_v19, %v17018_v7  ;;  %vm25224_vm3 = vmmov %vm25218_vm2  ;;  %v17067_v51 = vpop.permute.xlu1 %17066 }
0x1137   : > { %v11312_v18 = vsel %vm25224_vm3, %v17019_v50, %v17024_v43  ;;  %vm25225_vm4 = vmmov %vm25218_vm2  ;;  %v14312_v60 = vpack.c.bf16 %v11328_v61, %v11327_v31  ;;  %v17069_v0 = vunpack.i.h.bf16 %v17067_v51  ;;  %v17068_v34 = vunpack.i.l.bf16 %v17067_v51 }
0x1138   : > { %v11311_v45 = vsel %vm25225_vm4, %v17018_v7, %v17023_v19  ;;  %vm25226_vm11 = vmmov %vm25218_vm2  ;;  %v17082_v19 = vpop.permute.xlu0 %17081 }
0x1139   : > { %v11330_v28 = vsel %vm25226_vm11, %v17034_v55, %v17029_v14  ;;  %vm25227_vm8 = vmmov %vm25218_vm2  ;;  %v14315_v47 = vpack.c.bf16 %v11312_v18, %v11311_v45  ;;  %v17084_v57 = vunpack.i.h.bf16 %v17082_v19  ;;  %v17083_v61 = vunpack.i.l.bf16 %v17082_v19 }
0x113a   : > { %v11329_v48 = vsel %vm25227_vm8, %v17033_v56, %v17028_v49  ;;  %vm25228_vm12 = vmmov %vm25218_vm2  ;;  %v17077_v43 = vpop.permute.xlu1 %17076 }
0x113b   : > { %v11314_v21 = vsel %vm25228_vm12, %v17029_v14, %v17034_v55  ;;  %vm25229_vm6 = vmmov %vm25218_vm2  ;;  %v14318_v10 = vpack.c.bf16 %v11330_v28, %v11329_v48  ;;  %v17438_v55 = vld [vmem:[%s24313_s15 + $0x158] sm:$0xff]   ;;  %v17078_v38 = vunpack.i.l.bf16 %v17077_v43 }
0x113c   : > { %10827 = vmatmul.mubr.bf16.gmra.mrb[76].mxu1 %v17432_v44  ;;  %v11313_v5 = vsel %vm25229_vm6, %v17028_v49, %v17033_v56  ;;  %vm25230_vm7 = vmmov %vm25218_vm2  ;;  %v11316_v44 = vsel %vm25218_vm2, %v17039_v53, %v17044_v35  ;;  %v17079_v56 = vunpack.i.h.bf16 %v17077_v43 }
0x113d   : > { %10836 = vmatprep.mubr.bf16.mxu1 %v24541_v41  ;;  %v11332_v63 = vsel %vm25230_vm7, %v17044_v35, %v17039_v53  ;;  %vm25231_vm15 = vmmov %vm25218_vm2  ;;  %v14321_v23 = vpack.c.bf16 %v11314_v21, %v11313_v5  ;;  %v17439_v53 = vld [vmem:[%s24313_s15 + $0x160] sm:$0xff]   ;;  %v17442_v5 = vld [vmem:[%s24313_s15 + $0x178] sm:$0xff]  }
0x113e   : > { %v11331_v3 = vsel %vm25231_vm15, %v17043_v17, %v17038_v16  ;;  %vm25232_vm10 = vmmov %vm25218_vm2  ;;  %v17087_v35 = vpop.permute.xlu1 %17086 }
0x113f   : > { %v11315_v11 = vsel %vm25232_vm10, %v17038_v16, %v17043_v17  ;;  %v14324_v62 = vpack.c.bf16 %v11332_v63, %v11331_v3  ;;  %vm25233_vm14 = vmmov %vm25218_vm2  ;;  %v25246_v16 = vld [vmem:[#allocation30_spill] sm:$0xff]  ;;  %v17092_v17 = vpop.permute.xlu0 %17091 }
0x1140   : > { %vm25234_vm9 = vmmov %vm25218_vm2  ;;  %v14327_v9 = vpack.c.bf16 %v11316_v44, %v11315_v11 }
0x1141   : > { %v11333_v1 = vsel %vm25234_vm9, %v17053_v54, %v17048_v46  ;;  %vm25235_vm3 = vmmov %vm25218_vm2 }
0x1142   : > { %v11318_v59 = vsel %vm25235_vm3, %v17049_v2, %v17054_v36  ;;  %vm25236_vm4 = vmmov %vm25218_vm2  ;;  %vm25247_vm3 = vnez %v25246_v16  ;;  %v17448_v16 = vld [vmem:[%s24313_s15 + $0x1a8] sm:$0xff]  }
0x1143   : > { %v11317_v6 = vsel %vm25236_vm4, %v17048_v46, %v17053_v54  ;;  %vm25237_vm11 = vmmov %vm25218_vm2  ;;  %v17102_v8 = vpop.permute.xlu0 %17101  ;;  %v17094_v46 = vunpack.i.h.bf16 %v17092_v17 }
0x1144   : > { %10837 = vmatmul.mubr.bf16.gmra.mrb[80].mxu1 %v17433_v25  ;;  %v11334_v25 = vsel %vm25233_vm14, %v17054_v36, %v17049_v2  ;;  %vm25238_vm8 = vmmov %vm25218_vm2  ;;  %vm25244_vm14 = vcmp.lt.s32.totalorder %v18787_v22, 112  ;;  %v17088_v2 = vunpack.i.l.bf16 %v17087_v35  ;;  %v17093_v36 = vunpack.i.l.bf16 %v17092_v17 }
0x1145   : > { %10846 = vmatprep.mubr.bf16.mxu1 %v24541_v41  ;;  %v14330_v52 = vpack.c.bf16 %v11334_v25, %v11333_v1  ;;  %v11335_v7 = vsel %vm25238_vm8, %v17063_v29, %v17058_v15  ;;  %vm25239_vm12 = vmmov %vm25218_vm2  ;;  %v17104_v51 = vunpack.i.h.bf16 %v17102_v8 }
0x1146   : > { %vm25240_vm6 = vmmov %vm25218_vm2 }
0x1147   : > { %v11319_v40 = vsel %vm25240_vm6, %v17058_v15, %v17063_v29  ;;  %vm25241_vm7 = vmmov %vm25218_vm2  ;;  %v17112_v21 = vpop.permute.xlu0 %17111 }
0x1148   : > { %v11338_v14 = vsel %vm25241_vm7, %v17074_v24, %v17069_v0  ;;  %vm25242_vm15 = vmmov %vm25218_vm2 }
0x1149   : > { %vm25243_vm10 = vmmov %vm25218_vm2 }
0x114a   : > { %vm25245_vm9 = vmmov %vm25244_vm14 }
0x114b   : > { %v11677_v28 = vsel %vm25245_vm9, %v17083_v61, %v17078_v38  ;;  %v17122_v63 = vpop.permute.xlu0 %17121 }
0x114c   : > { %10847 = vmatmul.mubr.bf16.gmra.mrb[84].mxu1 %v17434_v58  ;;  %v17059_v58 = vunpack.i.h.bf16 %v17057_v12  ;;  %v17097_v12 = vpop.permute.xlu1 %17096 }
0x114d   : > { %11130 = vmatprep.mubr.bf16.mxu1 %v24541_v41  ;;  %v17099_v25 = vunpack.i.h.bf16 %v17097_v12  ;;  %v17098_v1 = vunpack.i.l.bf16 %v17097_v12 }
0x114e   : > { %v11336_v50 = vsel %vm25237_vm11, %v17064_v42, %v17059_v58  ;;  %v11320_v13 = vsel %vm25239_vm12, %v17059_v58, %v17064_v42 }
0x114f   : > { %v14339_v31 = vpack.c.bf16 %v11320_v13, %v11319_v40  ;;  %v17444_v40 = vld [vmem:[%s24313_s15 + $0x188] sm:$0xff]  }
0x1154   : > { %11131 = vmatmul.mubr.bf16.vlgmr.msra.gmra.mrb[56].mxu1 %v17435_v37  ;;  %v17073_v37 = vunpack.i.l.bf16 %v17072_v4  ;;  %v17103_v4 = vunpack.i.l.bf16 %v17102_v8 }
0x1155   : > { %14304 = vmatpush1.bf16.msk.msra.mxu1 %vm25223_vm13, %v14303_v26  ;;  %11140 = vmatprep.mubr.bf16.mxu1 %v24541_v41  ;;  %v14333_v26 = vpack.c.bf16 %v11318_v59, %v11317_v6  ;;  %v17114_v59 = vunpack.i.h.bf16 %v17112_v21  ;;  %v17113_v6 = vunpack.i.l.bf16 %v17112_v21  ;;  %v17445_v21 = vld [vmem:[%s24313_s15 + $0x190] sm:$0xff]  }
0x1156   : > { %14307 = vmatprep.subr.msk.bf16.mxu1 %vm25213_vm1, %v14306_v30  ;;  %v14336_v30 = vpack.c.bf16 %v11336_v50, %v11335_v7  ;;  %v11337_v49 = vsel %vm25242_vm15, %v17073_v37, %v17068_v34  ;;  %v11321_v18 = vsel %vm25243_vm10, %v17068_v34, %v17073_v37  ;;  %v25256_v37 = vld [vmem:[#allocation27_spill] sm:$0xff] }
0x1157   : > { %v14342_v45 = vpack.c.bf16 %v11338_v14, %v11337_v49  ;;  %vm25257_vm15 = vnez %v25256_v37  ;;  %v17124_v49 = vunpack.i.h.bf16 %v17122_v63  ;;  %v17449_v37 = vld [vmem:[%s24313_s15 + $0x1b0] sm:$0xff]  }
0x1159   : > { %14310 = vmatpush1.bf16.msk.msra.mxu1 %vm25223_vm13, %v14309_v27  ;;  %v11322_v27 = vsel %vm25218_vm2, %v17069_v0, %v17074_v24  ;;  %v17132_v0 = vpop.permute.xlu0 %17131 }
0x115a   : > { %14313 = vmatprep.subr.msk.bf16.mxu1 %vm25213_vm1, %v14312_v60  ;;  %v11678_v60 = vsel %vm25244_vm14, %v17084_v57, %v17079_v56  ;;  %v14345_v48 = vpack.c.bf16 %v11322_v27, %v11321_v18 }
0x115c   : > { %11141 = vmatmul.mubr.bf16.gmra.mrb[60].mxu1 %v17436_v33  ;;  %v14372_v33 = vpack.c.bf16 %v11678_v60, %v11677_v28  ;;  %v17134_v60 = vunpack.i.h.bf16 %v17132_v0  ;;  %v17133_v28 = vunpack.i.l.bf16 %v17132_v0 }
0x115d   : > { %14316 = vmatpush1.bf16.msk.msra.mxu1 %vm25223_vm13, %v14315_v47  ;;  %11150 = vmatprep.mubr.bf16.mxu1 %v24541_v41  ;;  %v17107_v47 = vpop.permute.xlu1 %17106 }
0x115e   : > { %14319 = vmatprep.subr.msk.bf16.mxu1 %vm25213_vm1, %v14318_v10  ;;  %v17089_v10 = vunpack.i.h.bf16 %v17087_v35  ;;  %v17109_v29 = vunpack.i.h.bf16 %v17107_v47 }
0x1161   : > { %14322 = vmatpush1.bf16.msk.msra.mxu1 %vm25223_vm13, %v14321_v23  ;;  %v17117_v54 = vpop.permute.xlu1 %17116 }
0x1162   : > { %14325 = vmatprep.subr.msk.bf16.mxu1 %vm25213_vm1, %v14324_v62  ;;  %v17443_v62 = vld [vmem:[%s24313_s15 + $0x180] sm:$0xff]   ;;  %v17118_v14 = vunpack.i.l.bf16 %v17117_v54 }
0x1164   : > { %11151 = vmatmul.mubr.bf16.gmra.mrb[64].mxu1 %v17437_v20 }
0x1165   : > { %14328 = vmatpush1.bf16.msk.msra.mxu1 %vm25223_vm13, %v14327_v9  ;;  %11160 = vmatprep.mubr.bf16.mxu1 %v24541_v41  ;;  %v17108_v9 = vunpack.i.l.bf16 %v17107_v47 }
0x1166   : > { %14331 = vmatprep.subr.msk.bf16.mxu1 %vm25213_vm1, %v14330_v52  ;;  %v17127_v52 = vpop.permute.xlu1 %17126 }
0x1167   : > { %v17129_v18 = vunpack.i.h.bf16 %v17127_v52 }
0x1169   : > { %14334 = vmatpush1.bf16.msk.msra.mxu1 %vm25223_vm13, %v14333_v26 }
0x116a   : > { %14337 = vmatprep.subr.msk.bf16.mxu1 %vm25213_vm1, %v14336_v30  ;;  %v17119_v30 = vunpack.i.h.bf16 %v17117_v54 }
0x116c   : > { %11161 = vmatmul.mubr.bf16.gmra.mrb[68].mxu1 %v17438_v55  ;;  %v17123_v55 = vunpack.i.l.bf16 %v17122_v63 }
0x116d   : > { %14340 = vmatpush1.bf16.msk.msra.mxu1 %vm25223_vm13, %v14339_v31  ;;  %11170 = vmatprep.mubr.bf16.mxu1 %v24541_v41 }
0x116e   : > { %14343 = vmatprep.subr.msk.bf16.mxu1 %vm25213_vm1, %v14342_v45  ;;  %vm25248_vm1 = vmmov %vm25245_vm9  ;;  %v17128_v45 = vunpack.i.l.bf16 %v17127_v52 }
0x116f   : > { %v11662_v3 = vsel %vm25248_vm1, %v17079_v56, %v17084_v57  ;;  %vm25250_vm4 = vmmov %vm25248_vm1  ;;  %v17137_v56 = vpop.permute.xlu1 %17136 }
0x1170   : > { %v11680_v44 = vsel %vm25250_vm4, %v17094_v46, %v17089_v10  ;;  %vm25251_vm11 = vmmov %vm25248_vm1 }
0x1171   : > { %14346 = vmatpush1.bf16.msk.msra.mxu1 %vm25223_vm13, %v14345_v48  ;;  %vm25249_vm13 = vmmov %vm25248_vm1  ;;  %v11679_v11 = vsel %vm25251_vm11, %v17093_v36, %v17088_v2 }
0x1172   : > { %14373 = vmatprep.subr.msk.bf16.mxu1 %vm25247_vm3, %v14372_v33  ;;  %v11661_v23 = vsel %vm25249_vm13, %v17078_v38, %v17083_v61  ;;  %vm25252_vm8 = vmmov %vm25248_vm1  ;;  %v14378_v42 = vpack.c.bf16 %v11680_v44, %v11679_v11  ;;  %v17142_v38 = vpop.permute.xlu0 %17141  ;;  %v11668_v61 = vsel %vm25248_vm1, %v17109_v29, %v17114_v59 }
0x1173   : > { %v14375_v20 = vpack.c.bf16 %v11662_v3, %v11661_v23  ;;  %v11664_v58 = vsel %vm25252_vm8, %v17089_v10, %v17094_v46  ;;  %vm25253_vm12 = vmmov %vm25248_vm1  ;;  %v17147_v8 = vpop.permute.xlu1 %17146  ;;  %v17138_v10 = vunpack.i.l.bf16 %v17137_v56  ;;  %v17143_v46 = vunpack.i.l.bf16 %v17142_v38 }
0x1174   : > { %11171 = vmatmul.mubr.bf16.gmra.mrb[72].mxu1 %v17439_v53  ;;  %v11663_v15 = vsel %vm25253_vm12, %v17088_v2, %v17093_v36  ;;  %vm25254_vm6 = vmmov %vm25248_vm1  ;;  %v17144_v2 = vunpack.i.h.bf16 %v17142_v38  ;;  %v17149_v23 = vunpack.i.h.bf16 %v17147_v8  ;;  %v17148_v44 = vunpack.i.l.bf16 %v17147_v8 }
0x1175   : > { %11180 = vmatprep.mubr.bf16.mxu1 %v24541_v41  ;;  %v11682_v34 = vsel %vm25254_vm6, %v17104_v51, %v17099_v25  ;;  %vm25255_vm7 = vmmov %vm25248_vm1  ;;  %v14381_v50 = vpack.c.bf16 %v11664_v58, %v11663_v15 }
0x1176   : > { %v11681_v24 = vsel %vm25255_vm7, %v17103_v4, %v17098_v1  ;;  %vm25258_vm2 = vmmov %vm25248_vm1  ;;  %v17152_v47 = vpop.permute.xlu0 %17151 }
0x1177   : > { %v11666_v7 = vsel %vm25258_vm2, %v17099_v25, %v17104_v51  ;;  %vm25259_vm10 = vmmov %vm25248_vm1  ;;  %v14384_v19 = vpack.c.bf16 %v11682_v34, %v11681_v24  ;;  %v17154_v11 = vunpack.i.h.bf16 %v17152_v47  ;;  %v17157_v51 = vpop.permute.xlu1 %17156 }
0x1178   : > { %v11665_v43 = vsel %vm25259_vm10, %v17098_v1, %v17103_v4  ;;  %vm25260_vm14 = vmmov %vm25248_vm1  ;;  %v17158_v52 = vunpack.i.l.bf16 %v17157_v51 }
0x1179   : > { %v11684_v26 = vsel %vm25260_vm14, %v17114_v59, %v17109_v29  ;;  %vm25261_vm9 = vmmov %vm25248_vm1  ;;  %v14387_v57 = vpack.c.bf16 %v11666_v7, %v11665_v43  ;;  %v17446_v59 = vld [vmem:[%s24313_s15 + $0x198] sm:$0xff]  }
0x117a   : > { %v11683_v13 = vsel %vm25261_vm9, %v17113_v6, %v17108_v9  ;;  %vm25262_vm13 = vmmov %vm25248_vm1  ;;  %v17162_v4 = vpop.permute.xlu0 %17161 }
0x117b   : > { %v11667_v31 = vsel %vm25262_vm13, %v17108_v9, %v17113_v6  ;;  %v14390_v27 = vpack.c.bf16 %v11684_v26, %v11683_v13  ;;  %vm25263_vm4 = vmmov %vm25248_vm1  ;;  %v17159_v6 = vunpack.i.h.bf16 %v17157_v51  ;;  %v17164_v0 = vunpack.i.h.bf16 %v17162_v4 }
0x117c   : > { %11181 = vmatmul.mubr.bf16.gmra.mrb[76].mxu1 %v17440_v32  ;;  %v11686_v48 = vsel %vm25263_vm4, %v17124_v49, %v17119_v30  ;;  %vm25264_vm11 = vmmov %vm25248_vm1  ;;  %v14393_v53 = vpack.c.bf16 %v11668_v61, %v11667_v31  ;;  %v17163_v34 = vunpack.i.l.bf16 %v17162_v4 }
0x117d   : > { %11190 = vmatprep.mubr.bf16.mxu1 %v24541_v41  ;;  %v11685_v33 = vsel %vm25264_vm11, %v17123_v55, %v17118_v14  ;;  %vm25265_vm8 = vmmov %vm25248_vm1 }
0x117e   : > { %v11670_v32 = vsel %vm25265_vm8, %v17119_v30, %v17124_v49  ;;  %vm25266_vm12 = vmmov %vm25248_vm1  ;;  %v14396_v17 = vpack.c.bf16 %v11686_v48, %v11685_v33  ;;  %v17447_v30 = vld [vmem:[%s24313_s15 + $0x1a0] sm:$0xff]   ;;  %v17167_v49 = vpop.permute.xlu1 %17166 }
0x117f   : > { %v11669_v35 = vsel %vm25266_vm12, %v17118_v14, %v17123_v55  ;;  %vm25267_vm6 = vmmov %vm25248_vm1  ;;  %v17172_v55 = vpop.permute.xlu0 %17171  ;;  %v17457_v14 = vld [vmem:[%s24313_s15 + $0x1f0] sm:$0xff]  }
0x1180   : > { %vm25268_vm7 = vmmov %vm25248_vm1  ;;  %v14399_v36 = vpack.c.bf16 %v11670_v32, %v11669_v35 }
0x1181   : > { %v11687_v12 = vsel %vm25268_vm7, %v17133_v28, %v17128_v45  ;;  %vm25269_vm2 = vmmov %vm25248_vm1 }
0x1182   : > { %v11672_v54 = vsel %vm25269_vm2, %v17129_v18, %v17134_v60  ;;  %vm25270_vm10 = vmmov %vm25248_vm1 }
0x1183   : > { %v11671_v63 = vsel %vm25270_vm10, %v17128_v45, %v17133_v28  ;;  %vm25271_vm14 = vmmov %vm25248_vm1  ;;  %v17182_v38 = vpop.permute.xlu0 %17181  ;;  %v17174_v45 = vunpack.i.h.bf16 %v17172_v55 }
0x1184   : > { %11191 = vmatmul.mubr.bf16.gmra.mrb[80].mxu1 %v17441_v39  ;;  %v11688_v39 = vsel %vm25267_vm6, %v17134_v60, %v17129_v18  ;;  %vm25272_vm9 = vmmov %vm25248_vm1  ;;  %vm25278_vm6 = vcmp.lt.s32.totalorder %v18787_v22, 111  ;;  %v17168_v18 = vunpack.i.l.bf16 %v17167_v49  ;;  %v17173_v60 = vunpack.i.l.bf16 %v17172_v55  ;;  %v17456_v22 = vld [vmem:[%s24313_s15 + $0x1e8] sm:$0xff]  }
0x1185   : > { %11200 = vmatprep.mubr.bf16.mxu1 %v24541_v41  ;;  %v14402_v3 = vpack.c.bf16 %v11688_v39, %v11687_v12  ;;  %v11689_v1 = vsel %vm25272_vm9, %v17143_v46, %v17138_v10  ;;  %vm25273_vm13 = vmmov %vm25248_vm1  ;;  %v17184_v32 = vunpack.i.h.bf16 %v17182_v38  ;;  %v17183_v35 = vunpack.i.l.bf16 %v17182_v38  ;;  %v17451_v12 = vld [vmem:[%s24313_s15 + $0x1c0] sm:$0xff]  }
0x1186   : > { %v11673_v15 = vsel %vm25273_vm13, %v17138_v10, %v17143_v46  ;;  %vm25274_vm4 = vmmov %vm25248_vm1 }
0x1187   : > { %v11692_v29 = vsel %vm25274_vm4, %v17154_v11, %v17149_v23  ;;  %vm25275_vm11 = vmmov %vm25248_vm1  ;;  %v17192_v31 = vpop.permute.xlu0 %17191 }
0x1188   : > { %vm25276_vm8 = vmmov %vm25248_vm1 }
0x1189   : > { %vm25277_vm12 = vmmov %vm25248_vm1 }
0x118a   : > { %vm25279_vm7 = vmmov %vm25278_vm6 }
0x118b   : > { %v12031_v26 = vsel %vm25279_vm7, %v17163_v34, %v17158_v52  ;;  %v17202_v39 = vpop.permute.xlu0 %17201 }
0x118c   : > { %11201 = vmatmul.mubr.bf16.gmra.mrb[84].mxu1 %v17442_v5  ;;  %v17139_v5 = vunpack.i.h.bf16 %v17137_v56  ;;  %v17177_v56 = vpop.permute.xlu1 %17176 }
0x118d   : > { %11484 = vmatprep.mubr.bf16.mxu1 %v24541_v41  ;;  %v17179_v33 = vunpack.i.h.bf16 %v17177_v56 }
0x118e   : > { %v11690_v25 = vsel %vm25271_vm14, %v17144_v2, %v17139_v5  ;;  %v11674_v58 = vsel %vm25248_vm1, %v17139_v5, %v17144_v2 }
0x118f   : > { %v14411_v24 = vpack.c.bf16 %v11674_v58, %v11673_v15  ;;  %v17204_v15 = vunpack.i.h.bf16 %v17202_v39 }
0x1190   : > { %v17187_v61 = vpop.permute.xlu1 %17186 }
0x1194   : > { %11485 = vmatmul.mubr.bf16.vlgmr.msra.gmra.mrb[56].mxu1 %v17443_v62  ;;  %v17153_v62 = vunpack.i.l.bf16 %v17152_v47 }
0x1195   : > { %14376 = vmatpush1.bf16.msk.msra.mxu1 %vm25257_vm15, %v14375_v20  ;;  %11494 = vmatprep.mubr.bf16.mxu1 %v24541_v41  ;;  %v14405_v20 = vpack.c.bf16 %v11672_v54, %v11671_v63  ;;  %v17189_v54 = vunpack.i.h.bf16 %v17187_v61  ;;  %v17188_v63 = vunpack.i.l.bf16 %v17187_v61  ;;  %v17453_v61 = vld [vmem:[%s24313_s15 + $0x1d0] sm:$0xff]  }
0x1196   : > { %14379 = vmatprep.subr.msk.bf16.mxu1 %vm25247_vm3, %v14378_v42  ;;  %v14408_v42 = vpack.c.bf16 %v11690_v25, %v11689_v1  ;;  %v11691_v9 = vsel %vm25275_vm11, %v17153_v62, %v17148_v44  ;;  %v11675_v7 = vsel %vm25277_vm12, %v17148_v44, %v17153_v62  ;;  %v17212_v62 = vpop.permute.xlu0 %17211  ;;  %v17458_v44 = vld [vmem:[%s24313_s15 + $0x1f8] sm:$0xff]  }
0x1197   : > { %v14414_v43 = vpack.c.bf16 %v11692_v29, %v11691_v9  ;;  %v17452_v29 = vld [vmem:[%s24313_s15 + $0x1c8] sm:$0xff]  }
0x1199   : > { %14382 = vmatpush1.bf16.msk.msra.mxu1 %vm25257_vm15, %v14381_v50  ;;  %v11676_v50 = vsel %vm25276_vm8, %v17149_v23, %v17154_v11  ;;  %v17193_v23 = vunpack.i.l.bf16 %v17192_v31 }
0x119a   : > { %14385 = vmatprep.subr.msk.bf16.mxu1 %vm25247_vm3, %v14384_v19  ;;  %v12032_v19 = vsel %vm25278_vm6, %v17164_v0, %v17159_v6  ;;  %v14417_v13 = vpack.c.bf16 %v11676_v50, %v11675_v7 }
0x119c   : > { %11495 = vmatmul.mubr.bf16.gmra.mrb[60].mxu1 %v17444_v40  ;;  %v14444_v40 = vpack.c.bf16 %v12032_v19, %v12031_v26 }
0x119d   : > { %14388 = vmatpush1.bf16.msk.msra.mxu1 %vm25257_vm15, %v14387_v57  ;;  %11504 = vmatprep.mubr.bf16.mxu1 %v24541_v41  ;;  %v17450_v57 = vld [vmem:[%s24313_s15 + $0x1b8] sm:$0xff]  }
0x119e   : > { %14391 = vmatprep.subr.msk.bf16.mxu1 %vm25247_vm3, %v14390_v27  ;;  %v17169_v27 = vunpack.i.h.bf16 %v17167_v49 }
0x11a1   : > { %14394 = vmatpush1.bf16.msk.msra.mxu1 %vm25257_vm15, %v14393_v53  ;;  %v17178_v53 = vunpack.i.l.bf16 %v17177_v56 }
0x11a2   : > { %14397 = vmatprep.subr.msk.bf16.mxu1 %vm25247_vm3, %v14396_v17  ;;  %v17197_v17 = vpop.permute.xlu1 %17196 }
0x11a3   : > { %v17198_v58 = vunpack.i.l.bf16 %v17197_v17 }
0x11a4   : > { %11505 = vmatmul.mubr.bf16.gmra.mrb[64].mxu1 %v17445_v21 }
0x11a5   : > { %14400 = vmatpush1.bf16.msk.msra.mxu1 %vm25257_vm15, %v14399_v36  ;;  %11514 = vmatprep.mubr.bf16.mxu1 %v24541_v41 }
0x11a6   : > { %14403 = vmatprep.subr.msk.bf16.mxu1 %vm25247_vm3, %v14402_v3  ;;  %v17194_v3 = vunpack.i.h.bf16 %v17192_v31  ;;  %v17207_v11 = vpop.permute.xlu1 %17206 }
0x11a7   : > { %v17209_v19 = vunpack.i.h.bf16 %v17207_v11  ;;  %v17208_v26 = vunpack.i.l.bf16 %v17207_v11  ;;  %v17455_v11 = vld [vmem:[%s24313_s15 + $0x1e0] sm:$0xff]  }
0x11a9   : > { %14406 = vmatpush1.bf16.msk.msra.mxu1 %vm25257_vm15, %v14405_v20  ;;  %v17199_v20 = vunpack.i.h.bf16 %v17197_v17 }
0x11aa   : > { %14409 = vmatprep.subr.msk.bf16.mxu1 %vm25247_vm3, %v14408_v42  ;;  %v17203_v42 = vunpack.i.l.bf16 %v17202_v39  ;;  %v17217_v7 = vpop.permute.xlu1 %17216 }
0x11ab   : > { %v17218_v56 = vunpack.i.l.bf16 %v17217_v7 }
0x11ac   : > { %11515 = vmatmul.mubr.bf16.gmra.mrb[68].mxu1 %v17446_v59 }
0x11ad   : > { %14412 = vmatpush1.bf16.msk.msra.mxu1 %vm25257_vm15, %v14411_v24  ;;  %11524 = vmatprep.mubr.bf16.mxu1 %v24541_v41 }
0x11ae   : > { %14415 = vmatprep.subr.msk.bf16.mxu1 %vm25247_vm3, %v14414_v43  ;;  %vm25281_vm3 = vmmov %vm25278_vm6  ;;  %v17222_v43 = vpop.permute.xlu0 %17221 }
0x11af   : > { %v12016_v28 = vsel %vm25281_vm3, %v17159_v6, %v17164_v0  ;;  %vm25283_vm2 = vmmov %vm25281_vm3  ;;  %v17224_v38 = vunpack.i.h.bf16 %v17222_v43 }
0x11b0   : > { %v12034_v8 = vsel %vm25283_vm2, %v17174_v45, %v17169_v27  ;;  %vm25284_vm10 = vmmov %vm25283_vm2 }
0x11b1   : > { %14418 = vmatpush1.bf16.msk.msra.mxu1 %vm25257_vm15, %v14417_v13  ;;  %vm25282_vm15 = vmmov %vm25281_vm3  ;;  %v12033_v47 = vsel %vm25284_vm10, %v17173_v60, %v17168_v18  ;;  %v17214_v13 = vunpack.i.h.bf16 %v17212_v62 }
0x11b2   : > { %14445 = vmatprep.subr.msk.bf16.mxu1 %vm20220_vm0, %v14444_v40  ;;  %v12015_v48 = vsel %vm25282_vm15, %v17158_v52, %v17163_v34  ;;  %vm25285_vm14 = vmmov %vm25283_vm2  ;;  %v14450_v2 = vpack.c.bf16 %v12034_v8, %v12033_v47  ;;  %v17213_v40 = vunpack.i.l.bf16 %v17212_v62  ;;  %v17459_v62 = vld [vmem:[%s24313_s15 + $0x200] sm:$0xff]  }
0x11b3   : > { %v14447_v21 = vpack.c.bf16 %v12016_v28, %v12015_v48  ;;  %v12018_v5 = vsel %vm25285_vm14, %v17169_v27, %v17174_v45  ;;  %vm25286_vm9 = vmmov %vm25283_vm2  ;;  %v17232_v45 = vpop.permute.xlu0 %17231 }
0x11b4   : > { %11525 = vmatmul.mubr.bf16.gmra.mrb[72].mxu1 %v17447_v30  ;;  %v12017_v10 = vsel %vm25286_vm9, %v17168_v18, %v17173_v60  ;;  %vm25287_vm1 = vmmov %vm25283_vm2  ;;  %v17227_v18 = vpop.permute.xlu1 %17226  ;;  %v17234_v39 = vunpack.i.h.bf16 %v17232_v45 }
0x11b5   : > { %11534 = vmatprep.mubr.bf16.mxu1 %v24541_v41  ;;  %v12036_v46 = vsel %vm25287_vm1, %v17184_v32, %v17179_v33  ;;  %vm25288_vm13 = vmmov %vm25287_vm1  ;;  %v14453_v25 = vpack.c.bf16 %v12018_v5, %v12017_v10  ;;  %v12026_v28 = vsel %vm25287_vm1, %v17209_v19, %v17214_v13  ;;  %v17228_v17 = vunpack.i.l.bf16 %v17227_v18  ;;  %v17454_v10 = vld [vmem:[%s24313_s15 + $0x1d8] sm:$0xff]  }
0x11b6   : > { %v12035_v36 = vsel %vm25288_vm13, %v17183_v35, %v17178_v53  ;;  %vm25290_vm4 = vmmov %vm25287_vm1 }
0x11b7   : > { %v12020_v1 = vsel %vm25290_vm4, %v17179_v33, %v17184_v32  ;;  %vm25291_vm11 = vmmov %vm25287_vm1  ;;  %v14456_v4 = vpack.c.bf16 %v12036_v46, %v12035_v36 }
0x11b8   : > { %v12019_v51 = vsel %vm25291_vm11, %v17178_v53, %v17183_v35  ;;  %vm25292_vm8 = vmmov %vm25287_vm1  ;;  %v17229_v35 = vunpack.i.h.bf16 %v17227_v18 }
0x11b9   : > { %v12038_v9 = vsel %vm25292_vm8, %v17194_v3, %v17189_v54  ;;  %vm25293_vm12 = vmmov %vm25287_vm1  ;;  %v14459_v6 = vpack.c.bf16 %v12020_v1, %v12019_v51  ;;  %v17461_v1 = vld [vmem:[%s24313_s15 + $0x210] sm:$0xff]   ;;  %v17462_v51 = vld [vmem:[%s24313_s15 + $0x218] sm:$0xff]  }
0x11ba   : > { %v12037_v59 = vsel %vm25293_vm12, %v17193_v23, %v17188_v63  ;;  %vm25294_vm6 = vmmov %vm25287_vm1 }
0x11bb   : > { %v12022_v52 = vsel %vm25294_vm6, %v17189_v54, %v17194_v3  ;;  %vm25295_vm7 = vmmov %vm25287_vm1  ;;  %v14462_v34 = vpack.c.bf16 %v12038_v9, %v12037_v59 }
0x11bc   : > { %11535 = vmatmul.mubr.bf16.gmra.mrb[76].mxu1 %v17448_v16  ;;  %v12021_v0 = vsel %vm25295_vm7, %v17188_v63, %v17193_v23  ;;  %vm25296_vm3 = vmmov %vm25287_vm1 }
0x11bd   : > { %11544 = vmatprep.mubr.bf16.mxu1 %v24541_v41  ;;  %v12040_v24 = vsel %vm25296_vm3, %v17204_v15, %v17199_v20  ;;  %vm25297_vm15 = vmmov %vm25287_vm1  ;;  %v14465_v30 = vpack.c.bf16 %v12022_v52, %v12021_v0 }
0x11be   : > { %v12039_v50 = vsel %vm25297_vm15, %v17203_v42, %v17198_v58  ;;  %vm25298_vm2 = vmmov %vm25287_vm1 }
0x11bf   : > { %v12024_v16 = vsel %vm25298_vm2, %v17199_v20, %v17204_v15  ;;  %vm25299_vm10 = vmmov %vm25287_vm1  ;;  %v14468_v55 = vpack.c.bf16 %v12040_v24, %v12039_v50  ;;  %v17464_v20 = vld [vmem:[%s24313_s15 + $0x228] sm:$0xff]   ;;  %v17466_v15 = vld [vmem:[%s24313_s15 + $0x238] sm:$0xff]  }
0x11c0   : > { %v12023_v49 = vsel %vm25299_vm10, %v17198_v58, %v17203_v42  ;;  %vm25300_vm14 = vmmov %vm25287_vm1  ;;  %v17465_v58 = vld [vmem:[%s24313_s15 + $0x230] sm:$0xff]  }
0x11c1   : > { %v12042_v31 = vsel %vm25300_vm14, %v17214_v13, %v17209_v19  ;;  %vm25301_vm9 = vmmov %vm25287_vm1  ;;  %v14471_v60 = vpack.c.bf16 %v12024_v16, %v12023_v49 }
0x11c2   : > { %v12041_v27 = vsel %vm25301_vm9, %v17213_v40, %v17208_v26  ;;  %vm25302_vm13 = vmmov %vm25287_vm1 }
0x11c3   : > { %v12025_v48 = vsel %vm25302_vm13, %v17208_v26, %v17213_v40  ;;  %v14474_v33 = vpack.c.bf16 %v12042_v31, %v12041_v27  ;;  %vm25303_vm4 = vmmov %vm25287_vm1  ;;  %v603_v27 = vld [vmem:[%s24234_s22 + $0x8] sm:$0xff] }
0x11c4   : > { %11545 = vmatmul.mubr.bf16.gmra.mrb[80].mxu1 %v17449_v37  ;;  %v17219_v37 = vunpack.i.h.bf16 %v17217_v7  ;;  %vm25304_vm11 = vmmov %vm25287_vm1  ;;  %v14477_v8 = vpack.c.bf16 %v12026_v28, %v12025_v48 }
0x11c5   : > { %11554 = vmatprep.mubr.bf16.mxu1 %v24541_v41  ;;  %vm25305_vm8 = vmmov %vm25287_vm1 }
0x11c6   : > { %v12044_v53 = vsel %vm25303_vm4, %v17224_v38, %v17219_v37  ;;  %v12028_v47 = vsel %vm25305_vm8, %v17219_v37, %v17224_v38  ;;  %vm25306_vm12 = vmmov %vm25287_vm1 }
0x11c7   : > { %vm25307_vm6 = vmmov %vm25287_vm1 }
0x11c8   : > { %vm25308_vm7 = vmmov %vm25287_vm1 }
0x11c9   : > { %vm25309_vm3 = vmmov %vm25287_vm1 }
0x11ca   : > { %v12030_v54 = vsel %vm25309_vm3, %v17229_v35, %v17234_v39  ;;  %vm25310_vm15 = vmmov %vm25287_vm1 }
0x11cc   : > { %11555 = vmatmul.mubr.bf16.gmra.mrb[84].mxu1 %v17450_v57  ;;  %v17223_v57 = vunpack.i.l.bf16 %v17222_v43 }
0x11cd   : > { %11838 = vmatprep.mubr.bf16.mxu1 %v24541_v41 }
0x11ce   : > { %v12043_v32 = vsel %vm25304_vm11, %v17223_v57, %v17218_v56 }
0x11cf   : > { %v14480_v5 = vpack.c.bf16 %v12044_v53, %v12043_v32  ;;  %v605_v53 = vld [vmem:[%s24234_s22 + $0x18] sm:$0xff] }
0x11d4   : > { %11839 = vmatmul.mubr.bf16.vlgmr.msra.gmra.mrb[56].mxu1 %v17451_v12  ;;  %v17233_v12 = vunpack.i.l.bf16 %v17232_v45 }
0x11d5   : > { %14448 = vmatpush1.bf16.msk.msra.mxu1 %vm20247_vm5, %v14447_v21  ;;  %11848 = vmatprep.mubr.bf16.mxu1 %v24541_v41  ;;  %v12027_v21 = vsel %vm25306_vm12, %v17218_v56, %v17223_v57 }
0x11d6   : > { %14451 = vmatprep.subr.msk.bf16.mxu1 %vm20220_vm0, %v14450_v2  ;;  %v12046_v2 = vsel %vm25307_vm6, %v17234_v39, %v17229_v35  ;;  %v12045_v46 = vsel %vm25308_vm7, %v17233_v12, %v17228_v17  ;;  %v14483_v36 = vpack.c.bf16 %v12028_v47, %v12027_v21  ;;  %v12029_v63 = vsel %vm25310_vm15, %v17228_v17, %v17233_v12 }
0x11d7   : > { %v14486_v3 = vpack.c.bf16 %v12046_v2, %v12045_v46  ;;  %v14489_v23 = vpack.c.bf16 %v12030_v54, %v12029_v63 }
0x11d9   : > { %14454 = vmatpush1.bf16.msk.msra.mxu1 %vm20247_vm5, %v14453_v25  ;;  %v17460_v25 = vld [vmem:[%s24313_s15 + $0x208] sm:$0xff]  }
0x11da   : > { %14457 = vmatprep.subr.msk.bf16.mxu1 %vm20220_vm0, %v14456_v4  ;;  %v17463_v4 = vld [vmem:[%s24313_s15 + $0x220] sm:$0xff]  }
0x11dc   : > { %11849 = vmatmul.mubr.bf16.gmra.mrb[60].mxu1 %v17452_v29 }
0x11dd   : > { %14460 = vmatpush1.bf16.msk.msra.mxu1 %vm20247_vm5, %v14459_v6  ;;  %11858 = vmatprep.mubr.bf16.mxu1 %v24541_v41  ;;  %v12308_v6 = vpop.permute.xlu1 %12307 }
0x11de   : > { %14463 = vmatprep.subr.msk.bf16.mxu1 %vm20220_vm0, %v14462_v34  ;;  %v12313_v34 = vpop.permute.xlu0 %12312 }
0x11e1   : > { %14466 = vmatpush1.bf16.msk.msra.mxu1 %vm20247_vm5, %v14465_v30  ;;  %v12318_v7 = vpop.permute.xlu1 %12317 }
0x11e2   : > { %14469 = vmatprep.subr.msk.bf16.mxu1 %vm20220_vm0, %v14468_v55  ;;  %v12323_v43 = vpop.permute.xlu0 %12322 }
0x11e4   : > { %11859 = vmatmul.mubr.bf16.gmra.mrb[64].mxu1 %v17453_v61  ;;  %v602_v61 = vld [vmem:[%s24234_s22] sm:$0xff] }
0x11e5   : > { %14472 = vmatpush1.bf16.msk.msra.mxu1 %vm20247_vm5, %v14471_v60  ;;  %11868 = vmatprep.mubr.bf16.mxu1 %v24541_v41  ;;  %v24216_v40 = vpop.permute.xlu1 %12327  ;;  %v604_v60 = vld [vmem:[%s24234_s22 + $0x10] sm:$0xff] }
0x11e6   : > { %14475 = vmatprep.subr.msk.bf16.mxu1 %vm20220_vm0, %v14474_v33  ;;  %v24218_v30 = vpop.permute.xlu0 %12332 }
0x11e9   : > { %14478 = vmatpush1.bf16.msk.msra.mxu1 %vm20247_vm5, %v14477_v8  ;;  %v24225_v55 = vpop.permute.xlu1 %12337 }
0x11ea   : > { %14481 = vmatprep.subr.msk.bf16.mxu1 %vm20220_vm0, %v14480_v5  ;;  %v24238_v38 = vpop.permute.xlu0 %12342 }
0x11ec   : > { %11869 = vmatmul.mubr.bf16.gmra.mrb[68].mxu1 %v17454_v10 }
0x11ed   : > { %14484 = vmatpush1.bf16.msk.msra.mxu1 %vm20247_vm5, %v14483_v36  ;;  %11878 = vmatprep.mubr.bf16.mxu1 %v24541_v41  ;;  %v12348_v45 = vpop.permute.xlu1 %12347 }
0x11ee   : > { %14487 = vmatprep.subr.msk.bf16.mxu1 %vm20220_vm0, %v14486_v3  ;;  %v12353_v17 = vpop.permute.xlu0 %12352 }
0x11f1   : > { %14490 = vmatpush1.bf16.msk.msra.mxu1 %vm20247_vm5, %v14489_v23  ;;  %v606_v23 = vld [vmem:[%s24234_s22 + $0x20] sm:$0xff] }
0x11f4   : > { %11879 = vmatmul.mubr.bf16.gmra.mrb[72].mxu1 %v17455_v11 }
0x11f5   : > { %11888 = vmatprep.mubr.bf16.mxu1 %v24541_v41 }
0x11fc   : > { %11889 = vmatmul.mubr.bf16.gmra.mrb[76].mxu1 %v17456_v22 }
0x11fd   : > { %11898 = vmatprep.mubr.bf16.mxu1 %v24541_v41 }
0x1204   : > { %11899 = vmatmul.mubr.bf16.gmra.mrb[80].mxu1 %v17457_v14 }
0x1205   : > { %11908 = vmatprep.mubr.bf16.mxu1 %v24541_v41 }
0x120c   : > { %11909 = vmatmul.mubr.bf16.gmra.mrb[84].mxu1 %v17458_v44  ;;  %v607_v44 = vld [vmem:[%s24234_s22 + $0x28] sm:$0xff] }
0x120d   : > { %12192 = vmatprep.mubr.bf16.mxu1 %v24541_v41 }
0x1214   : > { %12193 = vmatmul.mubr.bf16.vlgmr.msra.gmra.mrb[56].mxu1 %v17459_v62 }
0x1215   : > { %12202 = vmatprep.mubr.bf16.mxu1 %v24541_v41 }
0x121c   : > { %12203 = vmatmul.mubr.bf16.gmra.mrb[60].mxu1 %v17460_v25 }
0x121d   : > { %12212 = vmatprep.mubr.bf16.mxu1 %v24541_v41 }
0x1224   : > { %12213 = vmatmul.mubr.bf16.gmra.mrb[64].mxu1 %v17461_v1  ;;  %v12358_v1 = vpop.permute.xlu1 %12357 }
0x1225   : > { %12222 = vmatprep.mubr.bf16.mxu1 %v24541_v41 }
0x122c   : > { %12223 = vmatmul.mubr.bf16.gmra.mrb[68].mxu1 %v17462_v51  ;;  %v608_v51 = vld [vmem:[%s24234_s22 + $0x30] sm:$0xff] }
0x122d   : > { %12232 = vmatprep.mubr.bf16.mxu1 %v24541_v41 }
0x1234   : > { %12233 = vmatmul.mubr.bf16.gmra.mrb[72].mxu1 %v17463_v4 }
0x1235   : > { %12242 = vmatprep.mubr.bf16.mxu1 %v24541_v41 }
0x123c   : > { %12243 = vmatmul.mubr.bf16.gmra.mrb[76].mxu1 %v17464_v20 }
0x123d   : > { %12252 = vmatprep.mubr.bf16.mxu1 %v24541_v41 }
0x1244   : > { %12253 = vmatmul.mubr.bf16.gmra.mrb[80].mxu1 %v17465_v58 }
0x1245   : > { %12262 = vmatprep.mubr.bf16.mxu1 %v24541_v41 }
0x124c   : > { %12263 = vmatmul.mubr.bf16.gmra.mrb[84].mxu1 %v17466_v15 }
0x12e7   : > { %v12194_v42 = vpop.f32.mrb[56].mxu1 }
0x12e8   : > { %v12196_v29 = vpop.f32.mrb[57].mxu1  ;;  %v12385_v57 = vadd.f32 %v12308_v6, %v12194_v42  ;;  %v609_v42 = vld [vmem:[%s24234_s22 + $0x38] sm:$0xff] }
0x12e9   : > { %v12198_v9 = vpop.f32.mrb[58].mxu1  ;;  %v12386_v31 = vadd.f32 %v12308_v6, %v12196_v29 }
0x12ea   : > { %v12200_v59 = vpop.f32.mrb[59].mxu1  ;;  %v12387_v18 = vadd.f32 %v12313_v34, %v12198_v9  ;;  %v12417_v33 = vmul.f32 %v12385_v57, %v602_v61 }
0x12eb   : > { %v12388_v28 = vadd.f32 %v12313_v34, %v12200_v59  ;;  %v12418_v39 = vmul.f32 %v12386_v31, %v603_v27  ;;  %v12363_v59 = vpop.permute.xlu0 %12362 }
0x12ec   : > { %v12419_v47 = vmul.f32 %v12387_v18, %v604_v60 }
0x12ed   : > { %v12420_v2 = vmul.f32 %v12388_v28, %v605_v53 }
0x12ef   : > { %v12204_v52 = vpop.f32.mrb[60].mxu1 }
0x12f0   : > { %v12206_v0 = vpop.f32.mrb[61].mxu1  ;;  %v12389_v54 = vadd.f32 %v12318_v7, %v12204_v52 }
0x12f1   : > { %v12208_v24 = vpop.f32.mrb[62].mxu1  ;;  %v12390_v11 = vadd.f32 %v12318_v7, %v12206_v0 }
0x12f2   : > { %v12210_v50 = vpop.f32.mrb[63].mxu1  ;;  %v12391_v62 = vadd.f32 %v12323_v43, %v12208_v24  ;;  %v12421_v15 = vmul.f32 %v12389_v54, %v606_v23 }
0x12f3   : > { %v12392_v4 = vadd.f32 %v12323_v43, %v12210_v50  ;;  %v12422_v6 = vmul.f32 %v12390_v11, %v607_v44 }
0x12f4   : > { %v12423_v34 = vmul.f32 %v12391_v62, %v608_v51 }
0x12f5   : > { %v12424_v43 = vmul.f32 %v12392_v4, %v609_v42 }
0x12f7   : > { %v24208_v41 = vpop.f32.mrb[64].mxu1 }
0x12f8   : > { %v24210_v19 = vpop.f32.mrb[65].mxu1  ;;  %v12393_v31 = vadd.f32 %v24216_v40, %v24208_v41 }
0x12f9   : > { %v24212_v26 = vpop.f32.mrb[66].mxu1 }
0x12fa   : > { %v24214_v13 = vpop.f32.mrb[67].mxu1 }
0x12fb   : > { %v12396_v41 = vadd.f32 %v24218_v30, %v24214_v13 }
0x12ff   : > { %v24221_v16 = vpop.f32.mrb[68].mxu1 }
0x1300   : > { %v24223_v49 = vpop.f32.mrb[69].mxu1 }
0x1301   : > { %v24227_v37 = vpop.f32.mrb[70].mxu1 }
0x1302   : > { %v24236_v56 = vpop.f32.mrb[71].mxu1 }
0x1307   : > { %v12234_v48 = vpop.f32.mrb[72].mxu1 }
0x1308   : > { %v12401_v32 = vadd.f32 %v12348_v45, %v12234_v48  ;;  %v12236_v35 = vpop.f32.mrb[73].mxu1 }
0x1309   : > { %v12402_v12 = vadd.f32 %v12348_v45, %v12236_v35  ;;  %v12238_v8 = vpop.f32.mrb[74].mxu1  ;;  %v610_v45 = vld [vmem:[%s24234_s22 + $0x40] sm:$0xff]  ;;  %v12368_v35 = vpop.permute.xlu1 %12367 }
0x130a   : > { %v12433_v21 = vadd.f32 %v12417_v33, %v12401_v32  ;;  %v12403_v5 = vadd.f32 %v12353_v17, %v12238_v8  ;;  %v12240_v10 = vpop.f32.mrb[75].mxu1  ;;  %v611_v33 = vld [vmem:[%s24234_s22 + $0x48] sm:$0xff]  ;;  %v12425_v8 = vmul.f32 %v12393_v31, %v610_v45 }
0x130b   : > { %v12434_v46 = vadd.f32 %v12418_v39, %v12402_v12  ;;  %v12404_v36 = vadd.f32 %v12353_v17, %v12240_v10  ;;  %v612_v17 = vld [vmem:[%s24234_s22 + $0x50] sm:$0xff] }
0x130c   : > { %v12449_v63 = vadd.f32 %v12433_v21, %v602_v61  ;;  %v12435_v3 = vadd.f32 %v12419_v47, %v12403_v5  ;;  %v613_v47 = vld [vmem:[%s24234_s22 + $0x58] sm:$0xff]  ;;  %v12373_v21 = vpop.permute.xlu0 %12372 }
0x130d   : > { %v12450_v22 = vadd.f32 %v12434_v46, %v603_v27  ;;  %v12436_v14 = vadd.f32 %v12420_v2, %v12404_v36  ;;  %v12378_v4 = vpop.permute.xlu1 %12377 }
0x130e   : > { %12465 = vst [vmem:[%s24249_s21] sm:$0xff] %v12449_v63  ;;  %v12451_v25 = vadd.f32 %v12435_v3, %v604_v60  ;;  %v12394_v60 = vadd.f32 %v24216_v40, %v24210_v19  ;;  %v12397_v3 = vadd.f32 %v24225_v55, %v24221_v16  ;;  %v12400_v16 = vadd.f32 %v24238_v38, %v24236_v56 }
0x130f   : > { %12466 = vst [vmem:[%s24249_s21 + $0x8] sm:$0xff] %v12450_v22  ;;  %v12452_v20 = vadd.f32 %v12436_v14, %v605_v53  ;;  %v12244_v58 = vpop.f32.mrb[76].mxu1  ;;  %v12395_v53 = vadd.f32 %v24218_v30, %v24212_v26  ;;  %v12428_v30 = vmul.f32 %v12396_v41, %v613_v47  ;;  %v614_v22 = vld [vmem:[%s24234_s22 + $0x60] sm:$0xff]  ;;  %v12398_v14 = vadd.f32 %v24225_v55, %v24223_v49 }
0x1310   : > { %12467 = vst [vmem:[%s24249_s21 + $0x10] sm:$0xff] %v12451_v25  ;;  %v12405_v29 = vadd.f32 %v12358_v1, %v12244_v58  ;;  %v12246_v9 = vpop.f32.mrb[77].mxu1  ;;  %v12426_v5 = vmul.f32 %v12394_v60, %v611_v33  ;;  %v615_v25 = vld [vmem:[%s24234_s22 + $0x68] sm:$0xff] }
0x1311   : > { %12468 = vst [vmem:[%s24249_s21 + $0x18] sm:$0xff] %v12452_v20  ;;  %v12406_v52 = vadd.f32 %v12358_v1, %v12246_v9  ;;  %v12248_v0 = vpop.f32.mrb[78].mxu1  ;;  %v12427_v2 = vmul.f32 %v12395_v53, %v612_v17  ;;  %v12399_v1 = vadd.f32 %v24238_v38, %v24227_v37  ;;  %v616_v20 = vld [vmem:[%s24234_s22 + $0x70] sm:$0xff]  ;;  %v12383_v9 = vpop.permute.xlu0 %12382 }
0x1312   : > { %v12437_v24 = vadd.f32 %v12421_v15, %v12405_v29  ;;  %v12407_v7 = vadd.f32 %v12363_v59, %v12248_v0  ;;  %v12250_v50 = vpop.f32.mrb[79].mxu1  ;;  %v617_v29 = vld [vmem:[%s24234_s22 + $0x78] sm:$0xff] }
0x1313   : > { %v12438_v57 = vadd.f32 %v12422_v6, %v12406_v52  ;;  %v12408_v61 = vadd.f32 %v12363_v59, %v12250_v50  ;;  %v12430_v59 = vmul.f32 %v12398_v14, %v615_v25  ;;  %v12431_v52 = vmul.f32 %v12399_v1, %v616_v20 }
0x1314   : > { %v12453_v27 = vadd.f32 %v12437_v24, %v606_v23  ;;  %v12439_v18 = vadd.f32 %v12423_v34, %v12407_v7  ;;  %v12432_v34 = vmul.f32 %v12400_v16, %v617_v29 }
0x1315   : > { %v12454_v28 = vadd.f32 %v12438_v57, %v607_v44  ;;  %v12440_v48 = vadd.f32 %v12424_v43, %v12408_v61 }
0x1316   : > { %12469 = vst [vmem:[%s24249_s21 + $0x20] sm:$0xff] %v12453_v27  ;;  %v12455_v32 = vadd.f32 %v12439_v18, %v608_v51 }
0x1317   : > { %12470 = vst [vmem:[%s24249_s21 + $0x28] sm:$0xff] %v12454_v28  ;;  %v12456_v39 = vadd.f32 %v12440_v48, %v609_v42  ;;  %v12254_v12 = vpop.f32.mrb[80].mxu1  ;;  %v12429_v42 = vmul.f32 %v12397_v3, %v614_v22 }
0x1318   : > { %12471 = vst [vmem:[%s24249_s21 + $0x30] sm:$0xff] %v12455_v32  ;;  %v12409_v19 = vadd.f32 %v12368_v35, %v12254_v12  ;;  %v12256_v40 = vpop.f32.mrb[81].mxu1 }
0x1319   : > { %12472 = vst [vmem:[%s24249_s21 + $0x38] sm:$0xff] %v12456_v39  ;;  %v12410_v26 = vadd.f32 %v12368_v35, %v12256_v40  ;;  %v12258_v10 = vpop.f32.mrb[82].mxu1 }
0x131a   : > { %v12441_v46 = vadd.f32 %v12425_v8, %v12409_v19  ;;  %v12411_v36 = vadd.f32 %v12373_v21, %v12258_v10  ;;  %v12260_v13 = vpop.f32.mrb[83].mxu1 }
0x131b   : > { %v12442_v54 = vadd.f32 %v12426_v5, %v12410_v26  ;;  %v12412_v63 = vadd.f32 %v12373_v21, %v12260_v13 }
0x131c   : > { %v12457_v23 = vadd.f32 %v12441_v46, %v610_v45  ;;  %v12443_v11 = vadd.f32 %v12427_v2, %v12411_v36 }
0x131d   : > { %v12458_v44 = vadd.f32 %v12442_v54, %v611_v33  ;;  %v12444_v62 = vadd.f32 %v12428_v30, %v12412_v63 }
0x131e   : > { %12473 = vst [vmem:[%s24249_s21 + $0x40] sm:$0xff] %v12457_v23  ;;  %v12459_v51 = vadd.f32 %v12443_v11, %v612_v17 }
0x131f   : > { %12474 = vst [vmem:[%s24249_s21 + $0x48] sm:$0xff] %v12458_v44  ;;  %v12460_v58 = vadd.f32 %v12444_v62, %v613_v47  ;;  %v12264_v15 = vpop.f32.mrb[84].mxu1 }
0x1320   : > { %12475 = vst [vmem:[%s24249_s21 + $0x50] sm:$0xff] %v12459_v51  ;;  %v12413_v49 = vadd.f32 %v12378_v4, %v12264_v15  ;;  %v12266_v55 = vpop.f32.mrb[85].mxu1 }
0x1321   : > { %12476 = vst [vmem:[%s24249_s21 + $0x58] sm:$0xff] %v12460_v58  ;;  %v12414_v37 = vadd.f32 %v12378_v4, %v12266_v55  ;;  %v12268_v6 = vpop.f32.mrb[86].mxu1 }
0x1322   : > { %v12445_v0 = vadd.f32 %v12429_v42, %v12413_v49  ;;  %v12415_v56 = vadd.f32 %v12383_v9, %v12268_v6  ;;  %v12270_v38 = vpop.f32.mrb[87].mxu1 }
0x1323   : > { %v12446_v24 = vadd.f32 %v12430_v59, %v12414_v37  ;;  %v12416_v7 = vadd.f32 %v12383_v9, %v12270_v38 }
0x1324   : > { %v12461_v50 = vadd.f32 %v12445_v0, %v614_v22  ;;  %v12447_v43 = vadd.f32 %v12431_v52, %v12415_v56 }
0x1325   : > { %v12462_v57 = vadd.f32 %v12446_v24, %v615_v25  ;;  %v12448_v61 = vadd.f32 %v12432_v34, %v12416_v7 }
0x1326   : > { %12477 = vst [vmem:[%s24249_s21 + $0x60] sm:$0xff] %v12461_v50  ;;  %v12463_v31 = vadd.f32 %v12447_v43, %v616_v20 }
0x1327   : > { %12478 = vst [vmem:[%s24249_s21 + $0x68] sm:$0xff] %v12462_v57  ;;  %v12464_v27 = vadd.f32 %v12448_v61, %v617_v29 }
0x1328   : > { %12479 = vst [vmem:[%s24249_s21 + $0x70] sm:$0xff] %v12463_v31 }
0x1329   : > { %12480 = vst [vmem:[%s24249_s21 + $0x78] sm:$0xff] %v12464_v27 }
0x132a PF: > { %s27_s24 = sadd.s32 1, %s17752_s24  }
0x132b   : > { %p24_p4 = scmp.ge.s32.totalorder %s27_s24, 4  }
0x132d   :  { %26 = sbr.rel (!%p24_p4) target bundleno = 3 (0x3), region = 153 }

</bundles_post_ra>
